<compile_context>
chip_gen: v6e
topology: v6e:2x2x1
jax: 0.10.0
libtpu: 0.0.40
codegen_flags: <defaults>
</compile_context>

<pallas_src>
import math

import numpy as np
import jax
import jax.numpy as jnp
from jax.experimental import pallas as pl
from jax.experimental.pallas import tpu as pltpu

# ----------------------------- config -------------------------------------
IMG = 32                        # CIFAR image size (Args.image_size)
HW = IMG * IMG                  # 1024 pixels -> lane-dense matmul N dim
CH = 3                          # RGB
HID = 32                        # synthetic eps-model hidden channels (real: 128)
TEMB = 32                       # timestep-embedding dim (synthetic)
TMID = 4 * HID                  # time-MLP hidden width
VIT_HID = 64                    # synthetic ViT width (real: 768)
PATCH = 16                      # ViT patch size
OUT_RES = 224                   # interpolate target (224, 224)
NPATCH = OUT_RES // PATCH       # 14
NPP = NPATCH * NPATCH           # 196 patches per image
PATCH_DIM = CH * PATCH * PATCH  # 768
NUM_CLASSES = 10                # CIFAR-10 head
DIFF_STEPS = 1000               # Args.diffusion_steps
PAD = 64                        # flat-pixel halo for in-kernel 3x3 convs (>=33)
TAPS = tuple((dy, dx) for dy in (-1, 0, 1) for dx in (-1, 0, 1))


# ======================= kernel 1: eps-model + pred_xstart =================
def _eps_px_kernel(coef_ref, ss_ref, x_ref, n_ref, m_ref,
                   w1_ref, b1_ref, w2_ref, b2_ref,
                   px_ref, xt_scr, h_scr):
    f32 = jnp.float32
    bf16 = jnp.bfloat16

    # diffusion coefficients from SMEM (one compiled kernel for all timesteps)
    c_q0 = coef_ref[0]
    c_q1 = coef_ref[1]
    c_r0 = coef_ref[2]
    c_r1 = coef_ref[3]

    # ---- q_sample fused with x_in = 2x - 1, staged into zero-haloed scratch -
    x_t = c_q0 * (x_ref[...] * 2.0 - 1.0) + c_q1 * n_ref[...]        # (CH, HW)
    xt_scr[:, :PAD] = jnp.zeros((CH, PAD), f32)
    xt_scr[:, PAD + HW:] = jnp.zeros((CH, PAD), f32)
    xt_scr[:, PAD:PAD + HW] = x_t

    masks = m_ref[...]                                               # (9, HW) f32

    # ---- conv1 3x3 SAME as ONE K=27 matmul (9 masked halo slabs) ------------
    slabs1 = []
    for ti, (dy, dx) in enumerate(TAPS):
        s = dy * IMG + dx
        slabs1.append(xt_scr[:, PAD + s:PAD + s + HW] * masks[ti:ti + 1, :])
    x27 = jnp.concatenate(slabs1, axis=0).astype(bf16)               # (27, HW)
    h = jnp.dot(w1_ref[...], x27, preferred_element_type=f32) + b1_ref[...]

    # ---- scale-shift conditioning + SiLU (use_scale_shift_norm style) -------
    scale = ss_ref[:HID, :]                                          # (HID, 1)
    shift = ss_ref[HID:, :]
    h = h * (1.0 + scale) + shift
    h = h * jax.nn.sigmoid(h)

    # ---- stage hidden (bf16) into halo-padded scratch for conv2 -------------
    h_scr[:, :PAD] = jnp.zeros((HID, PAD), bf16)
    h_scr[:, PAD + HW:] = jnp.zeros((HID, PAD), bf16)
    h_scr[:, PAD:PAD + HW] = h.astype(bf16)

    # ---- conv2 3x3 SAME as one K = 9*HID = 288 matmul (variance half of
    # ---- learn_sigma already removed by slicing the weight on the host) -----
    masks_bf = masks.astype(bf16)
    slabs2 = []
    for ti, (dy, dx) in enumerate(TAPS):
        s = dy * IMG + dx
        slabs2.append(h_scr[:, PAD + s:PAD + s + HW] * masks_bf[ti:ti + 1, :])
    h288 = jnp.concatenate(slabs2, axis=0)                           # (288, HW)
    eps = jnp.dot(w2_ref[...], h288,
                  preferred_element_type=f32) + b2_ref[...]          # (CH, HW)

    # ---- DDIM (eta=0) pred_xstart, clip_denoised=True ------------------------
    xt_c = xt_scr[:, PAD:PAD + HW]
    px = jnp.clip(c_r0 * xt_c - c_r1 * eps, -1.0, 1.0)
    px_ref[...] = px.astype(px_ref.dtype)


def eps_pred_xstart(prep, coefs, ss, x, noise):
    """x, noise: (B, CH, IMG, IMG) f32. Returns clipped pred_xstart (B, CH, HW) bf16."""
    B = x.shape[0]
    return pl.pallas_call(
        _eps_px_kernel,
        out_shape=jax.ShapeDtypeStruct((B, CH, HW), jnp.bfloat16),
        grid=(B,),
        in_specs=[
            pl.BlockSpec(memory_space=pltpu.MemorySpace.SMEM),            # coefs (4,)
            pl.BlockSpec((None, 2 * HID, 1), lambda b: (b, 0, 0)),        # scale/shift
            pl.BlockSpec((None, CH, HW), lambda b: (b, 0, 0)),            # x
            pl.BlockSpec((None, CH, HW), lambda b: (b, 0, 0)),            # noise
            pl.BlockSpec((9, HW), lambda b: (0, 0)),                      # pad masks
            pl.BlockSpec((HID, 9 * CH), lambda b: (0, 0)),                # conv1 W (K=27)
            pl.BlockSpec((HID, 1), lambda b: (0, 0)),                     # conv1 b
            pl.BlockSpec((CH, 9 * HID), lambda b: (0, 0)),                # conv2 W (K=288)
            pl.BlockSpec((CH, 1), lambda b: (0, 0)),                      # conv2 b
        ],
        out_specs=pl.BlockSpec((None, CH, HW), lambda b: (b, 0, 0)),
        scratch_shapes=[pltpu.VMEM((CH, HW + 2 * PAD), jnp.float32),
                        pltpu.VMEM((HID, HW + 2 * PAD), jnp.bfloat16)],
        compiler_params=pltpu.CompilerParams(
            dimension_semantics=("parallel",),
            vmem_limit_bytes=32 * 1024 * 1024),
    )(coefs, ss, x.reshape(B, CH, HW), noise.reshape(B, CH, HW),
      prep["masks"], prep["w1k"], prep["cb1"], prep["w2k"], prep["cb2"])


# ======================= kernel 2: bicubic resize ===========================
def _resize_kernel(px_ref, whd_ref, wwT_ref, o_ref):
    # swapped contraction order (cheaper): height first on 32-wide data, then width
    mid = jnp.dot(whd_ref[...], px_ref[...],
                  preferred_element_type=jnp.float32)                 # (672, 32)
    out = jnp.dot(mid.astype(jnp.bfloat16), wwT_ref[...],
                  preferred_element_type=jnp.float32)                 # (672, 224)
    o_ref[...] = out.astype(o_ref.dtype)


def resize_bicubic(prep, px):
    B = px.shape[0]
    px_r = px.reshape(B, CH * IMG, IMG)   # free row-major reshape in HBM
    return pl.pallas_call(
        _resize_kernel,
        out_shape=jax.ShapeDtypeStruct((B, CH * OUT_RES, OUT_RES), jnp.bfloat16),
        grid=(B,),
        in_specs=[
            pl.BlockSpec((None, CH * IMG, IMG), lambda b: (b, 0, 0)),
            pl.BlockSpec((CH * OUT_RES, CH * IMG), lambda b: (0, 0)),
            pl.BlockSpec((IMG, OUT_RES), lambda b: (0, 0)),
        ],
        out_specs=pl.BlockSpec((None, CH * OUT_RES, OUT_RES), lambda b: (b, 0, 0)),
        compiler_params=pltpu.CompilerParams(
            dimension_semantics=("parallel",),
            vmem_limit_bytes=32 * 1024 * 1024),
    )(px_r, prep["whd"], prep["wwT"])


# ======================= kernel 3: classifier ===============================
def _classifier_kernel(p_ref, pw_ref, pb_ref, hw_ref, hb_ref, o_ref):
    # patch embed: (VIT_HID, 768) @ (768, 196) -> lane-dense 196 patches
    emb = jnp.dot(pw_ref[...], p_ref[...],
                  preferred_element_type=jnp.float32) + pb_ref[...]   # (64, 196)
    # TODO(synk): HF ViT uses exact erf-GELU; tanh approximation used here.
    emb = 0.5 * emb * (1.0 + jnp.tanh(
        0.7978845608028654 * (emb + 0.044715 * emb * emb * emb)))
    pooled = jnp.sum(emb, axis=1, keepdims=True) * (1.0 / NPP)        # (64, 1)
    o_ref[...] = jnp.dot(hw_ref[...], pooled,
                         preferred_element_type=jnp.float32) + hb_ref[...]


def classify(prep, imgs_rows):
    # TODO(synk): pretrained HF ViT (12 transformer layers) reduced to a
    # synthetic patch-embed + GELU + mean-pool + linear head.
    # imgs_rows: (B, CH*224, 224) bf16; patch regroup stays in XLA on bf16
    # (review fallback), halving the glue HBM traffic vs f32.
    B = imgs_rows.shape[0]
    pt = imgs_rows.reshape(B, CH, NPATCH, PATCH, NPATCH, PATCH)
    pt = pt.transpose(0, 1, 3, 5, 2, 4).reshape(B, PATCH_DIM, NPP)    # bf16
    logits = pl.pallas_call(
        _classifier_kernel,
        out_shape=jax.ShapeDtypeStruct((B, NUM_CLASSES, 1), jnp.float32),
        grid=(B,),
        in_specs=[
            pl.BlockSpec((None, PATCH_DIM, NPP), lambda b: (b, 0, 0)),
            pl.BlockSpec((VIT_HID, PATCH_DIM), lambda b: (0, 0)),
            pl.BlockSpec((VIT_HID, 1), lambda b: (0, 0)),
            pl.BlockSpec((NUM_CLASSES, VIT_HID), lambda b: (0, 0)),
            pl.BlockSpec((NUM_CLASSES, 1), lambda b: (0, 0)),
        ],
        out_specs=pl.BlockSpec((None, NUM_CLASSES, 1), lambda b: (b, 0, 0)),
        compiler_params=pltpu.CompilerParams(
            dimension_semantics=("parallel",),
            vmem_limit_bytes=32 * 1024 * 1024),
    )(pt, prep["pw"], prep["pb"], prep["hw"], prep["hb"])
    return logits.reshape(B, NUM_CLASSES)


# -------------------- diffusion schedule (glue, numpy) ----------------------
def make_schedule(T):
    # cosine schedule (noise_schedule='cosine'); returns a (T, 4) coef table:
    # [sqrt_ac, sqrt_1mac, sqrt_recip_ac, sqrt_recipm1_ac]
    def alpha_bar(t):
        return math.cos((t + 0.008) / 1.008 * math.pi / 2) ** 2
    betas = np.array([min(1.0 - alpha_bar((i + 1) / T) / alpha_bar(i / T), 0.999)
                      for i in range(T)], dtype=np.float64)
    ac = np.cumprod(1.0 - betas)
    table = np.stack([np.sqrt(ac), np.sqrt(1.0 - ac),
                      np.sqrt(1.0 / ac), np.sqrt(1.0 / ac - 1.0)],
                     axis=1).astype(np.float32)
    return jnp.asarray(table)


def timestep_embedding(t, dim):
    half = dim // 2
    freqs = jnp.exp(-math.log(10000.0) *
                    jnp.arange(half, dtype=jnp.float32) / half)
    args = t[:, None].astype(jnp.float32) * freqs[None, :]
    return jnp.concatenate([jnp.cos(args), jnp.sin(args)], axis=-1)


# -------------------- bicubic resize weight matrix (glue) -------------------
def bicubic_weight_matrix(in_size, out_size):
    # PyTorch bicubic, a=-0.75, align_corners=False; antialias is a no-op for
    # upsampling (scale > 1).  Border taps use index clamping with NO weight
    # renormalization, matching torch.nn.functional.interpolate.
    a = -0.75

    def cubic(x):
        x = abs(float(x))
        if x <= 1.0:
            return (a + 2.0) * x ** 3 - (a + 3.0) * x ** 2 + 1.0
        if x < 2.0:
            return a * x ** 3 - 5.0 * a * x ** 2 + 8.0 * a * x - 4.0 * a
        return 0.0

    scale = in_size / out_size
    W = np.zeros((out_size, in_size), dtype=np.float64)
    for i in range(out_size):
        src = (i + 0.5) * scale - 0.5
        f = int(np.floor(src))
        for k in range(-1, 3):
            idx = f + k
            W[i, min(max(idx, 0), in_size - 1)] += cubic(src - idx)
    return W.astype(np.float32)


# -------------------------- synthetic parameters ----------------------------
def init_params(key):
    # TODO(synk): real guided-diffusion UNet / HF ViT checkpoints replaced by
    # deterministic synthetic weights with identical I/O behaviour.
    ks = jax.random.split(key, 6)

    def w(k, shape, fan_in):
        return jax.random.normal(k, shape, jnp.float32) / np.sqrt(float(fan_in))

    return {
        # time-embedding MLP (column-oriented / pre-transposed weights)
        "tw1_t": w(ks[0], (TMID, TEMB), TEMB),
        "tb1": jnp.zeros((TMID, 1), jnp.float32),
        "tw2_t": w(ks[1], (2 * HID, TMID), TMID),
        "tb2": jnp.zeros((2 * HID, 1), jnp.float32),
        # eps-model 3x3 convs (per-tap weights); learn_sigma -> 2*CH outputs
        "cw1": w(ks[2], (9, HID, CH), 9 * CH),
        "cb1": jnp.zeros((HID, 1), jnp.float32),
        "cw2": w(ks[3], (2 * CH, 9 * HID), 9 * HID),
        "cb2": jnp.zeros((2 * CH, 1), jnp.float32),
        # classifier: patch embed + head (pre-transposed)
        "pw_t": w(ks[4], (VIT_HID, PATCH_DIM), PATCH_DIM),
        "pb": jnp.zeros((VIT_HID, 1), jnp.float32),
        "hw_t": w(ks[5], (NUM_CLASSES, VIT_HID), VIT_HID),
        "hb": jnp.zeros((NUM_CLASSES, 1), jnp.float32),
    }


def prepare(params, coef_table):
    """Pre-arrange / pre-cast everything the kernels consume (host side, once)."""
    W = bicubic_weight_matrix(IMG, OUT_RES)                          # (224, 32)

    # zero-pad (SAME) masks for the 9 conv taps, precomputed once on the host
    yy, xx = np.meshgrid(np.arange(IMG), np.arange(IMG), indexing="ij")
    masks = np.zeros((9, HW), np.float32)
    for ti, (dy, dx) in enumerate(TAPS):
        valid = ((yy + dy >= 0) & (yy + dy < IMG) &
                 (xx + dx >= 0) & (xx + dx < IMG))
        masks[ti] = valid.reshape(-1).astype(np.float32)

    # conv1 weight re-packed for the single K=27 matmul (tap-major, ch-minor)
    w1k = jnp.transpose(params["cw1"], (1, 0, 2)).reshape(HID, 9 * CH)

    return {
        "coef_table": coef_table,                                     # (T, 4)
        "masks": jnp.asarray(masks),
        # time-MLP (runs in XLA, hoisted out of kernel 1)
        "tw1": params["tw1_t"].T, "tb1": params["tb1"][:, 0],
        "tw2": params["tw2_t"].T, "tb2": params["tb2"][:, 0],
        # eps-model conv weights (bf16 MXU operands; variance half sliced off)
        "w1k": w1k.astype(jnp.bfloat16), "cb1": params["cb1"],
        "w2k": params["cw2"][:CH].astype(jnp.bfloat16), "cb2": params["cb2"][:CH],
        # bicubic resize weights (swapped order: block-diag Wh, then Ww^T)
        "whd": jnp.asarray(np.kron(np.eye(CH, dtype=np.float32), W)
                           ).astype(jnp.bfloat16),                   # (672, 96)
        "wwT": jnp.asarray(W.T).astype(jnp.bfloat16),                 # (32, 224)
        # classifier
        "pw": params["pw_t"].astype(jnp.bfloat16), "pb": params["pb"],
        "hw": params["hw_t"], "hb": params["hb"],
    }


# ------------------------------- forward -----------------------------------
@jax.jit
def diffusion_model_forward(prep, x, t, noise):
    """x: (B, 3, 32, 32) in [0, 1]; t: traced int32 timestep; noise: randn_like."""
    B = x.shape[0]
    coefs = prep["coef_table"][t]                                     # (4,) f32
    # rescale_timesteps=True: t * 1000 / num_timesteps
    t_batch = jnp.full((B,), t.astype(jnp.float32) * (1000.0 / DIFF_STEPS),
                       jnp.float32)
    temb = timestep_embedding(t_batch, TEMB)
    # time-embedding MLP hoisted out of the per-pixel kernel (tiny, XLA)
    ht = jax.nn.silu(temb @ prep["tw1"] + prep["tb1"])
    ss = (ht @ prep["tw2"] + prep["tb2"])[:, :, None]                 # (B, 2*HID, 1)

    px = eps_pred_xstart(prep, coefs, ss, x, noise)                   # (B, CH, 1024) bf16
    # TODO(synk): save_image side effect (writes PNGs to disk) intentionally skipped.
    imgs = resize_bicubic(prep, px)                                   # (B, 672, 224) bf16
    return classify(prep, imgs)                                       # (B, 10)


# --------------------------------- main -------------------------------------
if __name__ == "__main__":
    key = jax.random.PRNGKey(0)
    kx, kn, kp = jax.random.split(key, 3)

    B = 2                                                     # grid extent >= 2: both
    x = jax.random.uniform(kx, (B, CH, IMG, IMG), jnp.float32)   # v7x cores stay busy
    noise = jax.random.normal(kn, x.shape, jnp.float32)          # randn_like
    t = jnp.array(500, dtype=jnp.int32)                          # traced: no recompile

    params = init_params(kp)
    prep = prepare(params, make_schedule(DIFF_STEPS))

    logits = diffusion_model_forward(prep, x, t, noise)
    logits = jax.block_until_ready(logits)
    assert logits.shape == (B, NUM_CLASSES)
    assert bool(jnp.all(jnp.isfinite(logits)))
    print("KERNEL_OK")
</pallas_src>

<mosaic_0001>
module attributes {stable_mosaic.version = 11 : i64} {
  func.func @_eps_px_kernel(%arg0: i32, %arg1: memref<4xf32, #tpu.memory_space<smem>>, %arg2: memref<1x64x1xf32, #tpu.memory_space<vmem>>, %arg3: memref<1x3x1024xf32, #tpu.memory_space<vmem>>, %arg4: memref<1x3x1024xf32, #tpu.memory_space<vmem>>, %arg5: memref<9x1024xf32, #tpu.memory_space<vmem>>, %arg6: memref<32x27xbf16, #tpu.memory_space<vmem>>, %arg7: memref<32x1xf32, #tpu.memory_space<vmem>>, %arg8: memref<3x288xbf16, #tpu.memory_space<vmem>>, %arg9: memref<3x1xf32, #tpu.memory_space<vmem>>, %arg10: memref<1x3x1024xbf16, #tpu.memory_space<vmem>>, %arg11: memref<3x1152xf32, #tpu.memory_space<vmem>>, %arg12: memref<32x1152xbf16, #tpu.memory_space<vmem>>) attributes {dimension_semantics = [#tpu.dimension_semantics<parallel>], iteration_bounds = array<i64: 2>, scalar_prefetch = 0 : i64, scratch_operands = 2 : i64, tpu.core_type = #tpu.core_type<tc>, window_params = [{transform_indices = @transform_0, window_bounds = array<i64: 4>}, {transform_indices = @transform_1, window_bounds = array<i64: 1, 64, 1>}, {transform_indices = @transform_2, window_bounds = array<i64: 1, 3, 1024>}, {transform_indices = @transform_3, window_bounds = array<i64: 1, 3, 1024>}, {pipeline_mode = #tpu.pipeline_mode<synchronous>, transform_indices = @transform_4, window_bounds = array<i64: 9, 1024>}, {pipeline_mode = #tpu.pipeline_mode<synchronous>, transform_indices = @transform_5, window_bounds = array<i64: 32, 27>}, {pipeline_mode = #tpu.pipeline_mode<synchronous>, transform_indices = @transform_6, window_bounds = array<i64: 32, 1>}, {pipeline_mode = #tpu.pipeline_mode<synchronous>, transform_indices = @transform_7, window_bounds = array<i64: 3, 288>}, {pipeline_mode = #tpu.pipeline_mode<synchronous>, transform_indices = @transform_8, window_bounds = array<i64: 3, 1>}, {transform_indices = @transform_9, window_bounds = array<i64: 1, 3, 1024>}]} {
    %c0 = arith.constant 0 : index
    %0 = memref.load %arg1[%c0] : memref<4xf32, #tpu.memory_space<smem>>
    %c1 = arith.constant 1 : index
    %1 = memref.load %arg1[%c1] : memref<4xf32, #tpu.memory_space<smem>>
    %c2 = arith.constant 2 : index
    %2 = memref.load %arg1[%c2] : memref<4xf32, #tpu.memory_space<smem>>
    %c3 = arith.constant 3 : index
    %3 = memref.load %arg1[%c3] : memref<4xf32, #tpu.memory_space<smem>>
    %c0_0 = arith.constant 0 : index
    %c0_1 = arith.constant 0 : index
    %c0_2 = arith.constant 0 : index
    %4 = vector.load %arg3[%c0_0, %c0_1, %c0_2] : memref<1x3x1024xf32, #tpu.memory_space<vmem>>, vector<1x3x1024xf32>
    %5 = vector.shape_cast %4 : vector<1x3x1024xf32> to vector<3x1024xf32>
    %cst = arith.constant 2.000000e+00 : f32
    %6 = vector.broadcast %cst : f32 to vector<3x1024xf32>
    %7 = arith.mulf %5, %6 : vector<3x1024xf32>
    %cst_3 = arith.constant 1.000000e+00 : f32
    %8 = vector.broadcast %cst_3 : f32 to vector<3x1024xf32>
    %9 = arith.subf %7, %8 : vector<3x1024xf32>
    %10 = vector.broadcast %0 : f32 to vector<3x1024xf32>
    %11 = arith.mulf %10, %9 : vector<3x1024xf32>
    %c0_4 = arith.constant 0 : index
    %c0_5 = arith.constant 0 : index
    %c0_6 = arith.constant 0 : index
    %12 = vector.load %arg4[%c0_4, %c0_5, %c0_6] : memref<1x3x1024xf32, #tpu.memory_space<vmem>>, vector<1x3x1024xf32>
    %13 = vector.shape_cast %12 : vector<1x3x1024xf32> to vector<3x1024xf32>
    %14 = vector.broadcast %1 : f32 to vector<3x1024xf32>
    %15 = arith.mulf %14, %13 : vector<3x1024xf32>
    %16 = arith.addf %11, %15 : vector<3x1024xf32>
    %cst_7 = arith.constant 0.000000e+00 : f32
    %17 = vector.broadcast %cst_7 : f32 to vector<3x64xf32>
    %c0_8 = arith.constant 0 : index
    %c0_9 = arith.constant 0 : index
    %18 = vector.load %arg11[%c0_8, %c0_9] : memref<3x1152xf32, #tpu.memory_space<vmem>>, vector<3x64xf32>
    tpu.vector_store %arg11[%c0_8, %c0_9], %17 {strides = array<i32>} : memref<3x1152xf32, #tpu.memory_space<vmem>>, vector<3x64xf32>,
    %cst_10 = arith.constant 0.000000e+00 : f32
    %19 = vector.broadcast %cst_10 : f32 to vector<3x64xf32>
    %c0_11 = arith.constant 0 : index
    %c1088 = arith.constant 1088 : index
    %20 = vector.load %arg11[%c0_11, %c1088] : memref<3x1152xf32, #tpu.memory_space<vmem>>, vector<3x64xf32>
    tpu.vector_store %arg11[%c0_11, %c1088], %19 {strides = array<i32>} : memref<3x1152xf32, #tpu.memory_space<vmem>>, vector<3x64xf32>,
    %c0_12 = arith.constant 0 : index
    %c64 = arith.constant 64 : index
    %21 = vector.load %arg11[%c0_12, %c64] : memref<3x1152xf32, #tpu.memory_space<vmem>>, vector<3x1024xf32>
    tpu.vector_store %arg11[%c0_12, %c64], %16 {strides = array<i32>} : memref<3x1152xf32, #tpu.memory_space<vmem>>, vector<3x1024xf32>,
    %c0_13 = arith.constant 0 : index
    %c0_14 = arith.constant 0 : index
    %22 = vector.load %arg5[%c0_13, %c0_14] : memref<9x1024xf32, #tpu.memory_space<vmem>>, vector<9x1024xf32>
    %c0_15 = arith.constant 0 : index
    %c31 = arith.constant 31 : index
    %23 = vector.load %arg11[%c0_15, %c31] : memref<3x1152xf32, #tpu.memory_space<vmem>>, vector<3x1024xf32>
    %24 = vector.extract_strided_slice %22 {offsets = [0, 0], sizes = [1, 1024], strides = [1, 1]} : vector<9x1024xf32> to vector<1x1024xf32>
    %25 = vector.broadcast %24 : vector<1x1024xf32> to vector<3x1024xf32>
    %26 = arith.mulf %23, %25 : vector<3x1024xf32>
    %c0_16 = arith.constant 0 : index
    %c32 = arith.constant 32 : index
    %27 = vector.load %arg11[%c0_16, %c32] : memref<3x1152xf32, #tpu.memory_space<vmem>>, vector<3x1024xf32>
    %28 = vector.extract_strided_slice %22 {offsets = [1, 0], sizes = [1, 1024], strides = [1, 1]} : vector<9x1024xf32> to vector<1x1024xf32>
    %29 = vector.broadcast %28 : vector<1x1024xf32> to vector<3x1024xf32>
    %30 = arith.mulf %27, %29 : vector<3x1024xf32>
    %c0_17 = arith.constant 0 : index
    %c33 = arith.constant 33 : index
    %31 = vector.load %arg11[%c0_17, %c33] : memref<3x1152xf32, #tpu.memory_space<vmem>>, vector<3x1024xf32>
    %32 = vector.extract_strided_slice %22 {offsets = [2, 0], sizes = [1, 1024], strides = [1, 1]} : vector<9x1024xf32> to vector<1x1024xf32>
    %33 = vector.broadcast %32 : vector<1x1024xf32> to vector<3x1024xf32>
    %34 = arith.mulf %31, %33 : vector<3x1024xf32>
    %c0_18 = arith.constant 0 : index
    %c63 = arith.constant 63 : index
    %35 = vector.load %arg11[%c0_18, %c63] : memref<3x1152xf32, #tpu.memory_space<vmem>>, vector<3x1024xf32>
    %36 = vector.extract_strided_slice %22 {offsets = [3, 0], sizes = [1, 1024], strides = [1, 1]} : vector<9x1024xf32> to vector<1x1024xf32>
    %37 = vector.broadcast %36 : vector<1x1024xf32> to vector<3x1024xf32>
    %38 = arith.mulf %35, %37 : vector<3x1024xf32>
    %c0_19 = arith.constant 0 : index
    %c64_20 = arith.constant 64 : index
    %39 = vector.load %arg11[%c0_19, %c64_20] : memref<3x1152xf32, #tpu.memory_space<vmem>>, vector<3x1024xf32>
    %40 = vector.extract_strided_slice %22 {offsets = [4, 0], sizes = [1, 1024], strides = [1, 1]} : vector<9x1024xf32> to vector<1x1024xf32>
    %41 = vector.broadcast %40 : vector<1x1024xf32> to vector<3x1024xf32>
    %42 = arith.mulf %39, %41 : vector<3x1024xf32>
    %c0_21 = arith.constant 0 : index
    %c65 = arith.constant 65 : index
    %43 = vector.load %arg11[%c0_21, %c65] : memref<3x1152xf32, #tpu.memory_space<vmem>>, vector<3x1024xf32>
    %44 = vector.extract_strided_slice %22 {offsets = [5, 0], sizes = [1, 1024], strides = [1, 1]} : vector<9x1024xf32> to vector<1x1024xf32>
    %45 = vector.broadcast %44 : vector<1x1024xf32> to vector<3x1024xf32>
    %46 = arith.mulf %43, %45 : vector<3x1024xf32>
    %c0_22 = arith.constant 0 : index
    %c95 = arith.constant 95 : index
    %47 = vector.load %arg11[%c0_22, %c95] : memref<3x1152xf32, #tpu.memory_space<vmem>>, vector<3x1024xf32>
    %48 = vector.extract_strided_slice %22 {offsets = [6, 0], sizes = [1, 1024], strides = [1, 1]} : vector<9x1024xf32> to vector<1x1024xf32>
    %49 = vector.broadcast %48 : vector<1x1024xf32> to vector<3x1024xf32>
    %50 = arith.mulf %47, %49 : vector<3x1024xf32>
    %c0_23 = arith.constant 0 : index
    %c96 = arith.constant 96 : index
    %51 = vector.load %arg11[%c0_23, %c96] : memref<3x1152xf32, #tpu.memory_space<vmem>>, vector<3x1024xf32>
    %52 = vector.extract_strided_slice %22 {offsets = [7, 0], sizes = [1, 1024], strides = [1, 1]} : vector<9x1024xf32> to vector<1x1024xf32>
    %53 = vector.broadcast %52 : vector<1x1024xf32> to vector<3x1024xf32>
    %54 = arith.mulf %51, %53 : vector<3x1024xf32>
    %c0_24 = arith.constant 0 : index
    %c97 = arith.constant 97 : index
    %55 = vector.load %arg11[%c0_24, %c97] : memref<3x1152xf32, #tpu.memory_space<vmem>>, vector<3x1024xf32>
    %56 = vector.extract_strided_slice %22 {offsets = [8, 0], sizes = [1, 1024], strides = [1, 1]} : vector<9x1024xf32> to vector<1x1024xf32>
    %57 = vector.broadcast %56 : vector<1x1024xf32> to vector<3x1024xf32>
    %58 = arith.mulf %55, %57 : vector<3x1024xf32>
    %59 = tpu.concatenate %26, %30, %34, %38, %42, %46, %50, %54, %58 in 0 : vector<3x1024xf32>, vector<3x1024xf32>, vector<3x1024xf32>, vector<3x1024xf32>, vector<3x1024xf32>, vector<3x1024xf32>, vector<3x1024xf32>, vector<3x1024xf32>, vector<3x1024xf32> -> vector<27x1024xf32>
    %60 = arith.truncf %59 : vector<27x1024xf32> to vector<27x1024xbf16>
    %c0_25 = arith.constant 0 : index
    %c0_26 = arith.constant 0 : index
    %61 = vector.load %arg6[%c0_25, %c0_26] : memref<32x27xbf16, #tpu.memory_space<vmem>>, vector<32x27xbf16>
    %cst_27 = arith.constant dense<0.000000e+00> : vector<32x1024xf32>
    %62 = tpu.matmul %61, %60, %cst_27 {dimension_numbers = #tpu.dot_dimension_numbers<[1], [0], [0], [1], [0, 0, 1, 1], [], []>} : vector<32x27xbf16>, vector<27x1024xbf16>, vector<32x1024xf32> -> vector<32x1024xf32>
    %c0_28 = arith.constant 0 : index
    %c0_29 = arith.constant 0 : index
    %63 = vector.load %arg7[%c0_28, %c0_29] : memref<32x1xf32, #tpu.memory_space<vmem>>, vector<32x1xf32>
    %64 = vector.broadcast %63 : vector<32x1xf32> to vector<32x1024xf32>
    %65 = arith.addf %62, %64 : vector<32x1024xf32>
    %c0_30 = arith.constant 0 : index
    %c0_31 = arith.constant 0 : index
    %c0_32 = arith.constant 0 : index
    %66 = vector.load %arg2[%c0_30, %c0_31, %c0_32] : memref<1x64x1xf32, #tpu.memory_space<vmem>>, vector<1x32x1xf32>
    %67 = vector.shape_cast %66 : vector<1x32x1xf32> to vector<32x1xf32>
    %c0_33 = arith.constant 0 : index
    %c32_34 = arith.constant 32 : index
    %c0_35 = arith.constant 0 : index
    %68 = vector.load %arg2[%c0_33, %c32_34, %c0_35] : memref<1x64x1xf32, #tpu.memory_space<vmem>>, vector<1x32x1xf32>
    %69 = vector.shape_cast %68 : vector<1x32x1xf32> to vector<32x1xf32>
    %cst_36 = arith.constant 1.000000e+00 : f32
    %70 = vector.broadcast %cst_36 : f32 to vector<32x1xf32>
    %71 = arith.addf %70, %67 : vector<32x1xf32>
    %72 = vector.broadcast %71 : vector<32x1xf32> to vector<32x1024xf32>
    %73 = arith.mulf %65, %72 : vector<32x1024xf32>
    %74 = vector.broadcast %69 : vector<32x1xf32> to vector<32x1024xf32>
    %75 = arith.addf %73, %74 : vector<32x1024xf32>
    %76 = arith.negf %75 : vector<32x1024xf32>
    %77 = math.exp %76 : vector<32x1024xf32>
    %cst_37 = arith.constant 1.000000e+00 : f32
    %78 = vector.broadcast %cst_37 : f32 to vector<32x1024xf32>
    %79 = arith.addf %78, %77 : vector<32x1024xf32>
    %80 = arith.divf %78, %79 : vector<32x1024xf32>
    %81 = arith.mulf %75, %80 : vector<32x1024xf32>
    %cst_38 = arith.constant 0.000000e+00 : bf16
    %82 = vector.broadcast %cst_38 : bf16 to vector<32x64xbf16>
    %c0_39 = arith.constant 0 : index
    %c0_40 = arith.constant 0 : index
    %83 = vector.load %arg12[%c0_39, %c0_40] : memref<32x1152xbf16, #tpu.memory_space<vmem>>, vector<32x64xbf16>
    tpu.vector_store %arg12[%c0_39, %c0_40], %82 {strides = array<i32>} : memref<32x1152xbf16, #tpu.memory_space<vmem>>, vector<32x64xbf16>,
    %cst_41 = arith.constant 0.000000e+00 : bf16
    %84 = vector.broadcast %cst_41 : bf16 to vector<32x64xbf16>
    %c0_42 = arith.constant 0 : index
    %c1088_43 = arith.constant 1088 : index
    %85 = vector.load %arg12[%c0_42, %c1088_43] : memref<32x1152xbf16, #tpu.memory_space<vmem>>, vector<32x64xbf16>
    tpu.vector_store %arg12[%c0_42, %c1088_43], %84 {strides = array<i32>} : memref<32x1152xbf16, #tpu.memory_space<vmem>>, vector<32x64xbf16>,
    %86 = arith.truncf %81 : vector<32x1024xf32> to vector<32x1024xbf16>
    %c0_44 = arith.constant 0 : index
    %c64_45 = arith.constant 64 : index
    %87 = vector.load %arg12[%c0_44, %c64_45] : memref<32x1152xbf16, #tpu.memory_space<vmem>>, vector<32x1024xbf16>
    tpu.vector_store %arg12[%c0_44, %c64_45], %86 {strides = array<i32>} : memref<32x1152xbf16, #tpu.memory_space<vmem>>, vector<32x1024xbf16>,
    %88 = arith.truncf %22 : vector<9x1024xf32> to vector<9x1024xbf16>
    %c0_46 = arith.constant 0 : index
    %c31_47 = arith.constant 31 : index
    %89 = vector.load %arg12[%c0_46, %c31_47] : memref<32x1152xbf16, #tpu.memory_space<vmem>>, vector<32x1024xbf16>
    %90 = vector.extract_strided_slice %88 {offsets = [0, 0], sizes = [1, 1024], strides = [1, 1]} : vector<9x1024xbf16> to vector<1x1024xbf16>
    %91 = vector.broadcast %90 : vector<1x1024xbf16> to vector<32x1024xbf16>
    %92 = arith.mulf %89, %91 : vector<32x1024xbf16>
    %c0_48 = arith.constant 0 : index
    %c32_49 = arith.constant 32 : index
    %93 = vector.load %arg12[%c0_48, %c32_49] : memref<32x1152xbf16, #tpu.memory_space<vmem>>, vector<32x1024xbf16>
    %94 = vector.extract_strided_slice %88 {offsets = [1, 0], sizes = [1, 1024], strides = [1, 1]} : vector<9x1024xbf16> to vector<1x1024xbf16>
    %95 = vector.broadcast %94 : vector<1x1024xbf16> to vector<32x1024xbf16>
    %96 = arith.mulf %93, %95 : vector<32x1024xbf16>
    %c0_50 = arith.constant 0 : index
    %c33_51 = arith.constant 33 : index
    %97 = vector.load %arg12[%c0_50, %c33_51] : memref<32x1152xbf16, #tpu.memory_space<vmem>>, vector<32x1024xbf16>
    %98 = vector.extract_strided_slice %88 {offsets = [2, 0], sizes = [1, 1024], strides = [1, 1]} : vector<9x1024xbf16> to vector<1x1024xbf16>
    %99 = vector.broadcast %98 : vector<1x1024xbf16> to vector<32x1024xbf16>
    %100 = arith.mulf %97, %99 : vector<32x1024xbf16>
    %c0_52 = arith.constant 0 : index
    %c63_53 = arith.constant 63 : index
    %101 = vector.load %arg12[%c0_52, %c63_53] : memref<32x1152xbf16, #tpu.memory_space<vmem>>, vector<32x1024xbf16>
    %102 = vector.extract_strided_slice %88 {offsets = [3, 0], sizes = [1, 1024], strides = [1, 1]} : vector<9x1024xbf16> to vector<1x1024xbf16>
    %103 = vector.broadcast %102 : vector<1x1024xbf16> to vector<32x1024xbf16>
    %104 = arith.mulf %101, %103 : vector<32x1024xbf16>
    %c0_54 = arith.constant 0 : index
    %c64_55 = arith.constant 64 : index
    %105 = vector.load %arg12[%c0_54, %c64_55] : memref<32x1152xbf16, #tpu.memory_space<vmem>>, vector<32x1024xbf16>
    %106 = vector.extract_strided_slice %88 {offsets = [4, 0], sizes = [1, 1024], strides = [1, 1]} : vector<9x1024xbf16> to vector<1x1024xbf16>
    %107 = vector.broadcast %106 : vector<1x1024xbf16> to vector<32x1024xbf16>
    %108 = arith.mulf %105, %107 : vector<32x1024xbf16>
    %c0_56 = arith.constant 0 : index
    %c65_57 = arith.constant 65 : index
    %109 = vector.load %arg12[%c0_56, %c65_57] : memref<32x1152xbf16, #tpu.memory_space<vmem>>, vector<32x1024xbf16>
    %110 = vector.extract_strided_slice %88 {offsets = [5, 0], sizes = [1, 1024], strides = [1, 1]} : vector<9x1024xbf16> to vector<1x1024xbf16>
    %111 = vector.broadcast %110 : vector<1x1024xbf16> to vector<32x1024xbf16>
    %112 = arith.mulf %109, %111 : vector<32x1024xbf16>
    %c0_58 = arith.constant 0 : index
    %c95_59 = arith.constant 95 : index
    %113 = vector.load %arg12[%c0_58, %c95_59] : memref<32x1152xbf16, #tpu.memory_space<vmem>>, vector<32x1024xbf16>
    %114 = vector.extract_strided_slice %88 {offsets = [6, 0], sizes = [1, 1024], strides = [1, 1]} : vector<9x1024xbf16> to vector<1x1024xbf16>
    %115 = vector.broadcast %114 : vector<1x1024xbf16> to vector<32x1024xbf16>
    %116 = arith.mulf %113, %115 : vector<32x1024xbf16>
    %c0_60 = arith.constant 0 : index
    %c96_61 = arith.constant 96 : index
    %117 = vector.load %arg12[%c0_60, %c96_61] : memref<32x1152xbf16, #tpu.memory_space<vmem>>, vector<32x1024xbf16>
    %118 = vector.extract_strided_slice %88 {offsets = [7, 0], sizes = [1, 1024], strides = [1, 1]} : vector<9x1024xbf16> to vector<1x1024xbf16>
    %119 = vector.broadcast %118 : vector<1x1024xbf16> to vector<32x1024xbf16>
    %120 = arith.mulf %117, %119 : vector<32x1024xbf16>
    %c0_62 = arith.constant 0 : index
    %c97_63 = arith.constant 97 : index
    %121 = vector.load %arg12[%c0_62, %c97_63] : memref<32x1152xbf16, #tpu.memory_space<vmem>>, vector<32x1024xbf16>
    %122 = vector.extract_strided_slice %88 {offsets = [8, 0], sizes = [1, 1024], strides = [1, 1]} : vector<9x1024xbf16> to vector<1x1024xbf16>
    %123 = vector.broadcast %122 : vector<1x1024xbf16> to vector<32x1024xbf16>
    %124 = arith.mulf %121, %123 : vector<32x1024xbf16>
    %125 = tpu.concatenate %92, %96, %100, %104, %108, %112, %116, %120, %124 in 0 : vector<32x1024xbf16>, vector<32x1024xbf16>, vector<32x1024xbf16>, vector<32x1024xbf16>, vector<32x1024xbf16>, vector<32x1024xbf16>, vector<32x1024xbf16>, vector<32x1024xbf16>, vector<32x1024xbf16> -> vector<288x1024xbf16>
    %c0_64 = arith.constant 0 : index
    %c0_65 = arith.constant 0 : index
    %126 = vector.load %arg8[%c0_64, %c0_65] : memref<3x288xbf16, #tpu.memory_space<vmem>>, vector<3x288xbf16>
    %cst_66 = arith.constant dense<0.000000e+00> : vector<3x1024xf32>
    %127 = tpu.matmul %126, %125, %cst_66 {dimension_numbers = #tpu.dot_dimension_numbers<[1], [0], [0], [1], [0, 0, 1, 1], [], []>} : vector<3x288xbf16>, vector<288x1024xbf16>, vector<3x1024xf32> -> vector<3x1024xf32>
    %c0_67 = arith.constant 0 : index
    %c0_68 = arith.constant 0 : index
    %128 = vector.load %arg9[%c0_67, %c0_68] : memref<3x1xf32, #tpu.memory_space<vmem>>, vector<3x1xf32>
    %129 = vector.broadcast %128 : vector<3x1xf32> to vector<3x1024xf32>
    %130 = arith.addf %127, %129 : vector<3x1024xf32>
    %c0_69 = arith.constant 0 : index
    %c64_70 = arith.constant 64 : index
    %131 = vector.load %arg11[%c0_69, %c64_70] : memref<3x1152xf32, #tpu.memory_space<vmem>>, vector<3x1024xf32>
    %132 = vector.broadcast %2 : f32 to vector<3x1024xf32>
    %133 = arith.mulf %132, %131 : vector<3x1024xf32>
    %134 = vector.broadcast %3 : f32 to vector<3x1024xf32>
    %135 = arith.mulf %134, %130 : vector<3x1024xf32>
    %136 = arith.subf %133, %135 : vector<3x1024xf32>
    %cst_71 = arith.constant -1.000000e+00 : f32
    %cst_72 = arith.constant 1.000000e+00 : f32
    %137 = vector.broadcast %cst_71 : f32 to vector<3x1024xf32>
    %138 = arith.maximumf %137, %136 : vector<3x1024xf32>
    %139 = vector.broadcast %cst_72 : f32 to vector<3x1024xf32>
    %140 = arith.minimumf %139, %138 : vector<3x1024xf32>
    %141 = arith.truncf %140 : vector<3x1024xf32> to vector<3x1024xbf16>
    %c0_73 = arith.constant 0 : index
    %c0_74 = arith.constant 0 : index
    %c0_75 = arith.constant 0 : index
    %142 = vector.load %arg10[%c0_73, %c0_74, %c0_75] : memref<1x3x1024xbf16, #tpu.memory_space<vmem>>, vector<1x3x1024xbf16>
    %143 = vector.shape_cast %142 : vector<1x3x1024xbf16> to vector<3x1024xbf16>
    %144 = vector.shape_cast %141 : vector<3x1024xbf16> to vector<1x3x1024xbf16>
    tpu.vector_store %arg10[%c0_73, %c0_74, %c0_75], %144 {strides = array<i32>} : memref<1x3x1024xbf16, #tpu.memory_space<vmem>>, vector<1x3x1024xbf16>,
    return
  }
  func.func @transform_0(%arg0: i32) -> i32 {
    %c0_i32 = arith.constant 0 : i32
    %c0_i32_0 = arith.constant 0 : i32
    return %c0_i32 : i32
  }
  func.func @transform_1(%arg0: i32) -> (i32, i32, i32) {
    %c0_i32 = arith.constant 0 : i32
    %c0_i32_0 = arith.constant 0 : i32
    %c0_i32_1 = arith.constant 0 : i32
    return %arg0, %c0_i32, %c0_i32_0 : i32, i32, i32
  }
  func.func @transform_2(%arg0: i32) -> (i32, i32, i32) {
    %c0_i32 = arith.constant 0 : i32
    %c0_i32_0 = arith.constant 0 : i32
    %c0_i32_1 = arith.constant 0 : i32
    return %arg0, %c0_i32, %c0_i32_0 : i32, i32, i32
  }
  func.func @transform_3(%arg0: i32) -> (i32, i32, i32) {
    %c0_i32 = arith.constant 0 : i32
    %c0_i32_0 = arith.constant 0 : i32
    %c0_i32_1 = arith.constant 0 : i32
    return %arg0, %c0_i32, %c0_i32_0 : i32, i32, i32
  }
  func.func @transform_4(%arg0: i32) -> (i32, i32) {
    %c0_i32 = arith.constant 0 : i32
    %c0_i32_0 = arith.constant 0 : i32
    %c0_i32_1 = arith.constant 0 : i32
    return %c0_i32, %c0_i32_0 : i32, i32
  }
  func.func @transform_5(%arg0: i32) -> (i32, i32) {
    %c0_i32 = arith.constant 0 : i32
    %c0_i32_0 = arith.constant 0 : i32
    %c0_i32_1 = arith.constant 0 : i32
    return %c0_i32, %c0_i32_0 : i32, i32
  }
  func.func @transform_6(%arg0: i32) -> (i32, i32) {
    %c0_i32 = arith.constant 0 : i32
    %c0_i32_0 = arith.constant 0 : i32
    %c0_i32_1 = arith.constant 0 : i32
    return %c0_i32, %c0_i32_0 : i32, i32
  }
  func.func @transform_7(%arg0: i32) -> (i32, i32) {
    %c0_i32 = arith.constant 0 : i32
    %c0_i32_0 = arith.constant 0 : i32
    %c0_i32_1 = arith.constant 0 : i32
    return %c0_i32, %c0_i32_0 : i32, i32
  }
  func.func @transform_8(%arg0: i32) -> (i32, i32) {
    %c0_i32 = arith.constant 0 : i32
    %c0_i32_0 = arith.constant 0 : i32
    %c0_i32_1 = arith.constant 0 : i32
    return %c0_i32, %c0_i32_0 : i32, i32
  }
  func.func @transform_9(%arg0: i32) -> (i32, i32, i32) {
    %c0_i32 = arith.constant 0 : i32
    %c0_i32_0 = arith.constant 0 : i32
    %c0_i32_1 = arith.constant 0 : i32
    return %arg0, %c0_i32, %c0_i32_0 : i32, i32, i32
  }
}

module attributes {stable_mosaic.version = 11 : i64} {
  func.func @_resize_kernel(%arg0: i32, %arg1: memref<1x96x32xbf16, #tpu.memory_space<vmem>>, %arg2: memref<672x96xbf16, #tpu.memory_space<vmem>>, %arg3: memref<32x224xbf16, #tpu.memory_space<vmem>>, %arg4: memref<1x672x224xbf16, #tpu.memory_space<vmem>>) attributes {dimension_semantics = [#tpu.dimension_semantics<parallel>], iteration_bounds = array<i64: 2>, scalar_prefetch = 0 : i64, scratch_operands = 0 : i64, tpu.core_type = #tpu.core_type<tc>, window_params = [{transform_indices = @transform_0, window_bounds = array<i64: 1, 96, 32>}, {pipeline_mode = #tpu.pipeline_mode<synchronous>, transform_indices = @transform_1, window_bounds = array<i64: 672, 96>}, {pipeline_mode = #tpu.pipeline_mode<synchronous>, transform_indices = @transform_2, window_bounds = array<i64: 32, 224>}, {transform_indices = @transform_3, window_bounds = array<i64: 1, 672, 224>}]} {
    %c0 = arith.constant 0 : index
    %c0_0 = arith.constant 0 : index
    %0 = vector.load %arg2[%c0, %c0_0] : memref<672x96xbf16, #tpu.memory_space<vmem>>, vector<672x96xbf16>
    %c0_1 = arith.constant 0 : index
    %c0_2 = arith.constant 0 : index
    %c0_3 = arith.constant 0 : index
    %1 = vector.load %arg1[%c0_1, %c0_2, %c0_3] : memref<1x96x32xbf16, #tpu.memory_space<vmem>>, vector<1x96x32xbf16>
    %2 = vector.shape_cast %1 : vector<1x96x32xbf16> to vector<96x32xbf16>
    %cst = arith.constant dense<0.000000e+00> : vector<672x32xf32>
    %3 = tpu.matmul %0, %2, %cst {dimension_numbers = #tpu.dot_dimension_numbers<[1], [0], [0], [1], [0, 0, 1, 1], [], []>} : vector<672x96xbf16>, vector<96x32xbf16>, vector<672x32xf32> -> vector<672x32xf32>
    %4 = arith.truncf %3 : vector<672x32xf32> to vector<672x32xbf16>
    %c0_4 = arith.constant 0 : index
    %c0_5 = arith.constant 0 : index
    %5 = vector.load %arg3[%c0_4, %c0_5] : memref<32x224xbf16, #tpu.memory_space<vmem>>, vector<32x224xbf16>
    %cst_6 = arith.constant dense<0.000000e+00> : vector<672x224xf32>
    %6 = tpu.matmul %4, %5, %cst_6 {dimension_numbers = #tpu.dot_dimension_numbers<[1], [0], [0], [1], [0, 0, 1, 1], [], []>} : vector<672x32xbf16>, vector<32x224xbf16>, vector<672x224xf32> -> vector<672x224xf32>
    %7 = arith.truncf %6 : vector<672x224xf32> to vector<672x224xbf16>
    %c0_7 = arith.constant 0 : index
    %c0_8 = arith.constant 0 : index
    %c0_9 = arith.constant 0 : index
    %8 = vector.load %arg4[%c0_7, %c0_8, %c0_9] : memref<1x672x224xbf16, #tpu.memory_space<vmem>>, vector<1x672x224xbf16>
    %9 = vector.shape_cast %8 : vector<1x672x224xbf16> to vector<672x224xbf16>
    %10 = vector.shape_cast %7 : vector<672x224xbf16> to vector<1x672x224xbf16>
    tpu.vector_store %arg4[%c0_7, %c0_8, %c0_9], %10 {strides = array<i32>} : memref<1x672x224xbf16, #tpu.memory_space<vmem>>, vector<1x672x224xbf16>,
    return
  }
  func.func @transform_0(%arg0: i32) -> (i32, i32, i32) {
    %c0_i32 = arith.constant 0 : i32
    %c0_i32_0 = arith.constant 0 : i32
    %c0_i32_1 = arith.constant 0 : i32
    return %arg0, %c0_i32, %c0_i32_0 : i32, i32, i32
  }
  func.func @transform_1(%arg0: i32) -> (i32, i32) {
    %c0_i32 = arith.constant 0 : i32
    %c0_i32_0 = arith.constant 0 : i32
    %c0_i32_1 = arith.constant 0 : i32
    return %c0_i32, %c0_i32_0 : i32, i32
  }
  func.func @transform_2(%arg0: i32) -> (i32, i32) {
    %c0_i32 = arith.constant 0 : i32
    %c0_i32_0 = arith.constant 0 : i32
    %c0_i32_1 = arith.constant 0 : i32
    return %c0_i32, %c0_i32_0 : i32, i32
  }
  func.func @transform_3(%arg0: i32) -> (i32, i32, i32) {
    %c0_i32 = arith.constant 0 : i32
    %c0_i32_0 = arith.constant 0 : i32
    %c0_i32_1 = arith.constant 0 : i32
    return %arg0, %c0_i32, %c0_i32_0 : i32, i32, i32
  }
}

module attributes {stable_mosaic.version = 11 : i64} {
  func.func @_classifier_kernel(%arg0: i32, %arg1: memref<1x768x196xbf16, #tpu.memory_space<vmem>>, %arg2: memref<64x768xbf16, #tpu.memory_space<vmem>>, %arg3: memref<64x1xf32, #tpu.memory_space<vmem>>, %arg4: memref<10x64xf32, #tpu.memory_space<vmem>>, %arg5: memref<10x1xf32, #tpu.memory_space<vmem>>, %arg6: memref<1x10x1xf32, #tpu.memory_space<vmem>>) attributes {dimension_semantics = [#tpu.dimension_semantics<parallel>], iteration_bounds = array<i64: 2>, scalar_prefetch = 0 : i64, scratch_operands = 0 : i64, tpu.core_type = #tpu.core_type<tc>, window_params = [{transform_indices = @transform_0, window_bounds = array<i64: 1, 768, 196>}, {pipeline_mode = #tpu.pipeline_mode<synchronous>, transform_indices = @transform_1, window_bounds = array<i64: 64, 768>}, {pipeline_mode = #tpu.pipeline_mode<synchronous>, transform_indices = @transform_2, window_bounds = array<i64: 64, 1>}, {pipeline_mode = #tpu.pipeline_mode<synchronous>, transform_indices = @transform_3, window_bounds = array<i64: 10, 64>}, {pipeline_mode = #tpu.pipeline_mode<synchronous>, transform_indices = @transform_4, window_bounds = array<i64: 10, 1>}, {transform_indices = @transform_5, window_bounds = array<i64: 1, 10, 1>}]} {
    %c0 = arith.constant 0 : index
    %c0_0 = arith.constant 0 : index
    %0 = vector.load %arg2[%c0, %c0_0] : memref<64x768xbf16, #tpu.memory_space<vmem>>, vector<64x768xbf16>
    %c0_1 = arith.constant 0 : index
    %c0_2 = arith.constant 0 : index
    %c0_3 = arith.constant 0 : index
    %1 = vector.load %arg1[%c0_1, %c0_2, %c0_3] : memref<1x768x196xbf16, #tpu.memory_space<vmem>>, vector<1x768x196xbf16>
    %2 = vector.shape_cast %1 : vector<1x768x196xbf16> to vector<768x196xbf16>
    %cst = arith.constant dense<0.000000e+00> : vector<64x196xf32>
    %3 = tpu.matmul %0, %2, %cst {dimension_numbers = #tpu.dot_dimension_numbers<[1], [0], [0], [1], [0, 0, 1, 1], [], []>} : vector<64x768xbf16>, vector<768x196xbf16>, vector<64x196xf32> -> vector<64x196xf32>
    %c0_4 = arith.constant 0 : index
    %c0_5 = arith.constant 0 : index
    %4 = vector.load %arg3[%c0_4, %c0_5] : memref<64x1xf32, #tpu.memory_space<vmem>>, vector<64x1xf32>
    %5 = vector.broadcast %4 : vector<64x1xf32> to vector<64x196xf32>
    %6 = arith.addf %3, %5 : vector<64x196xf32>
    %cst_6 = arith.constant 5.000000e-01 : f32
    %7 = vector.broadcast %cst_6 : f32 to vector<64x196xf32>
    %8 = arith.mulf %7, %6 : vector<64x196xf32>
    %cst_7 = arith.constant 4.471500e-02 : f32
    %9 = vector.broadcast %cst_7 : f32 to vector<64x196xf32>
    %10 = arith.mulf %9, %6 : vector<64x196xf32>
    %11 = arith.mulf %10, %6 : vector<64x196xf32>
    %12 = arith.mulf %11, %6 : vector<64x196xf32>
    %13 = arith.addf %6, %12 : vector<64x196xf32>
    %cst_8 = arith.constant 0.797884583 : f32
    %14 = vector.broadcast %cst_8 : f32 to vector<64x196xf32>
    %15 = arith.mulf %14, %13 : vector<64x196xf32>
    %16 = math.tanh %15 : vector<64x196xf32>
    %cst_9 = arith.constant 1.000000e+00 : f32
    %17 = vector.broadcast %cst_9 : f32 to vector<64x196xf32>
    %18 = arith.addf %17, %16 : vector<64x196xf32>
    %19 = arith.mulf %8, %18 : vector<64x196xf32>
    %cst_10 = arith.constant dense<0.000000e+00> : vector<64xf32>
    %20 = vector.multi_reduction <add>, %19, %cst_10 [1] : vector<64x196xf32> to vector<64xf32>
    %21 = vector.shape_cast %20 : vector<64xf32> to vector<64x1xf32>
    %cst_11 = arith.constant 0.00510204071 : f32
    %22 = vector.broadcast %cst_11 : f32 to vector<64x1xf32>
    %23 = arith.mulf %21, %22 : vector<64x1xf32>
    %c0_12 = arith.constant 0 : index
    %c0_13 = arith.constant 0 : index
    %24 = vector.load %arg4[%c0_12, %c0_13] : memref<10x64xf32, #tpu.memory_space<vmem>>, vector<10x64xf32>
    %cst_14 = arith.constant dense<0.000000e+00> : vector<10x1xf32>
    %25 = tpu.matmul %24, %23, %cst_14 {dimension_numbers = #tpu.dot_dimension_numbers<[1], [0], [0], [1], [0, 0, 1, 1], [], []>} : vector<10x64xf32>, vector<64x1xf32>, vector<10x1xf32> -> vector<10x1xf32>
    %c0_15 = arith.constant 0 : index
    %c0_16 = arith.constant 0 : index
    %26 = vector.load %arg5[%c0_15, %c0_16] : memref<10x1xf32, #tpu.memory_space<vmem>>, vector<10x1xf32>
    %27 = arith.addf %25, %26 : vector<10x1xf32>
    %c0_17 = arith.constant 0 : index
    %c0_18 = arith.constant 0 : index
    %c0_19 = arith.constant 0 : index
    %28 = vector.load %arg6[%c0_17, %c0_18, %c0_19] : memref<1x10x1xf32, #tpu.memory_space<vmem>>, vector<1x10x1xf32>
    %29 = vector.shape_cast %28 : vector<1x10x1xf32> to vector<10x1xf32>
    %30 = vector.shape_cast %27 : vector<10x1xf32> to vector<1x10x1xf32>
    tpu.vector_store %arg6[%c0_17, %c0_18, %c0_19], %30 {strides = array<i32>} : memref<1x10x1xf32, #tpu.memory_space<vmem>>, vector<1x10x1xf32>,
    return
  }
  func.func @transform_0(%arg0: i32) -> (i32, i32, i32) {
    %c0_i32 = arith.constant 0 : i32
    %c0_i32_0 = arith.constant 0 : i32
    %c0_i32_1 = arith.constant 0 : i32
    return %arg0, %c0_i32, %c0_i32_0 : i32, i32, i32
  }
  func.func @transform_1(%arg0: i32) -> (i32, i32) {
    %c0_i32 = arith.constant 0 : i32
    %c0_i32_0 = arith.constant 0 : i32
    %c0_i32_1 = arith.constant 0 : i32
    return %c0_i32, %c0_i32_0 : i32, i32
  }
  func.func @transform_2(%arg0: i32) -> (i32, i32) {
    %c0_i32 = arith.constant 0 : i32
    %c0_i32_0 = arith.constant 0 : i32
    %c0_i32_1 = arith.constant 0 : i32
    return %c0_i32, %c0_i32_0 : i32, i32
  }
  func.func @transform_3(%arg0: i32) -> (i32, i32) {
    %c0_i32 = arith.constant 0 : i32
    %c0_i32_0 = arith.constant 0 : i32
    %c0_i32_1 = arith.constant 0 : i32
    return %c0_i32, %c0_i32_0 : i32, i32
  }
  func.func @transform_4(%arg0: i32) -> (i32, i32) {
    %c0_i32 = arith.constant 0 : i32
    %c0_i32_0 = arith.constant 0 : i32
    %c0_i32_1 = arith.constant 0 : i32
    return %c0_i32, %c0_i32_0 : i32, i32
  }
  func.func @transform_5(%arg0: i32) -> (i32, i32, i32) {
    %c0_i32 = arith.constant 0 : i32
    %c0_i32_0 = arith.constant 0 : i32
    %c0_i32_1 = arith.constant 0 : i32
    return %arg0, %c0_i32, %c0_i32_0 : i32, i32, i32
  }
}

</mosaic_0001>

<bundles_post_ra>
// kernel: diffusion_model_forward.4
= control target key start
LH: loop header
LB: loop body
LE: loop exit
PB: predicated region body
PF: predicated region fallthrough
CT: control target
= control target key end

     0   :  { %8 = vsyncpa [#allocation3], 0  ;;  %s2932_s12 = smov 0   ;;  %s3600_s0 = inlined_call_operand.vmem [shape: bf16[2,96,32], index: 0, kind: input, shape index: {}]   ;;  %s3601_s1 = inlined_call_operand.vmem [shape: bf16[672,96], index: 1, kind: input, shape index: {}]   ;;  %s3602_s2 = inlined_call_operand.hbm [shape: bf16[32,224], index: 2, kind: input, shape index: {}]   ;;  %s3603_s3 = inlined_call_operand.vmem [shape: bf16[2,672,224], index: 3, kind: output, shape index: {}]  }
   0x1 LB: > { %s2329_s13 = sadd.s32 4294967295, %s2906_s12   ;;  %p2331_p0 = scmp.ge.s32.totalorder %s2906_s12, 1  ;;  %s2906_s12 = sphi %s2932_s12, %s14_s12  }
   0x2   : > { %p113_p1 = scmp.lt.s32.totalorder %s2906_s12, 3  ;;  %s2908_s14 = smov [#allocation2]  }
   0x3   : > { %s128_s15 = sshll.u32 %s2908_s14, 4  ;;  %p2802_p3 = scmp.eq.s32.totalorder %s2329_s13, 0  ;;  %s129_s15 = int_to_ptr.vmem [resolvable:$true] %s128_s15 }
   0x4   : > { %p2940_p2 = pnand %p2331_p0, %p113_p1  ;;  %s2881_s17 = scalar_lea.vmem %s129_s15, 512 }
   0x5   : > { %p2882_p7 = scmp.ne.s32.totalorder %s129_s15, %s2881_s17  ;;  %p2889_p10 = scmp.lt.s32.totalorder %s129_s15, %s129_s15 }
   0x6   : > { %p2798_p4 = pneg %p2940_p2  ;;  %p2890_p11 = scmp.lt.s32.totalorder %s2881_s17, %s2881_s17 }
   0x8   : > { %p2799_p5 = pnand %p2802_p3, %p2798_p4  ;;  %p2891_p12 = por %p2890_p11, %p2889_p10 }
   0xa   : > { %p2872_p6 = pneg %p2799_p5 }
   0xc   : > { %p2884_p8 = pnand %p2882_p7, %p2872_p6 }
   0xe   : > { %p2885_p9 = pneg %p2884_p8 }
  0x10   : > { %p2892_p13 = pnand %p2891_p12, %p2885_p9 }
  0x12   : > { %2895 = shalt.err (!%p2892_p13)
}
  0x13   : > { %s2909_s18 = smov 128   ;;  %s2910_s19 = smov 8  }
  0x14   : > { %2801 = dma.hbm_to_vmem [thread:$0]  (!%p2799_p5), %s3602_s2, 512, %s129_s15, [#allocation3], %s2909_s18, %s2909_s18, %s2910_s19  }
  0x15   : > { %152 = sbr.rel (%p2940_p2) target bundleno = 749 (0x2ed), region = 32 }
  0x1a   : > { %2901 = dma.done.wait (%p2802_p3), [#allocation3], 512  }
  0x1b   : > { %2903 = vsyncadd (%p2802_p3), [#allocation3], 4294966784  ;;  %p176_p0 = scmp.lt.s32.totalorder %s2329_s13, 1  ;;  %vm529_vm0 = vcmask 785408   ;;  %v2822_v3 = vld [vmem:[%s3601_s1] sm:$0xff]   ;;  %v2823_v7 = vld [vmem:[%s3601_s1 + $0x8] sm:$0xff]  }
  0x1c   : > { %2704 = vmatprep.mubr.msk.bf16.mxu0 %vm529_vm0, %v2822_v3  ;;  %v2824_v8 = vld [vmem:[%s3601_s1 + $0x10] sm:$0xff]   ;;  %v2825_v9 = vld [vmem:[%s3601_s1 + $0x18] sm:$0xff]   ;;  %v2826_v10 = vld [vmem:[%s3601_s1 + $0x20] sm:$0xff]   ;;  %v2911_v31 = vmov 0   ;;  %vm1091_vm1 = vcmask 261120   ;;  %vm2175_vm2 = vcmask 1043456  }
  0x1d   : > { %s3608_s13 = smov (!%p176_p0, %s2329_s13), 1  ;;  %v2827_v11 = vld [vmem:[%s3601_s1 + $0x28] sm:$0xff]   ;;  %v2828_v12 = vld [vmem:[%s3601_s1 + $0x30] sm:$0xff]   ;;  %v2829_v13 = vld [vmem:[%s3601_s1 + $0x38] sm:$0xff]   ;;  %1340 = vmatprep.mubr.bf16.mxu1 %v2911_v31  ;;  %vm2176_vm3 = vcmask 785412  }
  0x1e   : > { %s2792_s22 = smul.u32 48, %s3608_s13  ;;  %v2830_v14 = vld [vmem:[%s3601_s1 + $0x40] sm:$0xff]   ;;  %v2831_v15 = vld [vmem:[%s3601_s1 + $0x48] sm:$0xff]   ;;  %v2832_v16 = vld [vmem:[%s3601_s1 + $0x50] sm:$0xff]  }
  0x1f   : > { %v2833_v17 = vld [vmem:[%s3601_s1 + $0x58] sm:$0xff]   ;;  %v2834_v18 = vld [vmem:[%s3601_s1 + $0x60] sm:$0xff]   ;;  %v2835_v19 = vld [vmem:[%s3601_s1 + $0x68] sm:$0xff]   ;;  %s2793_s8 = smul.u32 672, %s3608_s13 }
  0x20   : > { %s180_s25 = scalar_lea.vmem %s3600_s0, %s2792_s22  ;;  %v2836_v20 = vld [vmem:[%s3601_s1 + $0x70] sm:$0xff]   ;;  %v2837_v21 = vld [vmem:[%s3601_s1 + $0x78] sm:$0xff]   ;;  %v2838_v22 = vld [vmem:[%s3601_s1 + $0x80] sm:$0xff]  }
  0x21   : > { %v2816_v0 = vld [vmem:[%s180_s25 + $0x28] sm:$0xff]   ;;  %v2817_v1 = vld [vmem:[%s180_s25 + $0x20] sm:$0xff]   ;;  %v2818_v2 = vld [vmem:[%s180_s25 + $0x18] sm:$0xff]   ;;  %s3284_s11 = scalar_lea.vmem %s3603_s3, %s2793_s8 }
  0x22   : > { %2692 = vmatprep.subr.bf16.mxu0 %v2816_v0  ;;  %v2819_v4 = vld [vmem:[%s180_s25 + $0x10] sm:$0xff]   ;;  %v2820_v5 = vld [vmem:[%s180_s25 + $0x8] sm:$0xff]   ;;  %v2821_v6 = vld [vmem:[%s180_s25] sm:$0xff]  }
  0x23   : > { %2693 = vmatpush3.bf16.msra.mxu0 %v2816_v0  ;;  %v2839_v23 = vld [vmem:[%s3601_s1 + $0x88] sm:$0xff]   ;;  %v2840_v24 = vld [vmem:[%s3601_s1 + $0x90] sm:$0xff]   ;;  %v2841_v28 = vld [vmem:[%s3601_s1 + $0x98] sm:$0xff]  }
  0x24   : > { %2694 = vmatprep.subr.bf16.mxu0 %v2817_v1  ;;  %v2866_v25 = vld [vmem:[#allocation2 + $0x14] ss:$8 sps:$4 sm:$0xff]   ;;  %v2864_v26 = vld [vmem:[#allocation2 + $0x10] ss:$8 sps:$4 sm:$0xff]   ;;  %v2869_v27 = vld [vmem:[#allocation2 + $0x4] ss:$8 sps:$4 sm:$0xff]  }
  0x25   : > { %2788 = vmatprep.subr.bf16.mxu1 %v2866_v25  ;;  %v2867_v29 = vld [vmem:[#allocation2] ss:$8 sps:$4 sm:$0xff]   ;;  %v2844_v33 = vld [vmem:[%s3601_s1 + $0xb0] sm:$0xff]   ;;  %v2845_v34 = vld [vmem:[%s3601_s1 + $0xb8] sm:$0xff]  }
  0x26   : > { %2790 = vmatpush1.bf16.msra.mxu1 %v2864_v26  ;;  %v2842_v30 = vld [vmem:[%s3601_s1 + $0xa0] sm:$0xff]   ;;  %v2843_v32 = vld [vmem:[%s3601_s1 + $0xa8] sm:$0xff]   ;;  %v2848_v37 = vld [vmem:[%s3601_s1 + $0xd0] sm:$0xff]  }
  0x27   : > { %2695 = vmatpush3.bf16.msra.mxu0 %v2817_v1  ;;  %2789 = vmatprep.subr.bf16.mxu1 %v2869_v27  ;;  %v2846_v35 = vld [vmem:[%s3601_s1 + $0xc0] sm:$0xff]   ;;  %v2847_v36 = vld [vmem:[%s3601_s1 + $0xc8] sm:$0xff]   ;;  %v2849_v38 = vld [vmem:[%s3601_s1 + $0xd8] sm:$0xff]  }
  0x28   : > { %2696 = vmatprep.subr.bf16.mxu0 %v2818_v2  ;;  %v2850_v39 = vld [vmem:[%s3601_s1 + $0xe0] sm:$0xff]   ;;  %v2851_v40 = vld [vmem:[%s3601_s1 + $0xe8] sm:$0xff]   ;;  %v2852_v41 = vld [vmem:[%s3601_s1 + $0xf0] sm:$0xff]  }
  0x29   : > { %v2853_v42 = vld [vmem:[%s3601_s1 + $0xf8] sm:$0xff]   ;;  %v2854_v43 = vld [vmem:[%s3601_s1 + $0x100] sm:$0xff]   ;;  %v2855_v44 = vld [vmem:[%s3601_s1 + $0x108] sm:$0xff]  }
  0x2a   : > { %2791 = vmatpush1.bf16.msra.mxu1 %v2867_v29  ;;  %v2856_v45 = vld [vmem:[%s3601_s1 + $0x110] sm:$0xff]   ;;  %v2857_v46 = vld [vmem:[%s3601_s1 + $0x118] sm:$0xff]   ;;  %v2858_v47 = vld [vmem:[%s3601_s1 + $0x120] sm:$0xff]  }
  0x2b   : > { %2697 = vmatpush3.bf16.msra.mxu0 %v2818_v2  ;;  %v2859_v48 = vld [vmem:[%s3601_s1 + $0x128] sm:$0xff]   ;;  %v2860_v49 = vld [vmem:[%s3601_s1 + $0x130] sm:$0xff]   ;;  %v2861_v50 = vld [vmem:[%s3601_s1 + $0x138] sm:$0xff]  }
  0x2c   : > { %2698 = vmatprep.subr.bf16.mxu0 %v2819_v4  ;;  %v2862_v51 = vld [vmem:[%s3601_s1 + $0x140] sm:$0xff]   ;;  %v2863_v52 = vld [vmem:[%s3601_s1 + $0x148] sm:$0xff]   ;;  %vm3286_vm4 = vmor %vm2176_vm3, %vm2175_vm2 }
  0x2f   : > { %2699 = vmatpush3.bf16.msra.mxu0 %v2819_v4 }
  0x30   : > { %2700 = vmatprep.subr.bf16.mxu0 %v2820_v5 }
  0x33   : > { %2701 = vmatpush3.bf16.msra.mxu0 %v2820_v5 }
  0x34   : > { %2702 = vmatprep.subr.bf16.mxu0 %v2821_v6 }
  0x37   : > { %2703 = vmatpush3.bf16.msra.mxu0 %v2821_v6 }
  0x38   : > { %1230 = vmatprep.subr.bf16.mxu0 %v2866_v25 }
  0x3a   : > { %2705 = vmatmul.mubr.msk.bf16.vlgmr.msra.gmra.mxu0 %vm529_vm0, %v2823_v7 }
  0x3b   : > { %2708 = vmatprep.mubr.msk.bf16.mxu0 %vm529_vm0, %v2824_v8  ;;  %1231 = vmatpush1.bf16.msra.mxu0 %v2864_v26 }
  0x3c   : > { %1232 = vmatprep.subr.bf16.mxu0 %v2869_v27 }
  0x3f   : > { %1233 = vmatpush1.bf16.msra.mxu0 %v2867_v29 }
  0x42   : > { %2709 = vmatmul.mubr.msk.bf16.gmra.mxu0 %vm529_vm0, %v2825_v9 }
  0x43   : > { %2712 = vmatprep.mubr.msk.bf16.mxu0 %vm529_vm0, %v2826_v10 }
  0x4a   : > { %2713 = vmatmul.mubr.msk.bf16.gmra.mxu0 %vm529_vm0, %v2827_v11 }
  0x4b   : > { %2716 = vmatprep.mubr.msk.bf16.mxu0 %vm529_vm0, %v2828_v12 }
  0x52   : > { %2717 = vmatmul.mubr.msk.bf16.gmra.mxu0 %vm529_vm0, %v2829_v13 }
  0x53   : > { %2720 = vmatprep.mubr.msk.bf16.mxu0 %vm529_vm0, %v2830_v14 }
  0x5a   : > { %2721 = vmatmul.mubr.msk.bf16.gmra.mxu0 %vm529_vm0, %v2831_v15 }
  0x5b   : > { %2724 = vmatprep.mubr.msk.bf16.mxu0 %vm529_vm0, %v2832_v16 }
  0x62   : > { %2725 = vmatmul.mubr.msk.bf16.gmra.mxu0 %vm529_vm0, %v2833_v17 }
  0x63   : > { %2728 = vmatprep.mubr.msk.bf16.mxu0 %vm529_vm0, %v2834_v18 }
  0x6a   : > { %2729 = vmatmul.mubr.msk.bf16.gmra.mxu0 %vm529_vm0, %v2835_v19 }
  0x6b   : > { %2732 = vmatprep.mubr.msk.bf16.mxu0 %vm529_vm0, %v2836_v20 }
  0x72   : > { %2733 = vmatmul.mubr.msk.bf16.gmra.mxu0 %vm529_vm0, %v2837_v21 }
  0x73   : > { %2736 = vmatprep.mubr.msk.bf16.mxu0 %vm529_vm0, %v2838_v22 }
  0x7a   : > { %2737 = vmatmul.mubr.msk.bf16.gmra.mxu0 %vm529_vm0, %v2839_v23 }
  0x7b   : > { %2740 = vmatprep.mubr.msk.bf16.mxu0 %vm529_vm0, %v2840_v24 }
  0x82   : > { %2741 = vmatmul.mubr.msk.bf16.gmra.mxu0 %vm529_vm0, %v2841_v28 }
  0x83   : > { %2744 = vmatprep.mubr.msk.bf16.mxu0 %vm529_vm0, %v2842_v30 }
  0x8a   : > { %2745 = vmatmul.mubr.msk.bf16.gmra.mxu0 %vm529_vm0, %v2843_v32 }
  0x8b   : > { %2748 = vmatprep.mubr.msk.bf16.mxu0 %vm529_vm0, %v2844_v33 }
  0x92   : > { %2749 = vmatmul.mubr.msk.bf16.gmra.mxu0 %vm529_vm0, %v2845_v34 }
  0x93   : > { %2752 = vmatprep.mubr.msk.bf16.mxu0 %vm529_vm0, %v2846_v35 }
  0x9a   : > { %2753 = vmatmul.mubr.msk.bf16.gmra.mxu0 %vm529_vm0, %v2847_v36 }
  0x9b   : > { %2756 = vmatprep.mubr.msk.bf16.mxu0 %vm529_vm0, %v2848_v37 }
  0xa2   : > { %2757 = vmatmul.mubr.msk.bf16.gmra.mxu0 %vm529_vm0, %v2849_v38 }
  0xa3   : > { %2760 = vmatprep.mubr.msk.bf16.mxu0 %vm529_vm0, %v2850_v39 }
  0xaa   : > { %2761 = vmatmul.mubr.msk.bf16.gmra.mxu0 %vm529_vm0, %v2851_v40 }
  0xab   : > { %2764 = vmatprep.mubr.msk.bf16.mxu0 %vm529_vm0, %v2852_v41 }
  0xb2   : > { %2765 = vmatmul.mubr.msk.bf16.gmra.mxu0 %vm529_vm0, %v2853_v42 }
  0xb3   : > { %2768 = vmatprep.mubr.msk.bf16.mxu0 %vm529_vm0, %v2854_v43 }
  0xba   : > { %2769 = vmatmul.mubr.msk.bf16.gmra.mxu0 %vm529_vm0, %v2855_v44 }
  0xbb   : > { %2772 = vmatprep.mubr.msk.bf16.mxu0 %vm529_vm0, %v2856_v45 }
  0xc2   : > { %2773 = vmatmul.mubr.msk.bf16.gmra.mxu0 %vm529_vm0, %v2857_v46 }
  0xc3   : > { %2776 = vmatprep.mubr.msk.bf16.mxu0 %vm529_vm0, %v2858_v47 }
  0xca   : > { %2777 = vmatmul.mubr.msk.bf16.gmra.mxu0 %vm529_vm0, %v2859_v48 }
  0xcb   : > { %2780 = vmatprep.mubr.msk.bf16.mxu0 %vm529_vm0, %v2860_v49 }
  0xd2   : > { %2781 = vmatmul.mubr.msk.bf16.gmra.mxu0 %vm529_vm0, %v2861_v50 }
  0xd3   : > { %2784 = vmatprep.mubr.msk.bf16.mxu0 %vm529_vm0, %v2862_v51 }
  0xda   : > { %2785 = vmatmul.mubr.msk.bf16.gmra.mxu0 %vm529_vm0, %v2863_v52 }
  0xdb   : > { %1250 = vmatprep.mubr.bf16.mxu0 %v2911_v31 }
  0xfa   : > { %v2706_v53 = vpop.f32.mrf.mxu0 }
  0xfc   : > { %v690_v54 = vpop.f32.mrf.mxu0 }
  0xfe   : > { %v2707_v55 = vpop.f32.mrf.mxu0 }
  0xff   : > { %v1026_v62 = vpack.c.bf16 %v2707_v55, %v2706_v53 }
 0x100   : > { %v693_v56 = vpop.f32.mrf.mxu0 }
 0x101   : > { %v1025_v57 = vpack.c.bf16 %v693_v56, %v690_v54 }
 0x102   : > { %v2710_v58 = vpop.f32.mrf.mxu0 }
 0x103   : > { %2432 = vmatmul.mubr.msk.bf16.vlgmr.msra.gmra.mxu0 %vm1091_vm1, %v1025_v57 }
 0x104   : > { %v706_v59 = vpop.f32.mrf.mxu0  ;;  %1260 = vmatprep.mubr.bf16.mxu0 %v2911_v31 }
 0x106   : > { %v2711_v60 = vpop.f32.mrf.mxu0 }
 0x107   : > { %v1028_v8 = vpack.c.bf16 %v2711_v60, %v2710_v58 }
 0x108   : > { %v709_v61 = vpop.f32.mrf.mxu0 }
 0x109   : > { %v1027_v3 = vpack.c.bf16 %v709_v61, %v706_v59 }
 0x10a   : > { %v2714_v63 = vpop.f32.mrf.mxu0 }
 0x10b   : > { %2433 = vmatmul.mubr.msk.bf16.gmra.mxu0 %vm1091_vm1, %v1026_v62 }
 0x10c   : > { %v722_v0 = vpop.f32.mrf.mxu0  ;;  %1270 = vmatprep.mubr.bf16.mxu0 %v2911_v31 }
 0x10e   : > { %v2715_v1 = vpop.f32.mrf.mxu0 }
 0x10f   : > { %v1030_v19 = vpack.c.bf16 %v2715_v1, %v2714_v63 }
 0x110   : > { %v725_v2 = vpop.f32.mrf.mxu0 }
 0x111   : > { %v1029_v14 = vpack.c.bf16 %v725_v2, %v722_v0 }
 0x112   : > { %v2718_v4 = vpop.f32.mrf.mxu0 }
 0x113   : > { %2434 = vmatmul.mubr.msk.bf16.gmra.mxu0 %vm1091_vm1, %v1027_v3 }
 0x114   : > { %v738_v5 = vpop.f32.mrf.mxu0  ;;  %1280 = vmatprep.mubr.bf16.mxu0 %v2911_v31 }
 0x116   : > { %v2719_v6 = vpop.f32.mrf.mxu0 }
 0x117   : > { %v1032_v32 = vpack.c.bf16 %v2719_v6, %v2718_v4 }
 0x118   : > { %v741_v7 = vpop.f32.mrf.mxu0 }
 0x119   : > { %v1031_v25 = vpack.c.bf16 %v741_v7, %v738_v5 }
 0x11a   : > { %v2722_v9 = vpop.f32.mrf.mxu0 }
 0x11b   : > { %2435 = vmatmul.mubr.msk.bf16.gmra.mxu0 %vm1091_vm1, %v1028_v8 }
 0x11c   : > { %v754_v10 = vpop.f32.mrf.mxu0  ;;  %1290 = vmatprep.mubr.bf16.mxu0 %v2911_v31 }
 0x11e   : > { %v2723_v11 = vpop.f32.mrf.mxu0 }
 0x11f   : > { %v1034_v12 = vpack.c.bf16 %v2723_v11, %v2722_v9 }
 0x120   : > { %v757_v13 = vpop.f32.mrf.mxu0 }
 0x121   : > { %2441 = vmatmul.mubr.msk.bf16.vlgmr.msra.gmra.mxu1 %vm1091_vm1, %v1034_v12  ;;  %v1033_v38 = vpack.c.bf16 %v757_v13, %v754_v10 }
 0x122   : > { %v2726_v15 = vpop.f32.mrf.mxu0  ;;  %1350 = vmatprep.mubr.bf16.mxu1 %v2911_v31 }
 0x123   : > { %2436 = vmatmul.mubr.msk.bf16.gmra.mxu0 %vm1091_vm1, %v1029_v14 }
 0x124   : > { %v770_v16 = vpop.f32.mrf.mxu0  ;;  %1300 = vmatprep.mubr.bf16.mxu0 %v2911_v31 }
 0x126   : > { %v2727_v17 = vpop.f32.mrf.mxu0 }
 0x127   : > { %v1036_v26 = vpack.c.bf16 %v2727_v17, %v2726_v15 }
 0x128   : > { %v773_v18 = vpop.f32.mrf.mxu0 }
 0x129   : > { %v1035_v20 = vpack.c.bf16 %v773_v18, %v770_v16 }
 0x12a   : > { %v2730_v21 = vpop.f32.mrf.mxu0 }
 0x12b   : > { %2437 = vmatmul.mubr.msk.bf16.gmra.mxu0 %vm1091_vm1, %v1030_v19  ;;  %2442 = vmatmul.mubr.msk.bf16.gmra.mxu1 %vm1091_vm1, %v1035_v20 }
 0x12c   : > { %v786_v22 = vpop.f32.mrf.mxu0  ;;  %1310 = vmatprep.mubr.bf16.mxu0 %v2911_v31  ;;  %1360 = vmatprep.mubr.bf16.mxu1 %v2911_v31 }
 0x12e   : > { %v2731_v23 = vpop.f32.mrf.mxu0 }
 0x12f   : > { %v1038_v39 = vpack.c.bf16 %v2731_v23, %v2730_v21 }
 0x130   : > { %v789_v24 = vpop.f32.mrf.mxu0 }
 0x131   : > { %v1037_v33 = vpack.c.bf16 %v789_v24, %v786_v22 }
 0x132   : > { %v2734_v27 = vpop.f32.mrf.mxu0 }
 0x133   : > { %2438 = vmatmul.mubr.msk.bf16.gmra.mxu0 %vm1091_vm1, %v1031_v25  ;;  %2443 = vmatmul.mubr.msk.bf16.gmra.mxu1 %vm1091_vm1, %v1036_v26 }
 0x134   : > { %1320 = vmatprep.mubr.bf16.mxu0 %v2911_v31  ;;  %1370 = vmatprep.mubr.bf16.mxu1 %v2911_v31  ;;  %v802_v28 = vpop.f32.mrf.mxu0 }
 0x136   : > { %v2735_v29 = vpop.f32.mrf.mxu0 }
 0x137   : > { %v1040_v49 = vpack.c.bf16 %v2735_v29, %v2734_v27 }
 0x138   : > { %v805_v30 = vpop.f32.mrf.mxu0 }
 0x139   : > { %v1039_v44 = vpack.c.bf16 %v805_v30, %v802_v28 }
 0x13a   : > { %v2738_v34 = vpop.f32.mrf.mxu0 }
 0x13b   : > { %2439 = vmatmul.mubr.msk.bf16.gmra.mxu0 %vm1091_vm1, %v1032_v32  ;;  %2444 = vmatmul.mubr.msk.bf16.gmra.mxu1 %vm1091_vm1, %v1037_v33 }
 0x13c   : > { %1330 = vmatprep.mubr.bf16.mxu0 %v2911_v31  ;;  %1380 = vmatprep.mubr.bf16.mxu1 %v2911_v31  ;;  %v818_v35 = vpop.f32.mrf.mxu0 }
 0x13e   : > { %v2739_v36 = vpop.f32.mrf.mxu0 }
 0x13f   : > { %v1042_v59 = vpack.c.bf16 %v2739_v36, %v2738_v34 }
 0x140   : > { %v821_v37 = vpop.f32.mrf.mxu0 }
 0x141   : > { %v1041_v54 = vpack.c.bf16 %v821_v37, %v818_v35 }
 0x142   : > { %v2742_v40 = vpop.f32.mrf.mxu0 }
 0x143   : > { %2440 = vmatmul.mubr.msk.bf16.gmra.mxu0 %vm1091_vm1, %v1033_v38  ;;  %2445 = vmatmul.mubr.msk.bf16.gmra.mxu1 %vm1091_vm1, %v1038_v39 }
 0x144   : > { %1390 = vmatprep.mubr.bf16.mxu1 %v2911_v31  ;;  %v834_v41 = vpop.f32.mrf.mxu0 }
 0x146   : > { %v2743_v42 = vpop.f32.mrf.mxu0 }
 0x147   : > { %v1044_v5 = vpack.c.bf16 %v2743_v42, %v2742_v40 }
 0x148   : > { %v837_v43 = vpop.f32.mrf.mxu0 }
 0x149   : > { %v1043_v0 = vpack.c.bf16 %v837_v43, %v834_v41 }
 0x14a   : > { %v2746_v45 = vpop.f32.mrf.mxu0 }
 0x14b   : > { %2446 = vmatmul.mubr.msk.bf16.gmra.mxu1 %vm1091_vm1, %v1039_v44 }
 0x14c   : > { %1400 = vmatprep.mubr.bf16.mxu1 %v2911_v31  ;;  %v850_v46 = vpop.f32.mrf.mxu0 }
 0x14e   : > { %v2747_v47 = vpop.f32.mrf.mxu0 }
 0x14f   : > { %v1046_v16 = vpack.c.bf16 %v2747_v47, %v2746_v45 }
 0x150   : > { %v853_v48 = vpop.f32.mrf.mxu0 }
 0x151   : > { %v1045_v10 = vpack.c.bf16 %v853_v48, %v850_v46 }
 0x152   : > { %v2750_v50 = vpop.f32.mrf.mxu0 }
 0x153   : > { %2447 = vmatmul.mubr.msk.bf16.gmra.mxu1 %vm1091_vm1, %v1040_v49 }
 0x154   : > { %1410 = vmatprep.mubr.bf16.mxu1 %v2911_v31  ;;  %v866_v51 = vpop.f32.mrf.mxu0 }
 0x156   : > { %v2751_v52 = vpop.f32.mrf.mxu0 }
 0x157   : > { %v1048_v28 = vpack.c.bf16 %v2751_v52, %v2750_v50 }
 0x158   : > { %v869_v53 = vpop.f32.mrf.mxu0 }
 0x159   : > { %v1047_v22 = vpack.c.bf16 %v869_v53, %v866_v51 }
 0x15a   : > { %v3161_v55 = vpop.f32.mrf.mxu0 }
 0x15b   : > { %2448 = vmatmul.mubr.msk.bf16.gmra.mxu1 %vm1091_vm1, %v1041_v54 }
 0x15c   : > { %1420 = vmatprep.mubr.bf16.mxu1 %v2911_v31  ;;  %v882_v56 = vpop.f32.mrf.mxu0 }
 0x15e   : > { %v3165_v57 = vpop.f32.mrf.mxu0 }
 0x15f   : > { %v1050_v43 = vpack.c.bf16 %v3165_v57, %v3161_v55 }
 0x160   : > { %v885_v58 = vpop.f32.mrf.mxu0 }
 0x161   : > { %v1049_v36 = vpack.c.bf16 %v885_v58, %v882_v56 }
 0x162   : > { %v3167_v60 = vpop.f32.mrf.mxu0 }
 0x163   : > { %2449 = vmatmul.mubr.msk.bf16.gmra.mxu1 %vm1091_vm1, %v1042_v59 }
 0x164   : > { %1430 = vmatprep.mubr.bf16.mxu1 %v2911_v31  ;;  %v3171_v61 = vpop.f32.mrf.mxu0 }
 0x166   : > { %v3173_v62 = vpop.f32.mrf.mxu0 }
 0x167   : > { %v1052_v46 = vpack.c.bf16 %v3173_v62, %v3167_v60 }
 0x168   : > { %v3175_v63 = vpop.f32.mrf.mxu0 }
 0x169   : > { %v1051_v45 = vpack.c.bf16 %v3175_v63, %v3171_v61 }
 0x16a   : > { %v3177_v1 = vpop.f32.mrf.mxu0 }
 0x16b   : > { %2450 = vmatmul.mubr.msk.bf16.gmra.mxu1 %vm1091_vm1, %v1043_v0 }
 0x16c   : > { %1440 = vmatprep.mubr.bf16.mxu1 %v2911_v31  ;;  %v3181_v2 = vpop.f32.mrf.mxu0 }
 0x16e   : > { %v3183_v3 = vpop.f32.mrf.mxu0 }
 0x16f   : > { %v1054_v48 = vpack.c.bf16 %v3183_v3, %v3177_v1 }
 0x170   : > { %v917_v4 = vpop.f32.mrf.mxu0 }
 0x171   : > { %v1053_v47 = vpack.c.bf16 %v917_v4, %v3181_v2 }
 0x172   : > { %v3185_v6 = vpop.f32.mrf.mxu0 }
 0x173   : > { %2451 = vmatmul.mubr.msk.bf16.gmra.mxu1 %vm1091_vm1, %v1044_v5 }
 0x174   : > { %1450 = vmatprep.mubr.bf16.mxu1 %v2911_v31  ;;  %v3189_v7 = vpop.f32.mrf.mxu0 }
 0x176   : > { %v3191_v8 = vpop.f32.mrf.mxu0 }
 0x177   : > { %v1056_v61 = vpack.c.bf16 %v3191_v8, %v3185_v6 }
 0x178   : > { %v3193_v9 = vpop.f32.mrf.mxu0 }
 0x179   : > { %v1055_v54 = vpack.c.bf16 %v3193_v9, %v3189_v7 }
 0x17a   : > { %v3195_v11 = vpop.f32.mrf.mxu0 }
 0x17b   : > { %2452 = vmatmul.mubr.msk.bf16.gmra.mxu1 %vm1091_vm1, %v1045_v10 }
 0x17c   : > { %1460 = vmatprep.mubr.bf16.mxu1 %v2911_v31  ;;  %v3199_v12 = vpop.f32.mrf.mxu0 }
 0x17e   : > { %v3201_v13 = vpop.f32.mrf.mxu0 }
 0x17f   : > { %v1058_v14 = vpack.c.bf16 %v3201_v13, %v3195_v11 }
 0x180   : > { %v3205_v15 = vpop.f32.mrf.mxu0 }
 0x181   : > { %v1057_v4 = vpack.c.bf16 %v3205_v15, %v3199_v12 }
 0x182   : > { %v3207_v17 = vpop.f32.mrf.mxu0 }
 0x183   : > { %2453 = vmatmul.mubr.msk.bf16.gmra.mxu1 %vm1091_vm1, %v1046_v16 }
 0x184   : > { %1470 = vmatprep.mubr.bf16.mxu1 %v2911_v31  ;;  %v3211_v18 = vpop.f32.mrf.mxu0 }
 0x186   : > { %v3213_v19 = vpop.f32.mrf.mxu0 }
 0x187   : > { %v1060_v20 = vpack.c.bf16 %v3213_v19, %v3207_v17 }
 0x188   : > { %v3217_v21 = vpop.f32.mrf.mxu0 }
 0x189   : > { %v1059_v13 = vpack.c.bf16 %v3217_v21, %v3211_v18 }
 0x18a   : > { %v3219_v23 = vpop.f32.mrf.mxu0 }
 0x18b   : > { %2454 = vmatmul.mubr.msk.bf16.gmra.mxu1 %vm1091_vm1, %v1047_v22 }
 0x18c   : > { %1480 = vmatprep.mubr.bf16.mxu1 %v2911_v31  ;;  %v3223_v24 = vpop.f32.mrf.mxu0 }
 0x18e   : > { %v3225_v25 = vpop.f32.mrf.mxu0 }
 0x18f   : > { %v1062_v26 = vpack.c.bf16 %v3225_v25, %v3219_v23 }
 0x190   : > { %v3229_v27 = vpop.f32.mrf.mxu0 }
 0x191   : > { %v1061_v29 = vpack.c.bf16 %v3229_v27, %v3223_v24 }
 0x192   : > { %v3233_v30 = vpop.f32.mrf.mxu0 }
 0x193   : > { %2455 = vmatmul.mubr.msk.bf16.gmra.mxu1 %vm1091_vm1, %v1048_v28 }
 0x194   : > { %1490 = vmatprep.mubr.bf16.mxu1 %v2911_v31  ;;  %v3237_v32 = vpop.f32.mrf.mxu0 }
 0x196   : > { %v3239_v33 = vpop.f32.mrf.mxu0 }
 0x197   : > { %v1064_v34 = vpack.c.bf16 %v3239_v33, %v3233_v30 }
 0x198   : > { %v3243_v35 = vpop.f32.mrf.mxu0 }
 0x199   : > { %v1063_v37 = vpack.c.bf16 %v3243_v35, %v3237_v32 }
 0x19a   : > { %v3247_v38 = vpop.f32.mrf.mxu0 }
 0x19b   : > { %2456 = vmatmul.mubr.msk.bf16.gmra.mxu1 %vm1091_vm1, %v1049_v36 }
 0x19c   : > { %1500 = vmatprep.mubr.bf16.mxu1 %v2911_v31  ;;  %v3251_v39 = vpop.f32.mrf.mxu0 }
 0x19e   : > { %v3253_v40 = vpop.f32.mrf.mxu0 }
 0x19f   : > { %v1066_v41 = vpack.c.bf16 %v3253_v40, %v3247_v38 }
 0x1a0   : > { %v3257_v42 = vpop.f32.mrf.mxu0 }
 0x1a1   : > { %v1065_v44 = vpack.c.bf16 %v3257_v42, %v3251_v39 }
 0x1a3   : > { %2457 = vmatmul.mubr.msk.bf16.gmra.mxu1 %vm1091_vm1, %v1050_v43 }
 0x1a4   : > { %1510 = vmatprep.mubr.bf16.mxu1 %v2911_v31 }
 0x1ab   : > { %2458 = vmatmul.mubr.msk.bf16.gmra.mxu1 %vm1091_vm1, %v1051_v45 }
 0x1ac   : > { %1520 = vmatprep.mubr.bf16.mxu1 %v2911_v31 }
 0x1b3   : > { %2459 = vmatmul.mubr.msk.bf16.gmra.mxu1 %vm1091_vm1, %v1052_v46 }
 0x1b4   : > { %1530 = vmatprep.mubr.bf16.mxu1 %v2911_v31 }
 0x1bb   : > { %2460 = vmatmul.mubr.msk.bf16.gmra.mxu1 %vm1091_vm1, %v1053_v47 }
 0x1bc   : > { %1540 = vmatprep.mubr.bf16.mxu1 %v2911_v31 }
 0x1c3   : > { %v1252_v49 = vpop.f32.mrf.mxu0  ;;  %2461 = vmatmul.mubr.msk.bf16.gmra.mxu1 %vm1091_vm1, %v1054_v48 }
 0x1c4   : > { %1550 = vmatprep.mubr.bf16.mxu1 %v2911_v31 }
 0x1c5   : > { %v1254_v50 = vpop.f32.mrf.mxu0 }
 0x1c6   : > { %v2560_v52 = vpack.c.bf16 %v1254_v50, %v1252_v49 }
 0x1c7   : > { %v1256_v53 = vpop.f32.mrf.mxu0 }
 0x1c8   : > { %2178 = vst.msk [vmem:[%s3284_s11] sm:$0xff] %vm3286_vm4, %v2560_v52 }
 0x1c9   : > { %v1258_v55 = vpop.f32.mrf.mxu0 }
 0x1ca   : > { %v2561_v56 = vpack.c.bf16 %v1258_v55, %v1256_v53 }
 0x1cb   : > { %v1262_v57 = vpop.f32.mrf.mxu0  ;;  %2462 = vmatmul.mubr.msk.bf16.gmra.mxu1 %vm1091_vm1, %v1055_v54 }
 0x1cc   : > { %2179 = vst.msk [vmem:[%s3284_s11 + $0x8] sm:$0xff] %vm3286_vm4, %v2561_v56  ;;  %1560 = vmatprep.mubr.bf16.mxu1 %v2911_v31 }
 0x1cd   : > { %v1264_v58 = vpop.f32.mrf.mxu0 }
 0x1ce   : > { %v2562_v59 = vpack.c.bf16 %v1264_v58, %v1262_v57 }
 0x1cf   : > { %v1266_v60 = vpop.f32.mrf.mxu0 }
 0x1d0   : > { %2180 = vst.msk [vmem:[%s3284_s11 + $0x10] sm:$0xff] %vm3286_vm4, %v2562_v59 }
 0x1d1   : > { %v1268_v62 = vpop.f32.mrf.mxu0 }
 0x1d2   : > { %v2563_v63 = vpack.c.bf16 %v1268_v62, %v1266_v60 }
 0x1d3   : > { %v1272_v0 = vpop.f32.mrf.mxu0  ;;  %2463 = vmatmul.mubr.msk.bf16.gmra.mxu1 %vm1091_vm1, %v1056_v61 }
 0x1d4   : > { %2181 = vst.msk [vmem:[%s3284_s11 + $0x18] sm:$0xff] %vm3286_vm4, %v2563_v63  ;;  %1570 = vmatprep.mubr.bf16.mxu1 %v2911_v31 }
 0x1d5   : > { %v1274_v1 = vpop.f32.mrf.mxu0 }
 0x1d6   : > { %v2564_v2 = vpack.c.bf16 %v1274_v1, %v1272_v0 }
 0x1d7   : > { %v1276_v3 = vpop.f32.mrf.mxu0 }
 0x1d8   : > { %2182 = vst.msk [vmem:[%s3284_s11 + $0x20] sm:$0xff] %vm3286_vm4, %v2564_v2 }
 0x1d9   : > { %v1278_v5 = vpop.f32.mrf.mxu0 }
 0x1da   : > { %v2565_v6 = vpack.c.bf16 %v1278_v5, %v1276_v3 }
 0x1db   : > { %v1282_v7 = vpop.f32.mrf.mxu0  ;;  %2464 = vmatmul.mubr.msk.bf16.gmra.mxu1 %vm1091_vm1, %v1057_v4 }
 0x1dc   : > { %2183 = vst.msk [vmem:[%s3284_s11 + $0x28] sm:$0xff] %vm3286_vm4, %v2565_v6  ;;  %1580 = vmatprep.mubr.bf16.mxu1 %v2911_v31 }
 0x1dd   : > { %v1284_v8 = vpop.f32.mrf.mxu0 }
 0x1de   : > { %v2566_v9 = vpack.c.bf16 %v1284_v8, %v1282_v7 }
 0x1df   : > { %v1286_v10 = vpop.f32.mrf.mxu0 }
 0x1e0   : > { %2184 = vst.msk [vmem:[%s3284_s11 + $0x30] sm:$0xff] %vm3286_vm4, %v2566_v9 }
 0x1e1   : > { %v1288_v12 = vpop.f32.mrf.mxu0  ;;  %v1342_v15 = vpop.f32.mrf.mxu1 }
 0x1e2   : > { %v2567_v16 = vpack.c.bf16 %v1288_v12, %v1286_v10 }
 0x1e3   : > { %v1292_v22 = vpop.f32.mrf.mxu0  ;;  %v1344_v28 = vpop.f32.mrf.mxu1  ;;  %2465 = vmatmul.mubr.msk.bf16.gmra.mxu1 %vm1091_vm1, %v1058_v14 }
 0x1e4   : > { %2185 = vst.msk [vmem:[%s3284_s11 + $0x38] sm:$0xff] %vm3286_vm4, %v2567_v16  ;;  %v2578_v36 = vpack.c.bf16 %v1344_v28, %v1342_v15  ;;  %1590 = vmatprep.mubr.bf16.mxu1 %v2911_v31 }
 0x1e5   : > { %v1294_v43 = vpop.f32.mrf.mxu0  ;;  %v1346_v45 = vpop.f32.mrf.mxu1 }
 0x1e6   : > { %2196 = vst.msk [vmem:[%s3284_s11 + $0x90] sm:$0xff] %vm3286_vm4, %v2578_v36  ;;  %v2568_v46 = vpack.c.bf16 %v1294_v43, %v1292_v22 }
 0x1e7   : > { %v1296_v47 = vpop.f32.mrf.mxu0  ;;  %v1348_v48 = vpop.f32.mrf.mxu1 }
 0x1e8   : > { %2186 = vst.msk [vmem:[%s3284_s11 + $0x40] sm:$0xff] %vm3286_vm4, %v2568_v46  ;;  %v2579_v11 = vpack.c.bf16 %v1348_v48, %v1346_v45 }
 0x1e9   : > { %v1298_v14 = vpop.f32.mrf.mxu0 }
 0x1ea   : > { %2197 = vst.msk [vmem:[%s3284_s11 + $0x98] sm:$0xff] %vm3286_vm4, %v2579_v11  ;;  %v2569_v49 = vpack.c.bf16 %v1298_v14, %v1296_v47 }
 0x1eb   : > { %v1302_v50 = vpop.f32.mrf.mxu0  ;;  %v1352_v52 = vpop.f32.mrf.mxu1  ;;  %2466 = vmatmul.mubr.msk.bf16.gmra.mxu1 %vm1091_vm1, %v1059_v13 }
 0x1ec   : > { %2187 = vst.msk [vmem:[%s3284_s11 + $0x48] sm:$0xff] %vm3286_vm4, %v2569_v49  ;;  %1600 = vmatprep.mubr.bf16.mxu1 %v2911_v31 }
 0x1ed   : > { %v1304_v53 = vpop.f32.mrf.mxu0  ;;  %v1354_v54 = vpop.f32.mrf.mxu1 }
 0x1ee   : > { %v2570_v18 = vpack.c.bf16 %v1304_v53, %v1302_v50  ;;  %v2580_v21 = vpack.c.bf16 %v1354_v54, %v1352_v52 }
 0x1ef   : > { %v1306_v55 = vpop.f32.mrf.mxu0  ;;  %v1356_v56 = vpop.f32.mrf.mxu1 }
 0x1f0   : > { %2188 = vst.msk [vmem:[%s3284_s11 + $0x50] sm:$0xff] %vm3286_vm4, %v2570_v18  ;;  %2198 = vst.msk [vmem:[%s3284_s11 + $0xa0] sm:$0xff] %vm3286_vm4, %v2580_v21 }
 0x1f1   : > { %v1308_v57 = vpop.f32.mrf.mxu0  ;;  %v1358_v58 = vpop.f32.mrf.mxu1 }
 0x1f2   : > { %v2571_v59 = vpack.c.bf16 %v1308_v57, %v1306_v55  ;;  %v2581_v60 = vpack.c.bf16 %v1358_v58, %v1356_v56 }
 0x1f3   : > { %v1312_v61 = vpop.f32.mrf.mxu0  ;;  %v1362_v62 = vpop.f32.mrf.mxu1  ;;  %2467 = vmatmul.mubr.msk.bf16.gmra.mxu1 %vm1091_vm1, %v1060_v20 }
 0x1f4   : > { %2189 = vst.msk [vmem:[%s3284_s11 + $0x58] sm:$0xff] %vm3286_vm4, %v2571_v59  ;;  %2199 = vst.msk [vmem:[%s3284_s11 + $0xa8] sm:$0xff] %vm3286_vm4, %v2581_v60  ;;  %1610 = vmatprep.mubr.bf16.mxu1 %v2911_v31 }
 0x1f5   : > { %v1314_v63 = vpop.f32.mrf.mxu0  ;;  %v1364_v0 = vpop.f32.mrf.mxu1 }
 0x1f6   : > { %v2572_v1 = vpack.c.bf16 %v1314_v63, %v1312_v61  ;;  %v2582_v2 = vpack.c.bf16 %v1364_v0, %v1362_v62 }
 0x1f7   : > { %v1316_v3 = vpop.f32.mrf.mxu0  ;;  %v1366_v4 = vpop.f32.mrf.mxu1 }
 0x1f8   : > { %2190 = vst.msk [vmem:[%s3284_s11 + $0x60] sm:$0xff] %vm3286_vm4, %v2572_v1  ;;  %2200 = vst.msk [vmem:[%s3284_s11 + $0xb0] sm:$0xff] %vm3286_vm4, %v2582_v2 }
 0x1f9   : > { %v1318_v17 = vpop.f32.mrf.mxu0  ;;  %v1368_v19 = vpop.f32.mrf.mxu1 }
 0x1fa   : > { %v2573_v20 = vpack.c.bf16 %v1318_v17, %v1316_v3  ;;  %v2583_v5 = vpack.c.bf16 %v1368_v19, %v1366_v4 }
 0x1fb   : > { %v1322_v6 = vpop.f32.mrf.mxu0  ;;  %v1372_v7 = vpop.f32.mrf.mxu1  ;;  %2468 = vmatmul.mubr.msk.bf16.gmra.mxu1 %vm1091_vm1, %v1061_v29 }
 0x1fc   : > { %2191 = vst.msk [vmem:[%s3284_s11 + $0x68] sm:$0xff] %vm3286_vm4, %v2573_v20  ;;  %2201 = vst.msk [vmem:[%s3284_s11 + $0xb8] sm:$0xff] %vm3286_vm4, %v2583_v5  ;;  %1620 = vmatprep.mubr.bf16.mxu1 %v2911_v31 }
 0x1fd   : > { %v1324_v8 = vpop.f32.mrf.mxu0  ;;  %v1374_v9 = vpop.f32.mrf.mxu1 }
 0x1fe   : > { %v2574_v10 = vpack.c.bf16 %v1324_v8, %v1322_v6  ;;  %v2584_v12 = vpack.c.bf16 %v1374_v9, %v1372_v7 }
 0x1ff   : > { %v1326_v15 = vpop.f32.mrf.mxu0  ;;  %v1376_v16 = vpop.f32.mrf.mxu1 }
 0x200   : > { %2192 = vst.msk [vmem:[%s3284_s11 + $0x70] sm:$0xff] %vm3286_vm4, %v2574_v10  ;;  %2202 = vst.msk [vmem:[%s3284_s11 + $0xc0] sm:$0xff] %vm3286_vm4, %v2584_v12 }
 0x201   : > { %v1328_v24 = vpop.f32.mrf.mxu0  ;;  %v1378_v27 = vpop.f32.mrf.mxu1 }
 0x202   : > { %v2575_v29 = vpack.c.bf16 %v1328_v24, %v1326_v15  ;;  %v2585_v22 = vpack.c.bf16 %v1378_v27, %v1376_v16 }
 0x203   : > { %v1332_v28 = vpop.f32.mrf.mxu0  ;;  %v1382_v36 = vpop.f32.mrf.mxu1  ;;  %2469 = vmatmul.mubr.msk.bf16.gmra.mxu1 %vm1091_vm1, %v1062_v26 }
 0x204   : > { %2193 = vst.msk [vmem:[%s3284_s11 + $0x78] sm:$0xff] %vm3286_vm4, %v2575_v29  ;;  %2203 = vst.msk [vmem:[%s3284_s11 + $0xc8] sm:$0xff] %vm3286_vm4, %v2585_v22  ;;  %1630 = vmatprep.mubr.bf16.mxu1 %v2911_v31 }
 0x205   : > { %v1334_v43 = vpop.f32.mrf.mxu0  ;;  %v1384_v45 = vpop.f32.mrf.mxu1 }
 0x206   : > { %v2576_v46 = vpack.c.bf16 %v1334_v43, %v1332_v28  ;;  %v2586_v47 = vpack.c.bf16 %v1384_v45, %v1382_v36 }
 0x207   : > { %v1336_v48 = vpop.f32.mrf.mxu0  ;;  %v1386_v11 = vpop.f32.mrf.mxu1 }
 0x208   : > { %2194 = vst.msk [vmem:[%s3284_s11 + $0x80] sm:$0xff] %vm3286_vm4, %v2576_v46  ;;  %2204 = vst.msk [vmem:[%s3284_s11 + $0xd0] sm:$0xff] %vm3286_vm4, %v2586_v47 }
 0x209   : > { %v1338_v23 = vpop.f32.mrf.mxu0  ;;  %v1388_v25 = vpop.f32.mrf.mxu1 }
 0x20a   : > { %v2577_v26 = vpack.c.bf16 %v1338_v23, %v1336_v48  ;;  %v2587_v13 = vpack.c.bf16 %v1388_v25, %v1386_v11 }
 0x20b   : > { %v1392_v14 = vpop.f32.mrf.mxu1  ;;  %2470 = vmatmul.mubr.msk.bf16.gmra.mxu1 %vm1091_vm1, %v1063_v37 }
 0x20c   : > { %2195 = vst.msk [vmem:[%s3284_s11 + $0x88] sm:$0xff] %vm3286_vm4, %v2577_v26  ;;  %2205 = vst.msk [vmem:[%s3284_s11 + $0xd8] sm:$0xff] %vm3286_vm4, %v2587_v13  ;;  %1640 = vmatprep.mubr.bf16.mxu1 %v2911_v31 }
 0x20d   : > { %v1394_v49 = vpop.f32.mrf.mxu1 }
 0x20e   : > { %v2588_v50 = vpack.c.bf16 %v1394_v49, %v1392_v14 }
 0x20f   : > { %v1396_v52 = vpop.f32.mrf.mxu1 }
 0x210   : > { %2206 = vst.msk [vmem:[%s3284_s11 + $0xe0] sm:$0xff] %vm3286_vm4, %v2588_v50 }
 0x211   : > { %v1398_v53 = vpop.f32.mrf.mxu1 }
 0x212   : > { %v2589_v32 = vpack.c.bf16 %v1398_v53, %v1396_v52 }
 0x213   : > { %v1402_v35 = vpop.f32.mrf.mxu1  ;;  %2471 = vmatmul.mubr.msk.bf16.gmra.mxu1 %vm1091_vm1, %v1064_v34 }
 0x214   : > { %2207 = vst.msk [vmem:[%s3284_s11 + $0xe8] sm:$0xff] %vm3286_vm4, %v2589_v32  ;;  %1650 = vmatprep.mubr.bf16.mxu1 %v2911_v31 }
 0x215   : > { %v1404_v37 = vpop.f32.mrf.mxu1 }
 0x216   : > { %v2590_v54 = vpack.c.bf16 %v1404_v37, %v1402_v35 }
 0x217   : > { %v1406_v18 = vpop.f32.mrf.mxu1 }
 0x218   : > { %2208 = vst.msk [vmem:[%s3284_s11 + $0xf0] sm:$0xff] %vm3286_vm4, %v2590_v54 }
 0x219   : > { %v1408_v21 = vpop.f32.mrf.mxu1 }
 0x21a   : > { %v2591_v55 = vpack.c.bf16 %v1408_v21, %v1406_v18 }
 0x21b   : > { %v1412_v56 = vpop.f32.mrf.mxu1  ;;  %2472 = vmatmul.mubr.msk.bf16.gmra.mxu1 %vm1091_vm1, %v1065_v44 }
 0x21c   : > { %2209 = vst.msk [vmem:[%s3284_s11 + $0xf8] sm:$0xff] %vm3286_vm4, %v2591_v55  ;;  %1660 = vmatprep.mubr.bf16.mxu1 %v2911_v31 }
 0x21d   : > { %v1414_v30 = vpop.f32.mrf.mxu1 }
 0x21e   : > { %v2592_v33 = vpack.c.bf16 %v1414_v30, %v1412_v56 }
 0x21f   : > { %v1416_v34 = vpop.f32.mrf.mxu1 }
 0x220   : > { %2210 = vst.msk [vmem:[%s3284_s11 + $0x100] sm:$0xff] %vm3286_vm4, %v2592_v33 }
 0x221   : > { %v1418_v57 = vpop.f32.mrf.mxu1 }
 0x222   : > { %v2593_v58 = vpack.c.bf16 %v1418_v57, %v1416_v34 }
 0x223   : > { %v1422_v59 = vpop.f32.mrf.mxu1  ;;  %2473 = vmatmul.mubr.msk.bf16.gmra.mxu1 %vm1091_vm1, %v1066_v41 }
 0x224   : > { %2211 = vst.msk [vmem:[%s3284_s11 + $0x108] sm:$0xff] %vm3286_vm4, %v2593_v58 }
 0x225   : > { %v1424_v31 = vpop.f32.mrf.mxu1 }
 0x226   : > { %v2594_v39 = vpack.c.bf16 %v1424_v31, %v1422_v59 }
 0x227   : > { %v1426_v42 = vpop.f32.mrf.mxu1 }
 0x228   : > { %2212 = vst.msk [vmem:[%s3284_s11 + $0x110] sm:$0xff] %vm3286_vm4, %v2594_v39 }
 0x229   : > { %v1428_v44 = vpop.f32.mrf.mxu1 }
 0x22a   : > { %v2595_v60 = vpack.c.bf16 %v1428_v44, %v1426_v42 }
 0x22b   : > { %v1432_v61 = vpop.f32.mrf.mxu1 }
 0x22c   : > { %2213 = vst.msk [vmem:[%s3284_s11 + $0x118] sm:$0xff] %vm3286_vm4, %v2595_v60 }
 0x22d   : > { %v1434_v38 = vpop.f32.mrf.mxu1 }
 0x22e   : > { %v2596_v40 = vpack.c.bf16 %v1434_v38, %v1432_v61 }
 0x22f   : > { %v1436_v41 = vpop.f32.mrf.mxu1 }
 0x230   : > { %2214 = vst.msk [vmem:[%s3284_s11 + $0x120] sm:$0xff] %vm3286_vm4, %v2596_v40 }
 0x231   : > { %v1438_v62 = vpop.f32.mrf.mxu1 }
 0x232   : > { %v2597_v63 = vpack.c.bf16 %v1438_v62, %v1436_v41 }
 0x233   : > { %v1442_v0 = vpop.f32.mrf.mxu1 }
 0x234   : > { %2215 = vst.msk [vmem:[%s3284_s11 + $0x128] sm:$0xff] %vm3286_vm4, %v2597_v63 }
 0x235   : > { %v1444_v1 = vpop.f32.mrf.mxu1 }
 0x236   : > { %v2598_v2 = vpack.c.bf16 %v1444_v1, %v1442_v0 }
 0x237   : > { %v1446_v3 = vpop.f32.mrf.mxu1 }
 0x238   : > { %2216 = vst.msk [vmem:[%s3284_s11 + $0x130] sm:$0xff] %vm3286_vm4, %v2598_v2 }
 0x239   : > { %v1448_v4 = vpop.f32.mrf.mxu1 }
 0x23a   : > { %v2599_v17 = vpack.c.bf16 %v1448_v4, %v1446_v3 }
 0x23b   : > { %v1452_v19 = vpop.f32.mrf.mxu1 }
 0x23c   : > { %2217 = vst.msk [vmem:[%s3284_s11 + $0x138] sm:$0xff] %vm3286_vm4, %v2599_v17 }
 0x23d   : > { %v1454_v20 = vpop.f32.mrf.mxu1 }
 0x23e   : > { %v2600_v5 = vpack.c.bf16 %v1454_v20, %v1452_v19 }
 0x23f   : > { %v1456_v6 = vpop.f32.mrf.mxu1 }
 0x240   : > { %2218 = vst.msk [vmem:[%s3284_s11 + $0x140] sm:$0xff] %vm3286_vm4, %v2600_v5 }
 0x241   : > { %v1458_v7 = vpop.f32.mrf.mxu1 }
 0x242   : > { %v2601_v8 = vpack.c.bf16 %v1458_v7, %v1456_v6 }
 0x243   : > { %v1462_v9 = vpop.f32.mrf.mxu1 }
 0x244   : > { %2219 = vst.msk [vmem:[%s3284_s11 + $0x148] sm:$0xff] %vm3286_vm4, %v2601_v8 }
 0x245   : > { %v1464_v10 = vpop.f32.mrf.mxu1 }
 0x246   : > { %v2602_v12 = vpack.c.bf16 %v1464_v10, %v1462_v9 }
 0x247   : > { %v1466_v15 = vpop.f32.mrf.mxu1 }
 0x248   : > { %2220 = vst.msk [vmem:[%s3284_s11 + $0x150] sm:$0xff] %vm3286_vm4, %v2602_v12 }
 0x249   : > { %v1468_v16 = vpop.f32.mrf.mxu1 }
 0x24a   : > { %v2603_v24 = vpack.c.bf16 %v1468_v16, %v1466_v15 }
 0x24b   : > { %v1472_v27 = vpop.f32.mrf.mxu1 }
 0x24c   : > { %2221 = vst.msk [vmem:[%s3284_s11 + $0x158] sm:$0xff] %vm3286_vm4, %v2603_v24 }
 0x24d   : > { %v1474_v29 = vpop.f32.mrf.mxu1 }
 0x24e   : > { %v2604_v22 = vpack.c.bf16 %v1474_v29, %v1472_v27 }
 0x24f   : > { %v1476_v28 = vpop.f32.mrf.mxu1 }
 0x250   : > { %2222 = vst.msk [vmem:[%s3284_s11 + $0x160] sm:$0xff] %vm3286_vm4, %v2604_v22 }
 0x251   : > { %v1478_v36 = vpop.f32.mrf.mxu1 }
 0x252   : > { %v2605_v43 = vpack.c.bf16 %v1478_v36, %v1476_v28 }
 0x253   : > { %v1482_v45 = vpop.f32.mrf.mxu1 }
 0x254   : > { %2223 = vst.msk [vmem:[%s3284_s11 + $0x168] sm:$0xff] %vm3286_vm4, %v2605_v43 }
 0x255   : > { %v1484_v46 = vpop.f32.mrf.mxu1 }
 0x256   : > { %v2606_v47 = vpack.c.bf16 %v1484_v46, %v1482_v45 }
 0x257   : > { %v1486_v48 = vpop.f32.mrf.mxu1 }
 0x258   : > { %2224 = vst.msk [vmem:[%s3284_s11 + $0x170] sm:$0xff] %vm3286_vm4, %v2606_v47 }
 0x259   : > { %v1488_v11 = vpop.f32.mrf.mxu1 }
 0x25a   : > { %v2607_v23 = vpack.c.bf16 %v1488_v11, %v1486_v48 }
 0x25b   : > { %v1492_v25 = vpop.f32.mrf.mxu1 }
 0x25c   : > { %2225 = vst.msk [vmem:[%s3284_s11 + $0x178] sm:$0xff] %vm3286_vm4, %v2607_v23 }
 0x25d   : > { %v1494_v26 = vpop.f32.mrf.mxu1 }
 0x25e   : > { %v2608_v13 = vpack.c.bf16 %v1494_v26, %v1492_v25 }
 0x25f   : > { %v1496_v14 = vpop.f32.mrf.mxu1 }
 0x260   : > { %2226 = vst.msk [vmem:[%s3284_s11 + $0x180] sm:$0xff] %vm3286_vm4, %v2608_v13 }
 0x261   : > { %v1498_v49 = vpop.f32.mrf.mxu1 }
 0x262   : > { %v2609_v50 = vpack.c.bf16 %v1498_v49, %v1496_v14 }
 0x263   : > { %v1502_v52 = vpop.f32.mrf.mxu1 }
 0x264   : > { %2227 = vst.msk [vmem:[%s3284_s11 + $0x188] sm:$0xff] %vm3286_vm4, %v2609_v50 }
 0x265   : > { %v1504_v53 = vpop.f32.mrf.mxu1 }
 0x266   : > { %v2610_v32 = vpack.c.bf16 %v1504_v53, %v1502_v52 }
 0x267   : > { %v1506_v35 = vpop.f32.mrf.mxu1 }
 0x268   : > { %2228 = vst.msk [vmem:[%s3284_s11 + $0x190] sm:$0xff] %vm3286_vm4, %v2610_v32 }
 0x269   : > { %v1508_v37 = vpop.f32.mrf.mxu1 }
 0x26a   : > { %v2611_v54 = vpack.c.bf16 %v1508_v37, %v1506_v35 }
 0x26b   : > { %v1512_v18 = vpop.f32.mrf.mxu1 }
 0x26c   : > { %2229 = vst.msk [vmem:[%s3284_s11 + $0x198] sm:$0xff] %vm3286_vm4, %v2611_v54 }
 0x26d   : > { %v1514_v21 = vpop.f32.mrf.mxu1 }
 0x26e   : > { %v2612_v55 = vpack.c.bf16 %v1514_v21, %v1512_v18 }
 0x26f   : > { %v1516_v56 = vpop.f32.mrf.mxu1 }
 0x270   : > { %2230 = vst.msk [vmem:[%s3284_s11 + $0x1a0] sm:$0xff] %vm3286_vm4, %v2612_v55 }
 0x271   : > { %v1518_v30 = vpop.f32.mrf.mxu1 }
 0x272   : > { %v2613_v33 = vpack.c.bf16 %v1518_v30, %v1516_v56 }
 0x273   : > { %v1522_v34 = vpop.f32.mrf.mxu1 }
 0x274   : > { %2231 = vst.msk [vmem:[%s3284_s11 + $0x1a8] sm:$0xff] %vm3286_vm4, %v2613_v33 }
 0x275   : > { %v1524_v57 = vpop.f32.mrf.mxu1 }
 0x276   : > { %v2614_v58 = vpack.c.bf16 %v1524_v57, %v1522_v34 }
 0x277   : > { %v1526_v59 = vpop.f32.mrf.mxu1 }
 0x278   : > { %2232 = vst.msk [vmem:[%s3284_s11 + $0x1b0] sm:$0xff] %vm3286_vm4, %v2614_v58 }
 0x279   : > { %v1528_v31 = vpop.f32.mrf.mxu1 }
 0x27a   : > { %v2615_v39 = vpack.c.bf16 %v1528_v31, %v1526_v59 }
 0x27b   : > { %v1532_v42 = vpop.f32.mrf.mxu1 }
 0x27c   : > { %2233 = vst.msk [vmem:[%s3284_s11 + $0x1b8] sm:$0xff] %vm3286_vm4, %v2615_v39 }
 0x27d   : > { %v1534_v44 = vpop.f32.mrf.mxu1 }
 0x27e   : > { %v2616_v60 = vpack.c.bf16 %v1534_v44, %v1532_v42 }
 0x27f   : > { %v1536_v61 = vpop.f32.mrf.mxu1 }
 0x280   : > { %2234 = vst.msk [vmem:[%s3284_s11 + $0x1c0] sm:$0xff] %vm3286_vm4, %v2616_v60 }
 0x281   : > { %v1538_v38 = vpop.f32.mrf.mxu1 }
 0x282   : > { %v2617_v40 = vpack.c.bf16 %v1538_v38, %v1536_v61 }
 0x283   : > { %v1542_v41 = vpop.f32.mrf.mxu1 }
 0x284   : > { %2235 = vst.msk [vmem:[%s3284_s11 + $0x1c8] sm:$0xff] %vm3286_vm4, %v2617_v40 }
 0x285   : > { %v1544_v62 = vpop.f32.mrf.mxu1 }
 0x286   : > { %v2618_v63 = vpack.c.bf16 %v1544_v62, %v1542_v41 }
 0x287   : > { %v1546_v0 = vpop.f32.mrf.mxu1 }
 0x288   : > { %2236 = vst.msk [vmem:[%s3284_s11 + $0x1d0] sm:$0xff] %vm3286_vm4, %v2618_v63 }
 0x289   : > { %v1548_v1 = vpop.f32.mrf.mxu1 }
 0x28a   : > { %v2619_v2 = vpack.c.bf16 %v1548_v1, %v1546_v0 }
 0x28b   : > { %v1552_v3 = vpop.f32.mrf.mxu1 }
 0x28c   : > { %2237 = vst.msk [vmem:[%s3284_s11 + $0x1d8] sm:$0xff] %vm3286_vm4, %v2619_v2 }
 0x28d   : > { %v1554_v4 = vpop.f32.mrf.mxu1 }
 0x28e   : > { %v2620_v17 = vpack.c.bf16 %v1554_v4, %v1552_v3 }
 0x28f   : > { %v1556_v19 = vpop.f32.mrf.mxu1 }
 0x290   : > { %2238 = vst.msk [vmem:[%s3284_s11 + $0x1e0] sm:$0xff] %vm3286_vm4, %v2620_v17 }
 0x291   : > { %v1558_v20 = vpop.f32.mrf.mxu1 }
 0x292   : > { %v2621_v5 = vpack.c.bf16 %v1558_v20, %v1556_v19 }
 0x293   : > { %v1562_v6 = vpop.f32.mrf.mxu1 }
 0x294   : > { %2239 = vst.msk [vmem:[%s3284_s11 + $0x1e8] sm:$0xff] %vm3286_vm4, %v2621_v5 }
 0x295   : > { %v1564_v7 = vpop.f32.mrf.mxu1 }
 0x296   : > { %v2622_v8 = vpack.c.bf16 %v1564_v7, %v1562_v6 }
 0x297   : > { %v1566_v9 = vpop.f32.mrf.mxu1 }
 0x298   : > { %2240 = vst.msk [vmem:[%s3284_s11 + $0x1f0] sm:$0xff] %vm3286_vm4, %v2622_v8 }
 0x299   : > { %v1568_v10 = vpop.f32.mrf.mxu1 }
 0x29a   : > { %v2623_v12 = vpack.c.bf16 %v1568_v10, %v1566_v9 }
 0x29b   : > { %v1572_v15 = vpop.f32.mrf.mxu1 }
 0x29c   : > { %2241 = vst.msk [vmem:[%s3284_s11 + $0x1f8] sm:$0xff] %vm3286_vm4, %v2623_v12 }
 0x29d   : > { %v1574_v16 = vpop.f32.mrf.mxu1 }
 0x29e   : > { %v2624_v24 = vpack.c.bf16 %v1574_v16, %v1572_v15 }
 0x29f   : > { %v1576_v27 = vpop.f32.mrf.mxu1 }
 0x2a0   : > { %2242 = vst.msk [vmem:[%s3284_s11 + $0x200] sm:$0xff] %vm3286_vm4, %v2624_v24 }
 0x2a1   : > { %v1578_v29 = vpop.f32.mrf.mxu1 }
 0x2a2   : > { %v2625_v22 = vpack.c.bf16 %v1578_v29, %v1576_v27 }
 0x2a3   : > { %v1582_v28 = vpop.f32.mrf.mxu1 }
 0x2a4   : > { %2243 = vst.msk [vmem:[%s3284_s11 + $0x208] sm:$0xff] %vm3286_vm4, %v2625_v22 }
 0x2a5   : > { %v1584_v36 = vpop.f32.mrf.mxu1 }
 0x2a6   : > { %v2626_v43 = vpack.c.bf16 %v1584_v36, %v1582_v28 }
 0x2a7   : > { %v1586_v45 = vpop.f32.mrf.mxu1 }
 0x2a8   : > { %2244 = vst.msk [vmem:[%s3284_s11 + $0x210] sm:$0xff] %vm3286_vm4, %v2626_v43 }
 0x2a9   : > { %v1588_v46 = vpop.f32.mrf.mxu1 }
 0x2aa   : > { %v2627_v47 = vpack.c.bf16 %v1588_v46, %v1586_v45 }
 0x2ab   : > { %v1592_v48 = vpop.f32.mrf.mxu1 }
 0x2ac   : > { %2245 = vst.msk [vmem:[%s3284_s11 + $0x218] sm:$0xff] %vm3286_vm4, %v2627_v47 }
 0x2ad   : > { %v1594_v11 = vpop.f32.mrf.mxu1 }
 0x2ae   : > { %v2628_v23 = vpack.c.bf16 %v1594_v11, %v1592_v48 }
 0x2af   : > { %v1596_v25 = vpop.f32.mrf.mxu1 }
 0x2b0   : > { %2246 = vst.msk [vmem:[%s3284_s11 + $0x220] sm:$0xff] %vm3286_vm4, %v2628_v23 }
 0x2b1   : > { %v1598_v26 = vpop.f32.mrf.mxu1 }
 0x2b2   : > { %v2629_v13 = vpack.c.bf16 %v1598_v26, %v1596_v25 }
 0x2b3   : > { %v1602_v14 = vpop.f32.mrf.mxu1 }
 0x2b4   : > { %2247 = vst.msk [vmem:[%s3284_s11 + $0x228] sm:$0xff] %vm3286_vm4, %v2629_v13 }
 0x2b5   : > { %v1604_v49 = vpop.f32.mrf.mxu1 }
 0x2b6   : > { %v2630_v50 = vpack.c.bf16 %v1604_v49, %v1602_v14 }
 0x2b7   : > { %v1606_v52 = vpop.f32.mrf.mxu1 }
 0x2b8   : > { %2248 = vst.msk [vmem:[%s3284_s11 + $0x230] sm:$0xff] %vm3286_vm4, %v2630_v50 }
 0x2b9   : > { %v1608_v53 = vpop.f32.mrf.mxu1 }
 0x2ba   : > { %v2631_v32 = vpack.c.bf16 %v1608_v53, %v1606_v52 }
 0x2bb   : > { %v1612_v35 = vpop.f32.mrf.mxu1 }
 0x2bc   : > { %2249 = vst.msk [vmem:[%s3284_s11 + $0x238] sm:$0xff] %vm3286_vm4, %v2631_v32 }
 0x2bd   : > { %v1614_v37 = vpop.f32.mrf.mxu1 }
 0x2be   : > { %v2632_v54 = vpack.c.bf16 %v1614_v37, %v1612_v35 }
 0x2bf   : > { %v1616_v18 = vpop.f32.mrf.mxu1 }
 0x2c0   : > { %2250 = vst.msk [vmem:[%s3284_s11 + $0x240] sm:$0xff] %vm3286_vm4, %v2632_v54 }
 0x2c1   : > { %v1618_v21 = vpop.f32.mrf.mxu1 }
 0x2c2   : > { %v2633_v55 = vpack.c.bf16 %v1618_v21, %v1616_v18 }
 0x2c3   : > { %v1622_v56 = vpop.f32.mrf.mxu1 }
 0x2c4   : > { %2251 = vst.msk [vmem:[%s3284_s11 + $0x248] sm:$0xff] %vm3286_vm4, %v2633_v55 }
 0x2c5   : > { %v1624_v30 = vpop.f32.mrf.mxu1 }
 0x2c6   : > { %v2634_v33 = vpack.c.bf16 %v1624_v30, %v1622_v56 }
 0x2c7   : > { %v1626_v34 = vpop.f32.mrf.mxu1 }
 0x2c8   : > { %2252 = vst.msk [vmem:[%s3284_s11 + $0x250] sm:$0xff] %vm3286_vm4, %v2634_v33 }
 0x2c9   : > { %v1628_v57 = vpop.f32.mrf.mxu1 }
 0x2ca   : > { %v2635_v58 = vpack.c.bf16 %v1628_v57, %v1626_v34 }
 0x2cb   : > { %v1632_v59 = vpop.f32.mrf.mxu1 }
 0x2cc   : > { %2253 = vst.msk [vmem:[%s3284_s11 + $0x258] sm:$0xff] %vm3286_vm4, %v2635_v58 }
 0x2cd   : > { %v1634_v31 = vpop.f32.mrf.mxu1 }
 0x2ce   : > { %v2636_v39 = vpack.c.bf16 %v1634_v31, %v1632_v59 }
 0x2cf   : > { %v1636_v42 = vpop.f32.mrf.mxu1 }
 0x2d0   : > { %2254 = vst.msk [vmem:[%s3284_s11 + $0x260] sm:$0xff] %vm3286_vm4, %v2636_v39 }
 0x2d1   : > { %v1638_v44 = vpop.f32.mrf.mxu1 }
 0x2d2   : > { %v2637_v60 = vpack.c.bf16 %v1638_v44, %v1636_v42 }
 0x2d3   : > { %v1642_v61 = vpop.f32.mrf.mxu1 }
 0x2d4   : > { %2255 = vst.msk [vmem:[%s3284_s11 + $0x268] sm:$0xff] %vm3286_vm4, %v2637_v60 }
 0x2d5   : > { %v1644_v38 = vpop.f32.mrf.mxu1 }
 0x2d6   : > { %v2638_v40 = vpack.c.bf16 %v1644_v38, %v1642_v61 }
 0x2d7   : > { %v1646_v41 = vpop.f32.mrf.mxu1 }
 0x2d8   : > { %2256 = vst.msk [vmem:[%s3284_s11 + $0x270] sm:$0xff] %vm3286_vm4, %v2638_v40 }
 0x2d9   : > { %v1648_v62 = vpop.f32.mrf.mxu1 }
 0x2da   : > { %v2639_v63 = vpack.c.bf16 %v1648_v62, %v1646_v41 }
 0x2db   : > { %v1652_v0 = vpop.f32.mrf.mxu1 }
 0x2dc   : > { %2257 = vst.msk [vmem:[%s3284_s11 + $0x278] sm:$0xff] %vm3286_vm4, %v2639_v63 }
 0x2dd   : > { %v1654_v1 = vpop.f32.mrf.mxu1 }
 0x2de   : > { %v2640_v2 = vpack.c.bf16 %v1654_v1, %v1652_v0 }
 0x2df   : > { %v1656_v3 = vpop.f32.mrf.mxu1 }
 0x2e0   : > { %2258 = vst.msk [vmem:[%s3284_s11 + $0x280] sm:$0xff] %vm3286_vm4, %v2640_v2 }
 0x2e1   : > { %v1658_v4 = vpop.f32.mrf.mxu1 }
 0x2e2   : > { %v2641_v17 = vpack.c.bf16 %v1658_v4, %v1656_v3 }
 0x2e3   : > { %v1662_v19 = vpop.f32.mrf.mxu1 }
 0x2e4   : > { %2259 = vst.msk [vmem:[%s3284_s11 + $0x288] sm:$0xff] %vm3286_vm4, %v2641_v17 }
 0x2e5   : > { %v1664_v20 = vpop.f32.mrf.mxu1 }
 0x2e6   : > { %v2642_v5 = vpack.c.bf16 %v1664_v20, %v1662_v19 }
 0x2e7   : > { %v1666_v6 = vpop.f32.mrf.mxu1 }
 0x2e8   : > { %2260 = vst.msk [vmem:[%s3284_s11 + $0x290] sm:$0xff] %vm3286_vm4, %v2642_v5 }
 0x2e9   : > { %v1668_v7 = vpop.f32.mrf.mxu1 }
 0x2ea   : > { %v2643_v8 = vpack.c.bf16 %v1668_v7, %v1666_v6 }
 0x2ec   : > { %2261 = vst.msk [vmem:[%s3284_s11 + $0x298] sm:$0xff] %vm3286_vm4, %v2643_v8 }
 0x2ed PF: > { %s14_s12 = sadd.s32 1, %s2906_s12  }
 0x2ee   : > { %p11_p1 = scmp.ge.s32.totalorder %s14_s12, 4  }
 0x2f0   :  { %13 = sbr.rel (!%p11_p1) target bundleno = 1 (0x1), region = 67 }
 0x2f5   :  { %2283 = vsyncpa [#allocation3], 1 }
 0x2f6   :  { %2285 = vsyncpa [#allocation3 + $0x1], 1 }

// kernel: diffusion_model_forward.3
= control target key start
LH: loop header
LB: loop body
LE: loop exit
PB: predicated region body
PF: predicated region fallthrough
CT: control target
= control target key end

     0   :  { %14 = vsyncpa [#allocation6], 0  ;;  %s11876_s0 = inlined_call_operand.vmem [shape: f32[4], index: 0, kind: input, shape index: {}]   ;;  %s11877_s1 = inlined_call_operand.vmem [shape: f32[2,64,1], index: 1, kind: input, shape index: {}]   ;;  %s11878_s2 = inlined_call_operand.vmem [shape: f32[2,3,1024], index: 2, kind: input, shape index: {}]   ;;  %s11879_s3 = inlined_call_operand.vmem [shape: f32[2,3,1024], index: 3, kind: input, shape index: {}]   ;;  %s11880_s4 = inlined_call_operand.hbm [shape: f32[9,1024], index: 4, kind: input, shape index: {}]   ;;  %s11881_s5 = inlined_call_operand.hbm [shape: bf16[32,27], index: 5, kind: input, shape index: {}]   ;;  %s11882_s6 = inlined_call_operand.vmem [shape: f32[32,1], index: 6, kind: input, shape index: {}]   ;;  %s11883_s7 = inlined_call_operand.hbm [shape: bf16[3,288], index: 7, kind: input, shape index: {}]   ;;  %s11884_s8 = inlined_call_operand.vmem [shape: f32[3,1], index: 8, kind: input, shape index: {}]   ;;  %s11885_s9 = inlined_call_operand.vmem [shape: bf16[2,3,1024], index: 9, kind: output, shape index: {}]  }
   0x1   :  { %15 = vsyncpa [#allocation5], 0 }
   0x2   :  { %16 = vsyncpa [#allocation9], 0  ;;  %s6788_s30 = smov 0  }
   0x3 LB: > { %s6794_s10 = sadd.s32 4294967295, %s6712_s30   ;;  %p5918_p0 = scmp.ge.s32.totalorder %s6712_s30, 1  ;;  %s6712_s30 = sphi %s6788_s30, %s22_s30  }
   0x4   : > { %p257_p1 = scmp.lt.s32.totalorder %s6712_s30, 3  ;;  %p6264_p2 = scmp.eq.s32.totalorder %s6794_s10, 0 }
   0x5   : > { %s6714_s11 = smov [#allocation8]   ;;  %s270_s16 = sshll.u32 %s11876_s0, 4  ;;  %s271_s16 = int_to_ptr.vmem [resolvable:$true] %s270_s16 }
   0x6   : > { %s293_s12 = sshll.u32 %s6714_s11, 4  ;;  %p6799_p3 = pnand %p5918_p0, %p257_p1  ;;  %s294_s12 = int_to_ptr.vmem [resolvable:$true] %s293_s12 }
   0x7   : > { %s6715_s18 = smov [#allocation7]   ;;  %s6612_s20 = scalar_lea.vmem %s294_s12, 256 }
   0x8   : > { %p6251_p4 = pneg %p6799_p3  ;;  %s280_s19 = sshll.u32 %s6715_s18, 4  ;;  %s6814_s19 = int_to_ptr.vmem [resolvable:$true] %s280_s19 }
   0x9   : > { %p6613_p7 = scmp.ne.s32.totalorder %s294_s12, %s6612_s20  ;;  %p6620_p10 = scmp.lt.s32.totalorder %s294_s12, %s294_s12 }
   0xa   : > { %p6810_p5 = pnand %p6264_p2, %p6251_p4  ;;  %p6621_p11 = scmp.lt.s32.totalorder %s6612_s20, %s6612_s20 }
   0xc   : > { %p6603_p6 = pneg %p6810_p5  ;;  %p6622_p12 = por %p6621_p11, %p6620_p10 }
   0xe   : > { %p6615_p8 = pnand %p6613_p7, %p6603_p6 }
  0x10   : > { %p6616_p9 = pneg %p6615_p8 }
  0x12   : > { %p6623_p13 = pnand %p6622_p12, %p6616_p9 }
  0x14   : > { %6626 = shalt.err (!%p6623_p13)
}
  0x15   : > { %s6716_s21 = smov 64   ;;  %s6717_s22 = smov 4  }
  0x16   : > { %6260 = dma.hbm_to_vmem [thread:$0]  (!%p6810_p5), %s11881_s5, 256, %s294_s12, [#allocation9], %s6716_s21, %s6716_s21, %s6717_s22  }
  0x17   : > { %s6627_s25 = scalar_lea.vmem %s271_s16, 16  ;;  %p6635_p7 = scmp.lt.s32.totalorder %s271_s16, %s271_s16 }
  0x18   : > { %p6628_p0 = scmp.ne.s32.totalorder %s271_s16, %s6627_s25  ;;  %p6636_p8 = scmp.lt.s32.totalorder %s6627_s25, %s6627_s25 }
  0x1a   : > { %p6630_p1 = pnand %p6628_p0, %p6603_p6  ;;  %p6637_p10 = por %p6636_p8, %p6635_p7 }
  0x1c   : > { %p6631_p4 = pneg %p6630_p1 }
  0x1e   : > { %p6638_p9 = pnand %p6637_p10, %p6631_p4 }
  0x20   : > { %6641 = shalt.err (!%p6638_p9)
}
  0x21   : > { %s6718_s26 = smov [#allocation4]   ;;  %s6653_s27 = scalar_lea.vmem %s6814_s19, 2048 }
  0x22   : > { %6254 = dma.vmem_to_smem (!%p6810_p5), %s271_s16, 16, %s6718_s26, [#allocation6]  }
  0x23   : > { %p6654_p11 = scmp.ne.s32.totalorder %s6814_s19, %s6653_s27  ;;  %p6661_p0 = scmp.lt.s32.totalorder %s6814_s19, %s6814_s19 }
  0x24   : > { %p6662_p1 = scmp.lt.s32.totalorder %s6653_s27, %s6653_s27 }
  0x25   : > { %p6656_p12 = pnand %p6654_p11, %p6603_p6 }
  0x26   : > { %p6663_p7 = por %p6662_p1, %p6661_p0 }
  0x27   : > { %p6657_p13 = pneg %p6656_p12 }
  0x29   : > { %p6664_p4 = pnand %p6663_p7, %p6657_p13 }
  0x2b   : > { %6667 = shalt.err (!%p6664_p4)
}
  0x2c   : > { %s6719_s28 = smov 1024   ;;  %s6720_s12 = smov [#allocation10]  }
  0x2d   : > { %6257 = dma.hbm_to_vmem [thread:$0]  (!%p6810_p5), %s11880_s4, 2048, %s6814_s19, [#allocation5], %s6719_s28, %s6719_s28, %s6716_s21  }
  0x2e   : > { %s310_s14 = sshll.u32 %s6720_s12, 4  ;;  %s311_s14 = int_to_ptr.vmem [resolvable:$true] %s310_s14 }
  0x2f   : > { %s6679_s15 = scalar_lea.vmem %s311_s14, 96  ;;  %p6687_p11 = scmp.lt.s32.totalorder %s311_s14, %s311_s14 }
  0x30   : > { %p6680_p8 = scmp.ne.s32.totalorder %s311_s14, %s6679_s15  ;;  %p6688_p12 = scmp.lt.s32.totalorder %s6679_s15, %s6679_s15 }
  0x32   : > { %p6682_p10 = pnand %p6680_p8, %p6603_p6  ;;  %p6689_p13 = por %p6688_p12, %p6687_p11 }
  0x34   : > { %p6683_p9 = pneg %p6682_p10 }
  0x36   : > { %p6690_p0 = pnand %p6689_p13, %p6683_p9 }
  0x38   : > { %6693 = shalt.err (!%p6690_p0)
}
  0x39   : > { %6263 = dma.hbm_to_vmem [thread:$0]  (!%p6810_p5), %s11883_s7, 96, %s311_s14, [#allocation9]  }
  0x3a   : > { %350 = sbr.rel (%p6799_p3) target bundleno = 2158 (0x86e), region = 56 }
  0x3f   : > { %6699 = dma.done.wait (%p6264_p2), [#allocation6], 16  }
  0x40   : > { %6701 = vsyncadd (%p6264_p2), [#allocation6], 4294967280 }
  0x41   : > { %6703 = dma.done.wait (%p6264_p2), [#allocation5], 2048  }
  0x42   : > { %6705 = vsyncadd (%p6264_p2), [#allocation5], 4294965248 }
  0x43   : > { %6707 = dma.done.wait (%p6264_p2), [#allocation9], 352  }
  0x44   : > { %6709 = vsyncadd (%p6264_p2), [#allocation9], 4294966944 }
  0x45   : > { %368 = sfence }
  0x46   : > { %v526_v0 = vlaneseq  ;;  %v6866_v1 = vld [vmem:[#allocation7] sm:$0xff]  ;;  %p409_p3 = scmp.lt.s32.totalorder %s6794_s10, 1  ;;  %v6873_v4 = vld [vmem:[#allocation7 + $0x8] sm:$0xff]  ;;  %s6875_s13 = sld [smem:[#allocation4]]  ;;  %v6890_v8 = vld [vmem:[#allocation7 + $0x10] sm:$0xff]  ;;  %vm464_vm0 = vcmask 518144  }
  0x47   : > { %v6869_v2 = vld [vmem:[#allocation7 + $0x40] sm:$0x1]  ;;  %v6877_v5 = vld [vmem:[#allocation7 + $0x48] sm:$0x1]  ;;  %v6892_v9 = vld [vmem:[#allocation7 + $0x18] sm:$0xff]  ;;  %s6894_s17 = sld [smem:[#allocation4 + $0x1]] }
  0x48   : > { %v6871_v3 = vshrl.u32 %v526_v0, 7  ;;  %v6881_v6 = vpack.c.bf16 %v6869_v2, %v6866_v1  ;;  %s12861_s10 = smov (!%p409_p3, %s6794_s10), 1  ;;  %v6888_v7 = vpack.c.bf16 %v6877_v5, %v6873_v4  ;;  %s6721_s26 = smov 65   ;;  %v515_v52 = vld [vmem:[#allocation7 + $0x50] sm:$0x1]  ;;  %vm466_vm1 = vcmask 1042944  }
  0x49   : > { %s6216_s19 = sshll.u32 %s12861_s10, 5  ;;  %s6722_s27 = smov 95   ;;  %v516_v53 = vld [vmem:[#allocation7 + $0x58] sm:$0x1]  ;;  %v6971_v56 = vpack.c.bf16 %v515_v52, %v6890_v8  ;;  %vm498_vm2 = vcmask 1046532   ;;  %vm484_vm3 = vcmask 523264  }
  0x4a   : > { %12204 = vst [vmem:[#allocation14_spill] sm:$0xff] %v6871_v3  ;;  %v6897_v10 = vsub.s32 5, %v6871_v3  ;;  %v6900_v11 = vsub.s32 6, %v6871_v3  ;;  %v6903_v12 = vsub.s32 7, %v6871_v3  ;;  %s6909_s22 = scalar_lea.vmem %s11878_s2, %s6216_s19  ;;  %s6914_s25 = scalar_lea.vmem %s11879_s3, %s6216_s19  ;;  %v6952_v40 = vsub.s32 0, %v6871_v3  ;;  %vm499_vm4 = vmor %vm498_vm2, %vm466_vm1 }
  0x4b   : > { %v434_v17 = vld [vmem:[%s6909_s22] sm:$0x77]  ;;  %v436_v22 = vld [vmem:[%s6909_s22 + $0x10] sm:$0x77]  ;;  %v435_v23 = vld [vmem:[%s6909_s22 + $0x8] sm:$0x77]  ;;  %v6974_v57 = vpack.c.bf16 %v516_v53, %v6892_v9 }
  0x4c   : > { %v906_v13 = vrot.slane %v6890_v8, %v6897_v10  ;;  %v910_v14 = vrot.slane %v6892_v9, %v6897_v10  ;;  %v898_v15 = vrot.slane %v6866_v1, %v6897_v10  ;;  %v902_v16 = vrot.slane %v6873_v4, %v6897_v10  ;;  %v451_v27 = vld [vmem:[%s6914_s25] sm:$0x77]  ;;  %v453_v32 = vld [vmem:[%s6914_s25 + $0x10] sm:$0x77]  ;;  %v452_v33 = vld [vmem:[%s6914_s25 + $0x8] sm:$0x77] }
  0x4d   : > { %v980_v18 = vrot.slane %v6890_v8, %v6900_v11  ;;  %v984_v19 = vrot.slane %v6892_v9, %v6900_v11  ;;  %v972_v20 = vrot.slane %v6866_v1, %v6900_v11  ;;  %v976_v21 = vrot.slane %v6873_v4, %v6900_v11  ;;  %s6723_s28 = smov 96   ;;  %s6724_s29 = smov 64  }
  0x4e   : > { %v936_v24 = vcombine.low %v906_v13, %v910_v14  ;;  %v935_v25 = vcombine.low %v898_v15, %v902_v16  ;;  %v1046_v26 = vrot.slane %v6866_v1, %v6903_v12  ;;  %v1050_v30 = vrot.slane %v6873_v4, %v6903_v12  ;;  %s6725_s11 = smov 97   ;;  %s6726_s12 = smov 33  }
  0x4f   : > { %v1010_v28 = vcombine.low %v980_v18, %v984_v19  ;;  %v1009_v29 = vcombine.low %v972_v20, %v976_v21  ;;  %v438_v31 = vmul.f32 2.0, %v434_v17  ;;  %v6945_v34 = vstv %s6875_s13  ;;  %s6727_s14 = smov 63   ;;  %s6728_s15 = smov 32  }
  0x50   : > { %941 = vrot.lane.b32.xlu0 %v936_v24, %s6721_s26  ;;  %939 = vrot.lane.b32.xlu1 %v935_v25, %s6721_s26  ;;  %v6948_v35 = vstv %s6894_s17  ;;  %v440_v36 = vmul.f32 2.0, %v436_v22  ;;  %v439_v37 = vmul.f32 2.0, %v435_v23  ;;  %v1083_v43 = vcombine.low %v1046_v26, %v1050_v30  ;;  %v7005_v23 = vld [vmem:[#allocation7 + $0x20] sm:$0xff]  ;;  %v7007_v24 = vld [vmem:[#allocation7 + $0x28] sm:$0xff]  ;;  %s6730_s16 = smov 31   ;;  %s11900_s18 = smov 94  }
  0x51   : > { %v5940_v38 = vadd.f32 -1.0, %v438_v31  ;;  %v456_v39 = vmul.f32 %v6948_v35, %v451_v27  ;;  %v458_v45 = vmul.f32 %v6948_v35, %v453_v32  ;;  %v457_v48 = vmul.f32 %v6948_v35, %v452_v33  ;;  %v7009_v25 = vld [vmem:[#allocation7 + $0x60] sm:$0x1]  ;;  %v7011_v26 = vld [vmem:[#allocation7 + $0x68] sm:$0x1]  ;;  %s6733_s13 = smov 62  }
  0x52   : > { %v5942_v41 = vadd.f32 -1.0, %v440_v36  ;;  %v5941_v42 = vadd.f32 -1.0, %v439_v37  ;;  %v6962_v50 = vsub.s32 2, %v6871_v3  ;;  %v1120_v51 = vrot.slane %v6869_v2, %v6952_v40  ;;  %v437_v2 = vld [vmem:[%s6909_s22 + $0x18] sm:$0x77]  ;;  %s11902_s17 = smov 126  }
  0x53   : > { %v447_v44 = vmul.f32 %v5940_v38, %v6945_v34  ;;  %v1124_v54 = vrot.slane %v6877_v5, %v6952_v40  ;;  %v1054_v55 = vrot.slane %v6890_v8, %v6903_v12  ;;  %v1058_v60 = vrot.slane %v6892_v9, %v6903_v12  ;;  %v454_v38 = vld [vmem:[%s6914_s25 + $0x18] sm:$0x77]  ;;  %s6735_s19 = smov 127   ;;  %s6215_s20 = sshll.u32 %s12861_s10, 6 }
  0x54   : > { %1015 = vrot.lane.b32.xlu0 %v1010_v28, %s6722_s27  ;;  %1013 = vrot.lane.b32.xlu1 %v1009_v29, %s6722_s27  ;;  %v449_v46 = vmul.f32 %v5942_v41, %v6945_v34  ;;  %v448_v47 = vmul.f32 %v5941_v42, %v6945_v34  ;;  %12205 = vst [vmem:[#allocation15_spill] sm:$0xff] %v6962_v50  ;;  %v6981_v61 = vsub.s32 3, %v6871_v3  ;;  %v441_v15 = vmul.f32 2.0, %v437_v2  ;;  %s7550_s23 = scalar_lea.vmem %s11877_s1, %s6215_s20 }
  0x55   : > { %v460_v49 = vadd.f32 %v456_v39, %v447_v44  ;;  %v1157_v62 = vcombine.low %v1120_v51, %v1124_v54  ;;  %v677_v63 = vrot.slane %v6866_v1, %v6962_v50  ;;  %v681_v0 = vrot.slane %v6873_v4, %v6962_v50 }
  0x56   : > { %v462_v58 = vadd.f32 %v458_v45, %v449_v46  ;;  %v461_v59 = vadd.f32 %v457_v48, %v448_v47  ;;  %12206 = vst [vmem:[#allocation16_spill] sm:$0xff] %v6981_v61  ;;  %v1084_v5 = vcombine.low %v1054_v55, %v1058_v60  ;;  %v1128_v13 = vrot.slane %v515_v52, %v6952_v40  ;;  %v7043_v47 = vld [vmem:[#allocation7 + $0x30] sm:$0xff]  ;;  %v7045_v48 = vld [vmem:[#allocation7 + $0x38] sm:$0xff] }
  0x57   : > { %v1132_v14 = vrot.slane %v516_v53, %v6952_v40  ;;  %v6993_v16 = vsub.s32 1, %v6871_v3  ;;  %v714_v17 = vcombine.low %v677_v63, %v681_v0  ;;  %v751_v18 = vrot.slane %v6866_v1, %v6981_v61 }
  0x58   : > { %1087 = vrot.lane.b32.xlu1 %v1083_v43, %s6723_s28  ;;  %472 = vrot.lane.b32.xlu0 %v460_v49, %s6724_s29  ;;  %v755_v19 = vrot.slane %v6873_v4, %v6981_v61  ;;  %v685_v21 = vrot.slane %v6890_v8, %v6962_v50  ;;  %v689_v22 = vrot.slane %v6892_v9, %v6962_v50  ;;  %v5943_v27 = vadd.f32 -1.0, %v441_v15  ;;  %v7047_v49 = vld [vmem:[#allocation7 + $0x70] sm:$0x1] }
  0x59   : > { %v1158_v20 = vcombine.low %v1128_v13, %v1132_v14  ;;  %v7015_v28 = vpack.c.bf16 %v7009_v25, %v7005_v23  ;;  %v7019_v29 = vpack.c.bf16 %v7011_v26, %v7007_v24  ;;  %v603_v30 = vrot.slane %v6866_v1, %v6993_v16 }
  0x5a   : > { %v607_v31 = vrot.slane %v6873_v4, %v6993_v16  ;;  %v759_v32 = vrot.slane %v6890_v8, %v6981_v61  ;;  %v763_v33 = vrot.slane %v6892_v9, %v6981_v61  ;;  %v788_v36 = vcombine.low %v751_v18, %v755_v19 }
  0x5b   : > { %v715_v37 = vcombine.low %v685_v21, %v689_v22  ;;  %v7033_v39 = vsub.s32 4, %v6871_v3  ;;  %v450_v43 = vmul.f32 %v5943_v27, %v6945_v34  ;;  %v459_v44 = vmul.f32 %v6948_v35, %v454_v38  ;;  %v7049_v34 = vld [vmem:[#allocation7 + $0x78] sm:$0x1] }
  0x5c   : > { %476 = vrot.lane.b32.xlu1 %v462_v58, %s6724_s29  ;;  %474 = vrot.lane.b32.xlu0 %v461_v59, %s6724_s29  ;;  %v640_v41 = vcombine.low %v603_v30, %v607_v31  ;;  %v789_v42 = vcombine.low %v759_v32, %v763_v33  ;;  %v611_v45 = vrot.slane %v6890_v8, %v6993_v16  ;;  %v6729_v22 = vmov 0.0  }
  0x5d   : > { %12207 = vst [vmem:[#allocation17_spill] sm:$0xff] %v7033_v39  ;;  %v615_v46 = vrot.slane %v6892_v9, %v6993_v16  ;;  %v7053_v51 = vpack.c.bf16 %v7047_v49, %v7043_v47  ;;  %v7057_v35 = vpack.c.bf16 %v7049_v34, %v7045_v48  ;;  %v833_v52 = vrot.slane %v6890_v8, %v7033_v39 }
  0x5e   : > { %v837_v53 = vrot.slane %v6892_v9, %v7033_v39  ;;  %v825_v54 = vrot.slane %v6866_v1, %v7033_v39  ;;  %v463_v55 = vadd.f32 %v459_v44, %v450_v43  ;;  %v829_v59 = vrot.slane %v6873_v4, %v7033_v39  ;;  %465 = vst.msk [vmem:[#allocation2] sm:$0x7] %vm464_vm0, %v6729_v22 }
  0x5f   : > { %v641_v58 = vcombine.low %v611_v45, %v615_v46  ;;  %v988_v60 = vrot.slane %v7005_v23, %v6900_v11  ;;  %v914_v0 = vrot.slane %v7005_v23, %v6897_v10  ;;  %v537_v13 = vrot.slane %v6890_v8, %v6952_v40  ;;  %467 = vst.msk [vmem:[#allocation2 + $0x20] sm:$0x7] %vm466_vm1, %v6729_v22 }
  0x60   : > { %1161 = vrot.lane.b32.xlu1 %v1157_v62, %s6725_s11  ;;  %1089 = vrot.lane.b32.xlu0 %v1084_v5, %s6723_s28  ;;  %v992_v62 = vrot.slane %v7007_v24, %v6900_v11  ;;  %v863_v63 = vcombine.low %v833_v52, %v837_v53  ;;  %v862_v2 = vcombine.low %v825_v54, %v829_v59  ;;  %vm486_vm5 = vcmask 1043456  }
  0x61   : > { %v918_v5 = vrot.slane %v7007_v24, %v6897_v10  ;;  %v541_v14 = vrot.slane %v6892_v9, %v6952_v40  ;;  %v529_v15 = vrot.slane %v6866_v1, %v6952_v40  ;;  %v1136_v19 = vrot.slane %v7009_v25, %v6952_v40 }
  0x62   : > { %v1011_v18 = vcombine.low %v988_v60, %v992_v62  ;;  %v1066_v9 = vrot.slane %v7007_v24, %v6903_v12  ;;  %v771_v27 = vrot.slane %v7007_v24, %v6981_v61  ;;  %v693_v31 = vrot.slane %v7005_v23, %v6962_v50 }
  0x63   : > { %v7091_v21 = vcombine.low %v537_v13, %v541_v14  ;;  %v937_v1 = vcombine.low %v914_v0, %v918_v5  ;;  %v697_v32 = vrot.slane %v7007_v24, %v6962_v50  ;;  %v996_v44 = vrot.slane %v7043_v47, %v6900_v11 }
  0x64   : > { %718 = vrot.lane.b32.xlu1 %v714_v17, %s6726_s12  ;;  %1163 = vrot.lane.b32.xlu0 %v1158_v20, %s6725_s11  ;;  %v533_v17 = vrot.slane %v6873_v4, %v6952_v40  ;;  %v1140_v20 = vrot.slane %v7011_v26, %v6952_v40  ;;  %v1062_v4 = vrot.slane %v7005_v23, %v6903_v12  ;;  %vm1173_vm6 = vcmask 793600  }
  0x65   : > { %v767_v26 = vrot.slane %v7005_v23, %v6981_v61  ;;  %v716_v38 = vcombine.low %v693_v31, %v697_v32  ;;  %v1000_v45 = vrot.slane %v7045_v48, %v6900_v11  ;;  %v922_v52 = vrot.slane %v7043_v47, %v6897_v10 }
  0x66   : > { %v7093_v8 = vcombine.low %v529_v15, %v533_v17  ;;  %v1159_v25 = vcombine.low %v1136_v19, %v1140_v20  ;;  %v1085_v30 = vcombine.low %v1062_v4, %v1066_v9  ;;  %v926_v53 = vrot.slane %v7045_v48, %v6897_v10 }
  0x67   : > { %v790_v33 = vcombine.low %v767_v26, %v771_v27  ;;  %v1012_v54 = vcombine.low %v996_v44, %v1000_v45  ;;  %v1070_v59 = vrot.slane %v7043_v47, %v6903_v12  ;;  %v1074_v60 = vrot.slane %v7045_v48, %v6903_v12 }
  0x68   : > { %792 = vrot.lane.b32.xlu1 %v788_v36, %s6727_s14  ;;  %720 = vrot.lane.b32.xlu0 %v715_v37, %s6726_s12  ;;  %v841_v36 = vrot.slane %v7005_v23, %v7033_v39  ;;  %v845_v37 = vrot.slane %v7007_v24, %v7033_v39  ;;  %v938_v11 = vcombine.low %v922_v52, %v926_v53  ;;  %vm11912_vm7 = vcmask 531456  }
  0x69   : > { %v775_v10 = vrot.slane %v7043_v47, %v6981_v61  ;;  %v705_v0 = vrot.slane %v7045_v48, %v6962_v50  ;;  %v849_v12 = vrot.slane %v7043_v47, %v7033_v39  ;;  %v853_v5 = vrot.slane %v7045_v48, %v7033_v39 }
  0x6a   : > { %v864_v43 = vcombine.low %v841_v36, %v845_v37  ;;  %v627_v14 = vrot.slane %v7043_v47, %v6993_v16  ;;  %v631_v15 = vrot.slane %v7045_v48, %v6993_v16  ;;  %v553_v19 = vrot.slane %v7043_v47, %v6952_v40 }
  0x6b   : > { %v865_v17 = vcombine.low %v849_v12, %v853_v5  ;;  %v557_v20 = vrot.slane %v7045_v48, %v6952_v40  ;;  %v549_v4 = vrot.slane %v7007_v24, %v6952_v40  ;;  %vm1025_vm8 = vcmask 777216  }
  0x6c   : > { %644 = vrot.lane.b32.xlu1 %v640_v41, %s6728_s15  ;;  %794 = vrot.lane.b32.xlu0 %v789_v42, %s6727_s14  ;;  %v619_v41 = vrot.slane %v7005_v23, %v6993_v16  ;;  %v623_v42 = vrot.slane %v7007_v24, %v6993_v16  ;;  %vm1099_vm9 = vcmask 785408   ;;  %vm11928_vm10 = vcmask 269312  }
  0x6d   : > { %vm804_vm11 = vcmask 515072   ;;  %vm11938_vm12 = vcmask 261120   ;;  %vm1445_vm13 = vcmask 769024   ;;  %vm1596_vm14 = vcmask 506880  }
  0x6e   : > { %v642_v46 = vcombine.low %v619_v41, %v623_v42  ;;  %vm1663_vm15 = vcmask 1041408   ;;  %vm11941_vm1 = vcmask 252928   ;;  %vm1293_vm2 = vcmask 1031168  }
  0x70   : > { %478 = vrot.lane.b32.xlu1 %v463_v55, %s6724_s29  ;;  %646 = vrot.lane.b32.xlu0 %v641_v58, %s6728_s15  ;;  %v1144_v55 = vrot.slane %v7047_v49, %v6952_v40  ;;  %v1148_v58 = vrot.slane %v7049_v34, %v6952_v40  ;;  %v779_v49 = vrot.slane %v7045_v48, %v6981_v61 }
  0x71   : > { %v1086_v34 = vcombine.low %v1070_v59, %v1074_v60 }
  0x72   : > { %v1160_v62 = vcombine.low %v1144_v55, %v1148_v58 }
  0x74   : > { %868 = vrot.lane.b32.xlu1 %v863_v63, %s6724_s29  ;;  %866 = vrot.lane.b32.xlu0 %v862_v2, %s6724_s29  ;;  %v701_v63 = vrot.slane %v7043_v47, %v6962_v50  ;;  %v791_v2 = vcombine.low %v775_v10, %v779_v49  ;;  %v569_v47 = vcombine.low %v553_v19, %v557_v20 }
  0x76   : > { %v717_v13 = vcombine.low %v701_v63, %v705_v0 }
  0x78   : > { %1017 = vrot.lane.b32.xlu1 %v1011_v18, %s6722_s27  ;;  %943 = vrot.lane.b32.xlu0 %v937_v1, %s6721_s26  ;;  %v643_v18 = vcombine.low %v627_v14, %v631_v15  ;;  %v545_v1 = vrot.slane %v7005_v23, %v6952_v40 }
  0x7a   : > { %v568_v9 = vcombine.low %v545_v1, %v549_v4 }
  0x7c   : > { %1165 = vrot.lane.b32.xlu1 %v1159_v25, %s6725_s11  ;;  %1091 = vrot.lane.b32.xlu0 %v1085_v30, %s6723_s28 }
  0x80   : > { %796 = vrot.lane.b32.xlu1 %v790_v33, %s6727_s14  ;;  %722 = vrot.lane.b32.xlu0 %v716_v38, %s6726_s12  ;;  %v11886_v33 = vmov 0  }
  0x81   : > { %6464 = vset.pattern.permute.xlu0 %v11886_v33  ;;  %6465 = vset.pattern.permute.xlu1 %v11886_v33 }
  0x82   : > { %1883 = vmatprep.mubr.bf16.mxu0 %v11886_v33  ;;  %1936 = vmatprep.mubr.bf16.mxu1 %v11886_v33 }
  0x84   : > { %870 = vrot.lane.b32.xlu1 %v864_v43, %s6724_s29  ;;  %648 = vrot.lane.b32.xlu0 %v642_v46, %s6728_s15 }
  0x88   : > { %1019 = vrot.lane.b32.xlu1 %v1012_v54, %s6722_s27  ;;  %945 = vrot.lane.b32.xlu0 %v938_v11, %s6721_s26 }
  0x8c   : > { %1167 = vrot.lane.b32.xlu1 %v1160_v62, %s6725_s11  ;;  %1093 = vrot.lane.b32.xlu0 %v1086_v34, %s6723_s28 }
  0x90   : > { %798 = vrot.lane.b32.xlu1 %v791_v2, %s6727_s14  ;;  %724 = vrot.lane.b32.xlu0 %v717_v13, %s6726_s12 }
  0x94   : > { %872 = vrot.lane.b32.xlu1 %v865_v17, %s6724_s29  ;;  %650 = vrot.lane.b32.xlu0 %v643_v18, %s6728_s15 }
  0x98   : > { %572 = vrot.lane.b32.xlu1 %v7091_v21, %s6730_s16  ;;  %570 = vrot.lane.b32.xlu0 %v7093_v8, %s6730_s16 }
  0x9c   : > { %576 = vrot.lane.b32.xlu1 %v569_v47, %s6730_s16  ;;  %574 = vrot.lane.b32.xlu0 %v568_v9, %s6730_s16 }
  0xc2   : > { %v7181_v48 = vpop.permute.xlu0 %941  ;;  %v7183_v22 = vpop.permute.xlu1 %939 }
  0xc3   : > { %v947_v33 = vrot.slane %v7183_v22, 4 }
  0xc6   : > { %v7185_v23 = vpop.permute.xlu0 %1015  ;;  %v7187_v24 = vpop.permute.xlu1 %1013 }
  0xc7   : > { %v1021_v50 = vrot.slane %v7187_v24, 4 }
  0xca   : > { %v7189_v25 = vpop.permute.xlu1 %1087  ;;  %v473_v21 = vpop.permute.xlu0 %472 }
  0xcb   : > { %v480_v8 = vrot.slane %v473_v21, 4 }
  0xcd   : > { %v485_v26 = vsel %vm484_vm3, %v480_v8, %v473_v21 }
  0xce   : > { %500 = vst.msk [vmem:[#allocation2] sm:$0x77] %vm499_vm4, %v485_v26  ;;  %v477_v27 = vpop.permute.xlu1 %476  ;;  %v475_v30 = vpop.permute.xlu0 %474  ;;  %vm1634_vm4 = vcmask 1040384  }
  0xcf   : > { %v482_v31 = vrot.slane %v477_v27, 4  ;;  %v481_v32 = vrot.slane %v475_v30, 4 }
  0xd1   : > { %v487_v36 = vsel %vm486_vm5, %v480_v8, %v481_v32  ;;  %v489_v37 = vsel %vm486_vm5, %v481_v32, %v482_v31 }
  0xd2   : > { %v488_v38 = vsel %vm484_vm3, %v487_v36, %v475_v30  ;;  %v490_v41 = vsel %vm484_vm3, %v489_v37, %v477_v27  ;;  %v1162_v42 = vpop.permute.xlu1 %1161  ;;  %v7201_v43 = vpop.permute.xlu0 %1089 }
  0xd3   : > { %501 = vst [vmem:[#allocation2 + $0x8] sm:$0x77] %v488_v38  ;;  %502 = vst [vmem:[#allocation2 + $0x10] sm:$0x77] %v490_v41  ;;  %v1169_v20 = vrot.slane %v1162_v42, 4 }
  0xd5   : > { %v7251_v32 = vld [vmem:[#allocation2] sm:$0x77]  ;;  %v1174_v36 = vsel %vm1173_vm6, %v1169_v20, %v1162_v42 }
  0xd6   : > { %v7203_v44 = vpop.permute.xlu1 %718  ;;  %v1164_v45 = vpop.permute.xlu0 %1163 }
  0xd7   : > { %v1170_v14 = vrot.slane %v1164_v45, 4 }
  0xd9   : > { %v1175_v47 = vsel %vm486_vm5, %v1169_v20, %v1170_v14 }
  0xda   : > { %v7205_v46 = vpop.permute.xlu1 %792  ;;  %v7207_v52 = vpop.permute.xlu0 %720  ;;  %v1176_v41 = vsel %vm1173_vm6, %v1175_v47, %v1164_v45  ;;  %v1186_v45 = vmul.f32 %v1174_v36, %v7251_v32 }
  0xde   : > { %v7209_v53 = vpop.permute.xlu1 %644  ;;  %v7211_v54 = vpop.permute.xlu0 %794 }
  0xe2   : > { %v479_v55 = vpop.permute.xlu1 %478  ;;  %v7213_v58 = vpop.permute.xlu0 %646 }
  0xe3   : > { %v483_v11 = vrot.slane %v479_v55, 4 }
  0xe5   : > { %v491_v59 = vsel %vm486_vm5, %v482_v31, %v483_v11  ;;  %504 = vst.msk [vmem:[#allocation2 + $0x20] sm:$0x7] %vm464_vm0, %v483_v11  ;;  %vm1673_vm0 = vcmask 1044480  }
  0xe6   : > { %v492_v60 = vsel %vm484_vm3, %v491_v59, %v479_v55  ;;  %v7218_v62 = vpop.permute.xlu1 %868  ;;  %v867_v10 = vpop.permute.xlu0 %866  ;;  %v7257_v59 = vld [vmem:[#allocation2 + $0x8] sm:$0x77] }
  0xe7   : > { %503 = vst [vmem:[#allocation2 + $0x18] sm:$0x77] %v492_v60  ;;  %v874_v15 = vrot.slane %v867_v10, 4  ;;  %v875_v17 = vrot.slane %v7218_v62, 4 }
  0xe9   : > { %v878_v9 = vsel %vm484_vm3, %v874_v15, %v867_v10  ;;  %v879_v26 = vsel %vm486_vm5, %v874_v15, %v875_v17 }
  0xea   : > { %v7220_v49 = vpop.permute.xlu1 %1017  ;;  %v7222_v34 = vpop.permute.xlu0 %943  ;;  %v890_v55 = vmul.f32 %v878_v9, %v7251_v32  ;;  %v880_v15 = vsel %vm484_vm3, %v879_v26, %v7218_v62  ;;  %v1187_v62 = vmul.f32 %v1176_v41, %v7257_v59  ;;  %v12208_v41 = vrot.slane %v7181_v48, 4 }
  0xeb   : > { %v891_v26 = vmul.f32 %v880_v15, %v7257_v59 }
  0xec   : > { %v7240_v4 = vld [vmem:[#allocation2 + $0x20] sm:$0x7] }
  0xee   : > { %v1166_v63 = vpop.permute.xlu1 %1165  ;;  %v7224_v0 = vpop.permute.xlu0 %1091 }
  0xef   : > { %v1171_v27 = vrot.slane %v1166_v63, 4 }
  0xf1   : > { %v1177_v20 = vsel %vm486_vm5, %v1170_v14, %v1171_v27 }
  0xf2   : > { %v7226_v2 = vpop.permute.xlu1 %796  ;;  %v7228_v12 = vpop.permute.xlu0 %722  ;;  %v1178_v36 = vsel %vm1173_vm6, %v1177_v20, %v1166_v63  ;;  %v1370_v20 = vcombine.low %v891_v26, %v891_v26 }
  0xf6   : > { %v7230_v5 = vpop.permute.xlu1 %870  ;;  %v7232_v13 = vpop.permute.xlu0 %648 }
  0xf7   : > { %v876_v47 = vrot.slane %v7230_v5, 4 }
  0xfa   : > { %v7235_v18 = vpop.permute.xlu1 %1019  ;;  %v7237_v19 = vpop.permute.xlu0 %945 }
  0xfb   : > { %v11888_v1 = vrot.slane %v7237_v19, 4  ;;  %v11890_v21 = vrot.slane %v7235_v18, 4 }
  0xfd   : > { %v968_v8 = vmul.f32 %v11888_v1, %v7240_v4  ;;  %v1042_v42 = vmul.f32 %v11890_v21, %v7240_v4  ;;  %v881_v21 = vsel %vm486_vm5, %v875_v17, %v876_v47 }
  0xfe   : > { %v1168_v30 = vpop.permute.xlu1 %1167  ;;  %v7249_v31 = vpop.permute.xlu0 %1093 }
  0xff   : > { %v1172_v37 = vrot.slane %v1168_v30, 4  ;;  %v11889_v38 = vrot.slane %v7249_v31, 4  ;;  %v1426_v11 = vrot.slane %v968_v8, 1 }
 0x101   : > { %v1190_v60 = vmul.f32 %v1172_v37, %v7240_v4  ;;  %v1116_v10 = vmul.f32 %v11889_v38, %v7240_v4  ;;  %1443 = vrot.lane.b32.xlu0 %v1426_v11, %s11900_s18  ;;  %v1179_v1 = vsel %vm486_vm5, %v1171_v27, %v1172_v37  ;;  %v1480_v11 = vrot.slane %v1042_v42, 6  ;;  %v7291_v42 = vld [vmem:[#allocation2 + $0x10] sm:$0x77] }
 0x102   : > { %v7272_v9 = vpop.permute.xlu1 %798  ;;  %v1369_v38 = vcombine.low %v890_v55, %v890_v55  ;;  %v1180_v8 = vsel %vm1173_vm6, %v1179_v1, %v1168_v30  ;;  %v1574_v37 = vcombine.high %v1186_v45, %v1186_v45  ;;  %v1188_v17 = vmul.f32 %v1178_v36, %v7291_v42  ;;  %v7296_v1 = vld [vmem:[#allocation2 + $0x18] sm:$0x77] }
 0x103   : > { %1594 = vrot.lane.b32.xlu1 %v1190_v60, %s6733_s13  ;;  %v1533_v14 = vrot.slane %v1116_v10, 3  ;;  %v953_v60 = vsel %vm486_vm5, %v947_v33, %v12208_v41  ;;  %v1095_v10 = vrot.slane %v7189_v25, 4  ;;  %v882_v41 = vsel %vm484_vm3, %v881_v21, %v7230_v5 }
 0x104   : > { %v6304_v30 = vpack.i.bf16 %v1187_v62, %v1574_v37  ;;  %v1189_v3 = vmul.f32 %v1180_v8, %v7296_v1  ;;  %v6309_v61 = vpack.i.bf16 %v1369_v38, %v891_v26  ;;  %v11897_v36 = vrot.slane %v7207_v52, 4 }
 0x105   : > { %1550 = vrot.lane.b32.xlu0 %v1533_v14, %s6727_s14  ;;  %v1575_v14 = vcombine.high %v1187_v62, %v1187_v62  ;;  %v952_v5 = vsel %vm11912_vm7, %v947_v33, %v7183_v22  ;;  %v1022_v21 = vrot.slane %v7185_v23, 4  ;;  %v726_v8 = vrot.slane %v7203_v44, 4 }
 0x106   : > { %v7284_v27 = vpop.permute.xlu1 %872  ;;  %v954_v38 = vsel %vm11912_vm7, %v953_v60, %v7181_v48  ;;  %v892_v26 = vmul.f32 %v882_v41, %v7291_v42  ;;  %v6319_v37 = vpack.i.bf16 %v1370_v20, %v890_v55  ;;  %v1100_v22 = vsel %vm1099_vm9, %v1095_v10, %v7189_v25 }
 0x107   : > { %v11896_v15 = vrot.slane %v7284_v27, 4  ;;  %1497 = vrot.lane.b32.xlu1 %v1480_v11, %s6724_s29  ;;  %v732_v60 = vsel %vm486_vm5, %v726_v8, %v11897_v36  ;;  %v7331_v55 = vmul.f32 %v1100_v22, %v7251_v32  ;;  %v1027_v20 = vsel %vm486_vm5, %v1021_v50, %v1022_v21 }
 0x109   : > { %v883_v63 = vsel %vm486_vm5, %v876_v47, %v11896_v15  ;;  %6305 = vrot.lane.b32.xlu0 %v6304_v30, %s6733_s13  ;;  %v12209_v47 = vrot.slane %v7201_v43, 4  ;;  %v6314_v30 = vpack.i.bf16 %v1186_v45, %v1575_v14  ;;  %v1577_v15 = vcombine.high %v1189_v3, %v1189_v3 }
 0x10a   : > { %v884_v11 = vsel %vm484_vm3, %v883_v63, %v7284_v27  ;;  %v1576_v63 = vcombine.high %v1188_v17, %v1188_v17  ;;  %v731_v45 = vsel %vm11928_vm10, %v726_v8, %v7203_v44  ;;  %v7349_v8 = vmul.f32 %v954_v38, %v7257_v59 }
 0x10b   : > { %6310 = vrot.lane.b32.xlu1 %v6309_v61, %s6722_s27  ;;  %v1101_v62 = vsel %vm486_vm5, %v1095_v10, %v12209_v47  ;;  %v893_v33 = vmul.f32 %v884_v11, %v7296_v1  ;;  %v1026_v61 = vsel %vm1025_vm8, %v1021_v50, %v7187_v24  ;;  %v11899_v47 = vrot.slane %v7211_v54, 4 }
 0x10c   : > { %v1102_v25 = vsel %vm1099_vm9, %v1101_v62, %v7201_v43  ;;  %v800_v10 = vrot.slane %v7205_v46, 4  ;;  %v7340_v24 = vmul.f32 %v952_v5, %v7251_v32  ;;  %v6324_v41 = vpack.i.bf16 %v1576_v63, %v1188_v17 }
 0x10d   : > { %6320 = vrot.lane.b32.xlu0 %v6319_v37, %s6722_s27  ;;  %v1113_v14 = vmul.f32 %v1102_v25, %v7257_v59  ;;  %v1371_v11 = vcombine.low %v892_v26, %v892_v26  ;;  %v733_v62 = vsel %vm11928_vm10, %v732_v60, %v7207_v52  ;;  %v6334_v37 = vpack.i.bf16 %v1577_v15, %v1189_v3 }
 0x10e   : > { %v1372_v44 = vcombine.low %v893_v33, %v893_v33  ;;  %v7352_v22 = vmul.f32 %v731_v45, %v7251_v32  ;;  %v806_v5 = vsel %vm486_vm5, %v800_v10, %v11899_v47  ;;  %v11898_v50 = vrot.slane %v7213_v58, 4 }
 0x10f   : > { %6315 = vrot.lane.b32.xlu1 %v6314_v30, %s6733_s13  ;;  %v1521_v17 = vcombine.high %v7331_v55, %v7331_v55  ;;  %v805_v3 = vsel %vm804_vm11, %v800_v10, %v7205_v46  ;;  %v652_v15 = vrot.slane %v7209_v53, 4  ;;  %v1414_v38 = vcombine.high %v7340_v24, %v7340_v24 }
 0x110   : > { %v7368_v63 = vmul.f32 %v1026_v61, %v7251_v32  ;;  %v744_v30 = vmul.f32 %v733_v62, %v7257_v59  ;;  %v6329_v60 = vpack.i.bf16 %v892_v26, %v1371_v11  ;;  %v1527_v25 = vrot.slane %v1113_v14, 3 }
 0x111   : > { %6325 = vrot.lane.b32.xlu0 %v6324_v41, %s6733_s13  ;;  %v1028_v45 = vsel %vm1025_vm8, %v1027_v20, %v7185_v23  ;;  %v807_v46 = vsel %vm804_vm11, %v806_v5, %v7211_v54  ;;  %v6339_v10 = vpack.i.bf16 %v893_v33, %v1372_v44  ;;  %v1420_v41 = vrot.slane %v7349_v8, 1 }
 0x112   : > { %v7380_v36 = vmul.f32 %v805_v3, %v7251_v32  ;;  %v658_v26 = vsel %vm486_vm5, %v652_v15, %v11898_v50  ;;  %v1526_v61 = vrot.slane %v1521_v17, 3  ;;  %v1262_v20 = vcombine.high %v7352_v22, %v7352_v22 }
 0x113   : > { %6335 = vrot.lane.b32.xlu1 %v6334_v37, %s6733_s13  ;;  %v7377_v37 = vmul.f32 %v1028_v45, %v7257_v59  ;;  %v657_v33 = vsel %vm11938_vm12, %v652_v15, %v7209_v53  ;;  %v1419_v11 = vrot.slane %v1414_v38, 1  ;;  %v1468_v62 = vcombine.high %v7368_v63, %v7368_v63 }
 0x114   : > { %v1522_v44 = vcombine.high %v1113_v14, %v1113_v14  ;;  %v818_v5 = vmul.f32 %v807_v46, %v7257_v59  ;;  %v6354_v3 = vpack.i.bf16 %v1527_v25, %v1526_v61  ;;  %v1268_v45 = vrot.slane %v744_v30, 2 }
 0x115   : > { %6330 = vrot.lane.b32.xlu0 %v6329_v60, %s6722_s27  ;;  %v659_v17 = vsel %vm11938_vm12, %v658_v26, %v7213_v58  ;;  %v949_v60 = vrot.slane %v7222_v34, 4  ;;  %v6344_v50 = vpack.i.bf16 %v1420_v41, %v1419_v11  ;;  %v1474_v47 = vrot.slane %v7377_v37, 6 }
 0x116   : > { %v7399_v53 = vmul.f32 %v657_v33, %v7251_v32  ;;  %v1023_v15 = vrot.slane %v7220_v49, 4  ;;  %v1267_v14 = vrot.slane %v1262_v20, 2  ;;  %v1316_v38 = vcombine.high %v7380_v36, %v7380_v36 }
 0x117   : > { %6340 = vrot.lane.b32.xlu1 %v6339_v10, %s6722_s27  ;;  %v1473_v25 = vrot.slane %v1468_v62, 6  ;;  %v1528_v46 = vrot.slane %v1522_v44, 3  ;;  %v670_v10 = vmul.f32 %v659_v17, %v7257_v59  ;;  %v1322_v26 = vrot.slane %v818_v5, 7 }
 0x118   : > { %v6359_v41 = vpack.i.bf16 %v1268_v45, %v1267_v14  ;;  %v1525_v61 = vrot.slane %v7331_v55, 3  ;;  %v12210_v32 = vrot.slane %v7181_v48, 4  ;;  %v1097_v20 = vrot.slane %v7224_v0, 4 }
 0x119   : > { %6355 = vrot.lane.b32.xlu0 %v6354_v3, %s6727_s14  ;;  %v6349_v11 = vpack.i.bf16 %v1474_v47, %v1473_v25  ;;  %v1263_v3 = vcombine.high %v744_v30, %v744_v30  ;;  %v802_v62 = vrot.slane %v7226_v2, 4  ;;  %v1321_v55 = vrot.slane %v1316_v38, 7 }
 0x11a   : > { %v955_v33 = vsel %vm486_vm5, %v12210_v32, %v949_v60  ;;  %v1208_v44 = vcombine.high %v7399_v53, %v7399_v53  ;;  %v6384_v48 = vpack.i.bf16 %v1525_v61, %v1528_v46  ;;  %v1214_v45 = vrot.slane %v670_v10, 5 }
 0x11b   : > { %6345 = vrot.lane.b32.xlu1 %v6344_v50, %s11900_s18  ;;  %v1029_v50 = vsel %vm486_vm5, %v1022_v21, %v1023_v15  ;;  %v956_v47 = vsel %vm11912_vm7, %v955_v33, %v7222_v34  ;;  %v6364_v30 = vpack.i.bf16 %v1322_v26, %v1321_v55  ;;  %v1415_v23 = vcombine.high %v7349_v8, %v7349_v8 }
 0x11c   : > { %v1030_v21 = vsel %vm1025_vm8, %v1029_v50, %v7220_v49  ;;  %v12211_v17 = vrot.slane %v7201_v43, 4  ;;  %v1269_v38 = vrot.slane %v1263_v3, 2  ;;  %v1317_v25 = vcombine.high %v818_v5, %v818_v5  ;;  %v7448_v3 = vpop.permute.xlu0 %724 }
 0x11d   : > { %6360 = vrot.lane.b32.xlu0 %v6359_v41, %s11902_s17  ;;  %v12212_v46 = vrot.slane %v7211_v54, 4  ;;  %v1213_v26 = vrot.slane %v1208_v44, 5  ;;  %v966_v8 = vmul.f32 %v956_v47, %v7291_v42  ;;  %v728_v61 = vrot.slane %v7228_v12, 4 }
 0x11e   : > { %v1103_v14 = vsel %vm486_vm5, %v12211_v17, %v1097_v20  ;;  %v1266_v43 = vrot.slane %v7352_v22, 2  ;;  %v1469_v49 = vcombine.high %v7377_v37, %v7377_v37  ;;  %v1040_v5 = vmul.f32 %v1030_v21, %v7291_v42 }
 0x11f   : > { %6350 = vrot.lane.b32.xlu1 %v6349_v11, %s6724_s29  ;;  %v808_v41 = vsel %vm486_vm5, %v12212_v46, %v802_v62  ;;  %v1104_v54 = vsel %vm1099_vm9, %v1103_v14, %v7224_v0  ;;  %v6369_v32 = vpack.i.bf16 %v1214_v45, %v1213_v26  ;;  %v1421_v33 = vrot.slane %v1415_v23, 1 }
 0x120   : > { %v809_v11 = vsel %vm804_vm11, %v808_v41, %v7226_v2  ;;  %v6389_v50 = vpack.i.bf16 %v1266_v43, %v1269_v38  ;;  %v1323_v55 = vrot.slane %v1317_v25, 7  ;;  %v1209_v44 = vcombine.high %v670_v10, %v670_v10 }
 0x121   : > { %6365 = vrot.lane.b32.xlu0 %v6364_v30, %s6723_s28  ;;  %v12213_v22 = vrot.slane %v7235_v18, 4  ;;  %v1418_v37 = vrot.slane %v7340_v24, 1  ;;  %v1320_v0 = vrot.slane %v7380_v36, 7  ;;  %v1114_v47 = vmul.f32 %v1104_v54, %v7291_v42 }
 0x122   : > { %v12214_v30 = vrot.slane %v7207_v52, 4  ;;  %v654_v23 = vrot.slane %v7232_v13, 4  ;;  %v1416_v10 = vcombine.high %v966_v8, %v966_v8  ;;  %v1475_v17 = vrot.slane %v1469_v49, 6 }
 0x123   : > { %6385 = vrot.lane.b32.xlu1 %v6384_v48, %s6727_s14  ;;  %v1031_v48 = vsel %vm486_vm5, %v1023_v15, %v12213_v22  ;;  %v819_v15 = vmul.f32 %v809_v11, %v7291_v42  ;;  %v6374_v21 = vpack.i.bf16 %v1418_v37, %v1421_v33  ;;  %v1470_v14 = vcombine.high %v1040_v5, %v1040_v5 }
 0x124   : > { %v734_v45 = vsel %vm486_vm5, %v12214_v30, %v728_v61  ;;  %v1032_v24 = vsel %vm1025_vm8, %v1031_v48, %v7235_v18  ;;  %v6394_v36 = vpack.i.bf16 %v1320_v0, %v1323_v55  ;;  %v1215_v38 = vrot.slane %v1209_v44, 5  ;;  %v7476_v18 = vpop.permute.xlu0 %650 }
 0x125   : > { %6370 = vrot.lane.b32.xlu0 %v6369_v32, %s6735_s19  ;;  %v735_v52 = vsel %vm11928_vm10, %v734_v45, %v7228_v12  ;;  %v12215_v25 = vrot.slane %v7249_v31, 4  ;;  %v729_v41 = vrot.slane %v7448_v3, 4  ;;  %v1472_v26 = vrot.slane %v7368_v63, 6 }
 0x126   : > { %v12216_v43 = vrot.slane %v7213_v58, 4  ;;  %v1212_v12 = vrot.slane %v7399_v53, 5  ;;  %v1423_v54 = vrot.slane %v1416_v10, 1  ;;  %v1523_v32 = vcombine.high %v1114_v47, %v1114_v47 }
 0x127   : > { %6390 = vrot.lane.b32.xlu1 %v6389_v50, %s11902_s17  ;;  %v1105_v46 = vsel %vm486_vm5, %v1097_v20, %v12215_v25  ;;  %v1041_v20 = vmul.f32 %v1032_v24, %v7296_v1  ;;  %v6379_v33 = vpack.i.bf16 %v1472_v26, %v1475_v17  ;;  %v1477_v11 = vrot.slane %v1470_v14, 6 }
 0x128   : > { %v660_v49 = vsel %vm486_vm5, %v12216_v43, %v654_v23  ;;  %v1318_v50 = vcombine.high %v819_v15, %v819_v15  ;;  %v745_v55 = vmul.f32 %v735_v52, %v7291_v42  ;;  %v1106_v58 = vsel %vm1099_vm9, %v1105_v46, %v7249_v31 }
 0x129   : > { %6375 = vrot.lane.b32.xlu0 %v6374_v21, %s11900_s18  ;;  %v6399_v63 = vpack.i.bf16 %v1212_v12, %v1215_v38  ;;  %v1422_v44 = vrot.slane %v966_v8, 1  ;;  %v661_v22 = vsel %vm11938_vm12, %v660_v49, %v7232_v13  ;;  %v736_v53 = vsel %vm486_vm5, %v728_v61, %v729_v41 }
 0x12a   : > { %v655_v48 = vrot.slane %v7476_v18, 4  ;;  %v1476_v37 = vrot.slane %v1040_v5, 6  ;;  %v12217_v0 = vrot.slane %v7237_v19, 4  ;;  %v803_v8 = vrot.slane %v7272_v9, 4 }
 0x12b   : > { %6395 = vrot.lane.b32.xlu1 %v6394_v36, %s6723_s28  ;;  %v6404_v13 = vpack.i.bf16 %v1423_v54, %v1422_v44  ;;  %v1530_v30 = vrot.slane %v1523_v32, 3  ;;  %v1115_v45 = vmul.f32 %v1106_v58, %v7296_v1  ;;  %v1325_v10 = vrot.slane %v1318_v50, 7 }
 0x12c   : > { %v957_v31 = vsel %vm486_vm5, %v949_v60, %v12217_v0  ;;  %v6409_v61 = vpack.i.bf16 %v1477_v11, %v1476_v37  ;;  %v1471_v21 = vcombine.high %v1041_v20, %v1041_v20  ;;  %v671_v17 = vmul.f32 %v661_v22, %v7291_v42 }
 0x12d   : > { %6380 = vrot.lane.b32.xlu0 %v6379_v33, %s6724_s29  ;;  %v737_v5 = vsel %vm11928_vm10, %v736_v53, %v7448_v3  ;;  %v1529_v14 = vrot.slane %v1114_v47, 3  ;;  %v1264_v34 = vcombine.high %v745_v55, %v745_v55  ;;  %v958_v60 = vsel %vm11912_vm7, %v957_v31, %v7237_v19 }
 0x12e   : > { %v662_v24 = vsel %vm486_vm5, %v654_v23, %v655_v48  ;;  %v1324_v36 = vrot.slane %v819_v15, 7  ;;  %v810_v38 = vsel %vm486_vm5, %v802_v62, %v803_v8  ;;  %v746_v52 = vmul.f32 %v737_v5, %v7296_v1 }
 0x12f   : > { %6400 = vrot.lane.b32.xlu1 %v6399_v63, %s6735_s19  ;;  %v6414_v47 = vpack.i.bf16 %v1530_v30, %v1529_v14  ;;  %v1479_v19 = vrot.slane %v1471_v21, 6  ;;  %v1524_v46 = vcombine.high %v1115_v45, %v1115_v45  ;;  %v967_v26 = vmul.f32 %v958_v60, %v7296_v1 }
 0x130   : > { %v6424_v25 = vpack.i.bf16 %v1325_v10, %v1324_v36  ;;  %v663_v23 = vsel %vm11938_vm12, %v662_v24, %v7476_v18  ;;  %v1271_v15 = vrot.slane %v1264_v34, 2  ;;  %v1210_v43 = vcombine.high %v671_v17, %v671_v17  ;;  %v1707_v18 = vld [vmem:[%s11882_s6 + $0x10] sm:$0xff] }
 0x131   : > { %6405 = vrot.lane.b32.xlu0 %v6404_v13, %s11900_s18  ;;  %v811_v2 = vsel %vm804_vm11, %v810_v38, %v7272_v9  ;;  %v1478_v62 = vrot.slane %v1041_v20, 6  ;;  %v1270_v49 = vrot.slane %v745_v55, 2  ;;  %v672_v12 = vmul.f32 %v663_v23, %v7296_v1  ;;  %v2064_v23 = vld [vmem:[%s7550_s23 + $0x8] sm:$0xff] }
 0x132   : > { %v1532_v32 = vrot.slane %v1524_v46, 3  ;;  %v1265_v33 = vcombine.high %v746_v52, %v746_v52  ;;  %v820_v11 = vmul.f32 %v811_v2, %v7296_v1  ;;  %v1217_v58 = vrot.slane %v1210_v43, 5  ;;  %v2063_v43 = vld [vmem:[%s7550_s23] sm:$0xff] }
 0x133   : > { %6410 = vrot.lane.b32.xlu1 %v6409_v61, %s6724_s29  ;;  %v6439_v54 = vpack.i.bf16 %v1479_v19, %v1478_v62  ;;  %v6419_v50 = vpack.i.bf16 %v1271_v15, %v1270_v49  ;;  %v1417_v63 = vcombine.high %v967_v26, %v967_v26  ;;  %v1531_v44 = vrot.slane %v1115_v45, 3  ;;  %v1706_v19 = vld [vmem:[%s11882_s6 + $0x8] sm:$0xff]  ;;  %v2069_v15 = vld [vmem:[%s7550_s23 + $0x30] sm:$0xff] }
 0x134   : > { %v1216_v22 = vrot.slane %v671_v17, 5  ;;  %v1273_v53 = vrot.slane %v1265_v33, 2  ;;  %v1211_v37 = vcombine.high %v672_v12, %v672_v12  ;;  %v1319_v31 = vcombine.high %v820_v11, %v820_v11 }
 0x135   : > { %6425 = vrot.lane.b32.xlu0 %v6424_v25, %s6723_s28  ;;  %v6444_v20 = vpack.i.bf16 %v1532_v32, %v1531_v44  ;;  %v1425_v0 = vrot.slane %v1417_v63, 1  ;;  %v1272_v13 = vrot.slane %v746_v52, 2  ;;  %v1424_v30 = vrot.slane %v967_v26, 1  ;;  %v2066_v25 = vld [vmem:[%s7550_s23 + $0x18] sm:$0xff] }
 0x136   : > { %v6429_v55 = vpack.i.bf16 %v1217_v58, %v1216_v22  ;;  %v1219_v10 = vrot.slane %v1211_v37, 5  ;;  %v1327_v45 = vrot.slane %v1319_v31, 7  ;;  %v1218_v17 = vrot.slane %v672_v12, 5  ;;  %v2070_v26 = vld [vmem:[%s7550_s23 + $0x38] sm:$0xff] }
 0x137   : > { %6415 = vrot.lane.b32.xlu1 %v6414_v47, %s6727_s14  ;;  %v6449_v61 = vpack.i.bf16 %v1273_v53, %v1272_v13  ;;  %v6434_v21 = vpack.i.bf16 %v1425_v0, %v1424_v30  ;;  %v1326_v5 = vrot.slane %v820_v11, 7  ;;  %v747_v34 = vmul.f32 %v729_v41, %v7240_v4  ;;  %v2067_v0 = vld [vmem:[%s7550_s23 + $0x20] sm:$0xff] }
 0x138   : > { %v6459_v14 = vpack.i.bf16 %v1219_v10, %v1218_v17  ;;  %v821_v24 = vmul.f32 %v803_v8, %v7240_v4  ;;  %v673_v38 = vmul.f32 %v655_v48, %v7240_v4  ;;  %v12218_v52 = vrot.slane %v7284_v27, 4  ;;  %v2065_v27 = vld [vmem:[%s7550_s23 + $0x10] sm:$0xff]  ;;  %v1708_v8 = vld [vmem:[%s11882_s6 + $0x18] sm:$0xff] }
 0x139   : > { %6440 = vrot.lane.b32.xlu0 %v6439_v54, %s6724_s29  ;;  %v6454_v60 = vpack.i.bf16 %v1327_v45, %v1326_v5  ;;  %v1274_v36 = vrot.slane %v747_v34, 2  ;;  %v2073_v48 = vadd.f32 1.0, %v2065_v27  ;;  %v2074_v46 = vadd.f32 1.0, %v2066_v25 }
 0x13a   : > { %v1328_v47 = vrot.slane %v821_v24, 7  ;;  %v894_v3 = vmul.f32 %v12218_v52, %v7240_v4  ;;  %v1220_v9 = vrot.slane %v673_v38, 5  ;;  %v1705_v4 = vld [vmem:[%s11882_s6] sm:$0xff]  ;;  %v7574_v2 = vpack.i.b16 %v6971_v56, %v6971_v56  ;;  %v7644_v24 = vpop.permute.xlu0 %570  ;;  %v7653_v52 = vpop.permute.xlu1 %572 }
 0x13b   : > { %6420 = vrot.lane.b32.xlu1 %v6419_v50, %s11902_s17  ;;  %v7578_v62 = vpack.i.b16 %v6974_v57, %v6974_v57  ;;  %v2072_v49 = vadd.f32 1.0, %v2064_v23  ;;  %v7582_v12 = vpack.i.b16 %v6881_v6, %v6881_v6  ;;  %v7586_v54 = vpack.i.b16 %v6888_v7, %v6888_v7 }
 0x13c   : > { %v1373_v41 = vcombine.low %v894_v3, %v894_v3  ;;  %12219 = vst [vmem:[#allocation18_spill] sm:$0xff] %v7574_v2  ;;  %v2071_v32 = vadd.f32 1.0, %v2063_v43  ;;  %v2762_v33 = vshrl.u32 %v6881_v6, 16  ;;  %v2769_v11 = vshrl.u32 %v6888_v7, 16 }
 0x13d   : > { %6445 = vrot.lane.b32.xlu0 %v6444_v20, %s6727_s14  ;;  %12220 = vst [vmem:[#allocation19_spill] sm:$0xff] %v7578_v62  ;;  %12221 = vst [vmem:[#allocation20_spill] sm:$0xff] %v7582_v12  ;;  %v2776_v50 = vshrl.u32 %v6971_v56, 16  ;;  %v2783_v58 = vshrl.u32 %v6974_v57, 16  ;;  %v7594_v63 = vpack.i.b16 %v7053_v51, %v7053_v51  ;;  %v7598_v44 = vpack.i.b16 %v7057_v35, %v7057_v35  ;;  %v2068_v57 = vld [vmem:[%s7550_s23 + $0x28] sm:$0xff] }
 0x13e   : > { %12222 = vst [vmem:[#allocation21_spill] sm:$0xff] %v7586_v54  ;;  %v2661_v22 = vrot.slane %v7574_v2, %v6952_v40  ;;  %v2668_v6 = vrot.slane %v7578_v62, %v6952_v40  ;;  %v7606_v7 = vpack.i.b16 %v7015_v28, %v7015_v28  ;;  %v7610_v56 = vpack.i.b16 %v7019_v29, %v7019_v29 }
 0x13f   : > { %6430 = vrot.lane.b32.xlu1 %v6429_v55, %s6735_s19  ;;  %12223 = vst [vmem:[#allocation22_spill] sm:$0xff] %v7594_v63  ;;  %12224 = vst [vmem:[#allocation23_spill] sm:$0xff] %v7598_v44  ;;  %v2647_v20 = vrot.slane %v7582_v12, %v6952_v40  ;;  %v2654_v53 = vrot.slane %v7586_v54, %v6952_v40  ;;  %v7617_v37 = vpack.i.b16 %v2762_v33, %v2762_v33  ;;  %vm1239_vm7 = vcmask 1039360  }
 0x140   : > { %12225 = vst [vmem:[#allocation24_spill] sm:$0xff] %v7606_v7  ;;  %12226 = vst [vmem:[#allocation25_spill] sm:$0xff] %v7610_v56  ;;  %v7619_v55 = vpack.i.b16 %v2769_v11, %v2769_v11  ;;  %v7622_v31 = vpack.i.b16 %v2776_v50, %v2776_v50  ;;  %v7624_v13 = vpack.i.b16 %v2783_v58, %v2783_v58  ;;  %v2790_v30 = vshrl.u32 %v7015_v28, 16 }
 0x141   : > { %6450 = vrot.lane.b32.xlu0 %v6449_v61, %s11902_s17  ;;  %12227 = vst [vmem:[#allocation26_spill] sm:$0xff] %v7617_v37  ;;  %v2804_v61 = vshrl.u32 %v7053_v51, 16  ;;  %v2811_v10 = vshrl.u32 %v7057_v35, 16  ;;  %v2689_v45 = vrot.slane %v7594_v63, %v6952_v40  ;;  %v2696_v17 = vrot.slane %v7598_v44, %v6952_v40 }
 0x142   : > { %12228 = vst [vmem:[#allocation27_spill] sm:$0xff] %v7619_v55  ;;  %12229 = vst [vmem:[#allocation28_spill] sm:$0xff] %v7622_v31  ;;  %v2797_v5 = vshrl.u32 %v7019_v29, 16  ;;  %v2675_v34 = vrot.slane %v7606_v7, %v6952_v40  ;;  %v2682_v28 = vrot.slane %v7610_v56, %v6952_v40  ;;  %v7638_v51 = vpack.i.b16 %v2790_v30, %v2790_v30 }
 0x143   : > { %6435 = vrot.lane.b32.xlu1 %v6434_v21, %s11900_s18  ;;  %12230 = vst [vmem:[#allocation29_spill] sm:$0xff] %v7624_v13  ;;  %v6003_v21 = vcombine.low %v2661_v22, %v2668_v6  ;;  %v7640_v35 = vpack.i.b16 %v2804_v61, %v2804_v61  ;;  %v2782_v29 = vrot.slane %v7622_v31, %v6952_v40  ;;  %vm1614_vm10 = vcmask 1042432  }
 0x144   : > { %12231 = vst [vmem:[#allocation30_spill] sm:$0xff] %v7638_v51  ;;  %v2789_v38 = vrot.slane %v7624_v13, %v6952_v40  ;;  %v6004_v3 = vcombine.low %v2675_v34, %v2682_v28  ;;  %v2894_v23 = vrot.slane %v7574_v2, %v6993_v16  ;;  %v2910_v50 = vrot.slane %v7594_v63, %v6993_v16 }
 0x145   : > { %6460 = vrot.lane.b32.xlu0 %v6459_v14, %s6735_s19  ;;  %v6002_v14 = vcombine.low %v2647_v20, %v2654_v53  ;;  %v2810_v27 = vrot.slane %v7640_v35, %v6952_v40  ;;  %v2914_v58 = vrot.slane %v7598_v44, %v6993_v16  ;;  %v2902_v6 = vrot.slane %v7606_v7, %v6993_v16 }
 0x146   : > { %v2991_v30 = vrot.slane %v7622_v31, %v6993_v16  ;;  %v2995_v61 = vrot.slane %v7624_v13, %v6993_v16  ;;  %v3007_v34 = vrot.slane %v7640_v35, %v6993_v16  ;;  %vm11975_vm12 = vcmask 1045504  }
 0x147   : > { %6455 = vrot.lane.b32.xlu1 %v6454_v60, %s6723_s28  ;;  %v7642_v60 = vpack.i.b16 %v2811_v10, %v2811_v10 }
 0x149   : > { %1291 = vrot.lane.b32.xlu0 %v1274_v36, %s11902_s17  ;;  %v6005_v36 = vcombine.low %v2689_v45, %v2696_v17  ;;  %v2987_v45 = vrot.slane %v7619_v55, %v6993_v16  ;;  %v3011_v28 = vrot.slane %v7642_v60, %v6993_v16 }
 0x14b   : > { %1345 = vrot.lane.b32.xlu1 %v1328_v47, %s6723_s28  ;;  %v7651_v47 = vpack.i.b16 %v2797_v5, %v2797_v5 }
 0x14d   : > { %1237 = vrot.lane.b32.xlu0 %v1220_v9, %s6735_s19  ;;  %12232 = vst [vmem:[#allocation31_spill] sm:$0xff] %v7651_v47  ;;  %v2768_v9 = vrot.slane %v7617_v37, %v6952_v40  ;;  %v2803_v25 = vrot.slane %v7651_v47, %v6952_v40 }
 0x14f   : > { %1390 = vrot.lane.b32.xlu1 %v1373_v41, %s6722_s27  ;;  %v2775_v41 = vrot.slane %v7619_v55, %v6952_v40 }
 0x151   : > { %1711 = vperm.xlu0 %6464, %v1705_v4   ;;  %v6007_v4 = vcombine.low %v2782_v29, %v2789_v38  ;;  %v2999_v29 = vrot.slane %v7638_v51, %v6993_v16  ;;  %v3003_v38 = vrot.slane %v7651_v47, %v6993_v16 }
 0x153   : > { %1721 = vperm.xlu1 %6465, %v1707_v18   ;;  %v2817_v18 = vrot.slane %v7642_v60, %v6952_v40 }
 0x155   : > { %2087 = vperm.xlu0 %6464, %v2073_v48   ;;  %v6006_v48 = vcombine.low %v2768_v9, %v2775_v41  ;;  %v6017_v41 = vcombine.low %v3007_v34, %v3011_v28 }
 0x157   : > { %1726 = vperm.xlu1 %6465, %v1708_v8   ;;  %v2796_v8 = vrot.slane %v7638_v51, %v6952_v40  ;;  %v2890_v40 = vrot.slane %v7586_v54, %v6993_v16 }
 0x159   : > { %1716 = vperm.xlu0 %6464, %v1706_v19   ;;  %v7670_v19 = vpop.permute.xlu0 %574  ;;  %v6008_v43 = vcombine.low %v2796_v8, %v2803_v25 }
 0x15b   : > { %2092 = vperm.xlu1 %6465, %v2074_v46   ;;  %v7672_v46 = vpop.permute.xlu1 %576 }
 0x15d   : > { %2144 = vperm.xlu0 %6464, %v2070_v26   ;;  %v6009_v26 = vcombine.low %v2810_v27, %v2817_v18  ;;  %v3471_v27 = vrot.slane %v7586_v54, %v7033_v39  ;;  %v6016_v18 = vcombine.low %v2999_v29, %v3003_v38 }
 0x15f   : > { %2139 = vperm.xlu1 %6465, %v2069_v15   ;;  %v2898_v15 = vrot.slane %v7578_v62, %v6993_v16 }
 0x161   : > { %2082 = vperm.xlu0 %6464, %v2072_v49   ;;  %v2886_v49 = vrot.slane %v7582_v12, %v6993_v16  ;;  %v6011_v11 = vcombine.low %v2894_v23, %v2898_v15 }
 0x163   : > { %2077 = vperm.xlu1 %6465, %v2071_v32   ;;  %v6010_v22 = vcombine.low %v2886_v49, %v2890_v40  ;;  %v3475_v40 = vrot.slane %v7574_v2, %v7033_v39 }
 0x165   : > { %2134 = vperm.xlu0 %6464, %v2068_v57   ;;  %v2906_v57 = vrot.slane %v7610_v56, %v6993_v16 }
 0x167   : > { %2129 = vperm.xlu1 %6465, %v2067_v0   ;;  %v6013_v0 = vcombine.low %v2910_v50, %v2914_v58  ;;  %v6012_v10 = vcombine.low %v2902_v6, %v2906_v57 }
 0x169   : > { %2719 = vrot.lane.b32.xlu0 %v6003_v21, %s6730_s16  ;;  %v2983_v21 = vrot.slane %v7617_v37, %v6993_v16 }
 0x16b   : > { %2717 = vrot.lane.b32.xlu1 %v6002_v14, %s6730_s16  ;;  %v6015_v14 = vcombine.low %v2991_v30, %v2995_v61 }
 0x16d   : > { %2723 = vrot.lane.b32.xlu0 %v6005_v36, %s6730_s16  ;;  %v6014_v36 = vcombine.low %v2983_v21, %v2987_v45 }
 0x16f   : > { %2721 = vrot.lane.b32.xlu1 %v6004_v3, %s6730_s16 }
 0x171   : > { %2840 = vrot.lane.b32.xlu0 %v6007_v4, %s6728_s15  ;;  %v3467_v4 = vrot.slane %v7582_v12, %v7033_v39 }
 0x173   : > { %2838 = vrot.lane.b32.xlu1 %v6006_v48, %s6728_s15  ;;  %v7684_v32 = vpop.permute.xlu0 %1443  ;;  %v12233_v48 = vld [vmem:[#allocation15_spill] sm:$0xff]  ;;  %v6034_v23 = vcombine.low %v3467_v4, %v3471_v27 }
 0x174   : > { %v3080_v8 = vrot.slane %v7582_v12, %v12233_v48  ;;  %v3084_v16 = vrot.slane %v7586_v54, %v12233_v48  ;;  %v3088_v15 = vrot.slane %v7574_v2, %v12233_v48  ;;  %v3104_v6 = vrot.slane %v7594_v63, %v12233_v48 }
 0x175   : > { %v7686_v33 = vpop.permute.xlu1 %1594  ;;  %2844 = vrot.lane.b32.xlu0 %v6009_v26, %s6728_s15  ;;  %v3108_v57 = vrot.slane %v7598_v44, %v12233_v48  ;;  %v3096_v30 = vrot.slane %v7606_v7, %v12233_v48  ;;  %v3100_v61 = vrot.slane %v7610_v56, %v12233_v48  ;;  %v3184_v45 = vrot.slane %v7622_v31, %v12233_v48 }
 0x176   : > { %v6018_v49 = vcombine.low %v3080_v8, %v3084_v16  ;;  %v3180_v29 = vrot.slane %v7619_v55, %v12233_v48 }
 0x177   : > { %2842 = vrot.lane.b32.xlu1 %v6008_v43, %s6728_s15  ;;  %v7698_v20 = vpop.permute.xlu0 %1550  ;;  %v3092_v43 = vrot.slane %v7578_v62, %v12233_v48  ;;  %v6021_v34 = vcombine.low %v3104_v6, %v3108_v57  ;;  %v6020_v28 = vcombine.low %v3096_v30, %v3100_v61  ;;  %s6218_s15 = sshll.u32 %s12861_s10, 4 }
 0x178   : > { %s428_s18 = scalar_lea.vmem %s11885_s9, %s6218_s15 }
 0x179   : > { %v7700_v53 = vpop.permute.xlu1 %1497  ;;  %2937 = vrot.lane.b32.xlu0 %v6011_v11, %s6726_s12  ;;  %v3479_v11 = vrot.slane %v7578_v62, %v7033_v39 }
 0x17b   : > { %2935 = vrot.lane.b32.xlu1 %v6010_v22, %s6726_s12  ;;  %v7712_v17 = vpop.permute.xlu0 %6305  ;;  %v6019_v22 = vcombine.low %v3088_v15, %v3092_v43 }
 0x17c   : > { %v11908_v15 = vunpack.i.l.bf16 %v7712_v17 }
 0x17d   : > { %v7714_v5 = vpop.permute.xlu1 %6310  ;;  %2941 = vrot.lane.b32.xlu0 %v6013_v0, %s6726_s12  ;;  %v6035_v0 = vcombine.low %v3475_v40, %v3479_v11  ;;  %v3192_v11 = vrot.slane %v7638_v51, %v12233_v48 }
 0x17f   : > { %2939 = vrot.lane.b32.xlu1 %v6012_v10, %s6726_s12  ;;  %v7726_v3 = vpop.permute.xlu0 %6320  ;;  %s12403_s12 = smov 94  }
 0x181   : > { %v7728_v9 = vpop.permute.xlu1 %6315  ;;  %3034 = vrot.lane.b32.xlu0 %v6015_v14, %s6727_s14  ;;  %v3188_v14 = vrot.slane %v7624_v13, %v12233_v48  ;;  %v6597_v13 = vld [vmem:[#allocation2] sm:$0x77] }
 0x183   : > { %3032 = vrot.lane.b32.xlu1 %v6014_v36, %s6727_s14  ;;  %v7740_v25 = vpop.permute.xlu0 %6325  ;;  %v3176_v36 = vrot.slane %v7617_v37, %v12233_v48  ;;  %v6023_v16 = vcombine.low %v3184_v45, %v3188_v14 }
 0x184   : > { %12234 = vst [vmem:[#allocation15_spill] sm:$0xff] %v7740_v25  ;;  %v12248_v55 = vunpack.i.h.bf16 %v7740_v25 }
 0x185   : > { %v7742_v26 = vpop.permute.xlu1 %6335  ;;  %3038 = vrot.lane.b32.xlu0 %v6017_v41, %s6727_s14  ;;  %v6022_v40 = vcombine.low %v3176_v36, %v3180_v29 }
 0x186   : > { %12235 = vst [vmem:[#allocation32_spill] sm:$0xff] %v7742_v26 }
 0x187   : > { %3036 = vrot.lane.b32.xlu1 %v6016_v18, %s6727_s14  ;;  %v7754_v50 = vpop.permute.xlu0 %6330 }
 0x188   : > { %12236 = vst [vmem:[#allocation33_spill] sm:$0xff] %v7754_v50 }
 0x189   : > { %v7756_v58 = vpop.permute.xlu1 %6340  ;;  %3516 = vrot.lane.b32.xlu0 %v6034_v23, %s6725_s11  ;;  %v11907_v23 = vunpack.i.h.bf16 %v7712_v17 }
 0x18a   : > { %v12250_v56 = vunpack.i.l.bf16 %v7756_v58 }
 0x18b   : > { %3129 = vrot.lane.b32.xlu1 %v6018_v49, %s6724_s29  ;;  %v7768_v10 = vpop.permute.xlu0 %6355  ;;  %v1598_v14 = vsel %vm1596_vm14, %v11908_v15, %v11907_v23 }
 0x18c   : > { %v11906_v27 = vunpack.i.h.bf16 %v7768_v10  ;;  %v11909_v18 = vunpack.i.l.bf16 %v7768_v10 }
 0x18d   : > { %v7770_v21 = vpop.permute.xlu1 %6345  ;;  %3131 = vrot.lane.b32.xlu0 %v6019_v22, %s6724_s29  ;;  %v3196_v22 = vrot.slane %v7651_v47, %v12233_v48 }
 0x18e   : > { %v11904_v38 = vunpack.i.h.bf16 %v7770_v21  ;;  %v6347_v41 = vunpack.i.l.bf16 %v7770_v21  ;;  %v1553_v30 = vsel %vm804_vm11, %v11909_v18, %v11906_v27 }
 0x18f   : > { %3518 = vrot.lane.b32.xlu1 %v6035_v0, %s6725_s11  ;;  %v7784_v4 = vpop.permute.xlu0 %6360  ;;  %v6024_v29 = vcombine.low %v3192_v11, %v3196_v22 }
 0x190   : > { %v7803_v6 = vsel %vm1445_vm13, %v6347_v41, %v11904_v38  ;;  %v579_v38 = vrot.slane %v7653_v52, 4  ;;  %v12245_v47 = vunpack.i.l.bf16 %v7784_v4 }
 0x191   : > { %v7788_v8 = vpop.permute.xlu1 %6350  ;;  %3135 = vrot.lane.b32.xlu0 %v6021_v34, %s6724_s29 }
 0x192   : > { %v11905_v43 = vunpack.i.h.bf16 %v7788_v8  ;;  %v6352_v49 = vunpack.i.l.bf16 %v7788_v8 }
 0x193   : > { %3133 = vrot.lane.b32.xlu1 %v6020_v28, %s6724_s29  ;;  %v7808_v0 = vpop.permute.xlu0 %6365  ;;  %v1672_v28 = vsel %vm1663_vm15, %v7684_v32, %v7700_v53 }
 0x194   : > { %v1500_v57 = vsel %vm484_vm3, %v6352_v49, %v11905_v43  ;;  %v578_v43 = vrot.slane %v7644_v24, 4 }
 0x195   : > { %v1665_v61 = vsel %vm1663_vm15, %v7803_v6, %v1500_v57  ;;  %v7817_v45 = vpop.permute.xlu1 %6385  ;;  %3227 = vrot.lane.b32.xlu0 %v6023_v16, %s6721_s26  ;;  %v580_v16 = vrot.slane %v7670_v19, 4 }
 0x196   : > { %v1675_v34 = vsel %vm1673_vm0, %v1665_v61, %v1553_v30  ;;  %v1682_v30 = vsel %vm1673_vm0, %v1672_v28, %v7698_v20  ;;  %v584_v11 = vsel %vm486_vm5, %v578_v43, %v579_v38  ;;  %v583_v28 = vsel %vm11941_vm1, %v578_v43, %v7644_v24 }
 0x197   : > { %3225 = vrot.lane.b32.xlu1 %v6022_v40, %s6721_s26  ;;  %v1693_v36 = vpack.c.bf16 %v1598_v14, %v1675_v34  ;;  %v7830_v57 = vpop.permute.xlu0 %6370  ;;  %v1700_v22 = vpack.c.bf16 %v7686_v33, %v1682_v30  ;;  %v581_v14 = vrot.slane %v7672_v46, 4  ;;  %v586_v34 = vsel %vm486_vm5, %v579_v38, %v580_v16 }
 0x198   : > { %v587_v30 = vsel %vm11941_vm1, %v586_v34, %v7670_v19  ;;  %v6388_v15 = vunpack.i.h.bf16 %v7817_v45  ;;  %v7863_v24 = vmul.f32 %v6597_v13, %v583_v28  ;;  %v12239_v28 = vunpack.i.l.bf16 %v7768_v10 }
 0x199   : > { %v7834_v27 = vpop.permute.xlu1 %6390  ;;  %1777 = vrot.lane.b32.xlu0 %v1693_v36, %s6725_s11  ;;  %v588_v43 = vsel %vm486_vm5, %v580_v16, %v581_v14  ;;  %v7875_v34 = vmul.f32 %v587_v30, %v7291_v42  ;;  %v12240_v42 = vunpack.i.l.bf16 %v7712_v17 }
 0x19a   : > { %v589_v16 = vsel %vm11941_vm1, %v588_v43, %v7672_v46  ;;  %v12242_v46 = vunpack.i.l.bf16 %v7740_v25 }
 0x19b   : > { %3229 = vrot.lane.b32.xlu1 %v6024_v29, %s6721_s26  ;;  %v7841_v40 = vpop.permute.xlu0 %6375  ;;  %v585_v29 = vsel %vm11941_vm1, %v584_v11, %v7653_v52  ;;  %vm1653_vm1 = vcmask 1046528  }
 0x19c   : > { %v6378_v36 = vunpack.i.h.bf16 %v7841_v40  ;;  %v7868_v52 = vmul.f32 %v585_v29, %v7257_v59  ;;  %v1552_v59 = vsel %vm804_vm11, %v6388_v15, %v12239_v28 }
 0x19d   : > { %v7845_v61 = vpop.permute.xlu1 %6395 }
 0x19e   : > { %v7871_v11 = vsel %vm1445_vm13, %v6378_v36, %v6347_v41  ;;  %v7902_v41 = vmul.f32 %v589_v16, %v7296_v1  ;;  %v6323_v16 = vunpack.i.h.bf16 %v7726_v3 }
 0x19f   : > { %1791 = vrot.lane.b32.xlu1 %v1700_v22, %s6725_s11  ;;  %v7855_v23 = vpop.permute.xlu0 %6380  ;;  %v6318_v22 = vunpack.i.h.bf16 %v7728_v9  ;;  %12237 = vst [vmem:[#allocation34_spill] sm:$0xff] %v7871_v11 }
 0x1a0   : > { %v6383_v18 = vunpack.i.h.bf16 %v7855_v23  ;;  %v11914_v30 = vunpack.i.l.bf16 %v7855_v23 }
 0x1a1   : > { %v7861_v38 = vpop.permute.xlu1 %6400 }
 0x1a2   : > { %v1499_v19 = vsel %vm484_vm3, %v6383_v18, %v6352_v49  ;;  %v1597_v18 = vsel %vm1596_vm14, %v6318_v22, %v12240_v42  ;;  %v6368_v22 = vunpack.i.h.bf16 %v7808_v0  ;;  %v6402_v7 = vunpack.i.l.bf16 %v7861_v38 }
 0x1a3   : > { %v1664_v31 = vsel %vm1663_vm15, %v7871_v11, %v1499_v19  ;;  %v7879_v13 = vpop.permute.xlu0 %6405  ;;  %v6598_v19 = vld [vmem:[#allocation2 + $0x20] sm:$0x7] }
 0x1a4   : > { %12238 = vst [vmem:[#allocation35_spill] sm:$0xff] %v7879_v13  ;;  %v1674_v36 = vsel %vm1673_vm0, %v1664_v31, %v1552_v59  ;;  %v11917_v15 = vunpack.i.l.bf16 %v7879_v13  ;;  %v7899_v28 = vmul.f32 %v6598_v19, %v581_v14  ;;  %v11918_v59 = vunpack.i.l.bf16 %v7841_v40 }
 0x1a5   : > { %v7886_v29 = vpop.permute.xlu1 %6410  ;;  %v1692_v43 = vpack.c.bf16 %v1597_v18, %v1674_v36  ;;  %v6387_v18 = vunpack.i.l.bf16 %v7817_v45  ;;  %v6317_v19 = vunpack.i.l.bf16 %v7728_v9 }
 0x1a6   : > { %v11913_v49 = vunpack.i.l.bf16 %v7886_v29 }
 0x1a7   : > { %v7906_v42 = vpop.permute.xlu0 %6425  ;;  %1775 = vrot.lane.b32.xlu0 %v1692_v43, %s6725_s11  ;;  %v7929_v43 = vsel %vm1445_vm13, %v11918_v59, %v11917_v15  ;;  %v1600_v44 = vsel %vm1596_vm14, %v6317_v19, %v12242_v46  ;;  %v6363_v15 = vunpack.i.h.bf16 %v7784_v4  ;;  %v12243_v59 = vunpack.i.l.bf16 %v7808_v0 }
 0x1a8   : > { %v1502_v14 = vsel %vm484_vm3, %v11914_v30, %v11913_v49  ;;  %v6312_v49 = vunpack.i.l.bf16 %v7714_v5 }
 0x1a9   : > { %v7916_v1 = vpop.permute.xlu1 %6415  ;;  %v1667_v30 = vsel %vm1663_vm15, %v7929_v43, %v1502_v14  ;;  %v11933_v14 = vunpack.i.h.bf16 %v7742_v26  ;;  %v1348_v51 = vsel %vm1099_vm9, %v12243_v59, %v6368_v22  ;;  %v7972_v46 = vsel %vm1293_vm2, %v12245_v47, %v6363_v15 }
 0x1aa   : > { %v11923_v36 = vunpack.i.l.bf16 %v7916_v1  ;;  %v7953_v39 = vsel %vm1025_vm8, %v6323_v16, %v6312_v49  ;;  %v6373_v59 = vunpack.i.h.bf16 %v7830_v57  ;;  %v12247_v47 = vunpack.i.l.bf16 %v7742_v26 }
 0x1ab   : > { %v7938_v31 = vpop.permute.xlu0 %6440  ;;  %v1636_v37 = vsel %vm1634_vm4, %v7972_v46, %v1348_v51 }
 0x1ac   : > { %v1555_v9 = vsel %vm804_vm11, %v6387_v18, %v11923_v36  ;;  %12241 = vst [vmem:[#allocation36_spill] sm:$0xff] %v7938_v31  ;;  %v12246_v36 = vunpack.i.h.bf16 %v7712_v17  ;;  %v12249_v17 = vunpack.i.l.bf16 %v7754_v50 }
 0x1ad   : > { %v7945_v63 = vpop.permute.xlu1 %6420  ;;  %v1677_v45 = vsel %vm1673_vm0, %v1667_v30, %v1555_v9  ;;  %v12244_v30 = vunpack.i.l.bf16 %v7726_v3 }
 0x1ae   : > { %v1695_v2 = vpack.c.bf16 %v1600_v44, %v1677_v45  ;;  %v7982_v45 = vsel %vm1596_vm14, %v12246_v36, %v6317_v19  ;;  %v8000_v36 = vsel %vm1025_vm8, %v6312_v49, %v12249_v17 }
 0x1af   : > { %v1393_v9 = vsel %vm1025_vm8, %v12244_v30, %v6323_v16  ;;  %v7966_v62 = vpop.permute.xlu0 %6445  ;;  %v6392_v30 = vunpack.i.l.bf16 %v7834_v27  ;;  %v1602_v16 = vsel %vm1596_vm14, %v12248_v55, %v12247_v47  ;;  %v12252_v55 = vunpack.i.h.bf16 %v7768_v10 }
 0x1b0   : > { %1781 = vrot.lane.b32.xlu0 %v1695_v2, %s6725_s11  ;;  %v7988_v2 = vsel %vm1596_vm14, %v11933_v14, %v7686_v33  ;;  %v12251_v33 = vunpack.i.h.bf16 %v7754_v50  ;;  %v12253_v47 = vunpack.i.l.bf16 %v7845_v61  ;;  %v12260_v26 = vunpack.i.l.bf16 %v7966_v62 }
 0x1b1   : > { %v7977_v44 = vpop.permute.xlu1 %6430  ;;  %v8014_v51 = vsel %vm804_vm11, %v12252_v55, %v6387_v18  ;;  %v1296_v12 = vsel %vm1293_vm2, %v6363_v15, %v6392_v30  ;;  %v8031_v55 = vsel %vm486_vm5, %v1636_v37, %v1393_v9  ;;  %v1242_v15 = vsel %vm1239_vm7, %v6373_v59, %v6402_v7 }
 0x1b2   : > { %v8008_v14 = vsel %vm1025_vm8, %v12251_v33, %v12250_v56  ;;  %v1349_v49 = vsel %vm1099_vm9, %v6368_v22, %v12253_v47  ;;  %v12254_v56 = vunpack.i.l.bf16 %v7830_v57  ;;  %v11944_v47 = vunpack.i.h.bf16 %v7886_v29 }
 0x1b3   : > { %v8021_v54 = vpop.permute.xlu0 %6450  ;;  %v12256_v37 = vunpack.i.h.bf16 %v7938_v31  ;;  %v12257_v22 = vunpack.i.l.bf16 %v7938_v31  ;;  %v1617_v31 = vsel %vm1614_vm10, %v7868_v52, %v1242_v15  ;;  %v6398_v15 = vunpack.i.h.bf16 %v7845_v61 }
 0x1b4   : > { %v1241_v33 = vsel %vm1239_vm7, %v12254_v56, %v6373_v59  ;;  %v1637_v56 = vsel %vm1634_vm4, %v1296_v12, %v1349_v49  ;;  %v12258_v59 = vunpack.i.h.bf16 %v7879_v13 }
 0x1b5   : > { %v8028_v18 = vpop.permute.xlu1 %6435  ;;  %v1506_v9 = vsel %vm484_vm3, %v12256_v37, %v7700_v53  ;;  %v1504_v19 = vsel %vm484_vm3, %v11944_v47, %v12257_v22  ;;  %v12261_v22 = vunpack.i.h.bf16 %v7916_v1 }
 0x1b6   : > { %12255 = vst [vmem:[#allocation37_spill] sm:$0xff] %v8028_v18  ;;  %v11945_v17 = vunpack.i.l.bf16 %v8028_v18  ;;  %v12259_v50 = vunpack.i.h.bf16 %v8028_v18  ;;  %v12264_v18 = vunpack.i.l.bf16 %v7855_v23 }
 0x1b7   : > { %v8063_v53 = vpop.permute.xlu0 %6460  ;;  %v1557_v47 = vsel %vm804_vm11, %v12261_v22, %v12260_v26  ;;  %v12262_v26 = vunpack.i.h.bf16 %v7966_v62 }
 0x1b8   : > { %v8055_v49 = vsel %vm1445_vm13, %v12258_v59, %v11945_v17  ;;  %v8061_v10 = vsel %vm1445_vm13, %v12259_v50, %v7684_v32  ;;  %v6393_v50 = vunpack.i.h.bf16 %v7834_v27  ;;  %v12263_v27 = vcombine.high %v7863_v24, %v7863_v24 }
 0x1b9   : > { %v1669_v59 = vsel %vm1663_vm15, %v8055_v49, %v1504_v19  ;;  %v1671_v17 = vsel %vm1663_vm15, %v8061_v10, %v1506_v9  ;;  %v8075_v25 = vpop.permute.xlu1 %6455  ;;  %v1559_v19 = vsel %vm804_vm11, %v12262_v26, %v7698_v20  ;;  %v12265_v20 = vunpack.i.h.bf16 %v7788_v8 }
 0x1ba   : > { %v1679_v11 = vsel %vm1673_vm0, %v1669_v59, %v1557_v47  ;;  %v8092_v13 = vsel %vm1614_vm10, %v12263_v27, %v1241_v33  ;;  %v1681_v47 = vsel %vm1673_vm0, %v1671_v17, %v1559_v19  ;;  %v1646_v59 = vsel %vm486_vm5, %v1637_v56, %v7953_v39 }
 0x1bb   : > { %v1697_v22 = vpack.c.bf16 %v1602_v16, %v1679_v11  ;;  %v1292_v37 = vpop.permute.xlu0 %1291  ;;  %v1501_v11 = vsel %vm484_vm3, %v12265_v20, %v12264_v18  ;;  %v6428_v16 = vunpack.i.h.bf16 %v7906_v42  ;;  %v12266_v26 = vunpack.i.l.bf16 %v7945_v63 }
 0x1bc   : > { %v6452_v27 = vunpack.i.l.bf16 %v8021_v54  ;;  %v12267_v17 = vunpack.i.l.bf16 %v7841_v40  ;;  %v12268_v39 = vunpack.i.h.bf16 %v7770_v21  ;;  %v6403_v8 = vunpack.i.h.bf16 %v7861_v38 }
 0x1bd   : > { %v1297_v33 = vsel %vm1293_vm2, %v6392_v30, %v12266_v26  ;;  %v1346_v9 = vpop.permute.xlu1 %1345  ;;  %1785 = vrot.lane.b32.xlu0 %v1697_v22, %s6725_s11  ;;  %v12269_v18 = vunpack.i.l.bf16 %v7977_v44  ;;  %v1627_v19 = vsel %vm11975_vm12, %v1617_v31, %v1296_v12  ;;  %v12270_v30 = vunpack.i.l.bf16 %v7906_v42 }
 0x1be   : > { %v1448_v23 = vsel %vm1445_vm13, %v12268_v39, %v12267_v17  ;;  %v12271_v20 = vunpack.i.l.bf16 %v7845_v61  ;;  %v6423_v40 = vunpack.i.h.bf16 %v7945_v63  ;;  %v12272_v21 = vunpack.i.l.bf16 %v8075_v25 }
 0x1bf   : > { %v1243_v56 = vsel %vm1239_vm7, %v6402_v7, %v12269_v18  ;;  %v1699_v26 = vpack.c.bf16 %v7988_v2, %v1681_v47  ;;  %v1666_v7 = vsel %vm1663_vm15, %v1448_v23, %v1501_v11  ;;  %v6462_v31 = vunpack.i.l.bf16 %v8063_v53  ;;  %v1238_v17 = vpop.permute.xlu0 %1237 }
 0x1c0   : > { %v1350_v22 = vsel %vm1099_vm9, %v12271_v20, %v12270_v30  ;;  %v1352_v38 = vsel %vm1099_vm9, %v6428_v16, %v12272_v21  ;;  %v1656_v61 = vsel %vm1653_vm1, %v1646_v59, %v1448_v23  ;;  %v12273_v39 = vcombine.high %v7868_v52, %v7868_v52 }
 0x1c1   : > { %v1638_v12 = vsel %vm1634_vm4, %v1297_v33, %v1350_v22  ;;  %v1299_v2 = vsel %vm1293_vm2, %v6423_v40, %v6452_v27  ;;  %v1643_v47 = vsel %vm1634_vm4, %v1292_v37, %v1346_v9  ;;  %v1623_v11 = vsel %vm1614_vm10, %v7899_v28, %v1238_v17  ;;  %v1391_v30 = vpop.permute.xlu1 %1390  ;;  %1789 = vrot.lane.b32.xlu0 %v1699_v26, %s6725_s11 }
 0x1c2   : > { %v1618_v18 = vsel %vm1614_vm10, %v12273_v39, %v1243_v56  ;;  %v6433_v59 = vunpack.i.h.bf16 %v7977_v44  ;;  %v1640_v52 = vsel %vm1634_vm4, %v1299_v2, %v1352_v38  ;;  %v1652_v23 = vsel %vm486_vm5, %v1643_v47, %v1391_v30 }
 0x1c3   : > { %v1685_v56 = vpack.c.bf16 %v1656_v61, %v1627_v19  ;;  %v6458_v20 = vunpack.i.h.bf16 %v8075_v25  ;;  %v1633_v22 = vsel %vm11975_vm12, %v1623_v11, %v1292_v37  ;;  %v1662_v21 = vsel %vm1653_vm1, %v1652_v23, %v7684_v32 }
 0x1c4   : > { %v1647_v28 = vsel %vm486_vm5, %v1638_v12, %v8000_v36  ;;  %v12274_v39 = vunpack.i.l.bf16 %v7784_v4  ;;  %v1245_v19 = vsel %vm1239_vm7, %v6433_v59, %v6462_v31  ;;  %v1691_v38 = vpack.c.bf16 %v1662_v21, %v1633_v22 }
 0x1c5   : > { %v1628_v61 = vsel %vm11975_vm12, %v1618_v18, %v1297_v33  ;;  %v6453_v47 = vunpack.i.h.bf16 %v8021_v54  ;;  %v1354_v32 = vsel %vm1099_vm9, %v6458_v20, %v1346_v9  ;;  %1761 = vrot.lane.b32.xlu0 %v1685_v56, %s6725_s11  ;;  %v1676_v4 = vsel %vm1673_vm0, %v1666_v7, %v8014_v51 }
 0x1c6   : > { %v1294_v26 = vsel %vm1293_vm2, %v6393_v50, %v12274_v39  ;;  %v1649_v36 = vsel %vm486_vm5, %v1640_v52, %v8008_v14  ;;  %v12275_v50 = vunpack.i.l.bf16 %v7808_v0  ;;  %v6463_v33 = vunpack.i.h.bf16 %v8063_v53  ;;  %1773 = vrot.lane.b32.xlu1 %v1691_v38, %s6725_s11 }
 0x1c7   : > { %v12276_v18 = vunpack.i.h.bf16 %v7756_v58  ;;  %v1657_v9 = vsel %vm1653_vm1, %v1647_v28, %v7929_v43  ;;  %v12277_v51 = vunpack.i.l.bf16 %v7830_v57  ;;  %v12278_v0 = vcombine.high %v7875_v34, %v7875_v34 }
 0x1c8   : > { %v1347_v12 = vsel %vm1099_vm9, %v6398_v15, %v12275_v50  ;;  %v1301_v15 = vsel %vm1293_vm2, %v6453_v47, %v1292_v37  ;;  %v1686_v52 = vpack.c.bf16 %v1657_v9, %v1628_v61  ;;  %v1247_v43 = vsel %vm1239_vm7, %v6463_v33, %v1238_v17  ;;  %v12288_v9 = vld [vmem:[#allocation37_spill] sm:$0xff] }
 0x1c9   : > { %v1399_v11 = vsel %vm1025_vm8, %v12276_v18, %v1391_v30  ;;  %v1240_v7 = vsel %vm1239_vm7, %v6403_v8, %v12277_v51  ;;  %v1620_v14 = vsel %vm1614_vm10, %v12278_v0, %v1245_v19  ;;  %v1642_v30 = vsel %vm1634_vm4, %v1301_v15, %v1354_v32  ;;  %v12291_v0 = vld [vmem:[#allocation34_spill] sm:$0xff] }
 0x1ca   : > { %v1694_v57 = vpack.c.bf16 %v7982_v45, %v1676_v4  ;;  %v1659_v8 = vsel %vm1653_vm1, %v1649_v36, %v8055_v49  ;;  %v6313_v23 = vunpack.i.h.bf16 %v7714_v5  ;;  %v1635_v56 = vsel %vm1634_vm4, %v1294_v26, %v1347_v12  ;;  %1763 = vrot.lane.b32.xlu0 %v1686_v52, %s6725_s11  ;;  %v12285_v12 = vld [vmem:[#allocation35_spill] sm:$0xff] }
 0x1cb   : > { %v1651_v22 = vsel %vm486_vm5, %v1642_v30, %v1399_v11  ;;  %v1626_v37 = vsel %vm11975_vm12, %v8092_v13, %v7972_v46  ;;  %v1615_v17 = vsel %vm1614_vm10, %v7863_v24, %v1240_v7  ;;  %v1630_v45 = vsel %vm11975_vm12, %v1620_v14, %v1299_v2  ;;  %v12292_v30 = vld [vmem:[#allocation36_spill] sm:$0xff] }
 0x1cc   : > { %1779 = vrot.lane.b32.xlu1 %v1694_v57, %s6725_s11  ;;  %v12279_v49 = vunpack.i.l.bf16 %v7726_v3  ;;  %v12280_v21 = vcombine.high %v7902_v41, %v7902_v41  ;;  %v1688_v39 = vpack.c.bf16 %v1659_v8, %v1630_v45  ;;  %v1655_v13 = vsel %vm1653_vm1, %v8031_v55, %v7803_v6  ;;  %v8231_v61 = vpop.permute.xlu0 %1711 }
 0x1cd   : > { %v1661_v24 = vsel %vm1653_vm1, %v1651_v22, %v8061_v10  ;;  %v1684_v46 = vpack.c.bf16 %v1655_v13, %v1626_v37  ;;  %v12281_v3 = vunpack.i.h.bf16 %v7886_v29  ;;  %v12282_v19 = vunpack.i.l.bf16 %v7886_v29 }
 0x1ce   : > { %v1392_v5 = vsel %vm1025_vm8, %v6313_v23, %v12279_v49  ;;  %v1622_v28 = vsel %vm1614_vm10, %v12280_v21, %v1247_v43  ;;  %1767 = vrot.lane.b32.xlu0 %v1688_v39, %s6725_s11  ;;  %v1625_v32 = vsel %vm11975_vm12, %v1615_v17, %v1294_v26  ;;  %v3200_v6 = vrot.slane %v7640_v35, %v12233_v48  ;;  %v8245_v50 = vpop.permute.xlu1 %1721 }
 0x1cf   : > { %v1644_v2 = vsel %vm486_vm5, %v1635_v56, %v1392_v5  ;;  %v1503_v38 = vsel %vm484_vm3, %v12282_v19, %v12281_v3  ;;  %v3204_v10 = vrot.slane %v7642_v60, %v12233_v48  ;;  %v12283_v55 = vunpack.i.h.bf16 %v7916_v1  ;;  %v12296_v5 = vld [vmem:[#allocation15_spill] sm:$0xff] }
 0x1d0   : > { %v12284_v4 = vunpack.i.l.bf16 %v7916_v1  ;;  %v1632_v36 = vsel %vm11975_vm12, %v1622_v28, %v1301_v15  ;;  %1759 = vrot.lane.b32.xlu1 %v1684_v46, %s6725_s11  ;;  %v12286_v26 = vunpack.i.h.bf16 %v12285_v12  ;;  %v12287_v18 = vunpack.i.l.bf16 %v12285_v12  ;;  %v8266_v23 = vpop.permute.xlu0 %2087 }
 0x1d1   : > { %v12289_v48 = vunpack.i.h.bf16 %v12288_v9  ;;  %v12290_v51 = vunpack.i.l.bf16 %v12288_v9  ;;  %v1690_v7 = vpack.c.bf16 %v1661_v24, %v1632_v36  ;;  %v1654_v14 = vsel %vm1653_vm1, %v1644_v2, %v12291_v0 }
 0x1d2   : > { %v1556_v29 = vsel %vm804_vm11, %v12284_v4, %v12283_v55  ;;  %v1450_v11 = vsel %vm1445_vm13, %v12287_v18, %v12286_v26  ;;  %v1683_v52 = vpack.c.bf16 %v1654_v14, %v1625_v32  ;;  %v12293_v43 = vunpack.i.h.bf16 %v12292_v30  ;;  %v8276_v49 = vpop.permute.xlu1 %1726  ;;  %v12307_v4 = vld [vmem:[#allocation33_spill] sm:$0xff] }
 0x1d3   : > { %v1452_v1 = vsel %vm1445_vm13, %v12290_v51, %v12289_v48  ;;  %v1668_v15 = vsel %vm1663_vm15, %v1450_v11, %v1503_v38  ;;  %v12294_v57 = vunpack.i.l.bf16 %v12292_v30  ;;  %1771 = vrot.lane.b32.xlu0 %v1690_v7, %s6725_s11  ;;  %v6025_v56 = vcombine.low %v3200_v6, %v3204_v10  ;;  %v12313_v30 = vld [vmem:[#allocation20_spill] sm:$0xff] }
 0x1d4   : > { %v1678_v22 = vsel %vm1673_vm0, %v1668_v15, %v1556_v29  ;;  %v12295_v37 = vunpack.i.l.bf16 %v7945_v63  ;;  %1757 = vrot.lane.b32.xlu1 %v1683_v52, %s6725_s11  ;;  %v12297_v21 = vunpack.i.h.bf16 %v12296_v5  ;;  %v12298_v28 = vunpack.i.l.bf16 %v12296_v5  ;;  %v8305_v32 = vpop.permute.xlu0 %1716 }
 0x1d5   : > { %v1505_v8 = vsel %vm484_vm3, %v12294_v57, %v12293_v43  ;;  %v12299_v13 = vunpack.i.l.bf16 %v7977_v44  ;;  %v12301_v46 = vunpack.i.h.bf16 %v7966_v62  ;;  %v12302_v2 = vunpack.i.l.bf16 %v7966_v62  ;;  %v12314_v57 = vld [vmem:[#allocation21_spill] sm:$0xff] }
 0x1d6   : > { %v1298_v17 = vsel %vm1293_vm2, %v12295_v37, %v6423_v40  ;;  %v1670_v45 = vsel %vm1663_vm15, %v1452_v1, %v1505_v8  ;;  %v1601_v39 = vsel %vm1596_vm14, %v12298_v28, %v12297_v21  ;;  %v12300_v40 = vunpack.i.l.bf16 %v7906_v42  ;;  %v12315_v37 = vld [vmem:[#allocation24_spill] sm:$0xff] }
 0x1d7   : > { %v1244_v63 = vsel %vm1239_vm7, %v12299_v13, %v6433_v59  ;;  %v1558_v3 = vsel %vm804_vm11, %v12302_v2, %v12301_v46  ;;  %v12303_v19 = vunpack.i.l.bf16 %v8075_v25  ;;  %v1696_v38 = vpack.c.bf16 %v1601_v39, %v1678_v22  ;;  %3231 = vrot.lane.b32.xlu0 %v6025_v56, %s6721_s26  ;;  %v12317_v13 = vld [vmem:[#allocation26_spill] sm:$0xff]  ;;  %s12380_s26 = smov 126  }
 0x1d8   : > { %v1351_v24 = vsel %vm1099_vm9, %v12300_v40, %v6428_v16  ;;  %v1680_v42 = vsel %vm1673_vm0, %v1670_v45, %v1558_v3  ;;  %v1619_v62 = vsel %vm1614_vm10, %v7875_v34, %v1244_v63  ;;  %v1300_v25 = vsel %vm1293_vm2, %v6452_v27, %v6453_v47  ;;  %v8316_v16 = vpop.permute.xlu1 %2092  ;;  %v8341_v48 = vpop.permute.xlu0 %2144  ;;  %v12316_v45 = vld [vmem:[#allocation25_spill] sm:$0xff]  ;;  %v12318_v40 = vld [vmem:[#allocation27_spill] sm:$0xff]  ;;  %v12320_v3 = vld [vmem:[#allocation30_spill] sm:$0xff] }
 0x1d9   : > { %v1353_v44 = vsel %vm1099_vm9, %v12303_v19, %v6458_v20  ;;  %v1639_v59 = vsel %vm1634_vm4, %v1298_v17, %v1351_v24  ;;  %1783 = vrot.lane.b32.xlu1 %v1696_v38, %s6725_s11  ;;  %v12304_v20 = vld [vmem:[#allocation32_spill] sm:$0xff]  ;;  %v12308_v29 = vunpack.i.h.bf16 %v12307_v4  ;;  %v12309_v34 = vunpack.i.l.bf16 %v12307_v4 }
 0x1da   : > { %v12305_v6 = vunpack.i.h.bf16 %v12304_v20  ;;  %v12306_v10 = vunpack.i.l.bf16 %v12304_v20  ;;  %v1641_v54 = vsel %vm1634_vm4, %v1300_v25, %v1353_v44  ;;  %v12310_v47 = vunpack.i.h.bf16 %v7756_v58  ;;  %v12321_v44 = vld [vmem:[#allocation31_spill] sm:$0xff] }
 0x1db   : > { %v1396_v36 = vsel %vm1025_vm8, %v12309_v34, %v12308_v29  ;;  %v12311_v26 = vunpack.i.l.bf16 %v7756_v58  ;;  %v1246_v9 = vsel %vm1239_vm7, %v6462_v31, %v6463_v33  ;;  %v1629_v51 = vsel %vm11975_vm12, %v1619_v62, %v1298_v17  ;;  %v12312_v33 = vld [vmem:[#allocation16_spill] sm:$0xff] }
 0x1dc   : > { %v1603_v55 = vsel %vm1596_vm14, %v12306_v10, %v12305_v6  ;;  %v1648_v27 = vsel %vm486_vm5, %v1639_v59, %v1396_v36  ;;  %v8344_v7 = vpop.permute.xlu1 %2139  ;;  %v1621_v14 = vsel %vm1614_vm10, %v7902_v41, %v1246_v9  ;;  %v8351_v52 = vpop.permute.xlu0 %2082  ;;  %v3273_v43 = vrot.slane %v12313_v30, %v12312_v33 }
 0x1dd   : > { %v1698_v12 = vpack.c.bf16 %v1603_v55, %v1680_v42  ;;  %v1398_v18 = vsel %vm1025_vm8, %v12311_v26, %v12310_v47  ;;  %v1658_v58 = vsel %vm1653_vm1, %v1648_v27, %v1450_v11  ;;  %v3277_v8 = vrot.slane %v12314_v57, %v12312_v33 }
 0x1de   : > { %v1650_v0 = vsel %vm486_vm5, %v1641_v54, %v1398_v18  ;;  %v1687_v15 = vpack.c.bf16 %v1658_v58, %v1629_v51  ;;  %v1631_v11 = vsel %vm11975_vm12, %v1621_v14, %v1300_v25  ;;  %v3289_v17 = vrot.slane %v12315_v37, %v12312_v33  ;;  %v12322_v25 = vld [vmem:[#allocation17_spill] sm:$0xff] }
 0x1df   : > { %1787 = vrot.lane.b32.xlu1 %v1698_v12, %s6725_s11  ;;  %v1660_v53 = vsel %vm1653_vm1, %v1650_v0, %v1452_v1  ;;  %v6026_v1 = vcombine.low %v3273_v43, %v3277_v8  ;;  %v3293_v5 = vrot.slane %v12316_v45, %v12312_v33  ;;  %v3370_v63 = vrot.slane %v12317_v13, %v12312_v33 }
 0x1e0   : > { %v8355_v31 = vpop.permute.xlu1 %2077  ;;  %v1689_v56 = vpack.c.bf16 %v1660_v53, %v1631_v11  ;;  %v8362_v22 = vpop.permute.xlu0 %2134  ;;  %v3374_v24 = vrot.slane %v12318_v40, %v12312_v33  ;;  %v3386_v19 = vrot.slane %v12320_v3, %v12312_v33  ;;  %v3390_v38 = vrot.slane %v12321_v44, %v12312_v33 }
 0x1e1   : > { %v6028_v39 = vcombine.low %v3289_v17, %v3293_v5  ;;  %v3483_v20 = vrot.slane %v12315_v37, %v12322_v25  ;;  %v3487_v6 = vrot.slane %v12316_v45, %v12322_v25  ;;  %v6736_v17 = vmov 65535  }
 0x1e2   : > { %v6030_v2 = vcombine.low %v3370_v63, %v3374_v24  ;;  %v6032_v62 = vcombine.low %v3386_v19, %v3390_v38  ;;  %v1825_v45 = vsel %vm1673_vm0, 4294967295, %v6736_v17  ;;  %vm1818_vm10 = vcmask 220160  }
 0x1e3   : > { %1765 = vrot.lane.b32.xlu1 %v1687_v15, %s6725_s11  ;;  %v6036_v4 = vcombine.low %v3483_v20, %v3487_v6  ;;  %v1826_v63 = vsel %vm11975_vm12, %v1825_v45, 0  ;;  %v6466_v20 = vld [vmem:[#allocation8] sm:$0xff]   ;;  %v12341_v45 = vmov 0   ;;  %vm2403_vm0 = vcmask 519168  }
 0x1e4   : > { %v8365_v41 = vpop.permute.xlu1 %2129  ;;  %v8371_v21 = vpop.permute.xlu0 %2719  ;;  %vm2408_vm1 = vcmask 1043968   ;;  %2404 = vst.msk [vmem:[#allocation3] sm:$0xf] %vm2403_vm0, %v12341_v45  ;;  %2405 = vst.msk [vmem:[#allocation3 + $0x24] sm:$0xf] %vm2403_vm0, %v12341_v45  ;;  %vm2591_vm4 = vcmask 1047556  }
 0x1e5   : > { %2406 = vst.msk [vmem:[#allocation3 + $0x48] sm:$0xf] %vm2403_vm0, %v12341_v45  ;;  %2407 = vst.msk [vmem:[#allocation3 + $0x6c] sm:$0xf] %vm2403_vm0, %v12341_v45  ;;  %vm12358_vm12 = vcmask 261120  }
 0x1e6   : > { %2409 = vst.msk [vmem:[#allocation3 + $0x20] sm:$0xf] %vm2408_vm1, %v12341_v45  ;;  %2410 = vst.msk [vmem:[#allocation3 + $0x44] sm:$0xf] %vm2408_vm1, %v12341_v45 }
 0x1e7   : > { %1769 = vrot.lane.b32.xlu1 %v1689_v56, %s6725_s11  ;;  %2411 = vst.msk [vmem:[#allocation3 + $0x68] sm:$0xf] %vm2408_vm1, %v12341_v45  ;;  %2412 = vst.msk [vmem:[#allocation3 + $0x8c] sm:$0xf] %vm2408_vm1, %v12341_v45 }
 0x1e8   : > { %v8374_v28 = vpop.permute.xlu1 %2717  ;;  %v8380_v46 = vpop.permute.xlu0 %2723 }
 0x1e9   : > { %12319 = vst [vmem:[#allocation35_spill] sm:$0xff] %v8380_v46 }
 0x1eb   : > { %3322 = vrot.lane.b32.xlu1 %v6026_v1, %s6722_s27 }
 0x1ec   : > { %v8387_v59 = vpop.permute.xlu1 %2721  ;;  %v8389_v42 = vpop.permute.xlu0 %2840 }
 0x1ef   : > { %3326 = vrot.lane.b32.xlu1 %v6028_v39, %s6722_s27 }
 0x1f0   : > { %v8396_v10 = vpop.permute.xlu0 %2844  ;;  %v8398_v55 = vpop.permute.xlu1 %2838 }
 0x1f1   : > { %12323 = vst [vmem:[#allocation37_spill] sm:$0xff] %v8396_v10 }
 0x1f3   : > { %3419 = vrot.lane.b32.xlu1 %v6030_v2, %s6723_s28 }
 0x1f4   : > { %v8401_v29 = vpop.permute.xlu0 %2937  ;;  %v8404_v34 = vpop.permute.xlu1 %2842 }
 0x1f5   : > { %12324 = vst [vmem:[#allocation34_spill] sm:$0xff] %v8401_v29 }
 0x1f7   : > { %3423 = vrot.lane.b32.xlu1 %v6032_v62, %s6723_s28 }
 0x1f8   : > { %v8406_v36 = vpop.permute.xlu0 %2941  ;;  %v8408_v54 = vpop.permute.xlu1 %2935 }
 0x1f9   : > { %12325 = vst [vmem:[#allocation36_spill] sm:$0xff] %v8406_v36  ;;  %12326 = vst [vmem:[#allocation15_spill] sm:$0xff] %v8408_v54 }
 0x1fb   : > { %3520 = vrot.lane.b32.xlu1 %v6036_v4, %s6725_s11 }
 0x1fc   : > { %v8410_v12 = vpop.permute.xlu0 %3034  ;;  %v8412_v27 = vpop.permute.xlu1 %2939 }
 0x1fd   : > { %12327 = vst [vmem:[#allocation32_spill] sm:$0xff] %v8410_v12  ;;  %12328 = vst [vmem:[#allocation33_spill] sm:$0xff] %v8412_v27 }
 0x200   : > { %v8414_v47 = vpop.permute.xlu0 %3038  ;;  %v8416_v26 = vpop.permute.xlu1 %3032 }
 0x201   : > { %12329 = vst [vmem:[#allocation16_spill] sm:$0xff] %v8414_v47  ;;  %12330 = vst [vmem:[#allocation20_spill] sm:$0xff] %v8416_v26 }
 0x204   : > { %v8418_v18 = vpop.permute.xlu0 %3516  ;;  %v8420_v9 = vpop.permute.xlu1 %3036 }
 0x205   : > { %12331 = vst [vmem:[#allocation21_spill] sm:$0xff] %v8418_v18  ;;  %12332 = vst [vmem:[#allocation24_spill] sm:$0xff] %v8420_v9 }
 0x208   : > { %v8422_v51 = vpop.permute.xlu0 %3131  ;;  %v8424_v0 = vpop.permute.xlu1 %3129 }
 0x209   : > { %12333 = vst [vmem:[#allocation25_spill] sm:$0xff] %v8422_v51  ;;  %12334 = vst [vmem:[#allocation26_spill] sm:$0xff] %v8424_v0 }
 0x20c   : > { %v8426_v58 = vpop.permute.xlu0 %3135  ;;  %v8428_v14 = vpop.permute.xlu1 %3518 }
 0x20d   : > { %12335 = vst [vmem:[#allocation27_spill] sm:$0xff] %v8426_v58  ;;  %12336 = vst [vmem:[#allocation30_spill] sm:$0xff] %v8428_v14 }
 0x210   : > { %v8430_v15 = vpop.permute.xlu0 %3227  ;;  %v8432_v53 = vpop.permute.xlu1 %3133 }
 0x211   : > { %12337 = vst [vmem:[#allocation31_spill] sm:$0xff] %v8430_v15  ;;  %12338 = vst [vmem:[#allocation17_spill] sm:$0xff] %v8432_v53 }
 0x214   : > { %v1778_v30 = vpop.permute.xlu0 %1777  ;;  %v8434_v43 = vpop.permute.xlu1 %3225 }
 0x215   : > { %12339 = vst [vmem:[#allocation38_spill] sm:$0xff] %v8434_v43 }
 0x218   : > { %v8436_v8 = vpop.permute.xlu1 %3229 }
 0x219   : > { %v1776_v57 = vpop.permute.xlu0 %1775  ;;  %12340 = vst [vmem:[#allocation39_spill] sm:$0xff] %v8436_v8 }
 0x21a   : > { %v1802_v39 = vsel %vm1173_vm6, %v1776_v57, %v1778_v30 }
 0x21b   : > { %v1828_v2 = vand.u32 %v1826_v63, %v1802_v39 }
 0x21c   : > { %v1792_v56 = vpop.permute.xlu1 %1791 }
 0x222   : > { %v1782_v11 = vpop.permute.xlu0 %1781 }
 0x22f   : > { %v1786_v1 = vpop.permute.xlu0 %1785 }
 0x233   : > { %v1790_v5 = vpop.permute.xlu0 %1789 }
 0x237   : > { %v1762_v3 = vpop.permute.xlu0 %1761 }
 0x238   : > { %v1774_v37 = vpop.permute.xlu1 %1773 }
 0x23c   : > { %v1764_v6 = vpop.permute.xlu0 %1763 }
 0x23e   : > { %v1780_v13 = vpop.permute.xlu1 %1779 }
 0x23f   : > { %v1803_v40 = vsel %vm1173_vm6, %v1778_v30, %v1780_v13  ;;  %v1804_v57 = vsel %vm1173_vm6, %v1780_v13, %v1782_v11  ;;  %v1809_v13 = vsel %vm1173_vm6, %v1790_v5, %v1792_v56 }
 0x240   : > { %v1831_v24 = vand.u32 %v1826_v63, %v1803_v40  ;;  %v1834_v39 = vand.u32 %v1826_v63, %v1804_v57 }
 0x242   : > { %1863 = vmatprep.subr.bf16.mxu0 %v1831_v24  ;;  %v1760_v19 = vpop.permute.xlu1 %1759 }
 0x243   : > { %1864 = vmatpush1.bf16.msra.mxu0 %v1828_v2  ;;  %v1795_v44 = vsel %vm1173_vm6, %v1760_v19, %v1762_v3 }
 0x244   : > { %1865 = vmatprep.subr.bf16.mxu0 %v1795_v44  ;;  %v1768_v44 = vpop.permute.xlu0 %1767 }
 0x246   : > { %v1758_v38 = vpop.permute.xlu1 %1757 }
 0x247   : > { %v1794_v62 = vsel %vm1173_vm6, %v1758_v38, %v1760_v19  ;;  %v6467_v19 = vld [vmem:[#allocation8 + $0x8] sm:$0xff]  }
 0x248   : > { %1866 = vmatpush1.bf16.msra.mxu0 %v1794_v62 }
 0x24b   : > { %v1784_v4 = vpop.permute.xlu1 %1783  ;;  %5946 = vmatmul.mubr.msk.bf16.vlgmr.msra.gmra.mxu0 %vm1818_vm10, %v6466_v20 }
 0x24c   : > { %v1805_v30 = vsel %vm1173_vm6, %v1782_v11, %v1784_v4  ;;  %1893 = vmatprep.mubr.bf16.mxu0 %v12341_v45  ;;  %v1806_v24 = vsel %vm1173_vm6, %v1784_v4, %v1786_v1  ;;  %v1796_v4 = vsel %vm1173_vm6, %v1762_v3, %v1764_v6 }
 0x24d   : > { %v1837_v17 = vand.u32 %v1826_v63, %v1805_v30  ;;  %v1840_v62 = vand.u32 %v1826_v63, %v1806_v24  ;;  %v1772_v30 = vpop.permute.xlu0 %1771 }
 0x24f   : > { %1916 = vmatprep.subr.bf16.mxu1 %v1837_v17 }
 0x250   : > { %1917 = vmatpush1.bf16.msra.mxu1 %v1834_v39 }
 0x251   : > { %v1788_v40 = vpop.permute.xlu1 %1787 }
 0x252   : > { %v1807_v2 = vsel %vm1173_vm6, %v1786_v1, %v1788_v40  ;;  %v1808_v57 = vsel %vm1173_vm6, %v1788_v40, %v1790_v5  ;;  %v1849_v1 = vand.u32 %v1826_v63, %v1809_v13  ;;  %v1801_v5 = vsel %vm1173_vm6, %v1772_v30, %v1774_v37 }
 0x253   : > { %v1843_v38 = vand.u32 %v1826_v63, %v1807_v2  ;;  %5947 = vmatmul.mubr.msk.bf16.gmra.mxu0 %vm1818_vm10, %v6467_v19  ;;  %v1846_v17 = vand.u32 %v1826_v63, %v1808_v57  ;;  %v12343_v63 = vld [vmem:[#allocation19_spill] sm:$0xff]  ;;  %v12344_v2 = vld [vmem:[#allocation22_spill] sm:$0xff] }
 0x254   : > { %1989 = vmatprep.mubr.bf16.mxu0 %v12341_v45 }
 0x255   : > { %1969 = vmatprep.subr.bf16.mxu0 %v1843_v38  ;;  %v1766_v58 = vpop.permute.xlu1 %1765 }
 0x256   : > { %v1797_v11 = vsel %vm1173_vm6, %v1764_v6, %v1766_v58  ;;  %1970 = vmatpush1.bf16.msra.mxu0 %v1840_v62  ;;  %v1798_v24 = vsel %vm1173_vm6, %v1766_v58, %v1768_v44  ;;  %v12342_v58 = vld [vmem:[#allocation18_spill] sm:$0xff]  ;;  %v3285_v6 = vrot.slane %v12343_v63, %v12312_v33 }
 0x257   : > { %1918 = vmatprep.subr.bf16.mxu1 %v1797_v11  ;;  %v3281_v37 = vrot.slane %v12342_v58, %v12312_v33  ;;  %v12347_v11 = vld [vmem:[#allocation29_spill] sm:$0xff] }
 0x258   : > { %1919 = vmatpush1.bf16.msra.mxu1 %v1796_v4  ;;  %v3382_v57 = vrot.slane %v12347_v11, %v12312_v33 }
 0x259   : > { %2022 = vmatprep.subr.bf16.mxu1 %v1849_v1  ;;  %v1770_v56 = vpop.permute.xlu1 %1769  ;;  %v6027_v40 = vcombine.low %v3281_v37, %v3285_v6  ;;  %v3394_v1 = vrot.slane %v7640_v35, %v12312_v33 }
 0x25a   : > { %v1799_v39 = vsel %vm1173_vm6, %v1768_v44, %v1770_v56  ;;  %v1800_v3 = vsel %vm1173_vm6, %v1770_v56, %v1772_v30  ;;  %v3297_v44 = vrot.slane %v12344_v2, %v12312_v33  ;;  %v3398_v30 = vrot.slane %v7642_v60, %v12312_v33 }
 0x25b   : > { %5948 = vmatmul.mubr.msk.bf16.vlgmr.msra.gmra.mxu1 %vm1818_vm10, %v6466_v20  ;;  %1971 = vmatprep.subr.bf16.mxu0 %v1799_v39 }
 0x25c   : > { %1972 = vmatpush1.bf16.msra.mxu0 %v1798_v24  ;;  %2023 = vmatpush1.bf16.msra.mxu1 %v1846_v17  ;;  %v6033_v56 = vcombine.low %v3394_v1, %v3398_v30  ;;  %v3491_v17 = vrot.slane %v12344_v2, %v12322_v25 }
 0x25d   : > { %2024 = vmatprep.subr.bf16.mxu1 %v1801_v5  ;;  %1946 = vmatprep.mubr.bf16.mxu1 %v12341_v45 }
 0x25e   : > { %3324 = vrot.lane.b32.xlu0 %v6027_v40, %s6722_s27 }
 0x25f   : > { %5950 = vmatmul.mubr.msk.bf16.vlgmr.msra.gmra.mxu0 %vm1818_vm10, %v6466_v20 }
 0x260   : > { %2025 = vmatpush1.bf16.msra.mxu1 %v1800_v3  ;;  %1999 = vmatprep.mubr.bf16.mxu0 %v12341_v45 }
 0x263   : > { %5949 = vmatmul.mubr.msk.bf16.gmra.mxu1 %vm1818_vm10, %v6467_v19 }
 0x264   : > { %2042 = vmatprep.mubr.bf16.mxu1 %v12341_v45 }
 0x267   : > { %5951 = vmatmul.mubr.msk.bf16.gmra.mxu0 %vm1818_vm10, %v6467_v19 }
 0x26b   : > { %5952 = vmatmul.mubr.msk.bf16.vlgmr.msra.gmra.mxu1 %vm1818_vm10, %v6466_v20  ;;  %v12345_v20 = vld [vmem:[#allocation23_spill] sm:$0xff] }
 0x26c   : > { %2052 = vmatprep.mubr.bf16.mxu1 %v12341_v45  ;;  %v3301_v38 = vrot.slane %v12345_v20, %v12312_v33  ;;  %v3495_v39 = vrot.slane %v12345_v20, %v12322_v25 }
 0x26e   : > { %v6029_v13 = vcombine.low %v3297_v44, %v3301_v38  ;;  %v6037_v24 = vcombine.low %v3491_v17, %v3495_v39 }
 0x270   : > { %3328 = vrot.lane.b32.xlu0 %v6029_v13, %s6722_s27 }
 0x273   : > { %5953 = vmatmul.mubr.msk.bf16.gmra.mxu1 %vm1818_vm10, %v6467_v19  ;;  %v12346_v19 = vld [vmem:[#allocation28_spill] sm:$0xff]  ;;  %vm8793_vm10 = vmor %vm2591_vm4, %vm2408_vm1  ;;  %vm12354_vm1 = vcmask 252928  }
 0x274   : > { %5360 = vmatprep.mubr.bf16.mxu1 %v12341_v45  ;;  %v3378_v62 = vrot.slane %v12346_v19, %v12312_v33  ;;  %vm12356_vm4 = vmmov %vm12354_vm1 }
 0x276   : > { %v6031_v4 = vcombine.low %v3378_v62, %v3382_v57 }
 0x278   : > { %3421 = vrot.lane.b32.xlu0 %v6031_v4, %s6723_s28 }
 0x27c   : > { %3425 = vrot.lane.b32.xlu0 %v6033_v56, %s6723_s28 }
 0x280   : > { %3522 = vrot.lane.b32.xlu0 %v6037_v24, %s6725_s11 }
 0x30b   : > { %v1885_v35 = vpop.f32.mrf.mxu0 }
 0x30c   : > { %v1886_v60 = vadd.f32 %v1885_v35, %v8231_v61 }
 0x30d   : > { %v1887_v33 = vpop.f32.mrf.mxu0 }
 0x30e   : > { %v2095_v25 = vmul.f32 %v8355_v31, %v1886_v60  ;;  %v1888_v5 = vadd.f32 %v1887_v33, %v8231_v61 }
 0x30f   : > { %v1889_v3 = vpop.f32.mrf.mxu0 }
 0x310   : > { %v8516_v58 = vadd.f32 %v8365_v41, %v2095_v25  ;;  %v2096_v37 = vmul.f32 %v8355_v31, %v1888_v5  ;;  %v1890_v63 = vadd.f32 %v1889_v3, %v8305_v32 }
 0x311   : > { %v1891_v6 = vpop.f32.mrf.mxu0 }
 0x312   : > { %v5954_v40 = vmul.f32 -1.442695, %v8516_v58  ;;  %v8522_v2 = vadd.f32 %v8365_v41, %v2096_v37  ;;  %v2103_v44 = vmul.f32 %v8351_v52, %v1890_v63  ;;  %v1892_v20 = vadd.f32 %v1891_v6, %v8305_v32 }
 0x313   : > { %v1895_v38 = vpop.f32.mrf.mxu0 }
 0x314   : > { %6469 = vpow2.f32 %v5954_v40  ;;  %v5955_v13 = vmul.f32 -1.442695, %v8522_v2  ;;  %v8528_v19 = vadd.f32 %v8362_v22, %v2103_v44  ;;  %v2104_v62 = vmul.f32 %v8351_v52, %v1892_v20 }
 0x315   : > { %v1896_v11 = vadd.f32 %v1895_v38, %v8245_v50  ;;  %v1897_v57 = vpop.f32.mrf.mxu0 }
 0x316   : > { %6471 = vpow2.f32 %v5955_v13  ;;  %v5962_v4 = vmul.f32 -1.442695, %v8528_v19  ;;  %v8534_v1 = vadd.f32 %v8362_v22, %v2104_v62  ;;  %v1898_v30 = vadd.f32 %v1897_v57, %v8245_v50 }
 0x317   : > { %v2111_v56 = vmul.f32 %v8266_v23, %v1896_v11  ;;  %v1899_v17 = vpop.f32.mrf.mxu0 }
 0x318   : > { %6473 = vpow2.f32 %v5962_v4  ;;  %v5963_v39 = vmul.f32 -1.442695, %v8534_v1  ;;  %v2112_v24 = vmul.f32 %v8266_v23, %v1898_v30  ;;  %v1900_v35 = vadd.f32 %v1899_v17, %v8276_v49 }
 0x319   : > { %v8542_v33 = vadd.f32 %v8344_v7, %v2111_v56  ;;  %v1901_v5 = vpop.f32.mrf.mxu0 }
 0x31a   : > { %6475 = vpow2.f32 %v5963_v39  ;;  %v8546_v3 = vadd.f32 %v8344_v7, %v2112_v24  ;;  %v2119_v37 = vmul.f32 %v8316_v16, %v1900_v35  ;;  %v1902_v63 = vadd.f32 %v1901_v5, %v8276_v49 }
 0x31b   : > { %v1938_v60 = vpop.f32.mrf.mxu1  ;;  %v5970_v40 = vmul.f32 -1.442695, %v8542_v33 }
 0x31c   : > { %v1939_v25 = vadd.f32 %v1938_v60, %v8231_v61  ;;  %v5971_v38 = vmul.f32 -1.442695, %v8546_v3  ;;  %v8555_v13 = vadd.f32 %v8341_v48, %v2119_v37  ;;  %v2120_v62 = vmul.f32 %v8316_v16, %v1902_v63 }
 0x31d   : > { %v1940_v6 = vpop.f32.mrf.mxu1  ;;  %6477 = vpow2.f32 %v5970_v40 }
 0x31e   : > { %v2097_v44 = vmul.f32 %v8355_v31, %v1939_v25  ;;  %v1941_v20 = vadd.f32 %v1940_v6, %v8231_v61  ;;  %6479 = vpow2.f32 %v5971_v38  ;;  %v5978_v17 = vmul.f32 -1.442695, %v8555_v13 }
 0x31f   : > { %v1942_v11 = vpop.f32.mrf.mxu1  ;;  %v1991_v57 = vpop.f32.mrf.mxu0  ;;  %v8565_v39 = vadd.f32 %v8341_v48, %v2120_v62 }
 0x320   : > { %v8559_v4 = vadd.f32 %v8365_v41, %v2097_v44  ;;  %v2098_v30 = vmul.f32 %v8355_v31, %v1941_v20  ;;  %v1943_v56 = vadd.f32 %v1942_v11, %v8305_v32  ;;  %v1992_v24 = vadd.f32 %v1991_v57, %v8231_v61 }
 0x321   : > { %v1944_v35 = vpop.f32.mrf.mxu1  ;;  %v1993_v60 = vpop.f32.mrf.mxu0  ;;  %6481 = vpow2.f32 %v5978_v17  ;;  %v5979_v6 = vmul.f32 -1.442695, %v8565_v39 }
 0x322   : > { %v5956_v25 = vmul.f32 -1.442695, %v8559_v4  ;;  %v8570_v5 = vadd.f32 %v8365_v41, %v2098_v30  ;;  %v2105_v37 = vmul.f32 %v8351_v52, %v1943_v56  ;;  %v1945_v63 = vadd.f32 %v1944_v35, %v8305_v32  ;;  %v6470_v62 = vpop.eup %6469 }
 0x323   : > { %v2099_v40 = vmul.f32 %v8355_v31, %v1992_v24  ;;  %v1994_v44 = vadd.f32 %v1993_v60, %v8231_v61  ;;  %v1948_v20 = vpop.f32.mrf.mxu1  ;;  %v1995_v38 = vpop.f32.mrf.mxu0  ;;  %v2275_v56 = vadd.f32 1.0, %v6470_v62 }
 0x324   : > { %6483 = vpow2.f32 %v5956_v25  ;;  %v5957_v11 = vmul.f32 -1.442695, %v8570_v5  ;;  %v8579_v57 = vadd.f32 %v8362_v22, %v2105_v37  ;;  %v2106_v30 = vmul.f32 %v8351_v52, %v1945_v63  ;;  %v6472_v45 = vpop.eup %6471 }
 0x325   : > { %6485 = vpow2.f32 %v5979_v6  ;;  %v8583_v17 = vadd.f32 %v8365_v41, %v2099_v40  ;;  %v2100_v24 = vmul.f32 %v8355_v31, %v1994_v44  ;;  %v1950_v35 = vpop.f32.mrf.mxu1  ;;  %v1997_v60 = vpop.f32.mrf.mxu0  ;;  %v1949_v37 = vadd.f32 %v1948_v20, %v8245_v50 }
 0x326   : > { %6487 = vpow2.f32 %v5957_v11  ;;  %v5964_v25 = vmul.f32 -1.442695, %v8579_v57  ;;  %v8588_v47 = vadd.f32 %v8362_v22, %v2106_v30  ;;  %v2276_v63 = vadd.f32 1.0, %v6472_v45  ;;  %v6474_v44 = vpop.eup %6473 }
 0x327   : > { %6489 = vrcp.f32 %v2275_v56  ;;  %v5958_v6 = vmul.f32 -1.442695, %v8583_v17  ;;  %v8593_v40 = vadd.f32 %v8365_v41, %v2100_v24  ;;  %v1952_v62 = vpop.f32.mrf.mxu1  ;;  %v2113_v11 = vmul.f32 %v8266_v23, %v1949_v37  ;;  %v2001_v30 = vpop.f32.mrf.mxu0 }
 0x328   : > { %6491 = vpow2.f32 %v5964_v25  ;;  %v5965_v36 = vmul.f32 -1.442695, %v8588_v47  ;;  %v1996_v10 = vadd.f32 %v1995_v38, %v8305_v32  ;;  %v2283_v46 = vadd.f32 1.0, %v6474_v44  ;;  %v6476_v8 = vpop.eup %6475 }
 0x329   : > { %6493 = vrcp.f32 %v2276_v63  ;;  %v5959_v20 = vmul.f32 -1.442695, %v8593_v40  ;;  %v1951_v45 = vadd.f32 %v1950_v35, %v8245_v50  ;;  %v1954_v56 = vpop.f32.mrf.mxu1  ;;  %v8601_v24 = vadd.f32 %v8344_v7, %v2113_v11  ;;  %v2003_v11 = vpop.f32.mrf.mxu0 }
 0x32a   : > { %6495 = vpow2.f32 %v5958_v6  ;;  %v2107_v25 = vmul.f32 %v8351_v52, %v1996_v10  ;;  %v1998_v53 = vadd.f32 %v1997_v60, %v8305_v32  ;;  %v2284_v37 = vadd.f32 1.0, %v6476_v8  ;;  %v6478_v9 = vpop.eup %6477 }
 0x32b   : > { %6497 = vrcp.f32 %v2283_v46  ;;  %v2114_v38 = vmul.f32 %v8266_v23, %v1951_v45  ;;  %v1953_v63 = vadd.f32 %v1952_v62, %v8276_v49  ;;  %v2044_v44 = vpop.f32.mrf.mxu1  ;;  %v5972_v35 = vmul.f32 -1.442695, %v8601_v24  ;;  %v6480_v60 = vpop.eup %6479 }
 0x32c   : > { %6499 = vpow2.f32 %v5965_v36  ;;  %v8609_v14 = vadd.f32 %v8362_v22, %v2107_v25  ;;  %v2108_v6 = vmul.f32 %v8351_v52, %v1998_v53  ;;  %v2002_v46 = vadd.f32 %v2001_v30, %v8245_v50  ;;  %v2005_v0 = vpop.f32.mrf.mxu0 }
 0x32d   : > { %6501 = vrcp.f32 %v2284_v37  ;;  %v8613_v10 = vadd.f32 %v8344_v7, %v2114_v38  ;;  %v2046_v8 = vpop.f32.mrf.mxu1  ;;  %v2291_v62 = vadd.f32 1.0, %v6478_v9  ;;  %v2121_v45 = vmul.f32 %v8316_v16, %v1953_v63 }
 0x32e   : > { %6503 = vpow2.f32 %v5959_v20  ;;  %v5966_v36 = vmul.f32 -1.442695, %v8609_v14  ;;  %v2292_v25 = vadd.f32 1.0, %v6480_v60  ;;  %v6482_v53 = vpop.eup %6481  ;;  %v8620_v38 = vadd.f32 %v8362_v22, %v2108_v6 }
 0x32f   : > { %6505 = vpow2.f32 %v5972_v35  ;;  %v2048_v27 = vpop.f32.mrf.mxu1  ;;  %v5973_v37 = vmul.f32 -1.442695, %v8613_v10  ;;  %v1955_v30 = vadd.f32 %v1954_v56, %v8276_v49  ;;  %v2299_v9 = vadd.f32 1.0, %v6482_v53 }
 0x330   : > { %6507 = vrcp.f32 %v2291_v62  ;;  %v2115_v20 = vmul.f32 %v8266_v23, %v2002_v46  ;;  %v2004_v63 = vadd.f32 %v2003_v11, %v8245_v50  ;;  %v8626_v62 = vadd.f32 %v8341_v48, %v2121_v45  ;;  %v2007_v45 = vpop.f32.mrf.mxu0 }
 0x331   : > { %v6484_v12 = vpop.eup %6483  ;;  %6509 = vrcp.f32 %v2292_v25  ;;  %v2122_v43 = vmul.f32 %v8316_v16, %v1955_v30  ;;  %v2006_v25 = vadd.f32 %v2005_v0, %v8276_v49  ;;  %v2050_v53 = vpop.f32.mrf.mxu1 }
 0x332   : > { %v6486_v60 = vpop.eup %6485  ;;  %v2277_v35 = vadd.f32 1.0, %v6484_v12  ;;  %6511 = vpow2.f32 %v5966_v36  ;;  %v2116_v56 = vmul.f32 %v8266_v23, %v2004_v63  ;;  %v5967_v12 = vmul.f32 -1.442695, %v8620_v38 }
 0x333   : > { %v6488_v6 = vpop.eup %6487  ;;  %6513 = vrcp.f32 %v2299_v9  ;;  %v2300_v15 = vadd.f32 1.0, %v6486_v60  ;;  %v8633_v36 = vadd.f32 %v8344_v7, %v2115_v20  ;;  %v2123_v60 = vmul.f32 %v8316_v16, %v2006_v25  ;;  %v2054_v20 = vpop.f32.mrf.mxu1 }
 0x334   : > { %v6490_v51 = vpop.eup %6489  ;;  %6515 = vrcp.f32 %v2277_v35  ;;  %v2278_v46 = vadd.f32 1.0, %v6488_v6  ;;  %v2045_v63 = vadd.f32 %v2044_v44, %v8231_v61  ;;  %v5980_v35 = vmul.f32 -1.442695, %v8626_v62 }
 0x335   : > { %v6492_v11 = vpop.eup %6491  ;;  %6517 = vrcp.f32 %v2300_v15  ;;  %v8639_v6 = vadd.f32 %v8341_v48, %v2122_v43  ;;  %v8642_v15 = vadd.f32 %v8344_v7, %v2116_v56  ;;  %v2008_v25 = vadd.f32 %v2007_v45, %v8276_v49 }
 0x336   : > { %v6494_v30 = vpop.eup %6493  ;;  %6519 = vrcp.f32 %v2278_v46  ;;  %v2285_v9 = vadd.f32 1.0, %v6492_v11  ;;  %v2101_v46 = vmul.f32 %v8355_v31, %v2045_v63  ;;  %v8647_v44 = vmul.f32 %v6490_v51, %v8516_v58 }
 0x337   : > { %v6496_v0 = vpop.eup %6495  ;;  %6521 = vpow2.f32 %v5973_v37  ;;  %v5974_v37 = vmul.f32 -1.442695, %v8633_v36  ;;  %v2047_v43 = vadd.f32 %v2046_v8, %v8231_v61  ;;  %v8652_v18 = vadd.f32 %v8341_v48, %v2123_v60 }
 0x338   : > { %v6498_v26 = vpop.eup %6497  ;;  %6523 = vrcp.f32 %v2285_v9  ;;  %v2279_v29 = vadd.f32 1.0, %v6496_v0  ;;  %v2124_v9 = vmul.f32 %v8316_v16, %v2008_v25  ;;  %v8656_v45 = vadd.f32 %v8365_v41, %v2101_v46 }
 0x339   : > { %v6500_v11 = vpop.eup %6499  ;;  %6525 = vpow2.f32 %v5967_v12  ;;  %v2102_v51 = vmul.f32 %v8355_v31, %v2047_v43  ;;  %v2049_v58 = vadd.f32 %v2048_v27, %v8305_v32  ;;  %v2056_v12 = vpop.f32.mrf.mxu1  ;;  %v5975_v8 = vmul.f32 -1.442695, %v8642_v15 }
 0x33a   : > { %v6502_v54 = vpop.eup %6501  ;;  %6527 = vrcp.f32 %v2279_v29  ;;  %v2286_v56 = vadd.f32 1.0, %v6500_v11  ;;  %v5981_v29 = vmul.f32 -1.442695, %v8639_v6  ;;  %v8669_v27 = vmul.f32 %v6494_v30, %v8522_v2 }
 0x33b   : > { %v6504_v63 = vpop.eup %6503  ;;  %6529 = vpow2.f32 %v5980_v35  ;;  %v8665_v35 = vadd.f32 %v8341_v48, %v2124_v9  ;;  %v2109_v46 = vmul.f32 %v8351_v52, %v2049_v58  ;;  %v8672_v11 = vadd.f32 %v8365_v41, %v2102_v51  ;;  %v2058_v58 = vpop.f32.mrf.mxu1 }
 0x33c   : > { %v6506_v0 = vpop.eup %6505  ;;  %6531 = vrcp.f32 %v2286_v56  ;;  %v2280_v61 = vadd.f32 1.0, %v6504_v63  ;;  %v2051_v43 = vadd.f32 %v2050_v53, %v8305_v32  ;;  %v5982_v63 = vmul.f32 -1.442695, %v8652_v18 }
 0x33d   : > { %v8662_v60 = vpop.eup %6507  ;;  %v2293_v25 = vadd.f32 1.0, %v6506_v0  ;;  %6533 = vpow2.f32 %v5974_v37  ;;  %v5960_v37 = vmul.f32 -1.442695, %v8656_v45  ;;  %v8678_v9 = vadd.f32 %v8362_v22, %v2109_v46 }
 0x33e   : > { %v6510_v31 = vpop.eup %6509  ;;  %6535 = vrcp.f32 %v2280_v61  ;;  %v2110_v30 = vmul.f32 %v8351_v52, %v2051_v43  ;;  %v2055_v41 = vadd.f32 %v2054_v20, %v8245_v50  ;;  %v8685_v32 = vmul.f32 %v6498_v26, %v8528_v19 }
 0x33f   : > { %v6512_v56 = vpop.eup %6511  ;;  %6537 = vrcp.f32 %v2293_v25  ;;  %v5983_v53 = vmul.f32 -1.442695, %v8665_v35  ;;  %v2057_v61 = vadd.f32 %v2056_v12, %v8245_v50  ;;  %v5961_v46 = vmul.f32 -1.442695, %v8672_v11 }
 0x340   : > { %v8680_v0 = vpop.eup %6513  ;;  %v2287_v2 = vadd.f32 1.0, %v6512_v56  ;;  %6539 = vpow2.f32 %v5981_v29  ;;  %v8691_v56 = vadd.f32 %v8362_v22, %v2110_v30  ;;  %v2117_v52 = vmul.f32 %v8266_v23, %v2055_v41 }
 0x341   : > { %v6516_v51 = vpop.eup %6515  ;;  %6541 = vpow2.f32 %v5975_v8  ;;  %v2380_v20 = vmul.f32 %v6502_v54, %v8534_v1  ;;  %v2118_v26 = vmul.f32 %v8266_v23, %v2057_v61  ;;  %v2059_v19 = vadd.f32 %v2058_v58, %v8276_v49  ;;  %v2060_v8 = vpop.f32.mrf.mxu1 }
 0x342   : > { %v6518_v25 = vpop.eup %6517  ;;  %6543 = vrcp.f32 %v2287_v2  ;;  %v8698_v50 = vmul.f32 %v6510_v31, %v8546_v3  ;;  %v5968_v12 = vmul.f32 -1.442695, %v8678_v9  ;;  %v8702_v22 = vadd.f32 %v8344_v7, %v2117_v52 }
 0x343   : > { %v6520_v29 = vpop.eup %6519  ;;  %6545 = vpow2.f32 %v5982_v63  ;;  %v8705_v54 = vadd.f32 %v8344_v7, %v2118_v26  ;;  %v2125_v23 = vmul.f32 %v8316_v16, %v2059_v19  ;;  %v2373_v63 = vmul.f32 %v6516_v51, %v8559_v4 }
 0x344   : > { %v6522_v43 = vpop.eup %6521  ;;  %6547 = vpow2.f32 %v5960_v37  ;;  %v5969_v3 = vmul.f32 -1.442695, %v8691_v56  ;;  %v2061_v31 = vadd.f32 %v2060_v8, %v8276_v49  ;;  %v2374_v58 = vmul.f32 %v6520_v29, %v8570_v5 }
 0x345   : > { %v6524_v2 = vpop.eup %6523  ;;  %v2294_v30 = vadd.f32 1.0, %v6522_v43  ;;  %6549 = vpow2.f32 %v5983_v53  ;;  %v8713_v53 = vadd.f32 %v8341_v48, %v2125_v23  ;;  %v5976_v61 = vmul.f32 -1.442695, %v8702_v22 }
 0x346   : > { %v6526_v1 = vpop.eup %6525  ;;  %6551 = vpow2.f32 %v5961_v46  ;;  %v2126_v52 = vmul.f32 %v8316_v16, %v2061_v31  ;;  %v6219_v4 = vpack.c.bf16 %v8669_v27, %v8647_v44  ;;  %v2381_v49 = vmul.f32 %v6524_v2, %v8579_v57 }
 0x347   : > { %v6528_v37 = vpop.eup %6527  ;;  %6553 = vrcp.f32 %v2294_v30  ;;  %v2288_v41 = vadd.f32 1.0, %v6526_v1  ;;  %v5977_v5 = vmul.f32 -1.442695, %v8705_v54  ;;  %v6223_v16 = vpack.c.bf16 %v2380_v20, %v8685_v32 }
 0x348   : > { %v6530_v7 = vpop.eup %6529  ;;  %6555 = vpow2.f32 %v5968_v12  ;;  %v8723_v19 = vadd.f32 %v8341_v48, %v2126_v52  ;;  %2493 = vrot.lane.b32.xlu1 %v6219_v4, %s6724_s29  ;;  %v5984_v57 = vmul.f32 -1.442695, %v8713_v53  ;;  %v6220_v27 = vpack.c.bf16 %v2374_v58, %v2373_v63 }
 0x349   : > { %v6532_v51 = vpop.eup %6531  ;;  %6557 = vrcp.f32 %v2288_v41  ;;  %v2301_v46 = vadd.f32 1.0, %v6530_v7  ;;  %v2387_v12 = vmul.f32 %v8662_v60, %v8542_v33  ;;  %v2396_v2 = vmul.f32 %v6518_v25, %v8565_v39 }
 0x34a   : > { %v6534_v29 = vpop.eup %6533  ;;  %v2382_v26 = vmul.f32 %v6532_v51, %v8588_v47  ;;  %6559 = vpow2.f32 %v5969_v3  ;;  %2495 = vrot.lane.b32.xlu0 %v6220_v27, %s6724_s29  ;;  %v5985_v20 = vmul.f32 -1.442695, %v8723_v19  ;;  %v2395_v39 = vmul.f32 %v8680_v0, %v8555_v13 }
 0x34b   : > { %v6536_v8 = vpop.eup %6535  ;;  %6561 = vrcp.f32 %v2301_v46  ;;  %v2295_v44 = vadd.f32 1.0, %v6534_v29  ;;  %v6227_v23 = vpack.c.bf16 %v8698_v50, %v2387_v12  ;;  %v2375_v13 = vmul.f32 %v6528_v37, %v8583_v17 }
 0x34c   : > { %v6538_v43 = vpop.eup %6537  ;;  %6563 = vpow2.f32 %v5976_v61  ;;  %v6224_v48 = vpack.c.bf16 %v2382_v26, %v2381_v49  ;;  %2501 = vrot.lane.b32.xlu1 %v6223_v16, %s6724_s29  ;;  %v2376_v31 = vmul.f32 %v6536_v8, %v8593_v40  ;;  %v6231_v50 = vpack.c.bf16 %v2396_v2, %v2395_v39 }
 0x34d   : > { %v6540_v47 = vpop.eup %6539  ;;  %6565 = vrcp.f32 %v2295_v44  ;;  %v2389_v4 = vmul.f32 %v6538_v43, %v8601_v24 }
 0x34e   : > { %v6542_v30 = vpop.eup %6541  ;;  %v2302_v32 = vadd.f32 1.0, %v6540_v47  ;;  %6567 = vpow2.f32 %v5977_v5  ;;  %2503 = vrot.lane.b32.xlu0 %v6224_v48, %s6724_s29  ;;  %v6221_v46 = vpack.c.bf16 %v2376_v31, %v2375_v13 }
 0x34f   : > { %v6544_v1 = vpop.eup %6543  ;;  %v2296_v63 = vadd.f32 1.0, %v6542_v30  ;;  %6569 = vpow2.f32 %v5984_v57 }
 0x350   : > { %v6546_v33 = vpop.eup %6545  ;;  %6571 = vrcp.f32 %v2302_v32  ;;  %2509 = vrot.lane.b32.xlu1 %v6227_v23, %s6724_s29  ;;  %v2383_v17 = vmul.f32 %v6544_v1, %v8609_v14 }
 0x351   : > { %v6548_v60 = vpop.eup %6547  ;;  %6573 = vrcp.f32 %v2296_v63  ;;  %v2303_v25 = vadd.f32 1.0, %v6546_v33 }
 0x352   : > { %v6550_v3 = vpop.eup %6549  ;;  %v2281_v58 = vadd.f32 1.0, %v6548_v60  ;;  %6575 = vpow2.f32 %v5985_v20 }
 0x353   : > { %v6552_v41 = vpop.eup %6551  ;;  %6577 = vrcp.f32 %v2303_v25  ;;  %v2304_v7 = vadd.f32 1.0, %v6550_v3 }
 0x354   : > { %v6554_v61 = vpop.eup %6553  ;;  %6579 = vrcp.f32 %v2281_v58  ;;  %v2282_v0 = vadd.f32 1.0, %v6552_v41  ;;  %2517 = vrot.lane.b32.xlu1 %v6231_v50, %s6724_s29 }
 0x355   : > { %v6556_v52 = vpop.eup %6555  ;;  %v2390_v51 = vmul.f32 %v6554_v61, %v8613_v10  ;;  %6581 = vrcp.f32 %v2304_v7 }
 0x356   : > { %v6558_v40 = vpop.eup %6557  ;;  %6583 = vrcp.f32 %v2282_v0  ;;  %v2289_v49 = vadd.f32 1.0, %v6556_v52 }
 0x357   : > { %v6560_v5 = vpop.eup %6559  ;;  %v2384_v29 = vmul.f32 %v6558_v40, %v8620_v38  ;;  %v6228_v26 = vpack.c.bf16 %v2390_v51, %v2389_v4  ;;  %v8770_v4 = vpop.permute.xlu0 %3231 }
 0x358   : > { %v6562_v16 = vpop.eup %6561  ;;  %6585 = vrcp.f32 %v2289_v49  ;;  %v2290_v37 = vadd.f32 1.0, %v6560_v5  ;;  %2497 = vrot.lane.b32.xlu1 %v6221_v46, %s6724_s29  ;;  %v8772_v51 = vpop.permute.xlu1 %3322 }
 0x359   : > { %v6564_v8 = vpop.eup %6563  ;;  %2511 = vrot.lane.b32.xlu0 %v6228_v26, %s6724_s29  ;;  %v6225_v44 = vpack.c.bf16 %v2384_v29, %v2383_v17  ;;  %v2397_v14 = vmul.f32 %v6562_v16, %v8626_v62 }
 0x35a   : > { %v6566_v24 = vpop.eup %6565  ;;  %6587 = vrcp.f32 %v2290_v37  ;;  %v2297_v10 = vadd.f32 1.0, %v6564_v8 }
 0x35b   : > { %v6568_v57 = vpop.eup %6567  ;;  %v2391_v30 = vmul.f32 %v6566_v24, %v8633_v36 }
 0x35c   : > { %v6570_v27 = vpop.eup %6569  ;;  %6589 = vrcp.f32 %v2297_v10  ;;  %v2298_v43 = vadd.f32 1.0, %v6568_v57  ;;  %2505 = vrot.lane.b32.xlu1 %v6225_v44, %s6724_s29  ;;  %v2726_v57 = vrot.slane %v8371_v21, 4 }
 0x35d   : > { %v6572_v38 = vpop.eup %6571  ;;  %v2305_v12 = vadd.f32 1.0, %v6570_v27  ;;  %v2725_v27 = vrot.slane %v8374_v28, 4 }
 0x35e   : > { %v6574_v47 = vpop.eup %6573  ;;  %v2398_v2 = vmul.f32 %v6572_v38, %v8639_v6  ;;  %6591 = vrcp.f32 %v2298_v43  ;;  %v2847_v38 = vrot.slane %v8389_v42, 4 }
 0x35f   : > { %v6576_v48 = vpop.eup %6575  ;;  %v2392_v32 = vmul.f32 %v6574_v47, %v8642_v15  ;;  %6593 = vrcp.f32 %v2305_v12  ;;  %v2846_v12 = vrot.slane %v8398_v55, 4 }
 0x360   : > { %v6578_v20 = vpop.eup %6577  ;;  %v2306_v23 = vadd.f32 1.0, %v6576_v48  ;;  %v6232_v1 = vpack.c.bf16 %v2398_v2, %v2397_v14 }
 0x361   : > { %v6580_v63 = vpop.eup %6579  ;;  %v6229_v33 = vpack.c.bf16 %v2392_v32, %v2391_v30  ;;  %v2399_v6 = vmul.f32 %v6578_v20, %v8652_v18  ;;  %v2731_v20 = vsel %vm486_vm5, %v2725_v27, %v2726_v57 }
 0x362   : > { %v6582_v39 = vpop.eup %6581  ;;  %6595 = vrcp.f32 %v2306_v23  ;;  %2519 = vrot.lane.b32.xlu0 %v6232_v1, %s6724_s29  ;;  %v2377_v36 = vmul.f32 %v6580_v63, %v8656_v45  ;;  %v11977_v23 = vrot.slane %v8387_v59, 4  ;;  %v11976_v1 = vrot.slane %v8404_v34, 4 }
 0x363   : > { %v6584_v62 = vpop.eup %6583  ;;  %v2400_v60 = vmul.f32 %v6582_v39, %v8665_v35  ;;  %2513 = vrot.lane.b32.xlu1 %v6229_v33, %s6724_s29  ;;  %v2852_v33 = vsel %vm486_vm5, %v2846_v12, %v2847_v38 }
 0x364   : > { %v2378_v15 = vmul.f32 %v6584_v62, %v8672_v11 }
 0x365   : > { %v6586_v25 = vpop.eup %6585  ;;  %v6233_v3 = vpack.c.bf16 %v2400_v60, %v2399_v6  ;;  %v12353_v6 = vld [vmem:[#allocation21_spill] sm:$0xff] }
 0x366   : > { %v6222_v31 = vpack.c.bf16 %v2378_v15, %v2377_v36  ;;  %v2385_v50 = vmul.f32 %v6586_v25, %v8678_v9  ;;  %v11985_v60 = vrot.slane %v12353_v6, 4  ;;  %v8833_v15 = vsel %vm12354_vm1, %v2725_v27, %v8374_v28  ;;  %vm12360_vm1 = vmmov %vm12358_vm12 }
 0x367   : > { %v6588_v58 = vpop.eup %6587  ;;  %2521 = vrot.lane.b32.xlu1 %v6233_v3, %s6724_s29  ;;  %12355 = vst [vmem:[#allocation23_spill] sm:$0xff] %v8833_v15  ;;  %v8837_v25 = vsel %vm12356_vm4, %v2731_v20, %v8371_v21  ;;  %v12357_v3 = vld [vmem:[#allocation15_spill] sm:$0xff]  ;;  %v8854_v28 = vsel %vm12360_vm1, %v2852_v33, %v8389_v42  ;;  %v8859_v21 = vsel %vm486_vm5, %v2847_v38, %v11976_v1  ;;  %vm12362_vm4 = vcmask 269312   ;;  %v12370_v20 = vld [vmem:[#allocation26_spill] sm:$0xff] }
 0x368   : > { %v2386_v41 = vmul.f32 %v6588_v58, %v8691_v56  ;;  %2499 = vrot.lane.b32.xlu0 %v6222_v31, %s6724_s29  ;;  %v2943_v31 = vrot.slane %v12357_v3, 4 }
 0x369   : > { %v6590_v18 = vpop.eup %6589 }
 0x36a   : > { %v6226_v35 = vpack.c.bf16 %v2386_v41, %v2385_v50  ;;  %v2393_v61 = vmul.f32 %v6590_v18, %v8702_v22  ;;  %v8774_v22 = vpop.permute.xlu0 %3324  ;;  %v8846_v41 = vsel %vm486_vm5, %v2726_v57, %v11977_v23  ;;  %v8850_v18 = vsel %vm12358_vm12, %v2846_v12, %v8398_v55  ;;  %v12372_v23 = vld [vmem:[#allocation33_spill] sm:$0xff] }
 0x36b   : > { %v6592_v7 = vpop.eup %6591  ;;  %12359 = vst [vmem:[#allocation28_spill] sm:$0xff] %v8850_v18  ;;  %vm12374_vm12 = vcmask 531456  }
 0x36c   : > { %v2394_v45 = vmul.f32 %v6592_v7, %v8705_v54  ;;  %2507 = vrot.lane.b32.xlu0 %v6226_v35, %s6724_s29  ;;  %v6594_v11 = vpop.eup %6593  ;;  %v8776_v54 = vpop.permute.xlu1 %3326  ;;  %v12361_v35 = vld [vmem:[#allocation34_spill] sm:$0xff] }
 0x36d   : > { %v2401_v52 = vmul.f32 %v6594_v11, %v8713_v53  ;;  %v11986_v7 = vrot.slane %v12361_v35, 4 }
 0x36e   : > { %v6230_v13 = vpack.c.bf16 %v2394_v45, %v2393_v61  ;;  %v8778_v40 = vpop.permute.xlu0 %3328  ;;  %v8864_v61 = vsel %vm12362_vm4, %v2943_v31, %v12357_v3  ;;  %v12364_v45 = vld [vmem:[#allocation20_spill] sm:$0xff] }
 0x36f   : > { %v6596_v0 = vpop.eup %6595  ;;  %12348 = vst [vmem:[#allocation18_spill] sm:$0xff] %v8778_v40  ;;  %12363 = vst [vmem:[#allocation29_spill] sm:$0xff] %v8864_v61  ;;  %v3040_v11 = vrot.slane %v12364_v45, 4  ;;  %v2949_v1 = vsel %vm486_vm5, %v2943_v31, %v11986_v7 }
 0x370   : > { %v2402_v9 = vmul.f32 %v6596_v0, %v8723_v19  ;;  %2515 = vrot.lane.b32.xlu0 %v6230_v13, %s6724_s29  ;;  %v8780_v49 = vpop.permute.xlu1 %3419  ;;  %v8877_v0 = vsel %vm1173_vm6, %v11985_v60, %v12353_v6 }
 0x371   : > { %12365 = vst [vmem:[#allocation21_spill] sm:$0xff] %v8877_v0  ;;  %v8904_v3 = vsel %vm804_vm11, %v3040_v11, %v12364_v45 }
 0x372   : > { %v6234_v56 = vpack.c.bf16 %v2402_v9, %v2401_v52  ;;  %v8782_v53 = vpop.permute.xlu0 %3421  ;;  %12371 = vst [vmem:[#allocation15_spill] sm:$0xff] %v8904_v3 }
 0x374   : > { %2523 = vrot.lane.b32.xlu0 %v6234_v56, %s6724_s29  ;;  %v8784_v19 = vpop.permute.xlu1 %3423 }
 0x376   : > { %v8786_v46 = vpop.permute.xlu0 %3425 }
 0x377   : > { %12349 = vst [vmem:[#allocation19_spill] sm:$0xff] %v8786_v46 }
 0x378   : > { %v8788_v5 = vpop.permute.xlu1 %3520 }
 0x37a   : > { %v8790_v29 = vpop.permute.xlu0 %3522 }
 0x37b   : > { %12350 = vst [vmem:[#allocation22_spill] sm:$0xff] %v8790_v29 }
 0x3ba   : > { %v2494_v26 = vpop.permute.xlu1 %2493 }
 0x3bb   : > { %v2525_v17 = vrot.slane %v2494_v26, 4 }
 0x3bc   : > { %v2496_v8 = vpop.permute.xlu0 %2495 }
 0x3bd   : > { %v2542_v37 = vsel %vm484_vm3, %v2525_v17, %v2494_v26  ;;  %v2526_v10 = vrot.slane %v2496_v8, 4 }
 0x3be   : > { %2593 = vst.msk [vmem:[#allocation3] sm:$0xff] %vm8793_vm10, %v2542_v37  ;;  %v2502_v24 = vpop.permute.xlu1 %2501 }
 0x3bf   : > { %v2529_v44 = vrot.slane %v2502_v24, 4  ;;  %v2544_v43 = vsel %vm486_vm5, %v2525_v17, %v2526_v10  ;;  %v12366_v17 = vld [vmem:[#allocation25_spill] sm:$0xff] }
 0x3c0   : > { %v8807_v14 = vsel %vm484_vm3, %v2544_v43, %v2496_v8  ;;  %v8809_v2 = vpop.permute.xlu0 %2503  ;;  %v11978_v37 = vrot.slane %v12366_v17, 4  ;;  %v12367_v8 = vld [vmem:[#allocation31_spill] sm:$0xff] }
 0x3c1   : > { %v2550_v47 = vsel %vm484_vm3, %v2529_v44, %v2502_v24  ;;  %v2530_v30 = vrot.slane %v8809_v2, 4  ;;  %v11979_v24 = vrot.slane %v12367_v8, 4 }
 0x3c2   : > { %2598 = vst.msk [vmem:[#allocation3 + $0x24] sm:$0xff] %vm8793_vm10, %v2550_v47  ;;  %v2510_v48 = vpop.permute.xlu1 %2509  ;;  %v12369_v47 = vld [vmem:[#allocation32_spill] sm:$0xff] }
 0x3c3   : > { %v2533_v32 = vrot.slane %v2510_v48, 4  ;;  %v2551_v63 = vsel %vm486_vm5, %v2529_v44, %v2530_v30  ;;  %v12368_v44 = vld [vmem:[#allocation38_spill] sm:$0xff] }
 0x3c4   : > { %v8824_v62 = vsel %vm484_vm3, %v2551_v63, %v8809_v2  ;;  %v11981_v57 = vrot.slane %v12368_v44, 4  ;;  %v11980_v63 = vrot.slane %v12370_v20, 4 }
 0x3c5   : > { %v2557_v39 = vsel %vm484_vm3, %v2533_v32, %v2510_v48  ;;  %v8841_v50 = vld [vmem:[#allocation3] sm:$0xff]  ;;  %v11983_v48 = vrot.slane %v12369_v47, 4 }
 0x3c6   : > { %2603 = vst.msk [vmem:[#allocation3 + $0x48] sm:$0xff] %vm8793_vm10, %v2557_v39  ;;  %v8829_v36 = vpop.permute.xlu1 %2517  ;;  %v2863_v9 = vmul.bf16 %v8850_v18, %v8841_v50  ;;  %v3142_v45 = vsel %vm486_vm5, %v11980_v63, %v11978_v37  ;;  %v3057_v2 = vmul.bf16 %v8904_v3, %v8841_v50  ;;  %v2960_v60 = vmul.bf16 %v8864_v61, %v8841_v50 }
 0x3c7   : > { %v2537_v58 = vrot.slane %v8829_v36, 4 }
 0x3c9   : > { %v2564_v55 = vsel %vm484_vm3, %v2537_v58, %v8829_v36  ;;  %v8871_v42 = vld [vmem:[#allocation3 + $0x24] sm:$0xff] }
 0x3ca   : > { %2608 = vst.msk [vmem:[#allocation3 + $0x6c] sm:$0xff] %vm8793_vm10, %v2564_v55  ;;  %v8881_v52 = vpop.permute.xlu1 %2497  ;;  %v2868_v56 = vmul.bf16 %v8850_v18, %v8871_v42  ;;  %v3545_v12 = vmul.bf16 %v8877_v0, %v8871_v42  ;;  %vm12383_vm10 = vmmov %vm12360_vm1 }
 0x3cb   : > { %v2512_v13 = vpop.permute.xlu0 %2511  ;;  %v11988_v27 = vrot.slane %v8881_v52, 4  ;;  %v12381_v46 = vrot.slane %v8881_v52, 4  ;;  %vm12384_vm1 = vmmov %vm12362_vm4 }
 0x3cc   : > { %v2534_v26 = vrot.slane %v2512_v13, 4  ;;  %v6057_v43 = vcombine.high %v2863_v9, %v2868_v56  ;;  %v6056_v16 = vcombine.low %v2863_v9, %v2868_v56  ;;  %v11984_v9 = vrot.slane %v8772_v51, 4  ;;  %vm12392_vm4 = vmmov %vm12374_vm12 }
 0x3cd   : > { %v2546_v33 = vsel %vm486_vm5, %v2526_v10, %v11988_v27  ;;  %v3540_v10 = vmul.bf16 %v8877_v0, %v8841_v50 }
 0x3ce   : > { %v2558_v38 = vsel %vm486_vm5, %v2533_v32, %v2534_v26  ;;  %v8908_v32 = vsel %vm484_vm3, %v2546_v33, %v8881_v52  ;;  %3710 = vrot.lane.b32.xlu0 %v6057_v43, %s6735_s19  ;;  %3708 = vrot.lane.b32.xlu1 %v6056_v16, %s6735_s19  ;;  %v8912_v55 = vpop.permute.xlu1 %2505  ;;  %v11987_v43 = vrot.slane %v8780_v49, 4  ;;  %v3062_v33 = vmul.bf16 %v8904_v3, %v8871_v42 }
 0x3cf   : > { %v8900_v39 = vsel %vm484_vm3, %v2558_v38, %v2512_v13  ;;  %v3239_v13 = vsel %vm486_vm5, %v11981_v57, %v11979_v24  ;;  %v11982_v56 = vrot.slane %v8912_v55, 4  ;;  %v6182_v16 = vcombine.low %v3540_v10, %v3545_v12 }
 0x3d0   : > { %v6183_v38 = vcombine.high %v3540_v10, %v3545_v12  ;;  %v8938_v24 = vsel %vm486_vm5, %v3040_v11, %v11983_v48  ;;  %v12373_v10 = vld [vmem:[#allocation24_spill] sm:$0xff]  ;;  %v8948_v57 = vsel %vm484_vm3, %v3142_v45, %v12366_v17  ;;  %v8966_v45 = vsel %vm1025_vm8, %v11984_v9, %v8772_v51 }
 0x3d1   : > { %v2553_v12 = vsel %vm486_vm5, %v2530_v30, %v11982_v56  ;;  %v8960_v30 = vsel %vm12374_vm12, %v3239_v13, %v12367_v8  ;;  %v6092_v48 = vcombine.low %v3057_v2, %v3062_v33  ;;  %v6093_v63 = vcombine.high %v3057_v2, %v3062_v33  ;;  %vm12428_vm12 = vmmov %vm12392_vm4 }
 0x3d2   : > { %v8952_v31 = vsel %vm484_vm3, %v2553_v12, %v8912_v55  ;;  %4593 = vrot.lane.b32.xlu0 %v6182_v16, %s6733_s13  ;;  %4595 = vrot.lane.b32.xlu1 %v6183_v38, %s6733_s13  ;;  %v2965_v16 = vmul.bf16 %v8864_v61, %v8871_v42  ;;  %v8976_v38 = vsel %vm1099_vm9, %v11987_v43, %v8780_v49  ;;  %v12376_v43 = vld [vmem:[#allocation30_spill] sm:$0xff] }
 0x3d3   : > { %12375 = vst [vmem:[#allocation34_spill] sm:$0xff] %v8976_v38  ;;  %v3449_v7 = vmul.bf16 %v8976_v38, %v8871_v42  ;;  %v8988_v37 = vmul.bf16 %v8960_v30, %v8807_v14  ;;  %v3444_v61 = vmul.bf16 %v8976_v38, %v8841_v50  ;;  %v9079_v52 = vsel %vm804_vm11, %v8938_v24, %v12369_v47 }
 0x3d4   : > { %v2520_v11 = vpop.permute.xlu0 %2519  ;;  %v12390_v24 = vrot.slane %v12369_v47, 4 }
 0x3d5   : > { %v2538_v12 = vrot.slane %v2520_v11, 4  ;;  %v8968_v56 = vpop.permute.xlu1 %2513  ;;  %v6164_v29 = vcombine.low %v3444_v61, %v3449_v7 }
 0x3d6   : > { %v12377_v33 = vrot.slane %v8968_v56, 4  ;;  %3962 = vrot.lane.b32.xlu0 %v6092_v48, %s6723_s28  ;;  %3964 = vrot.lane.b32.xlu1 %v6093_v63, %s6723_s28  ;;  %v9014_v63 = vmul.bf16 %v8960_v30, %v8824_v62  ;;  %v9028_v48 = vmul.bf16 %v8837_v25, %v8807_v14 }
 0x3d7   : > { %v2565_v9 = vsel %vm486_vm5, %v2537_v58, %v2538_v12  ;;  %v9001_v58 = vmul.bf16 %v8948_v57, %v8807_v14 }
 0x3d8   : > { %v8992_v13 = vsel %vm484_vm3, %v2565_v9, %v2520_v11  ;;  %v2560_v36 = vsel %vm486_vm5, %v2534_v26, %v12377_v33  ;;  %v6074_v9 = vcombine.low %v2960_v60, %v2965_v16  ;;  %v6075_v11 = vcombine.high %v2960_v60, %v2965_v16 }
 0x3d9   : > { %v9005_v2 = vsel %vm484_vm3, %v2560_v36, %v8968_v56  ;;  %v9007_v27 = vpop.permute.xlu1 %2521  ;;  %v9018_v33 = vmul.bf16 %v8948_v57, %v8824_v62  ;;  %v9022_v36 = vmul.bf16 %v8837_v25, %v8824_v62  ;;  %v6165_v60 = vcombine.high %v3444_v61, %v3449_v7 }
 0x3da   : > { %12378 = vst [vmem:[#allocation20_spill] sm:$0xff] %v9005_v2  ;;  %v2500_v26 = vpop.permute.xlu0 %2499  ;;  %v3352_v16 = vmul.bf16 %v8966_v45, %v8871_v42  ;;  %v12379_v3 = vrot.slane %v9007_v27, 4  ;;  %3835 = vrot.lane.b32.xlu0 %v6074_v9, %s12380_s26  ;;  %3837 = vrot.lane.b32.xlu1 %v6075_v11, %s12380_s26 }
 0x3db   : > { %v2528_v2 = vrot.slane %v2500_v26, 4 }
 0x3dc   : > { %v2567_v0 = vsel %vm486_vm5, %v2538_v12, %v12379_v3  ;;  %v12395_v3 = vrot.slane %v8912_v55, 4 }
 0x3dd   : > { %v2548_v40 = vsel %vm486_vm5, %v12381_v46, %v2528_v2  ;;  %2597 = vst.msk [vmem:[#allocation3 + $0x20] sm:$0xf] %vm2403_vm0, %v2528_v2  ;;  %v9046_v38 = vsel %vm484_vm3, %v2567_v0, %v9007_v27  ;;  %v9062_v0 = vsel %vm12383_vm10, %v8859_v21, %v8404_v34  ;;  %v9066_v2 = vsel %vm12384_vm1, %v2949_v1, %v12361_v35 }
 0x3de   : > { %v9053_v9 = vsel %vm484_vm3, %v2548_v40, %v2500_v26  ;;  %v2508_v11 = vpop.permute.xlu0 %2507  ;;  %v12385_v40 = vrot.slane %v12372_v23, 4  ;;  %v12386_v26 = vrot.slane %v12361_v35, 4  ;;  %v12387_v21 = vrot.slane %v12376_v43, 4  ;;  %4469 = vrot.lane.b32.xlu0 %v6165_v60, %s6727_s14  ;;  %4467 = vrot.lane.b32.xlu1 %v6164_v29, %s6727_s14 }
 0x3df   : > { %12382 = vst [vmem:[#allocation25_spill] sm:$0xff] %v9053_v9  ;;  %2596 = vst [vmem:[#allocation3 + $0x18] sm:$0xff] %v9053_v9  ;;  %v2532_v61 = vrot.slane %v2508_v11, 4  ;;  %v12388_v1 = vrot.slane %v12353_v6, 4  ;;  %v3347_v35 = vmul.bf16 %v8966_v45, %v8841_v50  ;;  %v12391_v6 = vrot.slane %v12368_v44, 4 }
 0x3e0   : > { %v9073_v7 = vsel %vm486_vm5, %v12386_v26, %v12385_v40  ;;  %v12389_v40 = vrot.slane %v12373_v10, 4  ;;  %v12393_v60 = vrot.slane %v8774_v22, 4  ;;  %v12394_v29 = vrot.slane %v8772_v51, 4 }
 0x3e1   : > { %v3529_v46 = vsel %vm486_vm5, %v12388_v1, %v12387_v21  ;;  %v9102_v21 = vsel %vm12392_vm4, %v12391_v6, %v12368_v44  ;;  %v2555_v18 = vsel %vm486_vm5, %v12395_v3, %v2532_v61  ;;  %2602 = vst.msk [vmem:[#allocation3 + $0x44] sm:$0xf] %vm2403_vm0, %v2532_v61  ;;  %v6146_v12 = vcombine.low %v3347_v35, %v3352_v16  ;;  %v12398_v3 = vld [vmem:[#allocation17_spill] sm:$0xff] }
 0x3e2   : > { %v9096_v26 = vsel %vm486_vm5, %v12390_v24, %v12389_v40  ;;  %v3336_v1 = vsel %vm486_vm5, %v12394_v29, %v12393_v60  ;;  %v9114_v47 = vsel %vm484_vm3, %v2555_v18, %v2508_v11  ;;  %v2516_v40 = vpop.permute.xlu0 %2515  ;;  %v6147_v24 = vcombine.high %v3347_v35, %v3352_v16  ;;  %v12399_v11 = vld [vmem:[#allocation39_spill] sm:$0xff] }
 0x3e3   : > { %12396 = vst [vmem:[#allocation31_spill] sm:$0xff] %v9114_v47  ;;  %v3255_v44 = vmul.bf16 %v9102_v21, %v8871_v42  ;;  %v12397_v51 = vrot.slane %v12370_v20, 4  ;;  %v9126_v55 = vsel %vm1173_vm6, %v3529_v46, %v12376_v43  ;;  %2601 = vst [vmem:[#allocation3 + $0x3c] sm:$0xff] %v9114_v47  ;;  %v2536_v18 = vrot.slane %v2516_v40, 4  ;;  %4341 = vrot.lane.b32.xlu1 %v6146_v12, %s6724_s29 }
 0x3e4   : > { %v12400_v35 = vrot.slane %v8782_v53, 4  ;;  %v12401_v60 = vrot.slane %v8780_v49, 4  ;;  %4343 = vrot.lane.b32.xlu0 %v6147_v24, %s6724_s29  ;;  %v9142_v46 = vmul.bf16 %v8854_v28, %v8824_v62  ;;  %v12402_v16 = vrot.slane %v8968_v56, 4 }
 0x3e5   : > { %v9122_v6 = vsel %vm484_vm3, %v12397_v51, %v12370_v20  ;;  %v3250_v20 = vmul.bf16 %v9102_v21, %v8841_v50  ;;  %v9146_v51 = vsel %vm1025_vm8, %v3336_v1, %v8774_v22  ;;  %2607 = vst.msk [vmem:[#allocation3 + $0x68] sm:$0xf] %vm2403_vm0, %v2536_v18  ;;  %v2747_v24 = vmul.bf16 %v8833_v15, %v8871_v42 }
 0x3e6   : > { %v3433_v29 = vsel %vm486_vm5, %v12401_v60, %v12400_v35  ;;  %v2562_v49 = vsel %vm486_vm5, %v12402_v16, %v2536_v18  ;;  %v3158_v12 = vmul.bf16 %v9122_v6, %v8871_v42  ;;  %v2524_v60 = vpop.permute.xlu0 %2523  ;;  %v2864_v1 = vmul.bf16 %v8854_v28, %v8807_v14 }
 0x3e7   : > { %v9157_v35 = vsel %vm484_vm3, %v2562_v49, %v2516_v40  ;;  %v6129_v61 = vcombine.high %v3250_v20, %v3255_v44  ;;  %v6128_v9 = vcombine.low %v3250_v20, %v3255_v44  ;;  %v9163_v56 = vsel %vm1099_vm9, %v3433_v29, %v8782_v53 }
 0x3e8   : > { %v2540_v18 = vrot.slane %v2524_v60, 4  ;;  %v3153_v16 = vmul.bf16 %v9122_v6, %v8841_v50  ;;  %v2742_v42 = vmul.bf16 %v8833_v15, %v8841_v50  ;;  %v6058_v44 = vcombine.low %v2864_v1, %v9142_v46 }
 0x3e9   : > { %4216 = vrot.lane.b32.xlu0 %v6129_v61, %s12403_s12  ;;  %4214 = vrot.lane.b32.xlu1 %v6128_v9, %s12403_s12  ;;  %v6059_v20 = vcombine.high %v2864_v1, %v9142_v46  ;;  %v9176_v29 = vmul.bf16 %v9126_v55, %v8824_v62  ;;  %v12404_v49 = vrot.slane %v9007_v27, 4  ;;  %v9184_v61 = vmul.bf16 %v8854_v28, %v8900_v39 }
 0x3ea   : > { %2612 = vst.msk [vmem:[#allocation3 + $0x8c] sm:$0xf] %vm2403_vm0, %v2540_v18  ;;  %v6111_v50 = vcombine.high %v3153_v16, %v3158_v12  ;;  %v6039_v40 = vcombine.high %v2742_v42, %v2747_v24  ;;  %v6110_v46 = vcombine.low %v3153_v16, %v3158_v12  ;;  %v6038_v1 = vcombine.low %v2742_v42, %v2747_v24  ;;  %vm12423_vm0 = vmmov %vm12384_vm1 }
 0x3eb   : > { %v2569_v47 = vsel %vm486_vm5, %v12404_v49, %v2540_v18  ;;  %12405 = vst [vmem:[#allocation38_spill] sm:$0xff] %v9184_v61  ;;  %v9191_v15 = vmul.bf16 %v8854_v28, %v8992_v13  ;;  %v9195_v27 = vmul.bf16 %v9126_v55, %v8900_v39  ;;  %v9199_v18 = vmul.bf16 %v9126_v55, %v8992_v13 }
 0x3ec   : > { %v9187_v9 = vsel %vm484_vm3, %v2569_v47, %v2524_v60  ;;  %v9203_v49 = vmul.bf16 %v9079_v52, %v8900_v39  ;;  %v9207_v47 = vmul.bf16 %v9079_v52, %v8992_v13  ;;  %v9218_v60 = vmul.bf16 %v9066_v2, %v8900_v39 }
 0x3ed   : > { %12406 = vst [vmem:[#allocation32_spill] sm:$0xff] %v9191_v15  ;;  %12407 = vst [vmem:[#allocation26_spill] sm:$0xff] %v9195_v27  ;;  %4090 = vrot.lane.b32.xlu1 %v6111_v50, %s6722_s27  ;;  %4674 = vrot.lane.b32.xlu0 %v6039_v40, %s6725_s11  ;;  %v9230_v28 = vmul.bf16 %v9066_v2, %v8992_v13  ;;  %v9234_v24 = vmul.bf16 %v9163_v56, %v8900_v39  ;;  %v12418_v15 = vrot.slane %v12366_v17, 4  ;;  %vm12446_vm10 = vcmask 252928  }
 0x3ee   : > { %12408 = vst [vmem:[#allocation33_spill] sm:$0xff] %v9199_v18  ;;  %12409 = vst [vmem:[#allocation24_spill] sm:$0xff] %v9203_v49  ;;  %v9238_v16 = vmul.bf16 %v9163_v56, %v8992_v13  ;;  %v9242_v42 = vmul.bf16 %v9146_v51, %v8900_v39  ;;  %v9246_v50 = vmul.bf16 %v9146_v51, %v8992_v13  ;;  %v12419_v18 = vrot.slane %v12399_v11, 4 }
 0x3ef   : > { %12410 = vst [vmem:[#allocation30_spill] sm:$0xff] %v9207_v47  ;;  %v9250_v40 = vmul.bf16 %v8960_v30, %v8900_v39  ;;  %v9254_v12 = vmul.bf16 %v8960_v30, %v8992_v13  ;;  %v9258_v47 = vmul.bf16 %v8948_v57, %v8900_v39  ;;  %v9281_v27 = vmul.bf16 %v8948_v57, %v8992_v13  ;;  %vm12465_vm1 = vmmov %vm12446_vm10 }
 0x3f0   : > { %v9285_v30 = vmul.bf16 %v8837_v25, %v8900_v39  ;;  %v9289_v61 = vmul.bf16 %v8837_v25, %v8992_v13  ;;  %v12420_v49 = vrot.slane %v12367_v8, 4  ;;  %v12422_v39 = vrot.slane %v12376_v43, 4 }
 0x3f1   : > { %12411 = vst [vmem:[#allocation17_spill] sm:$0xff] %v9250_v40  ;;  %12412 = vst [vmem:[#allocation39_spill] sm:$0xff] %v9254_v12  ;;  %4088 = vrot.lane.b32.xlu1 %v6110_v46, %s6722_s27  ;;  %4672 = vrot.lane.b32.xlu0 %v6038_v1, %s6725_s11  ;;  %v12417_v46 = vrot.slane %v12398_v3, 4  ;;  %v12421_v12 = vrot.slane %v8788_v5, 4  ;;  %v3541_v25 = vmul.bf16 %v9126_v55, %v8807_v14  ;;  %v12424_v13 = vrot.slane %v8776_v54, 4 }
 0x3f2   : > { %12413 = vst [vmem:[#allocation40_spill] sm:$0xff] %v9258_v47  ;;  %12414 = vst [vmem:[#allocation41_spill] sm:$0xff] %v9281_v27  ;;  %v3241_v57 = vsel %vm486_vm5, %v12420_v49, %v12419_v18  ;;  %v9319_v43 = vsel %vm12423_vm0, %v9073_v7, %v12372_v23  ;;  %v12425_v55 = vrot.slane %v8774_v22, 4  ;;  %v12427_v18 = vrot.slane %v8782_v53, 4 }
 0x3f3   : > { %12415 = vst [vmem:[#allocation42_spill] sm:$0xff] %v9285_v30  ;;  %12416 = vst [vmem:[#allocation43_spill] sm:$0xff] %v9289_v61  ;;  %v3144_v1 = vsel %vm486_vm5, %v12418_v15, %v12417_v46  ;;  %v3531_v40 = vsel %vm486_vm5, %v12422_v39, %v12421_v12  ;;  %v6185_v46 = vcombine.high %v3541_v25, %v9176_v29  ;;  %v12451_v61 = vld [vmem:[#allocation16_spill] sm:$0xff]  ;;  %v12458_v47 = vrot.slane %v8404_v34, 4  ;;  %v9562_v34 = vld [vmem:[#allocation3 + $0x48] sm:$0xff] }
 0x3f4   : > { %v6184_v7 = vcombine.low %v3541_v25, %v9176_v29  ;;  %v3063_v39 = vmul.bf16 %v9079_v52, %v8824_v62  ;;  %v2966_v22 = vmul.bf16 %v9066_v2, %v8824_v62  ;;  %v9346_v53 = vsel %vm484_vm3, %v3144_v1, %v12398_v3 }
 0x3f5   : > { %3712 = vrot.lane.b32.xlu1 %v6058_v44, %s6735_s19  ;;  %3714 = vrot.lane.b32.xlu0 %v6059_v20, %s6735_s19  ;;  %v3338_v44 = vsel %vm486_vm5, %v12425_v55, %v12424_v13  ;;  %v12426_v20 = vrot.slane %v8784_v19, 4  ;;  %v9342_v13 = vsel %vm804_vm11, %v9096_v26, %v12373_v10  ;;  %v9350_v55 = vsel %vm12428_vm12, %v3241_v57, %v12399_v11 }
 0x3f6   : > { %v9354_v29 = vsel %vm1173_vm6, %v3531_v40, %v8788_v5  ;;  %v3058_v26 = vmul.bf16 %v9079_v52, %v8807_v14  ;;  %v2961_v25 = vmul.bf16 %v9066_v2, %v8807_v14  ;;  %v3450_v1 = vmul.bf16 %v9163_v56, %v8824_v62 }
 0x3f7   : > { %v3435_v49 = vsel %vm486_vm5, %v12427_v18, %v12426_v20  ;;  %v9366_v57 = vsel %vm1025_vm8, %v3338_v44, %v8776_v54  ;;  %v9374_v20 = vmul.bf16 %v9062_v0, %v8908_v32  ;;  %v9378_v52 = vmul.bf16 %v9062_v0, %v8952_v31 }
 0x3f8   : > { %v9370_v40 = vsel %vm1099_vm9, %v3435_v49, %v8784_v19  ;;  %v6095_v2 = vcombine.high %v3058_v26, %v3063_v39  ;;  %v6094_v18 = vcombine.low %v3058_v26, %v3063_v39  ;;  %v6076_v44 = vcombine.low %v2961_v25, %v2966_v22 }
 0x3f9   : > { %4599 = vrot.lane.b32.xlu1 %v6185_v46, %s6733_s13  ;;  %4597 = vrot.lane.b32.xlu0 %v6184_v7, %s6733_s13  ;;  %12429 = vst [vmem:[#allocation44_spill] sm:$0xff] %v9374_v20  ;;  %12430 = vst [vmem:[#allocation45_spill] sm:$0xff] %v9378_v52  ;;  %v6077_v46 = vcombine.high %v2961_v25, %v2966_v22  ;;  %v3445_v7 = vmul.bf16 %v9163_v56, %v8807_v14  ;;  %v12440_v52 = vld [vmem:[#allocation35_spill] sm:$0xff]  ;;  %v9487_v30 = vrot.slane %v12451_v61, 4  ;;  %vm12467_vm4 = vcmask 261120  }
 0x3fa   : > { %v9386_v49 = vmul.bf16 %v9342_v13, %v8908_v32  ;;  %v9390_v8 = vmul.bf16 %v9342_v13, %v8952_v31  ;;  %v9398_v22 = vmul.bf16 %v9319_v43, %v8908_v32  ;;  %v3353_v25 = vmul.bf16 %v9146_v51, %v8824_v62 }
 0x3fb   : > { %v6166_v39 = vcombine.low %v3445_v7, %v3450_v1  ;;  %v6167_v26 = vcombine.high %v3445_v7, %v3450_v1  ;;  %v9414_v56 = vmul.bf16 %v9370_v40, %v8952_v31  ;;  %v9420_v62 = vmul.bf16 %v9366_v57, %v8908_v32  ;;  %v12452_v7 = vld [vmem:[#allocation27_spill] sm:$0xff] }
 0x3fc   : > { %12431 = vst [vmem:[#allocation46_spill] sm:$0xff] %v9386_v49  ;;  %12432 = vst [vmem:[#allocation47_spill] sm:$0xff] %v9390_v8  ;;  %v9426_v12 = vmul.bf16 %v9366_v57, %v8952_v31  ;;  %v9432_v15 = vmul.bf16 %v9350_v55, %v8908_v32  ;;  %v9435_v1 = vrot.slane %v12440_v52, 4  ;;  %v9443_v8 = vmul.bf16 %v9350_v55, %v8952_v31  ;;  %v12449_v49 = vld [vmem:[#allocation36_spill] sm:$0xff] }
 0x3fd   : > { %3968 = vrot.lane.b32.xlu1 %v6095_v2, %s6723_s28  ;;  %3966 = vrot.lane.b32.xlu0 %v6094_v18, %s6723_s28  ;;  %12433 = vst [vmem:[#allocation48_spill] sm:$0xff] %v9398_v22  ;;  %v9406_v2 = vmul.bf16 %v9319_v43, %v8952_v31  ;;  %v9410_v18 = vmul.bf16 %v9370_v40, %v8908_v32  ;;  %12436 = vst [vmem:[#allocation51_spill] sm:$0xff] %v9414_v56  ;;  %v9484_v20 = vrot.slane %v12449_v49, 4 }
 0x3fe   : > { %12437 = vst [vmem:[#allocation52_spill] sm:$0xff] %v9420_v62  ;;  %12438 = vst [vmem:[#allocation53_spill] sm:$0xff] %v9426_v12  ;;  %v9451_v22 = vmul.bf16 %v9346_v53, %v8908_v32  ;;  %v9463_v17 = vmul.bf16 %v9354_v29, %v8908_v32  ;;  %v9499_v62 = vrot.slane %v8770_v4, 4  ;;  %v12457_v56 = vrot.slane %v8387_v59, 4 }
 0x3ff   : > { %12434 = vst [vmem:[#allocation49_spill] sm:$0xff] %v9406_v2  ;;  %12435 = vst [vmem:[#allocation50_spill] sm:$0xff] %v9410_v18  ;;  %v9467_v2 = vmul.bf16 %v9354_v29, %v8952_v31  ;;  %v9474_v18 = vsel %vm12446_vm10, %v8846_v41, %v8387_v59  ;;  %v3348_v41 = vmul.bf16 %v9146_v51, %v8807_v14  ;;  %v9534_v59 = vld [vmem:[#allocation3 + $0x6c] sm:$0xff] }
 0x400   : > { %12439 = vst [vmem:[#allocation54_spill] sm:$0xff] %v9432_v15  ;;  %12441 = vst [vmem:[#allocation35_spill] sm:$0xff] %v9443_v8  ;;  %v9496_v8 = vrot.slane %v12452_v7, 4  ;;  %v9508_v14 = vmul.bf16 %v9474_v18, %v8908_v32  ;;  %v9512_v51 = vmul.bf16 %v9474_v18, %v8952_v31  ;;  %v2735_v27 = vsel %vm486_vm5, %v12457_v56, %v9435_v1 }
 0x401   : > { %3841 = vrot.lane.b32.xlu1 %v6077_v46, %s12380_s26  ;;  %3839 = vrot.lane.b32.xlu0 %v6076_v44, %s12380_s26  ;;  %12442 = vst [vmem:[#allocation55_spill] sm:$0xff] %v9451_v22  ;;  %v9455_v46 = vmul.bf16 %v9346_v53, %v8952_v31  ;;  %12444 = vst [vmem:[#allocation57_spill] sm:$0xff] %v9463_v17  ;;  %v12447_v44 = vld [vmem:[#allocation37_spill] sm:$0xff]  ;;  %v6148_v15 = vcombine.low %v3348_v41, %v3353_v25  ;;  %v12462_v31 = vrot.slane %v12372_v23, 4 }
 0x402   : > { %12445 = vst [vmem:[#allocation58_spill] sm:$0xff] %v9467_v2  ;;  %v9477_v12 = vrot.slane %v12447_v44, 4  ;;  %12450 = vst [vmem:[#allocation36_spill] sm:$0xff] %v9484_v20  ;;  %v12459_v2 = vld [vmem:[#allocation19_spill] sm:$0xff] }
 0x403   : > { %12443 = vst [vmem:[#allocation56_spill] sm:$0xff] %v9455_v46  ;;  %12453 = vst [vmem:[#allocation16_spill] sm:$0xff] %v9496_v8  ;;  %v12454_v46 = vld [vmem:[#allocation18_spill] sm:$0xff]  ;;  %v2953_v17 = vsel %vm486_vm5, %v12462_v31, %v9484_v20  ;;  %v12468_v31 = vrot.slane %v12399_v11, 4  ;;  %v12471_v11 = vrot.slane %v8788_v5, 4  ;;  %v12474_v5 = vcombine.high %v8988_v37, %v9014_v63 }
 0x404   : > { %12448 = vst [vmem:[#allocation37_spill] sm:$0xff] %v9477_v12  ;;  %v9502_v22 = vrot.slane %v12454_v46, 4  ;;  %12455 = vst [vmem:[#allocation27_spill] sm:$0xff] %v9508_v14  ;;  %v9727_v20 = vmul.bf16 %v9366_v57, %v9046_v38 }
 0x405   : > { %4471 = vrot.lane.b32.xlu1 %v6166_v39, %s6727_s14  ;;  %4473 = vrot.lane.b32.xlu0 %v6167_v26, %s6727_s14  ;;  %v6149_v26 = vcombine.high %v3348_v41, %v3353_v25  ;;  %12456 = vst [vmem:[#allocation18_spill] sm:$0xff] %v9512_v51  ;;  %v2856_v39 = vsel %vm486_vm5, %v12458_v47, %v9477_v12  ;;  %v9523_v25 = vrot.slane %v12459_v2, 4  ;;  %v12460_v41 = vld [vmem:[#allocation22_spill] sm:$0xff]  ;;  %v12463_v47 = vrot.slane %v12373_v10, 4  ;;  %vm12775_vm10 = vmmov %vm12467_vm4 }
 0x406   : > { %v9526_v32 = vrot.slane %v12460_v41, 4  ;;  %v12464_v12 = vrot.slane %v12398_v3, 4  ;;  %v3243_v10 = vsel %vm486_vm5, %v12468_v31, %v9499_v62 }
 0x407   : > { %v3050_v56 = vsel %vm486_vm5, %v12463_v47, %v9487_v30  ;;  %v12469_v47 = vrot.slane %v8776_v54, 4  ;;  %v12472_v54 = vld [vmem:[#allocation28_spill] sm:$0xff] }
 0x408   : > { %12461 = vst [vmem:[#allocation19_spill] sm:$0xff] %v9526_v32  ;;  %v3146_v23 = vsel %vm486_vm5, %v12464_v12, %v9496_v8  ;;  %v12470_v12 = vrot.slane %v8784_v19, 4  ;;  %v9582_v31 = vsel %vm804_vm11, %v3050_v56, %v12451_v61  ;;  %v12473_v19 = vcombine.low %v8988_v37, %v9014_v63 }
 0x409   : > { %4345 = vrot.lane.b32.xlu1 %v6148_v15, %s6724_s29  ;;  %4347 = vrot.lane.b32.xlu0 %v6149_v26, %s6724_s29  ;;  %v9548_v15 = vsel %vm12465_vm1, %v2735_v27, %v12440_v52  ;;  %v9552_v26 = vsel %vm12467_vm4, %v2856_v39, %v12447_v44  ;;  %v3340_v3 = vsel %vm486_vm5, %v12469_v47, %v9502_v22  ;;  %vm5781_vm1 = vsmask.f32 5376 }
 0x40a   : > { %12466 = vst [vmem:[#allocation22_spill] sm:$0xff] %v9548_v15  ;;  %v9566_v27 = vsel %vm12423_vm0, %v2953_v17, %v12449_v49  ;;  %v3437_v52 = vsel %vm486_vm5, %v12470_v12, %v9523_v25  ;;  %v3533_v44 = vsel %vm486_vm5, %v12471_v11, %v9526_v32  ;;  %v9578_v39 = vmul.bf16 %v12472_v54, %v9534_v59  ;;  %v12475_v49 = vld [vmem:[#allocation21_spill] sm:$0xff] }
 0x40b   : > { %v9586_v17 = vsel %vm484_vm3, %v3146_v23, %v12452_v7  ;;  %v9598_v47 = vmul.bf16 %v12475_v49, %v9534_v59  ;;  %v9602_v61 = vsel %vm12428_vm12, %v3243_v10, %v8770_v4  ;;  %v9606_v7 = vsel %vm1025_vm8, %v3340_v3, %v12454_v46  ;;  %v12476_v23 = vld [vmem:[#allocation15_spill] sm:$0xff]  ;;  %v12477_v3 = vld [vmem:[#allocation29_spill] sm:$0xff] }
 0x40c   : > { %v2873_v56 = vmul.bf16 %v12472_v54, %v9562_v34  ;;  %v9612_v12 = vmul.bf16 %v12476_v23, %v9534_v59  ;;  %v9616_v37 = vsel %vm1099_vm9, %v3437_v52, %v12459_v2  ;;  %v9620_v63 = vsel %vm1173_vm6, %v3533_v44, %v12460_v41  ;;  %v12478_v2 = vld [vmem:[#allocation20_spill] sm:$0xff] }
 0x40d   : > { %4218 = vrot.lane.b32.xlu1 %v12473_v19, %s12403_s12  ;;  %4220 = vrot.lane.b32.xlu0 %v12474_v5, %s12403_s12  ;;  %v9624_v4 = vmul.bf16 %v12475_v49, %v9562_v34  ;;  %v9628_v46 = vmul.bf16 %v12476_v23, %v9562_v34  ;;  %v9633_v11 = vmul.bf16 %v12477_v3, %v9534_v59  ;;  %v12481_v49 = vld [vmem:[#allocation34_spill] sm:$0xff]  ;;  %vm5784_vm12 = vcmask 1047558  }
 0x40e   : > { %v6065_v10 = vcombine.low %v2873_v56, %v9578_v39  ;;  %v9637_v52 = vmul.bf16 %v9062_v0, %v12478_v2  ;;  %v9641_v41 = vmul.bf16 %v9062_v0, %v9046_v38  ;;  %v12479_v44 = vcombine.high %v9001_v58, %v9018_v33 }
 0x40f   : > { %v12480_v54 = vcombine.low %v9001_v58, %v9018_v33  ;;  %v6191_v19 = vcombine.low %v9624_v4, %v9598_v47  ;;  %v6066_v5 = vcombine.high %v2873_v56, %v9578_v39  ;;  %v9656_v23 = vmul.bf16 %v12481_v49, %v9534_v59 }
 0x410   : > { %v6101_v0 = vcombine.low %v9628_v46, %v9612_v12  ;;  %v9664_v8 = vmul.bf16 %v12477_v3, %v9562_v34  ;;  %v9672_v39 = vmul.bf16 %v12481_v49, %v9562_v34  ;;  %v9676_v56 = vmul.bf16 %v9342_v13, %v12478_v2 }
 0x411   : > { %4094 = vrot.lane.b32.xlu1 %v12479_v44, %s6722_s27  ;;  %4092 = vrot.lane.b32.xlu0 %v12480_v54, %s6722_s27  ;;  %v6192_v44 = vcombine.high %v9624_v4, %v9598_v47  ;;  %v9680_v47 = vmul.bf16 %v9342_v13, %v9046_v38  ;;  %v9686_v3 = vmul.bf16 %v8966_v45, %v9562_v34 }
 0x412   : > { %v6083_v4 = vcombine.low %v9664_v8, %v9633_v11  ;;  %v9690_v54 = vmul.bf16 %v9319_v43, %v12478_v2  ;;  %v9694_v49 = vmul.bf16 %v9319_v43, %v9046_v38  ;;  %v12485_v13 = vcombine.low %v9028_v48, %v9022_v36 }
 0x413   : > { %12482 = vst [vmem:[#allocation28_spill] sm:$0xff] %v9680_v47  ;;  %v9705_v33 = vmul.bf16 %v8966_v45, %v9534_v59  ;;  %v9713_v32 = vmul.bf16 %v9370_v40, %v12478_v2  ;;  %v9723_v45 = vmul.bf16 %v9366_v57, %v12478_v2  ;;  %v9733_v58 = vmul.bf16 %v9350_v55, %v12478_v2 }
 0x414   : > { %12483 = vst [vmem:[#allocation21_spill] sm:$0xff] %v9690_v54  ;;  %12484 = vst [vmem:[#allocation15_spill] sm:$0xff] %v9694_v49  ;;  %v9745_v57 = vmul.bf16 %v9346_v53, %v12478_v2  ;;  %v12487_v43 = vcombine.high %v9028_v48, %v9022_v36  ;;  %v9764_v54 = vmul.bf16 %v9354_v29, %v12478_v2 }
 0x415   : > { %4676 = vrot.lane.b32.xlu1 %v12485_v13, %s6725_s11  ;;  %3726 = vrot.lane.b32.xlu0 %v6065_v10, %s6735_s19  ;;  %v9717_v10 = vmul.bf16 %v9370_v40, %v9046_v38  ;;  %v9739_v13 = vmul.bf16 %v9350_v55, %v9046_v38  ;;  %v9756_v55 = vmul.bf16 %v9346_v53, %v9046_v38 }
 0x416   : > { %12489 = vst [vmem:[#allocation34_spill] sm:$0xff] %v9764_v54  ;;  %v9768_v48 = vmul.bf16 %v9354_v29, %v9046_v38  ;;  %v9788_v36 = vmul.bf16 %v9582_v31, %v9157_v35  ;;  %v9792_v53 = vmul.bf16 %v9582_v31, %v9187_v9  ;;  %v9802_v29 = vmul.bf16 %v9566_v27, %v9157_v35 }
 0x417   : > { %12486 = vst [vmem:[#allocation29_spill] sm:$0xff] %v9739_v13  ;;  %12488 = vst [vmem:[#allocation20_spill] sm:$0xff] %v9756_v55  ;;  %v9806_v40 = vmul.bf16 %v9566_v27, %v9187_v9  ;;  %v9826_v13 = vmul.bf16 %v9474_v18, %v12478_v2  ;;  %v9830_v49 = vmul.bf16 %v9474_v18, %v9046_v38 }
 0x418   : > { %12490 = vst [vmem:[#allocation59_spill] sm:$0xff] %v9768_v48  ;;  %12491 = vst [vmem:[#allocation60_spill] sm:$0xff] %v9788_v36  ;;  %v9838_v47 = vmul.bf16 %v9616_v37, %v9157_v35  ;;  %v9842_v55 = vmul.bf16 %v9616_v37, %v9187_v9  ;;  %v9852_v2 = vmul.bf16 %v9606_v7, %v9157_v35  ;;  %v9902_v36 = vld [vmem:[#allocation3 + $0x44] sm:$0xf] }
 0x419   : > { %4678 = vrot.lane.b32.xlu1 %v12487_v43, %s6725_s11  ;;  %4611 = vrot.lane.b32.xlu0 %v6191_v19, %s6733_s13  ;;  %v9776_v19 = vmul.bf16 %v9620_v63, %v9157_v35  ;;  %v9780_v43 = vmul.bf16 %v9620_v63, %v9187_v9  ;;  %12492 = vst [vmem:[#allocation61_spill] sm:$0xff] %v9792_v53  ;;  %12493 = vst [vmem:[#allocation62_spill] sm:$0xff] %v9802_v29 }
 0x41a   : > { %12494 = vst [vmem:[#allocation63_spill] sm:$0xff] %v9806_v40  ;;  %12497 = vst [vmem:[#allocation66_spill] sm:$0xff] %v9838_v47  ;;  %v9858_v48 = vmul.bf16 %v9606_v7, %v9187_v9  ;;  %v9868_v18 = vmul.bf16 %v9602_v61, %v9187_v9  ;;  %v9874_v54 = vmul.bf16 %v9586_v17, %v9157_v35 }
 0x41b   : > { %12498 = vst [vmem:[#allocation67_spill] sm:$0xff] %v9842_v55  ;;  %v9878_v40 = vmul.bf16 %v9586_v17, %v9187_v9  ;;  %v12501_v47 = vcombine.high %v9628_v46, %v9612_v12  ;;  %v12502_v53 = vcombine.high %v9672_v39, %v9656_v23  ;;  %v6084_v12 = vcombine.high %v9664_v8, %v9633_v11 }
 0x41c   : > { %12499 = vst [vmem:[#allocation68_spill] sm:$0xff] %v9874_v54  ;;  %v6156_v55 = vcombine.high %v9686_v3, %v9705_v33  ;;  %v3265_v29 = vmul.bf16 %v9102_v21, %v9534_v59  ;;  %v2751_v38 = vmul.bf16 %v9435_v1, %v9902_v36  ;;  %v6173_v46 = vcombine.low %v9672_v39, %v9656_v23 }
 0x41d   : > { %3728 = vrot.lane.b32.xlu1 %v6066_v5, %s6735_s19  ;;  %3980 = vrot.lane.b32.xlu0 %v6101_v0, %s6723_s28  ;;  %v9814_v5 = vmul.bf16 %v9552_v26, %v9157_v35  ;;  %v9818_v0 = vmul.bf16 %v9552_v26, %v9187_v9  ;;  %12500 = vst [vmem:[#allocation69_spill] sm:$0xff] %v9878_v40 }
 0x41f   : > { %12495 = vst [vmem:[#allocation64_spill] sm:$0xff] %v9814_v5  ;;  %12496 = vst [vmem:[#allocation65_spill] sm:$0xff] %v9818_v0  ;;  %v9882_v0 = vld [vmem:[#allocation3 + $0x8c] sm:$0xf]  ;;  %v9900_v5 = vld [vmem:[#allocation3 + $0x20] sm:$0xf] }
 0x420   : > { %v2761_v11 = vmul.bf16 %v9435_v1, %v9882_v0 }
 0x421   : > { %4613 = vrot.lane.b32.xlu1 %v6192_v44, %s6733_s13  ;;  %3853 = vrot.lane.b32.xlu0 %v6083_v4, %s12380_s26  ;;  %v9864_v4 = vmul.bf16 %v9602_v61, %v9157_v35  ;;  %v9880_v44 = vld [vmem:[#allocation3 + $0x68] sm:$0xf] }
 0x422   : > { %v2756_v8 = vmul.bf16 %v9435_v1, %v9880_v44 }
 0x424   : > { %v9942_v40 = vcombine.low %v2756_v8, %v2761_v11 }
 0x425   : > { %3982 = vrot.lane.b32.xlu1 %v12501_v47, %s6723_s28  ;;  %4487 = vrot.lane.b32.xlu0 %v12502_v53, %s6727_s14  ;;  %v9916_v47 = vmul.bf16 %v9548_v15, %v9157_v35  ;;  %v9920_v53 = vmul.bf16 %v9548_v15, %v9187_v9  ;;  %v2746_v9 = vmul.bf16 %v9435_v1, %v9900_v5 }
 0x426   : > { %v3260_v15 = vmul.bf16 %v9102_v21, %v9562_v34  ;;  %12505 = vst [vmem:[#allocation72_spill] sm:$0xff] %v9942_v40  ;;  %v3163_v1 = vmul.bf16 %v9122_v6, %v9562_v34  ;;  %v6155_v21 = vcombine.low %v9686_v3, %v9705_v33  ;;  %v12509_v33 = vld [vmem:[#allocation32_spill] sm:$0xff] }
 0x427   : > { %12503 = vst [vmem:[#allocation70_spill] sm:$0xff] %v9916_v47  ;;  %12504 = vst [vmem:[#allocation71_spill] sm:$0xff] %v9920_v53  ;;  %v9944_v54 = vcombine.low %v2746_v9, %v2751_v38  ;;  %v3168_v53 = vmul.bf16 %v9122_v6, %v9534_v59  ;;  %v12507_v38 = vld [vmem:[#allocation23_spill] sm:$0xff]  ;;  %v3066_v47 = vmul.bf16 %v9487_v30, %v9902_v36 }
 0x428   : > { %v6138_v35 = vcombine.high %v3260_v15, %v3265_v29  ;;  %v2752_v23 = vmul.bf16 %v12507_v38, %v9562_v34  ;;  %v6137_v39 = vcombine.low %v3260_v15, %v3265_v29  ;;  %v12512_v15 = vld [vmem:[#allocation26_spill] sm:$0xff]  ;;  %v12513_v29 = vld [vmem:[#allocation33_spill] sm:$0xff] }
 0x429   : > { %3855 = vrot.lane.b32.xlu1 %v6084_v12, %s12380_s26  ;;  %4361 = vrot.lane.b32.xlu0 %v6156_v55, %s6724_s29  ;;  %12506 = vst [vmem:[#allocation73_spill] sm:$0xff] %v9944_v54  ;;  %v6120_v55 = vcombine.high %v3163_v1, %v3168_v53  ;;  %v2757_v12 = vmul.bf16 %v12507_v38, %v9534_v59  ;;  %v12508_v59 = vld [vmem:[#allocation38_spill] sm:$0xff] }
 0x42a   : > { %v6119_v6 = vcombine.low %v3163_v1, %v3168_v53  ;;  %v12510_v3 = vcombine.high %v12508_v59, %v12509_v33  ;;  %v12511_v34 = vcombine.low %v12508_v59, %v12509_v33  ;;  %v12514_v11 = vcombine.high %v12512_v15, %v12513_v29  ;;  %v12516_v1 = vld [vmem:[#allocation24_spill] sm:$0xff] }
 0x42b   : > { %v6047_v8 = vcombine.low %v2752_v23, %v2757_v12  ;;  %v12515_v53 = vcombine.low %v12512_v15, %v12513_v29  ;;  %v12522_v59 = vcombine.low %v9234_v24, %v9238_v16  ;;  %v12523_v33 = vcombine.high %v9234_v24, %v9238_v16  ;;  %v12528_v24 = vld [vmem:[#allocation17_spill] sm:$0xff]  ;;  %v12529_v16 = vld [vmem:[#allocation39_spill] sm:$0xff] }
 0x42d   : > { %4485 = vrot.lane.b32.xlu1 %v6173_v46, %s6727_s14  ;;  %4234 = vrot.lane.b32.xlu0 %v6138_v35, %s12403_s12  ;;  %v6048_v46 = vcombine.high %v2752_v23, %v2757_v12 }
 0x431   : > { %4359 = vrot.lane.b32.xlu1 %v6155_v21, %s6724_s29  ;;  %4108 = vrot.lane.b32.xlu0 %v6120_v55, %s6722_s27  ;;  %v12517_v21 = vld [vmem:[#allocation30_spill] sm:$0xff] }
 0x432   : > { %v12518_v55 = vcombine.high %v12516_v1, %v12517_v21  ;;  %v12519_v38 = vcombine.low %v12516_v1, %v12517_v21 }
 0x435   : > { %4232 = vrot.lane.b32.xlu1 %v6137_v39, %s12403_s12  ;;  %4692 = vrot.lane.b32.xlu0 %v6048_v46, %s6725_s11  ;;  %v12520_v39 = vcombine.high %v9218_v60, %v9230_v28  ;;  %v12521_v46 = vcombine.low %v9218_v60, %v9230_v28  ;;  %v12526_v28 = vcombine.low %v9242_v42, %v9246_v50 }
 0x436   : > { %v12527_v60 = vcombine.high %v9242_v42, %v9246_v50  ;;  %v3453_v42 = vmul.bf16 %v9523_v25, %v9902_v36  ;;  %v12532_v50 = vld [vmem:[#allocation40_spill] sm:$0xff] }
 0x439   : > { %4106 = vrot.lane.b32.xlu1 %v6119_v6, %s6722_s27  ;;  %4690 = vrot.lane.b32.xlu0 %v6047_v8, %s6725_s11 }
 0x43d   : > { %3732 = vrot.lane.b32.xlu1 %v12510_v3, %s6735_s19  ;;  %3730 = vrot.lane.b32.xlu0 %v12511_v34, %s6735_s19 }
 0x440   : > { %v9982_v35 = vpop.permute.xlu0 %3710  ;;  %v9984_v9 = vpop.permute.xlu1 %3708 }
 0x441   : > { %4617 = vrot.lane.b32.xlu1 %v12514_v11, %s6733_s13  ;;  %4615 = vrot.lane.b32.xlu0 %v12515_v53, %s6733_s13  ;;  %v12530_v11 = vcombine.low %v12528_v24, %v12529_v16  ;;  %v12531_v53 = vcombine.high %v12528_v24, %v12529_v16  ;;  %v12538_v24 = vld [vmem:[#allocation42_spill] sm:$0xff]  ;;  %v12539_v16 = vld [vmem:[#allocation43_spill] sm:$0xff] }
 0x444   : > { %v9994_v12 = vpop.permute.xlu0 %4593  ;;  %v9996_v23 = vpop.permute.xlu1 %4595 }
 0x445   : > { %3986 = vrot.lane.b32.xlu1 %v12518_v55, %s6723_s28  ;;  %3984 = vrot.lane.b32.xlu0 %v12519_v38, %s6723_s28  ;;  %v12533_v55 = vld [vmem:[#allocation41_spill] sm:$0xff] }
 0x446   : > { %v12534_v38 = vcombine.low %v12532_v50, %v12533_v55 }
 0x448   : > { %v10006_v6 = vpop.permute.xlu0 %3962  ;;  %v10008_v8 = vpop.permute.xlu1 %3964 }
 0x449   : > { %3859 = vrot.lane.b32.xlu1 %v12520_v39, %s12380_s26  ;;  %3857 = vrot.lane.b32.xlu0 %v12521_v46, %s12380_s26  ;;  %v12535_v39 = vcombine.high %v12532_v50, %v12533_v55  ;;  %v3448_v46 = vmul.bf16 %v9523_v25, %v9900_v5 }
 0x44c   : > { %v10018_v3 = vpop.permute.xlu0 %3835  ;;  %v10020_v34 = vpop.permute.xlu1 %3837 }
 0x44d   : > { %4489 = vrot.lane.b32.xlu1 %v12522_v59, %s6727_s14  ;;  %4491 = vrot.lane.b32.xlu0 %v12523_v33, %s6727_s14  ;;  %12524 = vst [vmem:[#allocation23_spill] sm:$0xff] %v10018_v3  ;;  %12525 = vst [vmem:[#allocation38_spill] sm:$0xff] %v10020_v34 }
 0x450   : > { %v10030_v15 = vpop.permute.xlu0 %4469  ;;  %v10032_v29 = vpop.permute.xlu1 %4467 }
 0x451   : > { %4363 = vrot.lane.b32.xlu1 %v12526_v28, %s6724_s29  ;;  %4365 = vrot.lane.b32.xlu0 %v12527_v60, %s6724_s29  ;;  %v6172_v28 = vcombine.low %v3448_v46, %v3453_v42  ;;  %v3356_v60 = vmul.bf16 %v9502_v22, %v9902_v36  ;;  %v12543_v42 = vld [vmem:[#allocation37_spill] sm:$0xff]  ;;  %v3259_v46 = vmul.bf16 %v9499_v62, %v9902_v36 }
 0x455   : > { %4236 = vrot.lane.b32.xlu1 %v12530_v11, %s12403_s12  ;;  %4238 = vrot.lane.b32.xlu0 %v12531_v53, %s12403_s12  ;;  %v10044_v21 = vpop.permute.xlu1 %4341  ;;  %v12540_v11 = vcombine.low %v12538_v24, %v12539_v16  ;;  %v3351_v53 = vmul.bf16 %v9502_v22, %v9900_v5 }
 0x456   : > { %v10042_v1 = vpop.permute.xlu0 %4343 }
 0x459   : > { %4110 = vrot.lane.b32.xlu1 %v12534_v38, %s6722_s27  ;;  %4112 = vrot.lane.b32.xlu0 %v12535_v39, %s6722_s27  ;;  %v6154_v38 = vcombine.low %v3351_v53, %v3356_v60  ;;  %v2872_v39 = vmul.bf16 %v12543_v42, %v9902_v36 }
 0x45b   : > { %v10058_v59 = vpop.permute.xlu0 %4216  ;;  %v10060_v33 = vpop.permute.xlu1 %4214 }
 0x45c   : > { %12536 = vst [vmem:[#allocation32_spill] sm:$0xff] %v10058_v59  ;;  %12537 = vst [vmem:[#allocation26_spill] sm:$0xff] %v10060_v33  ;;  %v12558_v59 = vld [vmem:[#allocation25_spill] sm:$0xff] }
 0x45d   : > { %4694 = vrot.lane.b32.xlu1 %v12540_v11, %s6725_s11  ;;  %4483 = vrot.lane.b32.xlu0 %v6172_v28, %s6727_s14  ;;  %v12544_v11 = vcombine.high %v12538_v24, %v12539_v16  ;;  %v2867_v28 = vmul.bf16 %v12543_v42, %v9900_v5  ;;  %v12547_v24 = vld [vmem:[#allocation19_spill] sm:$0xff] }
 0x45e   : > { %v3549_v16 = vmul.bf16 %v12547_v24, %v9902_v36 }
 0x45f   : > { %v10071_v50 = vpop.permute.xlu0 %4674  ;;  %v10073_v55 = vpop.permute.xlu1 %4090  ;;  %v6064_v54 = vcombine.low %v2867_v28, %v2872_v39  ;;  %v12550_v28 = vld [vmem:[#allocation36_spill] sm:$0xff] }
 0x460   : > { %12541 = vst [vmem:[#allocation33_spill] sm:$0xff] %v10071_v50  ;;  %12542 = vst [vmem:[#allocation24_spill] sm:$0xff] %v10073_v55  ;;  %v3254_v50 = vmul.bf16 %v9499_v62, %v9900_v5 }
 0x461   : > { %4696 = vrot.lane.b32.xlu1 %v12544_v11, %s6725_s11  ;;  %4357 = vrot.lane.b32.xlu0 %v6154_v38, %s6724_s29  ;;  %v3061_v38 = vmul.bf16 %v9487_v30, %v9900_v5  ;;  %v3544_v11 = vmul.bf16 %v12547_v24, %v9900_v5 }
 0x462   : > { %v6136_v40 = vcombine.low %v3254_v50, %v3259_v46 }
 0x463   : > { %v10088_v60 = vpop.permute.xlu0 %4672  ;;  %v10090_v53 = vpop.permute.xlu1 %4088  ;;  %v6100_v50 = vcombine.low %v3061_v38, %v3066_v47  ;;  %v6190_v46 = vcombine.low %v3544_v11, %v3549_v16  ;;  %v12554_v47 = vld [vmem:[#allocation31_spill] sm:$0xff]  ;;  %v12555_v38 = vld [vmem:[#allocation44_spill] sm:$0xff]  ;;  %v12556_v11 = vld [vmem:[#allocation45_spill] sm:$0xff] }
 0x464   : > { %12545 = vst [vmem:[#allocation30_spill] sm:$0xff] %v10088_v60  ;;  %12546 = vst [vmem:[#allocation17_spill] sm:$0xff] %v10090_v53  ;;  %v2969_v53 = vmul.bf16 %v12550_v28, %v9902_v36  ;;  %v2871_v16 = vmul.bf16 %v9552_v26, %v12554_v47 }
 0x465   : > { %3724 = vrot.lane.b32.xlu1 %v6064_v54, %s6735_s19  ;;  %4230 = vrot.lane.b32.xlu0 %v6136_v40, %s12403_s12  ;;  %v2964_v54 = vmul.bf16 %v12550_v28, %v9900_v5 }
 0x467   : > { %v10102_v60 = vpop.permute.xlu0 %3714  ;;  %v10104_v39 = vpop.permute.xlu1 %3712  ;;  %v6082_v33 = vcombine.low %v2964_v54, %v2969_v53 }
 0x468   : > { %12548 = vst [vmem:[#allocation39_spill] sm:$0xff] %v10102_v60  ;;  %12549 = vst [vmem:[#allocation40_spill] sm:$0xff] %v10104_v39  ;;  %v12553_v60 = vld [vmem:[#allocation16_spill] sm:$0xff] }
 0x469   : > { %3978 = vrot.lane.b32.xlu1 %v6100_v50, %s6723_s28  ;;  %4609 = vrot.lane.b32.xlu0 %v6190_v46, %s6733_s13  ;;  %v3162_v39 = vmul.bf16 %v12553_v60, %v9902_v36  ;;  %v12557_v50 = vcombine.high %v12555_v38, %v12556_v11  ;;  %v3157_v46 = vmul.bf16 %v12553_v60, %v9900_v5  ;;  %v12564_v5 = vld [vmem:[#allocation47_spill] sm:$0xff] }
 0x46b   : > { %v10112_v40 = vpop.permute.xlu0 %4597  ;;  %v10114_v55 = vpop.permute.xlu1 %4599  ;;  %v6118_v36 = vcombine.low %v3157_v46, %v3162_v39 }
 0x46c   : > { %12551 = vst [vmem:[#allocation41_spill] sm:$0xff] %v10112_v40  ;;  %12552 = vst [vmem:[#allocation42_spill] sm:$0xff] %v10114_v55  ;;  %v2866_v55 = vmul.bf16 %v9552_v26, %v12558_v59  ;;  %v12566_v26 = vcombine.low %v12555_v38, %v12556_v11  ;;  %v12574_v38 = vld [vmem:[#allocation51_spill] sm:$0xff] }
 0x46d   : > { %3851 = vrot.lane.b32.xlu1 %v6082_v33, %s12380_s26  ;;  %3718 = vrot.lane.b32.xlu0 %v12557_v50, %s6735_s19  ;;  %v12563_v50 = vld [vmem:[#allocation46_spill] sm:$0xff] }
 0x46e   : > { %v6063_v3 = vcombine.high %v2866_v55, %v2871_v16  ;;  %v12565_v40 = vcombine.high %v12563_v50, %v12564_v5 }
 0x46f   : > { %v10129_v53 = vpop.permute.xlu0 %3966  ;;  %v10131_v54 = vpop.permute.xlu1 %3968 }
 0x470   : > { %12559 = vst [vmem:[#allocation43_spill] sm:$0xff] %v10129_v53  ;;  %12560 = vst [vmem:[#allocation37_spill] sm:$0xff] %v10131_v54  ;;  %v12573_v54 = vld [vmem:[#allocation50_spill] sm:$0xff] }
 0x471   : > { %4104 = vrot.lane.b32.xlu1 %v6118_v36, %s6722_s27  ;;  %3722 = vrot.lane.b32.xlu0 %v6063_v3, %s6735_s19  ;;  %v6062_v36 = vcombine.low %v2866_v55, %v2871_v16  ;;  %v12568_v3 = vld [vmem:[#allocation48_spill] sm:$0xff]  ;;  %v12575_v11 = vcombine.low %v12573_v54, %v12574_v38  ;;  %v12576_v55 = vcombine.low %v12563_v50, %v12564_v5  ;;  %v12585_v50 = vld [vmem:[#allocation54_spill] sm:$0xff]  ;;  %v12586_v5 = vld [vmem:[#allocation35_spill] sm:$0xff] }
 0x473   : > { %v10135_v33 = vpop.permute.xlu0 %3839  ;;  %v10137_v34 = vpop.permute.xlu1 %3841 }
 0x474   : > { %12561 = vst [vmem:[#allocation19_spill] sm:$0xff] %v10135_v33  ;;  %12562 = vst [vmem:[#allocation36_spill] sm:$0xff] %v10137_v34  ;;  %v12569_v33 = vld [vmem:[#allocation49_spill] sm:$0xff] }
 0x475   : > { %3972 = vrot.lane.b32.xlu0 %v12565_v40, %s6723_s28  ;;  %3716 = vrot.lane.b32.xlu1 %v12566_v26, %s6735_s19  ;;  %v12570_v53 = vcombine.high %v12568_v3, %v12569_v33 }
 0x477   : > { %v10147_v39 = vpop.permute.xlu0 %4473  ;;  %v10149_v46 = vpop.permute.xlu1 %4471 }
 0x478   : > { %12567 = vst [vmem:[#allocation16_spill] sm:$0xff] %v10147_v39  ;;  %v12582_v39 = vcombine.low %v12568_v3, %v12569_v33  ;;  %v12591_v33 = vld [vmem:[#allocation55_spill] sm:$0xff] }
 0x479   : > { %3845 = vrot.lane.b32.xlu0 %v12570_v53, %s12380_s26  ;;  %3720 = vrot.lane.b32.xlu1 %v6062_v36, %s6735_s19  ;;  %v12579_v53 = vld [vmem:[#allocation52_spill] sm:$0xff]  ;;  %v12580_v36 = vld [vmem:[#allocation53_spill] sm:$0xff] }
 0x47b   : > { %v10156_v34 = vpop.permute.xlu0 %4347  ;;  %v10158_v40 = vpop.permute.xlu1 %4345 }
 0x47c   : > { %12571 = vst [vmem:[#allocation31_spill] sm:$0xff] %v10156_v34  ;;  %12572 = vst [vmem:[#allocation44_spill] sm:$0xff] %v10158_v40  ;;  %v12581_v34 = vcombine.low %v12579_v53, %v12580_v36 }
 0x47d   : > { %4475 = vrot.lane.b32.xlu0 %v12575_v11, %s6727_s14  ;;  %3970 = vrot.lane.b32.xlu1 %v12576_v55, %s6723_s28  ;;  %v12587_v55 = vcombine.low %v12585_v50, %v12586_v5 }
 0x47f   : > { %v10168_v16 = vpop.permute.xlu0 %4220  ;;  %v10170_v26 = vpop.permute.xlu1 %4218 }
 0x480   : > { %12577 = vst [vmem:[#allocation45_spill] sm:$0xff] %v10168_v16  ;;  %12578 = vst [vmem:[#allocation25_spill] sm:$0xff] %v10170_v26  ;;  %v12588_v26 = vcombine.high %v12573_v54, %v12574_v38  ;;  %v3548_v54 = vmul.bf16 %v9620_v63, %v12554_v47  ;;  %v12597_v38 = vld [vmem:[#allocation57_spill] sm:$0xff] }
 0x481   : > { %4349 = vrot.lane.b32.xlu0 %v12581_v34, %s6724_s29  ;;  %3843 = vrot.lane.b32.xlu1 %v12582_v39, %s12380_s26  ;;  %v12592_v39 = vld [vmem:[#allocation56_spill] sm:$0xff] }
 0x482   : > { %v12593_v3 = vcombine.low %v12591_v33, %v12592_v39 }
 0x483   : > { %v10180_v11 = vpop.permute.xlu0 %4092  ;;  %v10182_v40 = vpop.permute.xlu1 %4094 }
 0x484   : > { %12583 = vst [vmem:[#allocation46_spill] sm:$0xff] %v10180_v11  ;;  %12584 = vst [vmem:[#allocation47_spill] sm:$0xff] %v10182_v40  ;;  %v12594_v11 = vcombine.high %v12579_v53, %v12580_v36  ;;  %v3543_v53 = vmul.bf16 %v9620_v63, %v12558_v59 }
 0x485   : > { %4222 = vrot.lane.b32.xlu0 %v12587_v55, %s12403_s12  ;;  %4477 = vrot.lane.b32.xlu1 %v12588_v26, %s6727_s14  ;;  %v12598_v26 = vld [vmem:[#allocation58_spill] sm:$0xff] }
 0x487   : > { %v10192_v34 = vpop.permute.xlu0 %3726  ;;  %v10194_v16 = vpop.permute.xlu1 %4676 }
 0x488   : > { %12589 = vst [vmem:[#allocation48_spill] sm:$0xff] %v10192_v34  ;;  %12590 = vst [vmem:[#allocation49_spill] sm:$0xff] %v10194_v16  ;;  %v12599_v16 = vcombine.low %v12597_v38, %v12598_v26  ;;  %v3065_v34 = vmul.bf16 %v9582_v31, %v12554_v47 }
 0x489   : > { %4096 = vrot.lane.b32.xlu0 %v12593_v3, %s6722_s27  ;;  %4351 = vrot.lane.b32.xlu1 %v12594_v11, %s6724_s29  ;;  %v12600_v3 = vcombine.high %v12585_v50, %v12586_v5  ;;  %v3060_v50 = vmul.bf16 %v9582_v31, %v12558_v59 }
 0x48b   : > { %v10204_v55 = vpop.permute.xlu0 %4611  ;;  %v10206_v40 = vpop.permute.xlu1 %4678 }
 0x48c   : > { %12595 = vst [vmem:[#allocation50_spill] sm:$0xff] %v10204_v55  ;;  %12596 = vst [vmem:[#allocation51_spill] sm:$0xff] %v10206_v40  ;;  %v6188_v40 = vcombine.low %v3543_v53, %v3548_v54  ;;  %v6099_v55 = vcombine.high %v3060_v50, %v3065_v34 }
 0x48d   : > { %4601 = vrot.lane.b32.xlu0 %v12599_v16, %s6733_s13  ;;  %4224 = vrot.lane.b32.xlu1 %v12600_v3, %s12403_s12  ;;  %v12603_v16 = vcombine.high %v12591_v33, %v12592_v39  ;;  %v6098_v3 = vcombine.low %v3060_v50, %v3065_v34  ;;  %v2963_v33 = vmul.bf16 %v9566_v27, %v12558_v59 }
 0x48e   : > { %v3355_v34 = vmul.bf16 %v9606_v7, %v12554_v47  ;;  %v3350_v50 = vmul.bf16 %v9606_v7, %v12558_v59 }
 0x48f   : > { %v10220_v36 = vpop.permute.xlu0 %3980  ;;  %v10222_v11 = vpop.permute.xlu1 %3728 }
 0x490   : > { %12601 = vst [vmem:[#allocation52_spill] sm:$0xff] %v10220_v36  ;;  %12602 = vst [vmem:[#allocation53_spill] sm:$0xff] %v10222_v11  ;;  %v2968_v11 = vmul.bf16 %v9566_v27, %v12554_v47  ;;  %v12606_v27 = vcombine.low %v9508_v14, %v9512_v51  ;;  %v3258_v51 = vmul.bf16 %v9602_v61, %v12554_v47 }
 0x491   : > { %4605 = vrot.lane.b32.xlu0 %v6188_v40, %s6733_s13  ;;  %4098 = vrot.lane.b32.xlu1 %v12603_v16, %s6722_s27  ;;  %v12605_v40 = vcombine.high %v12597_v38, %v12598_v26  ;;  %v3452_v38 = vmul.bf16 %v9616_v37, %v12554_v47  ;;  %v3161_v14 = vmul.bf16 %v9586_v17, %v12554_v47 }
 0x492   : > { %v6080_v16 = vcombine.low %v2963_v33, %v2968_v11  ;;  %v3458_v47 = vmul.bf16 %v9523_v25, %v9880_v44 }
 0x493   : > { %v10233_v5 = vpop.permute.xlu0 %3853  ;;  %v10235_v63 = vpop.permute.xlu1 %4613 }
 0x494   : > { %12604 = vst [vmem:[#allocation54_spill] sm:$0xff] %v10233_v5  ;;  %v6189_v5 = vcombine.high %v3543_v53, %v3548_v54  ;;  %v3447_v54 = vmul.bf16 %v9616_v37, %v12558_v59  ;;  %v6153_v37 = vcombine.high %v3350_v50, %v3355_v34 }
 0x495   : > { %3974 = vrot.lane.b32.xlu0 %v6098_v3, %s6723_s28  ;;  %4603 = vrot.lane.b32.xlu1 %v12605_v40, %s6733_s13  ;;  %v6081_v40 = vcombine.high %v2963_v33, %v2968_v11  ;;  %v3253_v11 = vmul.bf16 %v9602_v61, %v12558_v59 }
 0x497   : > { %v10246_v39 = vpop.permute.xlu0 %4487  ;;  %v10248_v31 = vpop.permute.xlu1 %3982  ;;  %v6135_v7 = vcombine.high %v3253_v11, %v3258_v51 }
 0x499   : > { %3847 = vrot.lane.b32.xlu0 %v6080_v16, %s12380_s26  ;;  %4607 = vrot.lane.b32.xlu1 %v6189_v5, %s6733_s13  ;;  %v6171_v5 = vcombine.high %v3447_v54, %v3452_v38 }
 0x49b   : > { %v10252_v36 = vpop.permute.xlu0 %4361  ;;  %v10254_v3 = vpop.permute.xlu1 %3855 }
 0x49d   : > { %4680 = vrot.lane.b32.xlu0 %v12606_v27, %s6725_s11  ;;  %3976 = vrot.lane.b32.xlu1 %v6099_v55, %s6723_s28  ;;  %v6170_v27 = vcombine.low %v3447_v54, %v3452_v38  ;;  %v3156_v38 = vmul.bf16 %v9586_v17, %v12558_v59 }
 0x49f   : > { %v10265_v26 = vpop.permute.xlu0 %4234  ;;  %v10267_v53 = vpop.permute.xlu1 %4485  ;;  %v6117_v61 = vcombine.high %v3156_v38, %v3161_v14  ;;  %v6116_v59 = vcombine.low %v3156_v38, %v3161_v14 }
 0x4a1   : > { %4481 = vrot.lane.b32.xlu0 %v6171_v5, %s6727_s14  ;;  %3849 = vrot.lane.b32.xlu1 %v6081_v40, %s12380_s26  ;;  %v6152_v40 = vcombine.low %v3350_v50, %v3355_v34 }
 0x4a3   : > { %v10275_v55 = vpop.permute.xlu0 %4108  ;;  %v10277_v16 = vpop.permute.xlu1 %4359 }
 0x4a5   : > { %4355 = vrot.lane.b32.xlu0 %v6153_v37, %s6724_s29  ;;  %4479 = vrot.lane.b32.xlu1 %v6170_v27, %s6727_s14  ;;  %v6134_v27 = vcombine.low %v3253_v11, %v3258_v51  ;;  %v3076_v51 = vmul.bf16 %v9487_v30, %v9882_v0  ;;  %v3361_v11 = vmul.bf16 %v9502_v22, %v9880_v44 }
 0x4a7   : > { %v10285_v33 = vpop.permute.xlu0 %4692  ;;  %v10287_v5 = vpop.permute.xlu1 %4232 }
 0x4a8   : > { %12607 = vst [vmem:[#allocation35_spill] sm:$0xff] %v10285_v33  ;;  %v3463_v33 = vmul.bf16 %v9523_v25, %v9882_v0  ;;  %v3071_v25 = vmul.bf16 %v9487_v30, %v9880_v44  ;;  %v2974_v30 = vmul.bf16 %v12550_v28, %v9880_v44 }
 0x4a9   : > { %4228 = vrot.lane.b32.xlu0 %v6135_v7, %s12403_s12  ;;  %4353 = vrot.lane.b32.xlu1 %v6152_v40, %s6724_s29  ;;  %v3366_v7 = vmul.bf16 %v9502_v22, %v9882_v0  ;;  %v3554_v22 = vmul.bf16 %v12547_v24, %v9880_v44 }
 0x4aa   : > { %v6181_v17 = vcombine.low %v3458_v47, %v3463_v33  ;;  %v6109_v38 = vcombine.low %v3071_v25, %v3076_v51  ;;  %v2882_v51 = vmul.bf16 %v12543_v42, %v9882_v0 }
 0x4ab   : > { %v10295_v54 = vpop.permute.xlu0 %4690  ;;  %v10297_v37 = vpop.permute.xlu1 %4106  ;;  %v6163_v14 = vcombine.low %v3361_v11, %v3366_v7  ;;  %v2877_v11 = vmul.bf16 %v12543_v42, %v9880_v44 }
 0x4ac   : > { %12608 = vst [vmem:[#allocation55_spill] sm:$0xff] %v10295_v54 }
 0x4ad   : > { %4102 = vrot.lane.b32.xlu0 %v6117_v61, %s6722_s27  ;;  %4226 = vrot.lane.b32.xlu1 %v6134_v27, %s12403_s12  ;;  %v3559_v61 = vmul.bf16 %v12547_v24, %v9882_v0  ;;  %v2979_v27 = vmul.bf16 %v12550_v28, %v9882_v0  ;;  %v6073_v28 = vcombine.low %v2877_v11, %v2882_v51 }
 0x4ae   : > { %v3167_v51 = vmul.bf16 %v12553_v60, %v9880_v44 }
 0x4af   : > { %v10305_v34 = vpop.permute.xlu0 %3730  ;;  %v10307_v50 = vpop.permute.xlu1 %3732  ;;  %v6091_v7 = vcombine.low %v2974_v30, %v2979_v27  ;;  %v3172_v30 = vmul.bf16 %v12553_v60, %v9882_v0 }
 0x4b1   : > { %4501 = vrot.lane.b32.xlu0 %v6181_v17, %s6727_s14  ;;  %4100 = vrot.lane.b32.xlu1 %v6116_v59, %s6722_s27  ;;  %v6199_v59 = vcombine.low %v3554_v22, %v3559_v61  ;;  %v3264_v61 = vmul.bf16 %v9499_v62, %v9880_v44  ;;  %v12615_v44 = vcombine.low %v9713_v32, %v9717_v10 }
 0x4b3   : > { %v10319_v40 = vpop.permute.xlu0 %4615  ;;  %v10321_v33 = vpop.permute.xlu1 %4617 }
 0x4b5   : > { %4375 = vrot.lane.b32.xlu0 %v6163_v14, %s6724_s29  ;;  %3996 = vrot.lane.b32.xlu1 %v6109_v38, %s6723_s28  ;;  %v3269_v14 = vmul.bf16 %v9499_v62, %v9882_v0  ;;  %v12609_v38 = vcombine.low %v9637_v52, %v9641_v41 }
 0x4b7   : > { %v10333_v47 = vpop.permute.xlu0 %3984  ;;  %v10335_v17 = vpop.permute.xlu1 %3986  ;;  %v6145_v22 = vcombine.low %v3264_v61, %v3269_v14  ;;  %v12612_v14 = vld [vmem:[#allocation21_spill] sm:$0xff] }
 0x4b9   : > { %4627 = vrot.lane.b32.xlu0 %v6199_v59, %s6733_s13  ;;  %3869 = vrot.lane.b32.xlu1 %v6091_v7, %s12380_s26  ;;  %v12610_v59 = vld [vmem:[#allocation28_spill] sm:$0xff] }
 0x4ba   : > { %v12611_v7 = vcombine.high %v9676_v56, %v12610_v59  ;;  %v12616_v60 = vcombine.low %v9676_v56, %v12610_v59  ;;  %v12621_v56 = vld [vmem:[#allocation29_spill] sm:$0xff] }
 0x4bb   : > { %v10343_v24 = vpop.permute.xlu0 %3857  ;;  %v10345_v25 = vpop.permute.xlu1 %3859  ;;  %v12622_v59 = vcombine.low %v9733_v58, %v12621_v56 }
 0x4bd   : > { %3734 = vrot.lane.b32.xlu0 %v12609_v38, %s6735_s19  ;;  %3742 = vrot.lane.b32.xlu1 %v6073_v28, %s6735_s19  ;;  %v6127_v28 = vcombine.low %v3167_v51, %v3172_v30  ;;  %v12613_v38 = vld [vmem:[#allocation15_spill] sm:$0xff]  ;;  %v12617_v51 = vcombine.low %v9723_v45, %v9727_v20 }
 0x4be   : > { %v12614_v61 = vcombine.high %v12612_v14, %v12613_v38 }
 0x4bf   : > { %v10356_v27 = vpop.permute.xlu0 %4491  ;;  %v10358_v42 = vpop.permute.xlu1 %4489 }
 0x4c1   : > { %3990 = vrot.lane.b32.xlu0 %v12611_v7, %s6723_s28  ;;  %4248 = vrot.lane.b32.xlu1 %v6145_v22, %s12403_s12 }
 0x4c3   : > { %v10369_v11 = vpop.permute.xlu0 %4365  ;;  %v10371_v62 = vpop.permute.xlu1 %4363 }
 0x4c5   : > { %3863 = vrot.lane.b32.xlu0 %v12614_v61, %s12380_s26  ;;  %4122 = vrot.lane.b32.xlu1 %v6127_v28, %s6722_s27  ;;  %v12618_v28 = vcombine.low %v12612_v14, %v12613_v38  ;;  %v12626_v14 = vld [vmem:[#allocation20_spill] sm:$0xff] }
 0x4c6   : > { %v12627_v38 = vcombine.low %v9745_v57, %v12626_v14 }
 0x4c7   : > { %v10378_v0 = vpop.permute.xlu0 %4238  ;;  %v10380_v7 = vpop.permute.xlu1 %4236 }
 0x4c9   : > { %4493 = vrot.lane.b32.xlu0 %v12615_v44, %s6727_s14  ;;  %3988 = vrot.lane.b32.xlu1 %v12616_v60, %s6723_s28  ;;  %v12623_v60 = vcombine.high %v9637_v52, %v9641_v41  ;;  %v12631_v52 = vld [vmem:[#allocation34_spill] sm:$0xff]  ;;  %v12632_v41 = vld [vmem:[#allocation59_spill] sm:$0xff] }
 0x4cb   : > { %v10390_v22 = vpop.permute.xlu0 %4112  ;;  %v10392_v30 = vpop.permute.xlu1 %4110 }
 0x4cd   : > { %4367 = vrot.lane.b32.xlu0 %v12617_v51, %s6724_s29  ;;  %3861 = vrot.lane.b32.xlu1 %v12618_v28, %s12380_s26  ;;  %v12628_v28 = vcombine.high %v9713_v32, %v9717_v10  ;;  %v12636_v32 = vcombine.high %v9776_v19, %v9780_v43  ;;  %v12637_v10 = vcombine.high %v9733_v58, %v12621_v56  ;;  %v12645_v58 = vld [vmem:[#allocation62_spill] sm:$0xff]  ;;  %v12646_v56 = vld [vmem:[#allocation63_spill] sm:$0xff] }
 0x4cf   : > { %v10402_v61 = vpop.permute.xlu0 %4483  ;;  %v10404_v44 = vpop.permute.xlu1 %4694 }
 0x4d0   : > { %12619 = vst [vmem:[#allocation56_spill] sm:$0xff] %v10402_v61  ;;  %12620 = vst [vmem:[#allocation57_spill] sm:$0xff] %v10404_v44  ;;  %v12648_v61 = vcombine.low %v12631_v52, %v12632_v41 }
 0x4d1   : > { %4240 = vrot.lane.b32.xlu0 %v12622_v59, %s12403_s12  ;;  %3736 = vrot.lane.b32.xlu1 %v12623_v60, %s6735_s19  ;;  %v12633_v60 = vcombine.high %v12631_v52, %v12632_v41 }
 0x4d3   : > { %v10414_v51 = vpop.permute.xlu0 %4357  ;;  %v10416_v54 = vpop.permute.xlu1 %4696 }
 0x4d4   : > { %12624 = vst [vmem:[#allocation58_spill] sm:$0xff] %v10414_v51  ;;  %12625 = vst [vmem:[#allocation28_spill] sm:$0xff] %v10416_v54  ;;  %v12634_v54 = vcombine.high %v9723_v45, %v9727_v20  ;;  %v12639_v20 = vld [vmem:[#allocation60_spill] sm:$0xff]  ;;  %v12640_v45 = vld [vmem:[#allocation61_spill] sm:$0xff] }
 0x4d5   : > { %4114 = vrot.lane.b32.xlu0 %v12627_v38, %s6722_s27  ;;  %4495 = vrot.lane.b32.xlu1 %v12628_v28, %s6727_s14  ;;  %v12655_v52 = vcombine.low %v12639_v20, %v12640_v45 }
 0x4d7   : > { %v10426_v59 = vpop.permute.xlu0 %4230  ;;  %v10428_v44 = vpop.permute.xlu1 %3724 }
 0x4d8   : > { %12629 = vst [vmem:[#allocation21_spill] sm:$0xff] %v10426_v59  ;;  %12630 = vst [vmem:[#allocation15_spill] sm:$0xff] %v10428_v44 }
 0x4d9   : > { %4621 = vrot.lane.b32.xlu0 %v12633_v60, %s6733_s13  ;;  %4369 = vrot.lane.b32.xlu1 %v12634_v54, %s6724_s29  ;;  %v12641_v54 = vcombine.high %v12639_v20, %v12640_v45  ;;  %v12661_v20 = vcombine.high %v9852_v2, %v9858_v48 }
 0x4db   : > { %v10438_v38 = vpop.permute.xlu0 %4609  ;;  %v10440_v51 = vpop.permute.xlu1 %3978 }
 0x4dc   : > { %12635 = vst [vmem:[#allocation29_spill] sm:$0xff] %v10438_v38  ;;  %v12642_v38 = vcombine.high %v9745_v57, %v12626_v14  ;;  %v12649_v57 = vld [vmem:[#allocation64_spill] sm:$0xff]  ;;  %v12650_v14 = vld [vmem:[#allocation65_spill] sm:$0xff] }
 0x4dd   : > { %4625 = vrot.lane.b32.xlu0 %v12636_v32, %s6733_s13  ;;  %4242 = vrot.lane.b32.xlu1 %v12637_v10, %s12403_s12  ;;  %v12647_v10 = vcombine.low %v12645_v58, %v12646_v56  ;;  %v12662_v45 = vcombine.high %v12649_v57, %v12650_v14 }
 0x4df   : > { %v10450_v28 = vpop.permute.xlu0 %3718  ;;  %v10452_v60 = vpop.permute.xlu1 %3851 }
 0x4e0   : > { %12638 = vst [vmem:[#allocation20_spill] sm:$0xff] %v10450_v28 }
 0x4e1   : > { %3994 = vrot.lane.b32.xlu0 %v12641_v54, %s6723_s28  ;;  %4116 = vrot.lane.b32.xlu1 %v12642_v38, %s6722_s27  ;;  %v12651_v38 = vcombine.low %v12649_v57, %v12650_v14  ;;  %v12666_v57 = vld [vmem:[#allocation68_spill] sm:$0xff]  ;;  %v12667_v14 = vld [vmem:[#allocation69_spill] sm:$0xff] }
 0x4e3   : > { %v10462_v32 = vpop.permute.xlu0 %3722  ;;  %v10464_v59 = vpop.permute.xlu1 %4104 }
 0x4e4   : > { %12643 = vst [vmem:[#allocation34_spill] sm:$0xff] %v10462_v32  ;;  %12644 = vst [vmem:[#allocation59_spill] sm:$0xff] %v10464_v59  ;;  %v12652_v59 = vcombine.low %v9776_v19, %v9780_v43  ;;  %v12656_v19 = vld [vmem:[#allocation66_spill] sm:$0xff]  ;;  %v12657_v43 = vld [vmem:[#allocation67_spill] sm:$0xff] }
 0x4e5   : > { %3865 = vrot.lane.b32.xlu0 %v12647_v10, %s12380_s26  ;;  %4619 = vrot.lane.b32.xlu1 %v12648_v61, %s6733_s13  ;;  %v12654_v61 = vcombine.low %v9826_v13, %v9830_v49 }
 0x4e7   : > { %v10474_v54 = vpop.permute.xlu0 %3972  ;;  %v10476_v44 = vpop.permute.xlu1 %3716 }
 0x4e9   : > { %3738 = vrot.lane.b32.xlu0 %v12651_v38, %s6735_s19  ;;  %4623 = vrot.lane.b32.xlu1 %v12652_v59, %s6733_s13  ;;  %v12658_v59 = vcombine.low %v12656_v19, %v12657_v43 }
 0x4eb   : > { %v10486_v10 = vpop.permute.xlu0 %3845  ;;  %v10488_v32 = vpop.permute.xlu1 %3720 }
 0x4ec   : > { %12653 = vst [vmem:[#allocation60_spill] sm:$0xff] %v10488_v32  ;;  %v12659_v32 = vcombine.high %v12645_v58, %v12646_v56  ;;  %v12665_v58 = vcombine.high %v12656_v19, %v12657_v43  ;;  %v4630_v19 = vsel %vm1596_vm14, %v9994_v12, %v9996_v23  ;;  %v12671_v43 = vcombine.low %v9864_v4, %v9868_v18 }
 0x4ed   : > { %4698 = vrot.lane.b32.xlu0 %v12654_v61, %s6725_s11  ;;  %3992 = vrot.lane.b32.xlu1 %v12655_v52, %s6723_s28 }
 0x4ef   : > { %v10498_v41 = vpop.permute.xlu0 %4475  ;;  %v10500_v38 = vpop.permute.xlu1 %3970 }
 0x4f1   : > { %4497 = vrot.lane.b32.xlu0 %v12658_v59, %s6727_s14  ;;  %3867 = vrot.lane.b32.xlu1 %v12659_v32, %s12380_s26  ;;  %v12664_v32 = vcombine.high %v9864_v4, %v9868_v18  ;;  %v4503_v18 = vsel %vm804_vm11, %v10032_v29, %v10030_v15  ;;  %v12676_v4 = vcombine.high %v9826_v13, %v9830_v49  ;;  %v12681_v13 = vld [vmem:[#allocation41_spill] sm:$0xff] }
 0x4f3   : > { %v10510_v61 = vpop.permute.xlu0 %4349  ;;  %v10512_v28 = vpop.permute.xlu1 %3843 }
 0x4f4   : > { %12660 = vst [vmem:[#allocation61_spill] sm:$0xff] %v10510_v61 }
 0x4f5   : > { %4373 = vrot.lane.b32.xlu0 %v12661_v20, %s6724_s29  ;;  %3740 = vrot.lane.b32.xlu1 %v12662_v45, %s6735_s19  ;;  %v12668_v45 = vcombine.low %v12666_v57, %v12667_v14 }
 0x4f7   : > { %v10522_v52 = vpop.permute.xlu0 %4222  ;;  %v10524_v59 = vpop.permute.xlu1 %4477 }
 0x4f8   : > { %12663 = vst [vmem:[#allocation62_spill] sm:$0xff] %v10522_v52  ;;  %v12669_v52 = vcombine.low %v9852_v2, %v9858_v48  ;;  %v3745_v48 = vsel %vm1239_vm7, %v9984_v9, %v9982_v35  ;;  %v12674_v2 = vcombine.high %v12666_v57, %v12667_v14  ;;  %v4377_v57 = vsel %vm484_vm3, %v10044_v21, %v10042_v1 }
 0x4f9   : > { %4246 = vrot.lane.b32.xlu0 %v12664_v32, %s12403_s12  ;;  %4499 = vrot.lane.b32.xlu1 %v12665_v58, %s6727_s14  ;;  %v3998_v14 = vsel %vm1099_vm9, %v10006_v6, %v10008_v8  ;;  %s5938_s14 = sld [smem:[#allocation4 + $0x2]] }
 0x4fb   : > { %v10534_v56 = vpop.permute.xlu0 %4096  ;;  %v10536_v20 = vpop.permute.xlu1 %4351 }
 0x4fd   : > { %4118 = vrot.lane.b32.xlu0 %v12668_v45, %s6722_s27  ;;  %4371 = vrot.lane.b32.xlu1 %v12669_v52, %s6724_s29 }
 0x4ff   : > { %v10546_v32 = vpop.permute.xlu0 %4601  ;;  %v10548_v61 = vpop.permute.xlu1 %4224 }
 0x500   : > { %12670 = vst [vmem:[#allocation63_spill] sm:$0xff] %v10548_v61 }
 0x501   : > { %4960 = vrot.lane.b32.xlu0 %v4630_v19, %s6725_s11  ;;  %4244 = vrot.lane.b32.xlu1 %v12671_v43, %s12403_s12  ;;  %v4631_v43 = vsel %vm1596_vm14, %v9996_v23, %v12681_v13 }
 0x503   : > { %v10558_v58 = vpop.permute.xlu0 %4605  ;;  %v10560_v45 = vpop.permute.xlu1 %4098 }
 0x504   : > { %12672 = vst [vmem:[#allocation64_spill] sm:$0xff] %v10558_v58  ;;  %12673 = vst [vmem:[#allocation65_spill] sm:$0xff] %v10560_v45 }
 0x505   : > { %4708 = vrot.lane.b32.xlu0 %v3745_v48, %s6725_s11  ;;  %4120 = vrot.lane.b32.xlu1 %v12674_v2, %s6722_s27  ;;  %v12682_v48 = vld [vmem:[#allocation38_spill] sm:$0xff]  ;;  %v12683_v2 = vld [vmem:[#allocation23_spill] sm:$0xff] }
 0x506   : > { %v3872_v21 = vsel %vm1293_vm2, %v12683_v2, %v12682_v48 }
 0x507   : > { %v10570_v12 = vpop.permute.xlu0 %3974  ;;  %v10572_v52 = vpop.permute.xlu1 %4603 }
 0x508   : > { %12675 = vst [vmem:[#allocation66_spill] sm:$0xff] %v10570_v12  ;;  %v12694_v12 = vld [vmem:[#allocation36_spill] sm:$0xff] }
 0x509   : > { %4924 = vrot.lane.b32.xlu0 %v4503_v18, %s6725_s11  ;;  %4700 = vrot.lane.b32.xlu1 %v12676_v4, %s6725_s11  ;;  %v12686_v4 = vld [vmem:[#allocation32_spill] sm:$0xff] }
 0x50b   : > { %v10582_v9 = vpop.permute.xlu0 %3847  ;;  %v10584_v19 = vpop.permute.xlu1 %4607 }
 0x50c   : > { %12677 = vst [vmem:[#allocation67_spill] sm:$0xff] %v10582_v9  ;;  %12678 = vst [vmem:[#allocation68_spill] sm:$0xff] %v10584_v19  ;;  %v12689_v9 = vld [vmem:[#allocation43_spill] sm:$0xff] }
 0x50d   : > { %4888 = vrot.lane.b32.xlu0 %v4377_v57, %s6725_s11  ;;  %4780 = vrot.lane.b32.xlu1 %v3998_v14, %s6725_s11  ;;  %v12687_v57 = vld [vmem:[#allocation26_spill] sm:$0xff] }
 0x50e   : > { %v4251_v14 = vsel %vm1445_vm13, %v12687_v57, %v12686_v4 }
 0x50f   : > { %v10594_v29 = vpop.permute.xlu0 %4680  ;;  %v10596_v49 = vpop.permute.xlu1 %3976 }
 0x510   : > { %12679 = vst [vmem:[#allocation69_spill] sm:$0xff] %v10594_v29  ;;  %12680 = vst [vmem:[#allocation74_spill] sm:$0xff] %v10596_v49  ;;  %v12688_v29 = vld [vmem:[#allocation37_spill] sm:$0xff]  ;;  %v12695_v49 = vld [vmem:[#allocation19_spill] sm:$0xff] }
 0x511   : > { %4962 = vrot.lane.b32.xlu0 %v4631_v43, %s6725_s11  ;;  %4744 = vrot.lane.b32.xlu1 %v3872_v21, %s6725_s11  ;;  %v4000_v23 = vsel %vm1099_vm9, %v12689_v9, %v12688_v29  ;;  %v12692_v21 = vld [vmem:[#allocation24_spill] sm:$0xff]  ;;  %v3874_v57 = vsel %vm1293_vm2, %v12695_v49, %v12694_v12 }
 0x513   : > { %v10606_v6 = vpop.permute.xlu0 %4481  ;;  %v10608_v18 = vpop.permute.xlu1 %3849 }
 0x514   : > { %12684 = vst [vmem:[#allocation41_spill] sm:$0xff] %v10606_v6  ;;  %12685 = vst [vmem:[#allocation38_spill] sm:$0xff] %v10608_v18  ;;  %v12693_v6 = vld [vmem:[#allocation17_spill] sm:$0xff] }
 0x515   : > { %4784 = vrot.lane.b32.xlu0 %v4000_v23, %s6725_s11  ;;  %4852 = vrot.lane.b32.xlu1 %v4251_v14, %s6725_s11  ;;  %v4124_v18 = vsel %vm1025_vm8, %v12693_v6, %v12692_v21  ;;  %v12698_v14 = vld [vmem:[#allocation40_spill] sm:$0xff] }
 0x517   : > { %v10618_v2 = vpop.permute.xlu0 %4355  ;;  %v10620_v43 = vpop.permute.xlu1 %4479 }
 0x518   : > { %12690 = vst [vmem:[#allocation23_spill] sm:$0xff] %v10618_v2  ;;  %12691 = vst [vmem:[#allocation32_spill] sm:$0xff] %v10620_v43  ;;  %v3746_v2 = vsel %vm1239_vm7, %v9982_v35, %v12698_v14  ;;  %v12699_v43 = vld [vmem:[#allocation42_spill] sm:$0xff]  ;;  %v3999_v35 = vsel %vm1099_vm9, %v10008_v8, %v12689_v9 }
 0x519   : > { %4748 = vrot.lane.b32.xlu0 %v3874_v57, %s6725_s11  ;;  %4816 = vrot.lane.b32.xlu1 %v4124_v18, %s6725_s11  ;;  %v4632_v6 = vsel %vm1596_vm14, %v12681_v13, %v12699_v43  ;;  %v4504_v18 = vsel %vm804_vm11, %v10030_v15, %v10149_v46  ;;  %v3873_v15 = vsel %vm1293_vm2, %v12682_v48, %v12695_v49  ;;  %v12711_v48 = vld [vmem:[#allocation47_spill] sm:$0xff] }
 0x51b   : > { %v10630_v19 = vpop.permute.xlu0 %4228  ;;  %v10632_v23 = vpop.permute.xlu1 %4353 }
 0x51c   : > { %12696 = vst [vmem:[#allocation26_spill] sm:$0xff] %v10630_v19  ;;  %12697 = vst [vmem:[#allocation37_spill] sm:$0xff] %v10632_v23  ;;  %v12708_v19 = vld [vmem:[#allocation39_spill] sm:$0xff] }
 0x51d   : > { %4710 = vrot.lane.b32.xlu0 %v3746_v2, %s6725_s11  ;;  %4964 = vrot.lane.b32.xlu1 %v4632_v6, %s6725_s11  ;;  %v12704_v6 = vld [vmem:[#allocation44_spill] sm:$0xff]  ;;  %v12717_v23 = vld [vmem:[#allocation31_spill] sm:$0xff] }
 0x51f   : > { %v10642_v58 = vpop.permute.xlu0 %4102  ;;  %v10644_v57 = vpop.permute.xlu1 %4226 }
 0x520   : > { %12700 = vst [vmem:[#allocation43_spill] sm:$0xff] %v10642_v58  ;;  %12701 = vst [vmem:[#allocation24_spill] sm:$0xff] %v10644_v57  ;;  %v4378_v58 = vsel %vm484_vm3, %v10042_v1, %v12704_v6  ;;  %v3747_v1 = vsel %vm1239_vm7, %v12698_v14, %v12708_v19  ;;  %v12713_v57 = vld [vmem:[#allocation16_spill] sm:$0xff] }
 0x521   : > { %4926 = vrot.lane.b32.xlu0 %v4504_v18, %s6725_s11  ;;  %4782 = vrot.lane.b32.xlu1 %v3999_v35, %s6725_s11  ;;  %v12706_v18 = vld [vmem:[#allocation45_spill] sm:$0xff] }
 0x522   : > { %v12707_v35 = vld [vmem:[#allocation25_spill] sm:$0xff] }
 0x523   : > { %v10654_v13 = vpop.permute.xlu0 %4501  ;;  %v10656_v2 = vpop.permute.xlu1 %4100 }
 0x524   : > { %12702 = vst [vmem:[#allocation17_spill] sm:$0xff] %v10654_v13  ;;  %12703 = vst [vmem:[#allocation36_spill] sm:$0xff] %v10656_v2  ;;  %v4253_v2 = vsel %vm1445_vm13, %v12707_v35, %v12706_v18  ;;  %v4505_v13 = vsel %vm804_vm11, %v10149_v46, %v12713_v57 }
 0x525   : > { %4890 = vrot.lane.b32.xlu0 %v4378_v58, %s6725_s11  ;;  %4746 = vrot.lane.b32.xlu1 %v3873_v15, %s6725_s11  ;;  %v12712_v15 = vld [vmem:[#allocation46_spill] sm:$0xff] }
 0x527   : > { %v10666_v8 = vpop.permute.xlu0 %4375  ;;  %v10668_v9 = vpop.permute.xlu1 %3996 }
 0x528   : > { %12705 = vst [vmem:[#allocation19_spill] sm:$0xff] %v10666_v8  ;;  %v4126_v8 = vsel %vm1025_vm8, %v12712_v15, %v12711_v48 }
 0x529   : > { %4856 = vrot.lane.b32.xlu0 %v4253_v2, %s6725_s11  ;;  %4712 = vrot.lane.b32.xlu1 %v3747_v1, %s6725_s11  ;;  %v12716_v1 = vld [vmem:[#allocation50_spill] sm:$0xff] }
 0x52b   : > { %v10678_v49 = vpop.permute.xlu0 %4627  ;;  %v10680_v58 = vpop.permute.xlu1 %3869 }
 0x52c   : > { %12709 = vst [vmem:[#allocation40_spill] sm:$0xff] %v10678_v49  ;;  %12710 = vst [vmem:[#allocation42_spill] sm:$0xff] %v10680_v58  ;;  %v4638_v49 = vsel %vm1596_vm14, %v12716_v1, %v10235_v63  ;;  %v4379_v58 = vsel %vm484_vm3, %v12704_v6, %v12717_v23  ;;  %v4252_v1 = vsel %vm1445_vm13, %v12686_v4, %v12707_v35 }
 0x52d   : > { %4820 = vrot.lane.b32.xlu0 %v4126_v8, %s6725_s11  ;;  %4928 = vrot.lane.b32.xlu1 %v4505_v13, %s6725_s11  ;;  %v12719_v13 = vld [vmem:[#allocation52_spill] sm:$0xff] }
 0x52f   : > { %v10690_v14 = vpop.permute.xlu0 %3734  ;;  %v10692_v2 = vpop.permute.xlu1 %3742 }
 0x530   : > { %12714 = vst [vmem:[#allocation44_spill] sm:$0xff] %v10690_v14  ;;  %12715 = vst [vmem:[#allocation45_spill] sm:$0xff] %v10692_v2  ;;  %v4006_v14 = vsel %vm1099_vm9, %v12719_v13, %v10248_v31  ;;  %v4125_v13 = vsel %vm1025_vm8, %v12692_v21, %v12712_v15 }
 0x531   : > { %4978 = vrot.lane.b32.xlu0 %v4638_v49, %s6725_s11  ;;  %4892 = vrot.lane.b32.xlu1 %v4379_v58, %s6725_s11  ;;  %v12722_v58 = vld [vmem:[#allocation54_spill] sm:$0xff] }
 0x533   : > { %v10702_v46 = vpop.permute.xlu0 %3990  ;;  %v10704_v8 = vpop.permute.xlu1 %4248 }
 0x534   : > { %12718 = vst [vmem:[#allocation25_spill] sm:$0xff] %v10704_v8  ;;  %v3880_v8 = vsel %vm1293_vm2, %v12722_v58, %v10254_v3 }
 0x535   : > { %4798 = vrot.lane.b32.xlu0 %v4006_v14, %s6725_s11  ;;  %4854 = vrot.lane.b32.xlu1 %v4252_v1, %s6725_s11  ;;  %v4385_v14 = vsel %vm484_vm3, %v10277_v16, %v10252_v36  ;;  %v12723_v1 = vld [vmem:[#allocation53_spill] sm:$0xff]  ;;  %v4259_v16 = vsel %vm1445_vm13, %v10287_v5, %v10265_v26 }
 0x537   : > { %v10714_v6 = vpop.permute.xlu0 %3863  ;;  %v10716_v49 = vpop.permute.xlu1 %4122 }
 0x538   : > { %12720 = vst [vmem:[#allocation39_spill] sm:$0xff] %v10714_v6  ;;  %12721 = vst [vmem:[#allocation47_spill] sm:$0xff] %v10716_v49  ;;  %v12724_v49 = vld [vmem:[#allocation48_spill] sm:$0xff] }
 0x539   : > { %4762 = vrot.lane.b32.xlu0 %v3880_v8, %s6725_s11  ;;  %4818 = vrot.lane.b32.xlu1 %v4125_v13, %s6725_s11  ;;  %v3753_v58 = vsel %vm1239_vm7, %v12724_v49, %v12723_v1  ;;  %v4511_v8 = vsel %vm804_vm11, %v10267_v53, %v10246_v39  ;;  %v4639_v53 = vsel %vm1596_vm14, %v10235_v63, %v10319_v40 }
 0x53b   : > { %v10726_v4 = vpop.permute.xlu0 %4493  ;;  %v10728_v35 = vpop.permute.xlu1 %3988 }
 0x53d   : > { %4726 = vrot.lane.b32.xlu0 %v3753_v58, %s6725_s11  ;;  %4906 = vrot.lane.b32.xlu1 %v4385_v14, %s6725_s11  ;;  %v4132_v14 = vsel %vm1025_vm8, %v10297_v37, %v10275_v55  ;;  %v4640_v37 = vsel %vm1596_vm14, %v10319_v40, %v10321_v33 }
 0x53f   : > { %v10738_v21 = vpop.permute.xlu0 %4367  ;;  %v10740_v15 = vpop.permute.xlu1 %3861 }
 0x541   : > { %4942 = vrot.lane.b32.xlu0 %v4511_v8, %s6725_s11  ;;  %4870 = vrot.lane.b32.xlu1 %v4259_v16, %s6725_s11  ;;  %v4008_v8 = vsel %vm1099_vm9, %v10333_v47, %v10335_v17 }
 0x543   : > { %v10750_v49 = vpop.permute.xlu0 %4240  ;;  %v10752_v13 = vpop.permute.xlu1 %3736 }
 0x545   : > { %4980 = vrot.lane.b32.xlu0 %v4639_v53, %s6725_s11  ;;  %4834 = vrot.lane.b32.xlu1 %v4132_v14, %s6725_s11  ;;  %v3881_v14 = vsel %vm1293_vm2, %v10254_v3, %v10343_v24  ;;  %v4007_v53 = vsel %vm1099_vm9, %v10248_v31, %v10333_v47  ;;  %v3882_v3 = vsel %vm1293_vm2, %v10343_v24, %v10345_v25 }
 0x547   : > { %v10762_v5 = vpop.permute.xlu0 %4114  ;;  %v10764_v58 = vpop.permute.xlu1 %4495 }
 0x549   : > { %4802 = vrot.lane.b32.xlu0 %v4008_v8, %s6725_s11  ;;  %4982 = vrot.lane.b32.xlu1 %v4640_v37, %s6725_s11  ;;  %v3754_v37 = vsel %vm1239_vm7, %v12723_v1, %v10305_v34  ;;  %v3755_v1 = vsel %vm1239_vm7, %v10305_v34, %v10307_v50 }
 0x54b   : > { %v10774_v63 = vpop.permute.xlu0 %4621  ;;  %v10776_v16 = vpop.permute.xlu1 %4369 }
 0x54d   : > { %4764 = vrot.lane.b32.xlu0 %v3881_v14, %s6725_s11  ;;  %4800 = vrot.lane.b32.xlu1 %v4007_v53, %s6725_s11  ;;  %v4512_v14 = vsel %vm804_vm11, %v10246_v39, %v10358_v42  ;;  %v4513_v39 = vsel %vm804_vm11, %v10358_v42, %v10356_v27 }
 0x54f   : > { %v10786_v40 = vpop.permute.xlu0 %4625  ;;  %v10788_v8 = vpop.permute.xlu1 %4242 }
 0x551   : > { %4728 = vrot.lane.b32.xlu0 %v3754_v37, %s6725_s11  ;;  %4766 = vrot.lane.b32.xlu1 %v3882_v3, %s6725_s11  ;;  %v4387_v37 = vsel %vm484_vm3, %v10371_v62, %v10369_v11 }
 0x553   : > { %v10798_v31 = vpop.permute.xlu0 %3994  ;;  %v10800_v47 = vpop.permute.xlu1 %4116 }
 0x555   : > { %4944 = vrot.lane.b32.xlu0 %v4512_v14, %s6725_s11  ;;  %4730 = vrot.lane.b32.xlu1 %v3755_v1, %s6725_s11  ;;  %v4261_v14 = vsel %vm1445_vm13, %v10380_v7, %v10378_v0  ;;  %v4386_v1 = vsel %vm484_vm3, %v10252_v36, %v10371_v62 }
 0x557   : > { %v10810_v24 = vpop.permute.xlu0 %3865  ;;  %v10812_v53 = vpop.permute.xlu1 %4619 }
 0x558   : > { %12725 = vst [vmem:[#allocation46_spill] sm:$0xff] %v10810_v24 }
 0x559   : > { %4910 = vrot.lane.b32.xlu0 %v4387_v37, %s6725_s11  ;;  %4946 = vrot.lane.b32.xlu1 %v4513_v39, %s6725_s11  ;;  %v4134_v39 = vsel %vm1025_vm8, %v10392_v30, %v10390_v22 }
 0x55b   : > { %v10822_v34 = vpop.permute.xlu0 %3738  ;;  %v10824_v3 = vpop.permute.xlu1 %4623 }
 0x55c   : > { %12726 = vst [vmem:[#allocation16_spill] sm:$0xff] %v10822_v34  ;;  %v4260_v34 = vsel %vm1445_vm13, %v10265_v26, %v10380_v7  ;;  %v4001_v7 = vsel %vm1099_vm9, %v12688_v29, %v10500_v38 }
 0x55d   : > { %4874 = vrot.lane.b32.xlu0 %v4261_v14, %s6725_s11  ;;  %4908 = vrot.lane.b32.xlu1 %v4386_v1, %s6725_s11  ;;  %v4133_v14 = vsel %vm1025_vm8, %v10275_v55, %v10392_v30  ;;  %v4002_v30 = vsel %vm1099_vm9, %v10500_v38, %v10474_v54  ;;  %v3748_v38 = vsel %vm1239_vm7, %v12708_v19, %v10476_v44 }
 0x55f   : > { %v10834_v42 = vpop.permute.xlu0 %4698  ;;  %v10836_v37 = vpop.permute.xlu1 %3992 }
 0x560   : > { %12727 = vst [vmem:[#allocation50_spill] sm:$0xff] %v10834_v42 }
 0x561   : > { %4838 = vrot.lane.b32.xlu0 %v4134_v39, %s6725_s11  ;;  %4872 = vrot.lane.b32.xlu1 %v4260_v34, %s6725_s11  ;;  %v3875_v39 = vsel %vm1293_vm2, %v12694_v12, %v10512_v28 }
 0x563   : > { %v10846_v36 = vpop.permute.xlu0 %4497  ;;  %v10848_v62 = vpop.permute.xlu1 %3867 }
 0x564   : > { %12728 = vst [vmem:[#allocation31_spill] sm:$0xff] %v10846_v36  ;;  %12729 = vst [vmem:[#allocation52_spill] sm:$0xff] %v10848_v62  ;;  %v12753_v36 = vld [vmem:[#allocation67_spill] sm:$0xff] }
 0x565   : > { %4796 = vrot.lane.b32.xlu0 %v10440_v51, %s6725_s11  ;;  %4836 = vrot.lane.b32.xlu1 %v4133_v14, %s6725_s11 }
 0x567   : > { %v10856_v1 = vpop.permute.xlu0 %4373  ;;  %v10858_v26 = vpop.permute.xlu1 %3740 }
 0x568   : > { %12730 = vst [vmem:[#allocation54_spill] sm:$0xff] %v10856_v1  ;;  %12731 = vst [vmem:[#allocation53_spill] sm:$0xff] %v10858_v26  ;;  %v10942_v1 = vld [vmem:[#allocation10] sm:$0x3f] }
 0x569   : > { %4760 = vrot.lane.b32.xlu0 %v10452_v60, %s6725_s11  ;;  %4786 = vrot.lane.b32.xlu1 %v4001_v7, %s6725_s11  ;;  %v3876_v7 = vsel %vm1293_vm2, %v10512_v28, %v10486_v10  ;;  %v4507_v28 = vsel %vm804_vm11, %v10498_v41, %v10524_v59 }
 0x56b   : > { %v10866_v34 = vpop.permute.xlu0 %4246  ;;  %v10868_v55 = vpop.permute.xlu1 %4499 }
 0x56c   : > { %12732 = vst [vmem:[#allocation48_spill] sm:$0xff] %v10866_v34  ;;  %12733 = vst [vmem:[#allocation75_spill] sm:$0xff] %v10868_v55 }
 0x56d   : > { %4788 = vrot.lane.b32.xlu0 %v4002_v30, %s6725_s11  ;;  %4750 = vrot.lane.b32.xlu1 %v3875_v39, %s6725_s11  ;;  %v12737_v39 = vld [vmem:[#allocation20_spill] sm:$0xff] }
 0x56e   : > { %v3749_v42 = vsel %vm1239_vm7, %v10476_v44, %v12737_v39 }
 0x56f   : > { %v10878_v29 = vpop.permute.xlu0 %4118  ;;  %v10880_v14 = vpop.permute.xlu1 %4371 }
 0x570   : > { %12734 = vst [vmem:[#allocation76_spill] sm:$0xff] %v10878_v29  ;;  %12735 = vst [vmem:[#allocation77_spill] sm:$0xff] %v10880_v14  ;;  %v12739_v29 = vld [vmem:[#allocation61_spill] sm:$0xff]  ;;  %v12749_v14 = vld [vmem:[#allocation68_spill] sm:$0xff] }
 0x571   : > { %4752 = vrot.lane.b32.xlu0 %v3876_v7, %s6725_s11  ;;  %4714 = vrot.lane.b32.xlu1 %v3748_v38, %s6725_s11  ;;  %v4506_v38 = vsel %vm804_vm11, %v12713_v57, %v10498_v41  ;;  %v4381_v44 = vsel %vm484_vm3, %v12739_v29, %v10536_v20 }
 0x573   : > { %v10890_v12 = vpop.permute.xlu0 %4960  ;;  %v10892_v30 = vpop.permute.xlu1 %4244 }
 0x574   : > { %12736 = vst [vmem:[#allocation78_spill] sm:$0xff] %v10892_v30 }
 0x575   : > { %4716 = vrot.lane.b32.xlu0 %v3749_v42, %s6725_s11  ;;  %4932 = vrot.lane.b32.xlu1 %v4507_v28, %s6725_s11  ;;  %v4380_v28 = vsel %vm484_vm3, %v12717_v23, %v12739_v29  ;;  %v4127_v23 = vsel %vm1025_vm8, %v12711_v48, %v10534_v56  ;;  %v6737_v29 = vmov 1983009808   ;;  %v4634_v48 = vsel %vm1596_vm14, %v10546_v32, %v10572_v52 }
 0x577   : > { %v10902_v19 = vpop.permute.xlu0 %4708  ;;  %v10904_v7 = vpop.permute.xlu1 %4120 }
 0x578   : > { %12738 = vst [vmem:[#allocation20_spill] sm:$0xff] %v10904_v7  ;;  %v12741_v7 = vld [vmem:[#allocation62_spill] sm:$0xff] }
 0x579   : > { %4930 = vrot.lane.b32.xlu0 %v4506_v38, %s6725_s11  ;;  %4896 = vrot.lane.b32.xlu1 %v4381_v44, %s6725_s11  ;;  %v4255_v41 = vsel %vm1445_vm13, %v12741_v7, %v10548_v61  ;;  %v4254_v44 = vsel %vm1445_vm13, %v12706_v18, %v12741_v7  ;;  %v4128_v18 = vsel %vm1025_vm8, %v10534_v56, %v10560_v45  ;;  %v12743_v7 = vld [vmem:[#allocation14_spill] sm:$0xff]  ;;  %v12747_v45 = vld [vmem:[#allocation64_spill] sm:$0xff] }
 0x57a   : > { %v4633_v56 = vsel %vm1596_vm14, %v12699_v43, %v10546_v32  ;;  %v4636_v32 = vsel %vm1596_vm14, %v12747_v45, %v12749_v14  ;;  %v12750_v43 = vld [vmem:[#allocation74_spill] sm:$0xff] }
 0x57b   : > { %v10914_v30 = vpop.permute.xlu0 %4924  ;;  %v10916_v42 = vpop.permute.xlu1 %4700 }
 0x57c   : > { %12740 = vst [vmem:[#allocation61_spill] sm:$0xff] %v10916_v42  ;;  %v4656_v42 = vunpack.c.l.s4 %v6737_v29 }
 0x57d   : > { %4894 = vrot.lane.b32.xlu0 %v4380_v28, %s6725_s11  ;;  %4860 = vrot.lane.b32.xlu1 %v4255_v41, %s6725_s11 }
 0x57e   : > { %v4657_v28 = vunpack.c.0.s8 %v4656_v42 }
 0x57f   : > { %v10926_v57 = vpop.permute.xlu0 %4888  ;;  %v10928_v38 = vpop.permute.xlu1 %4780 }
 0x580   : > { %12742 = vst [vmem:[#allocation62_spill] sm:$0xff] %v10926_v57  ;;  %v10951_v29 = vsub.s32 %v4657_v28, %v12743_v7  ;;  %v4635_v28 = vsel %vm1596_vm14, %v10572_v52, %v12747_v45  ;;  %v12751_v52 = vld [vmem:[#allocation66_spill] sm:$0xff]  ;;  %v4005_v45 = vsel %vm1099_vm9, %v12750_v43, %v10440_v51 }
 0x581   : > { %4858 = vrot.lane.b32.xlu0 %v4254_v44, %s6725_s11  ;;  %4822 = vrot.lane.b32.xlu1 %v4127_v23, %s6725_s11  ;;  %v4004_v55 = vsel %vm1099_vm9, %v12751_v52, %v12750_v43  ;;  %v12754_v43 = vld [vmem:[#allocation34_spill] sm:$0xff] }
 0x582   : > { %12744 = vst [vmem:[#allocation14_spill] sm:$0xff] %v10951_v29  ;;  %v10957_v42 = vrot.slane %v10942_v1, %v10951_v29 }
 0x583   : > { %v10938_v41 = vpop.permute.xlu0 %4962  ;;  %v10940_v34 = vpop.permute.xlu1 %4744 }
 0x584   : > { %12745 = vst [vmem:[#allocation79_spill] sm:$0xff] %v10957_v42 }
 0x585   : > { %4824 = vrot.lane.b32.xlu0 %v4128_v18, %s6725_s11  ;;  %4968 = vrot.lane.b32.xlu1 %v4634_v48, %s6725_s11  ;;  %v10971_v18 = vcombine.high %v10957_v42, %v10957_v42  ;;  %v4003_v42 = vsel %vm1099_vm9, %v10474_v54, %v12751_v52  ;;  %v3877_v54 = vsel %vm1293_vm2, %v10486_v10, %v12753_v36  ;;  %v12755_v52 = vld [vmem:[#allocation60_spill] sm:$0xff] }
 0x587   : > { %v10959_v44 = vpop.permute.xlu0 %4784  ;;  %v10961_v23 = vpop.permute.xlu1 %4852  ;;  %5319 = vmatprep.mubr.bf16.mxu0 %v10971_v18 }
 0x588   : > { %12746 = vst [vmem:[#allocation80_spill] sm:$0xff] %v10961_v23  ;;  %v12762_v23 = vld [vmem:[#allocation18_spill] sm:$0xff] }
 0x589   : > { %4966 = vrot.lane.b32.xlu0 %v4633_v56, %s6725_s11  ;;  %4970 = vrot.lane.b32.xlu1 %v4635_v28, %s6725_s11 }
 0x58b   : > { %v10976_v48 = vpop.permute.xlu0 %4748  ;;  %v10978_v7 = vpop.permute.xlu1 %4816 }
 0x58c   : > { %12748 = vst [vmem:[#allocation64_spill] sm:$0xff] %v10978_v7 }
 0x58d   : > { %4972 = vrot.lane.b32.xlu0 %v4636_v32, %s6725_s11  ;;  %4792 = vrot.lane.b32.xlu1 %v4004_v55, %s6725_s11  ;;  %v12752_v55 = vld [vmem:[#allocation38_spill] sm:$0xff] }
 0x58e   : > { %v3878_v7 = vsel %vm1293_vm2, %v12753_v36, %v12752_v55  ;;  %v3879_v26 = vsel %vm1293_vm2, %v12752_v55, %v10452_v60  ;;  %v12758_v55 = vld [vmem:[#allocation15_spill] sm:$0xff] }
 0x58f   : > { %v10988_v56 = vpop.permute.xlu0 %4710  ;;  %v10990_v28 = vpop.permute.xlu1 %4964 }
 0x591   : > { %4790 = vrot.lane.b32.xlu0 %v4003_v42, %s6725_s11  ;;  %4794 = vrot.lane.b32.xlu1 %v4005_v45, %s6725_s11  ;;  %v3751_v45 = vsel %vm1239_vm7, %v12755_v52, %v12754_v43 }
 0x593   : > { %v11000_v14 = vpop.permute.xlu0 %4926  ;;  %v11002_v32 = vpop.permute.xlu1 %4782 }
 0x595   : > { %4756 = vrot.lane.b32.xlu0 %v3878_v7, %s6725_s11  ;;  %4754 = vrot.lane.b32.xlu1 %v3877_v54, %s6725_s11  ;;  %v3750_v7 = vsel %vm1239_vm7, %v12737_v39, %v12755_v52  ;;  %v4010_v52 = vsel %vm1099_vm9, %v10728_v35, %v10702_v46 }
 0x597   : > { %v11012_v51 = vpop.permute.xlu0 %4890  ;;  %v11014_v42 = vpop.permute.xlu1 %4746 }
 0x599   : > { %4720 = vrot.lane.b32.xlu0 %v3751_v45, %s6725_s11  ;;  %4758 = vrot.lane.b32.xlu1 %v3879_v26, %s6725_s11  ;;  %v3752_v26 = vsel %vm1239_vm7, %v12754_v43, %v12758_v55  ;;  %v12759_v45 = vld [vmem:[#allocation42_spill] sm:$0xff]  ;;  %v4009_v43 = vsel %vm1099_vm9, %v10335_v17, %v10728_v35 }
 0x59b   : > { %v11024_v10 = vpop.permute.xlu0 %4856  ;;  %v11026_v36 = vpop.permute.xlu1 %4712 }
 0x59c   : > { %12756 = vst [vmem:[#allocation74_spill] sm:$0xff] %v11024_v10 }
 0x59d   : > { %4814 = vrot.lane.b32.xlu0 %v10668_v9, %s6725_s11  ;;  %4718 = vrot.lane.b32.xlu1 %v3750_v7, %s6725_s11 }
 0x59f   : > { %v11034_v54 = vpop.permute.xlu0 %4820  ;;  %v11036_v60 = vpop.permute.xlu1 %4928 }
 0x5a0   : > { %12757 = vst [vmem:[#allocation66_spill] sm:$0xff] %v11034_v54 }
 0x5a1   : > { %4778 = vrot.lane.b32.xlu0 %v12759_v45, %s6725_s11  ;;  %4722 = vrot.lane.b32.xlu1 %v3752_v26, %s6725_s11  ;;  %v12761_v26 = vld [vmem:[#allocation27_spill] sm:$0xff] }
 0x5a2   : > { %v12763_v10 = vcombine.high %v12761_v26, %v12762_v23  ;;  %v3883_v23 = vsel %vm1293_vm2, %v10345_v25, %v10740_v15 }
 0x5a3   : > { %v4979_v61 = vpop.permute.xlu0 %4978  ;;  %v11044_v39 = vpop.permute.xlu1 %4892 }
 0x5a5   : > { %4742 = vrot.lane.b32.xlu0 %v10692_v2, %s6725_s11  ;;  %4806 = vrot.lane.b32.xlu1 %v4010_v52, %s6725_s11  ;;  %v3884_v52 = vsel %vm1293_vm2, %v10740_v15, %v10714_v6  ;;  %v12765_v2 = vld [vmem:[#allocation70_spill] sm:$0xff] }
 0x5a7   : > { %v4799_v7 = vpop.permute.xlu0 %4798  ;;  %v11052_v54 = vpop.permute.xlu1 %4854 }
 0x5a8   : > { %12760 = vst [vmem:[#allocation38_spill] sm:$0xff] %v11052_v54  ;;  %v12766_v54 = vld [vmem:[#allocation71_spill] sm:$0xff] }
 0x5a9   : > { %4804 = vrot.lane.b32.xlu0 %v4009_v43, %s6725_s11  ;;  %4682 = vrot.lane.b32.xlu1 %v12763_v10, %s6725_s11  ;;  %v12767_v24 = vcombine.low %v12765_v2, %v12766_v54  ;;  %v12768_v10 = vld [vmem:[#allocation44_spill] sm:$0xff]  ;;  %v12771_v25 = vcombine.high %v12765_v2, %v12766_v54 }
 0x5aa   : > { %v3756_v43 = vsel %vm1239_vm7, %v10307_v50, %v12768_v10  ;;  %v6600_v50 = vld [vmem:[#allocation3 + $0x18] sm:$0xff] }
 0x5ab   : > { %v11062_v45 = vpop.permute.xlu0 %4762  ;;  %v11064_v57 = vpop.permute.xlu1 %4818  ;;  %v12772_v54 = vld [vmem:[#allocation32_spill] sm:$0xff] }
 0x5ac   : > { %12764 = vst [vmem:[#allocation67_spill] sm:$0xff] %v11064_v57  ;;  %v12770_v57 = vld [vmem:[#allocation22_spill] sm:$0xff] }
 0x5ad   : > { %4702 = vrot.lane.b32.xlu0 %v12767_v24, %s6725_s11  ;;  %4770 = vrot.lane.b32.xlu1 %v3884_v52, %s6725_s11  ;;  %v6599_v52 = vld [vmem:[#allocation3 + $0x3c] sm:$0xff]  ;;  %v2745_v15 = vmul.bf16 %v6600_v50, %v12770_v57  ;;  %v4514_v50 = vsel %vm804_vm11, %v10356_v27, %v10726_v4 }
 0x5ae   : > { %v2750_v6 = vmul.bf16 %v6599_v52, %v12770_v57  ;;  %v4508_v57 = vsel %vm804_vm11, %v10524_v59, %v12772_v54 }
 0x5af   : > { %v11074_v17 = vpop.permute.xlu0 %4726  ;;  %v11076_v35 = vpop.permute.xlu1 %4906 }
 0x5b0   : > { %v6045_v62 = vcombine.high %v2745_v15, %v2750_v6  ;;  %v6044_v2 = vcombine.low %v2745_v15, %v2750_v6  ;;  %v5125_v6 = vsel %vm1173_vm6, %v10938_v41, %v10990_v28 }
 0x5b1   : > { %4768 = vrot.lane.b32.xlu0 %v3883_v23, %s6725_s11  ;;  %4732 = vrot.lane.b32.xlu1 %v3756_v43, %s6725_s11 }
 0x5b3   : > { %v11086_v26 = vpop.permute.xlu0 %4942  ;;  %v11088_v24 = vpop.permute.xlu1 %4870 }
 0x5b4   : > { %12769 = vst [vmem:[#allocation34_spill] sm:$0xff] %v11088_v24  ;;  %v3757_v24 = vsel %vm1239_vm7, %v12768_v10, %v10752_v13 }
 0x5b5   : > { %4724 = vrot.lane.b32.xlu0 %v12758_v55, %s6725_s11  ;;  %4704 = vrot.lane.b32.xlu1 %v12771_v25, %s6725_s11 }
 0x5b7   : > { %v4981_v23 = vpop.permute.xlu0 %4980  ;;  %v11098_v43 = vpop.permute.xlu1 %4834 }
 0x5b8   : > { %v5132_v10 = vsel %vm1173_vm6, %v4979_v61, %v4981_v23 }
 0x5b9   : > { %4734 = vrot.lane.b32.xlu0 %v3757_v24, %s6725_s11  ;;  %4686 = vrot.lane.b32.xlu1 %v6045_v62, %s6725_s11  ;;  %v4654_v62 = vcombine.high %v10942_v1, %v10942_v1  ;;  %v5124_v1 = vsel %vm1173_vm6, %v10890_v12, %v10938_v41  ;;  %v5044_v12 = vsel %vm1173_vm6, %v10928_v38, %v11002_v32  ;;  %v12777_v38 = vld [vmem:[#allocation41_spill] sm:$0xff] }
 0x5bb   : > { %v11105_v55 = vpop.permute.xlu0 %4802  ;;  %v11107_v52 = vpop.permute.xlu1 %4982 }
 0x5bc   : > { %v5133_v25 = vsel %vm1173_vm6, %v4981_v23, %v11107_v52  ;;  %v12773_v23 = vld [vmem:[#allocation72_spill] sm:$0xff] }
 0x5bd   : > { %4684 = vrot.lane.b32.xlu0 %v6044_v2, %s6725_s11  ;;  %4934 = vrot.lane.b32.xlu1 %v4508_v57, %s6725_s11  ;;  %v11135_v2 = vrot.slane %v4654_v62, %v10951_v29 }
 0x5be   : > { %5340 = vmatprep.subr.bf16.mxu1 %v5133_v25  ;;  %v4388_v25 = vsel %vm484_vm3, %v10369_v11, %v10738_v21  ;;  %v4515_v11 = vsel %vm804_vm11, %v10726_v4, %v10764_v58  ;;  %v4509_v4 = vsel %vm804_vm11, %v12772_v54, %v12777_v38  ;;  %v4263_v54 = vsel %vm1445_vm13, %v10750_v49, %v10788_v8 }
 0x5bf   : > { %5341 = vmatpush1.bf16.msra.mxu1 %v5132_v10  ;;  %v4765_v24 = vpop.permute.xlu0 %4764  ;;  %v4801_v59 = vpop.permute.xlu1 %4800  ;;  %v12774_v10 = vld [vmem:[#allocation73_spill] sm:$0xff] }
 0x5c0   : > { %5342 = vmatprep.subr.bf16.mxu1 %v5125_v6  ;;  %v5053_v15 = vsel %vm1173_vm6, %v4801_v59, %v11105_v55  ;;  %v5052_v61 = vsel %vm1173_vm6, %v4799_v7, %v4801_v59  ;;  %v5045_v7 = vsel %vm1173_vm6, %v11002_v32, %v10959_v44  ;;  %v12776_v59 = vld [vmem:[#allocation56_spill] sm:$0xff] }
 0x5c1   : > { %4706 = vrot.lane.b32.xlu0 %v12773_v23, %s6725_s11  ;;  %4948 = vrot.lane.b32.xlu1 %v4514_v50, %s6725_s11  ;;  %v4510_v32 = vsel %vm804_vm11, %v12777_v38, %v12776_v59  ;;  %v5036_v50 = vsel %vm1173_vm6, %v11062_v45, %v4765_v24  ;;  %v5028_v45 = vsel %vm1173_vm6, %v10940_v34, %v11014_v42  ;;  %v12780_v38 = vld [vmem:[#allocation57_spill] sm:$0xff] }
 0x5c2   : > { %5287 = vmatprep.subr.bf16.mxu0 %v5053_v15 }
 0x5c3   : > { %5288 = vmatpush1.bf16.msra.mxu0 %v5052_v61  ;;  %5343 = vmatpush1.bf16.msra.mxu1 %v5124_v1  ;;  %v4729_v27 = vpop.permute.xlu0 %4728  ;;  %v11140_v57 = vpop.permute.xlu1 %4766  ;;  %v5029_v61 = vsel %vm1173_vm6, %v11014_v42, %v10976_v48  ;;  %v12778_v1 = vld [vmem:[#allocation37_spill] sm:$0xff] }
 0x5c4   : > { %5289 = vmatprep.subr.bf16.mxu0 %v5045_v7  ;;  %v5037_v62 = vsel %vm1173_vm6, %v4765_v24, %v11140_v57  ;;  %v4382_v7 = vsel %vm484_vm3, %v10536_v20, %v12778_v1  ;;  %v4389_v20 = vsel %vm484_vm3, %v10738_v21, %v10776_v16  ;;  %v5020_v34 = vsel %vm1173_vm6, %v11074_v17, %v4729_v27 }
 0x5c5   : > { %4688 = vrot.lane.b32.xlu0 %v12774_v10, %s6725_s11  ;;  %4912 = vrot.lane.b32.xlu1 %v4388_v25, %s6725_s11  ;;  %v4136_v21 = vsel %vm1025_vm8, %v10762_v5, %v10800_v47  ;;  %v5012_v17 = vsel %vm1173_vm6, %v10902_v19, %v10988_v56  ;;  %v12782_v19 = vld [vmem:[#allocation55_spill] sm:$0xff] }
 0x5c6   : > { %6200 = vmatmul.mubr.msk.bf16.vlgmr.msra.gmra.mxu1 %vm12775_vm10, %v11135_v2  ;;  %vm5785_vm10 = vsmask.f32 7424 }
 0x5c7   : > { %5290 = vmatpush1.bf16.msra.mxu0 %v5044_v12  ;;  %v11153_v41 = vpop.permute.xlu0 %4944  ;;  %v11157_v6 = vpop.permute.xlu1 %4730  ;;  %5401 = vmatprep.mubr.bf16.mxu1 %v10971_v18  ;;  %v5013_v12 = vsel %vm1173_vm6, %v10988_v56, %v11026_v36 }
 0x5c8   : > { %5291 = vmatprep.subr.bf16.mxu0 %v5037_v62  ;;  %v5021_v25 = vsel %vm1173_vm6, %v4729_v27, %v11157_v6 }
 0x5c9   : > { %4950 = vrot.lane.b32.xlu0 %v4515_v11, %s6725_s11  ;;  %4938 = vrot.lane.b32.xlu1 %v4510_v32, %s6725_s11  ;;  %v12779_v11 = vld [vmem:[#allocation17_spill] sm:$0xff]  ;;  %v12781_v32 = vld [vmem:[#allocation35_spill] sm:$0xff] }
 0x5ca   : > { %v5004_v56 = vsel %vm1173_vm6, %v12782_v19, %v12781_v32 }
 0x5cb   : > { %5292 = vmatpush1.bf16.msra.mxu0 %v5036_v50  ;;  %v11170_v15 = vpop.permute.xlu0 %4910  ;;  %v11175_v23 = vpop.permute.xlu1 %4946  ;;  %v5005_v50 = vsel %vm1173_vm6, %v12781_v32, %v12780_v38  ;;  %v4011_v32 = vsel %vm1099_vm9, %v10702_v46, %v10836_v37  ;;  %v4642_v46 = vsel %vm1596_vm14, %v10812_v53, %v10774_v63 }
 0x5cc   : > { %5293 = vmatprep.subr.bf16.mxu0 %v5029_v61 }
 0x5cd   : > { %4936 = vrot.lane.b32.xlu0 %v4509_v4, %s6725_s11  ;;  %4898 = vrot.lane.b32.xlu1 %v4382_v7, %s6725_s11  ;;  %v4262_v4 = vsel %vm1445_vm13, %v10378_v0, %v10750_v49  ;;  %v4641_v7 = vsel %vm1596_vm14, %v10321_v33, %v10812_v53  ;;  %v4644_v33 = vsel %vm1596_vm14, %v10824_v3, %v10786_v40  ;;  %v12786_v49 = vld [vmem:[#allocation30_spill] sm:$0xff] }
 0x5cf   : > { %5294 = vmatpush1.bf16.msra.mxu0 %v5028_v45  ;;  %v11188_v24 = vpop.permute.xlu0 %4874  ;;  %v11192_v10 = vpop.permute.xlu1 %4908 }
 0x5d0   : > { %5295 = vmatprep.subr.bf16.mxu0 %v5021_v25  ;;  %v12784_v25 = vld [vmem:[#allocation49_spill] sm:$0xff]  ;;  %v5101_v19 = vsel %vm1173_vm6, %v11192_v10, %v11170_v15 }
 0x5d1   : > { %4914 = vrot.lane.b32.xlu0 %v4389_v20, %s6725_s11  ;;  %4878 = vrot.lane.b32.xlu1 %v4263_v54, %s6725_s11  ;;  %v12785_v20 = vld [vmem:[#allocation33_spill] sm:$0xff] }
 0x5d2   : > { %v4997_v54 = vsel %vm1173_vm6, %v12785_v20, %v12784_v25 }
 0x5d3   : > { %5296 = vmatpush1.bf16.msra.mxu0 %v5020_v34  ;;  %v11204_v42 = vpop.permute.xlu0 %4838  ;;  %v11209_v62 = vpop.permute.xlu1 %4872  ;;  %v4996_v34 = vsel %vm1173_vm6, %v12786_v49, %v12785_v20  ;;  %v12788_v20 = vld [vmem:[#allocation23_spill] sm:$0xff]  ;;  %v12789_v49 = vld [vmem:[#allocation52_spill] sm:$0xff] }
 0x5d4   : > { %5297 = vmatprep.subr.bf16.mxu0 %v5013_v12 }
 0x5d5   : > { %4958 = vrot.lane.b32.xlu0 %v12779_v11, %s6725_s11  ;;  %4842 = vrot.lane.b32.xlu1 %v4136_v21, %s6725_s11  ;;  %v5117_v21 = vsel %vm1173_vm6, %v11153_v41, %v11175_v23 }
 0x5d7   : > { %5298 = vmatpush1.bf16.msra.mxu0 %v5012_v17  ;;  %v11220_v27 = vpop.permute.xlu0 %4796  ;;  %v11225_v61 = vpop.permute.xlu1 %4836 }
 0x5d8   : > { %5299 = vmatprep.subr.bf16.mxu0 %v5005_v50  ;;  %v5116_v50 = vsel %vm1173_vm6, %v11086_v26, %v11153_v41  ;;  %v5108_v26 = vsel %vm1173_vm6, %v10914_v30, %v11000_v14 }
 0x5d9   : > { %4876 = vrot.lane.b32.xlu0 %v4262_v4, %s6725_s11  ;;  %4984 = vrot.lane.b32.xlu1 %v4641_v7, %s6725_s11  ;;  %v5109_v7 = vsel %vm1173_vm6, %v11000_v14, %v11036_v60  ;;  %v5100_v14 = vsel %vm1173_vm6, %v11076_v35, %v11192_v10  ;;  %v12791_v35 = vld [vmem:[#allocation62_spill] sm:$0xff] }
 0x5da   : > { %v5092_v10 = vsel %vm1173_vm6, %v12791_v35, %v11012_v51  ;;  %v12799_v35 = vld [vmem:[#allocation24_spill] sm:$0xff] }
 0x5db   : > { %5300 = vmatpush1.bf16.msra.mxu0 %v5004_v56  ;;  %v11238_v45 = vpop.permute.xlu0 %4760  ;;  %v11243_v0 = vpop.permute.xlu1 %4786  ;;  %v12787_v56 = vld [vmem:[#allocation58_spill] sm:$0xff] }
 0x5dc   : > { %12783 = vst [vmem:[#allocation60_spill] sm:$0xff] %v11238_v45  ;;  %5301 = vmatprep.subr.bf16.mxu0 %v4997_v54  ;;  %v4384_v54 = vsel %vm484_vm3, %v12788_v20, %v12787_v56  ;;  %v12819_v45 = vld [vmem:[#allocation48_spill] sm:$0xff] }
 0x5dd   : > { %4940 = vrot.lane.b32.xlu0 %v12776_v59, %s6725_s11  ;;  %4990 = vrot.lane.b32.xlu1 %v4644_v33, %s6725_s11  ;;  %v4135_v59 = vsel %vm1025_vm8, %v10390_v22, %v10762_v5  ;;  %v4013_v5 = vsel %vm1099_vm9, %v10798_v31, %v10668_v9  ;;  %v4643_v9 = vsel %vm1596_vm14, %v10774_v63, %v10824_v3 }
 0x5de   : > { %v5093_v33 = vsel %vm1173_vm6, %v11012_v51, %v11044_v39  ;;  %v4012_v3 = vsel %vm1099_vm9, %v10836_v37, %v10798_v31  ;;  %v4383_v37 = vsel %vm484_vm3, %v12778_v1, %v12788_v20  ;;  %v12793_v51 = vld [vmem:[#allocation34_spill] sm:$0xff]  ;;  %v12796_v20 = vld [vmem:[#allocation39_spill] sm:$0xff]  ;;  %vm12854_vm9 = vmmov %vm12467_vm4 }
 0x5df   : > { %5302 = vmatpush1.bf16.msra.mxu0 %v4996_v34  ;;  %v11254_v12 = vpop.permute.xlu0 %4788  ;;  %v11259_v17 = vpop.permute.xlu1 %4750  ;;  %v12790_v34 = vld [vmem:[#allocation46_spill] sm:$0xff] }
 0x5e0   : > { %5303 = vmatprep.subr.bf16.mxu0 %v5117_v21  ;;  %v3886_v21 = vsel %vm1293_vm2, %v12790_v34, %v12789_v49 }
 0x5e1   : > { %4840 = vrot.lane.b32.xlu0 %v4135_v59, %s6725_s11  ;;  %4808 = vrot.lane.b32.xlu1 %v4011_v32, %s6725_s11  ;;  %v5085_v32 = vsel %vm1173_vm6, %v11209_v62, %v11188_v24 }
 0x5e3   : > { %5304 = vmatpush2.bf16.msra.mxu0 %v5116_v50  ;;  %v11272_v4 = vpop.permute.xlu0 %4752  ;;  %v11277_v22 = vpop.permute.xlu1 %4714  ;;  %v12792_v50 = vld [vmem:[#allocation42_spill] sm:$0xff] }
 0x5e4   : > { %5305 = vmatprep.subr.bf16.mxu0 %v5109_v7  ;;  %v3887_v7 = vsel %vm1293_vm2, %v12789_v49, %v12792_v50 }
 0x5e5   : > { %4986 = vrot.lane.b32.xlu0 %v4642_v46, %s6725_s11  ;;  %4812 = vrot.lane.b32.xlu1 %v4013_v5, %s6725_s11  ;;  %v5084_v46 = vsel %vm1173_vm6, %v12793_v51, %v11209_v62  ;;  %v12798_v62 = vld [vmem:[#allocation80_spill] sm:$0xff]  ;;  %v12803_v51 = vld [vmem:[#allocation67_spill] sm:$0xff] }
 0x5e7   : > { %5306 = vmatpush2.bf16.msra.mxu0 %v5108_v26  ;;  %v11290_v41 = vpop.permute.xlu0 %4716  ;;  %v11295_v53 = vpop.permute.xlu1 %4932  ;;  %v12794_v26 = vld [vmem:[#allocation74_spill] sm:$0xff] }
 0x5e8   : > { %5307 = vmatprep.subr.bf16.mxu0 %v5101_v19  ;;  %v12795_v19 = vld [vmem:[#allocation38_spill] sm:$0xff] }
 0x5e9   : > { %4988 = vrot.lane.b32.xlu0 %v4643_v9, %s6725_s11  ;;  %4902 = vrot.lane.b32.xlu1 %v4384_v54, %s6725_s11  ;;  %v5077_v9 = vsel %vm1173_vm6, %v12795_v19, %v12794_v26  ;;  %v3885_v54 = vsel %vm1293_vm2, %v12796_v20, %v12790_v34  ;;  %v12804_v20 = vld [vmem:[#allocation53_spill] sm:$0xff]  ;;  %vm5780_vm2 = vcmask 1045508  }
 0x5ea   : > { %vm5782_vm0 = vmand %vm5780_vm2, %vm5781_vm1 }
 0x5eb   : > { %5308 = vmatpush2.bf16.msra.mxu0 %v5100_v14  ;;  %v11308_v30 = vpop.permute.xlu0 %4930  ;;  %v11313_v63 = vpop.permute.xlu1 %4896  ;;  %v12797_v14 = vld [vmem:[#allocation16_spill] sm:$0xff] }
 0x5ec   : > { %5309 = vmatprep.subr.bf16.mxu0 %v5093_v33  ;;  %v3758_v33 = vsel %vm1239_vm7, %v10752_v13, %v12797_v14 }
 0x5ed   : > { %4810 = vrot.lane.b32.xlu0 %v4012_v3, %s6725_s11  ;;  %4774 = vrot.lane.b32.xlu1 %v3886_v21, %s6725_s11  ;;  %v5076_v3 = vsel %vm1173_vm6, %v12798_v62, %v12795_v19  ;;  %v5069_v21 = vsel %vm1173_vm6, %v11225_v61, %v11204_v42  ;;  %v12806_v62 = vld [vmem:[#allocation64_spill] sm:$0xff] }
 0x5ef   : > { %5310 = vmatpush2.bf16.msra.mxu0 %v5092_v10  ;;  %v11326_v59 = vpop.permute.xlu0 %4894  ;;  %v11331_v31 = vpop.permute.xlu1 %4860  ;;  %v12800_v10 = vld [vmem:[#allocation63_spill] sm:$0xff] }
 0x5f0   : > { %5311 = vmatprep.subr.bf16.mxu0 %v5085_v32  ;;  %v4256_v13 = vsel %vm1445_vm13, %v12800_v10, %v12799_v35  ;;  %v12801_v32 = vld [vmem:[#allocation19_spill] sm:$0xff] }
 0x5f1   : > { %4900 = vrot.lane.b32.xlu0 %v4383_v37, %s6725_s11  ;;  %4776 = vrot.lane.b32.xlu1 %v3887_v7, %s6725_s11  ;;  %v5068_v37 = vsel %vm1173_vm6, %v11098_v43, %v11225_v61  ;;  %v12802_v7 = vld [vmem:[#allocation66_spill] sm:$0xff]  ;;  %v12807_v10 = vld [vmem:[#allocation31_spill] sm:$0xff] }
 0x5f3   : > { %5312 = vmatpush2.bf16.msra.mxu0 %v5084_v46  ;;  %v11344_v5 = vpop.permute.xlu0 %4858  ;;  %v11349_v1 = vpop.permute.xlu1 %4822  ;;  %v5061_v46 = vsel %vm1173_vm6, %v12803_v51, %v12802_v7 }
 0x5f4   : > { %5313 = vmatprep.subr.bf16.mxu0 %v5077_v9 }
 0x5f5   : > { %4772 = vrot.lane.b32.xlu0 %v3885_v54, %s6725_s11  ;;  %4736 = vrot.lane.b32.xlu1 %v3758_v33, %s6725_s11  ;;  %v3759_v54 = vsel %vm1239_vm7, %v12797_v14, %v12804_v20  ;;  %v12805_v33 = vld [vmem:[#allocation45_spill] sm:$0xff] }
 0x5f6   : > { %v3760_v43 = vsel %vm1239_vm7, %v12804_v20, %v12805_v33  ;;  %vm12841_vm7 = vmmov %vm12467_vm4 }
 0x5f7   : > { %5314 = vmatpush2.bf16.msra.mxu0 %v5076_v3  ;;  %v11362_v49 = vpop.permute.xlu0 %4824  ;;  %v4969_v34 = vpop.permute.xlu1 %4968  ;;  %v5060_v3 = vsel %vm1173_vm6, %v12806_v62, %v12803_v51  ;;  %v12809_v51 = vmov 0  }
 0x5f8   : > { %5315 = vmatprep.subr.bf16.mxu0 %v5069_v21 }
 0x5f9   : > { %4922 = vrot.lane.b32.xlu0 %v12801_v32, %s6725_s11  ;;  %4862 = vrot.lane.b32.xlu1 %v4256_v13, %s6725_s11  ;;  %v4516_v13 = vsel %vm804_vm11, %v10764_v58, %v12807_v10 }
 0x5fb   : > { %5316 = vmatpush2.bf16.msra.mxu0 %v5068_v37  ;;  %v11376_v50 = vpop.permute.xlu0 %4966  ;;  %v11381_v19 = vpop.permute.xlu1 %4970 }
 0x5fc   : > { %5317 = vmatprep.subr.bf16.mxu0 %v5061_v46  ;;  %v11385_v9 = vsel %vm1173_vm6, %v4969_v34, %v11381_v19  ;;  %v11395_v61 = vsel %vm1173_vm6, %v11376_v50, %v4969_v34  ;;  %v12808_v34 = vld [vmem:[#allocation79_spill] sm:$0xff] }
 0x5fd   : > { %4738 = vrot.lane.b32.xlu0 %v3759_v54, %s6725_s11  ;;  %4740 = vrot.lane.b32.xlu1 %v3760_v43, %s6725_s11  ;;  %v12810_v54 = vld [vmem:[#allocation26_spill] sm:$0xff] }
 0x5fe   : > { %v4257_v58 = vsel %vm1445_vm13, %v12799_v35, %v12810_v54  ;;  %v12813_v35 = vld [vmem:[#allocation77_spill] sm:$0xff] }
 0x5ff   : > { %5318 = vmatpush2.bf16.msra.mxu0 %v5060_v3  ;;  %v11402_v21 = vpop.permute.xlu0 %4972  ;;  %v4793_v14 = vpop.permute.xlu1 %4792  ;;  %v4390_v29 = vsel %vm484_vm3, %v10776_v16, %v12813_v35 }
 0x601   : > { %4904 = vrot.lane.b32.xlu0 %v12787_v56, %s6725_s11  ;;  %4952 = vrot.lane.b32.xlu1 %v4516_v13, %s6725_s11  ;;  %v12811_v56 = vld [vmem:[#allocation75_spill] sm:$0xff] }
 0x602   : > { %5320 = vmatmul.mubr.bf16.vlgmr.msra.gmra.mxu0 %v12808_v34  ;;  %v4518_v33 = vsel %vm804_vm11, %v12811_v56, %v12779_v11  ;;  %v4517_v13 = vsel %vm804_vm11, %v12807_v10, %v12811_v56  ;;  %v12817_v10 = vld [vmem:[#allocation54_spill] sm:$0xff]  ;;  %vm5777_vm11 = vsmask.f32 3328 }
 0x603   : > { %v11411_v37 = vpop.permute.xlu0 %4790  ;;  %v11413_v46 = vpop.permute.xlu1 %4794  ;;  %5442 = vmatprep.mubr.bf16.mxu0 %v12809_v51  ;;  %v4391_v56 = vsel %vm484_vm3, %v12813_v35, %v12817_v10  ;;  %v4392_v16 = vsel %vm484_vm3, %v12817_v10, %v12801_v32 }
 0x604   : > { %v11418_v20 = vsel %vm1173_vm6, %v4793_v14, %v11413_v46  ;;  %v11428_v43 = vsel %vm1173_vm6, %v11411_v37, %v4793_v14 }
 0x605   : > { %4864 = vrot.lane.b32.xlu0 %v4257_v58, %s6725_s11  ;;  %4956 = vrot.lane.b32.xlu1 %v4518_v33, %s6725_s11 }
 0x607   : > { %v4757_v62 = vpop.permute.xlu0 %4756  ;;  %v11432_v3 = vpop.permute.xlu1 %4754 }
 0x608   : > { %12812 = vst [vmem:[#allocation15_spill] sm:$0xff] %v11432_v3  ;;  %v11442_v11 = vsel %vm1173_vm6, %v11432_v3, %v4757_v62  ;;  %v12820_v3 = vld [vmem:[#allocation78_spill] sm:$0xff] }
 0x609   : > { %12814 = vst [vmem:[#allocation27_spill] sm:$0xff] %v11442_v11  ;;  %4954 = vrot.lane.b32.xlu0 %v4517_v13, %s6725_s11  ;;  %4916 = vrot.lane.b32.xlu1 %v4390_v29, %s6725_s11  ;;  %v4264_v35 = vsel %vm1445_vm13, %v10788_v8, %v12820_v3 }
 0x60b   : > { %v4721_v14 = vpop.permute.xlu0 %4720  ;;  %v11446_v58 = vpop.permute.xlu1 %4758 }
 0x60c   : > { %12815 = vst [vmem:[#allocation18_spill] sm:$0xff] %v11446_v58  ;;  %v11450_v33 = vsel %vm1173_vm6, %v4757_v62, %v11446_v58  ;;  %v4265_v62 = vsel %vm1445_vm13, %v12820_v3, %v12819_v45 }
 0x60d   : > { %12816 = vst [vmem:[#allocation70_spill] sm:$0xff] %v11450_v33  ;;  %4918 = vrot.lane.b32.xlu0 %v4391_v56, %s6725_s11  ;;  %4920 = vrot.lane.b32.xlu1 %v4392_v16, %s6725_s11  ;;  %v12824_v16 = vld [vmem:[#allocation25_spill] sm:$0xff] }
 0x60e   : > { %v4266_v58 = vsel %vm1445_vm13, %v12819_v45, %v12824_v16 }
 0x60f   : > { %v11460_v29 = vpop.permute.xlu0 %4814  ;;  %v11462_v13 = vpop.permute.xlu1 %4718 }
 0x610   : > { %12818 = vst [vmem:[#allocation71_spill] sm:$0xff] %v11462_v13  ;;  %v11472_v33 = vsel %vm1173_vm6, %v11462_v13, %v4721_v14 }
 0x611   : > { %12821 = vst [vmem:[#allocation44_spill] sm:$0xff] %v11472_v33  ;;  %4882 = vrot.lane.b32.xlu0 %v4265_v62, %s6725_s11  ;;  %4880 = vrot.lane.b32.xlu1 %v4264_v35, %s6725_s11  ;;  %v12826_v62 = vld [vmem:[#allocation20_spill] sm:$0xff] }
 0x612   : > { %v12827_v35 = vld [vmem:[#allocation76_spill] sm:$0xff] }
 0x613   : > { %v11476_v32 = vpop.permute.xlu0 %4778  ;;  %v4723_v10 = vpop.permute.xlu1 %4722  ;;  %v4138_v13 = vsel %vm1025_vm8, %v12827_v35, %v12826_v62 }
 0x614   : > { %12822 = vst [vmem:[#allocation22_spill] sm:$0xff] %v11476_v32  ;;  %v11479_v56 = vsel %vm1173_vm6, %v4721_v14, %v4723_v10  ;;  %v4137_v14 = vsel %vm1025_vm8, %v10800_v47, %v12827_v35  ;;  %v12830_v35 = vld [vmem:[#allocation36_spill] sm:$0xff]  ;;  %v12832_v32 = vld [vmem:[#allocation47_spill] sm:$0xff] }
 0x615   : > { %12823 = vst [vmem:[#allocation32_spill] sm:$0xff] %v11479_v56  ;;  %4886 = vrot.lane.b32.xlu0 %v12824_v16, %s6725_s11  ;;  %4884 = vrot.lane.b32.xlu1 %v4266_v58, %s6725_s11  ;;  %v12828_v56 = vld [vmem:[#allocation21_spill] sm:$0xff]  ;;  %v4139_v11 = vsel %vm1025_vm8, %v12826_v62, %v12832_v32 }
 0x617   : > { %v11487_v8 = vpop.permute.xlu0 %4742  ;;  %v11489_v3 = vpop.permute.xlu1 %4806 }
 0x618   : > { %12825 = vst [vmem:[#allocation72_spill] sm:$0xff] %v11487_v8  ;;  %v4258_v8 = vsel %vm1445_vm13, %v12810_v54, %v12828_v56  ;;  %v12829_v54 = vld [vmem:[#allocation43_spill] sm:$0xff] }
 0x619   : > { %4846 = vrot.lane.b32.xlu0 %v4138_v13, %s6725_s11  ;;  %4844 = vrot.lane.b32.xlu1 %v4137_v14, %s6725_s11  ;;  %v4130_v14 = vsel %vm1025_vm8, %v12830_v35, %v12829_v54 }
 0x61b   : > { %v4805_v45 = vpop.permute.xlu0 %4804  ;;  %v11499_v16 = vpop.permute.xlu1 %4682 }
 0x61c   : > { %v5054_v58 = vsel %vm1173_vm6, %v11105_v55, %v4805_v45  ;;  %v5055_v33 = vsel %vm1173_vm6, %v4805_v45, %v11489_v3  ;;  %v5047_v55 = vsel %vm1173_vm6, %v11243_v0, %v11254_v12  ;;  %v12831_v45 = vld [vmem:[#allocation65_spill] sm:$0xff] }
 0x61d   : > { %4868 = vrot.lane.b32.xlu0 %v12828_v56, %s6725_s11  ;;  %4866 = vrot.lane.b32.xlu1 %v4258_v8, %s6725_s11  ;;  %v4129_v56 = vsel %vm1025_vm8, %v12831_v45, %v12830_v35 }
 0x61e   : > { %5369 = vmatprep.subr.bf16.mxu1 %v5055_v33  ;;  %v5046_v33 = vsel %vm1173_vm6, %v10959_v44, %v11243_v0  ;;  %v5031_v0 = vsel %vm1173_vm6, %v11259_v17, %v11272_v4 }
 0x61f   : > { %5370 = vmatpush1.bf16.msra.mxu1 %v5054_v58  ;;  %v11511_v47 = vpop.permute.xlu0 %4702  ;;  %v11516_v13 = vpop.permute.xlu1 %4770 }
 0x620   : > { %5371 = vmatprep.subr.bf16.mxu1 %v5047_v55 }
 0x621   : > { %4828 = vrot.lane.b32.xlu0 %v4130_v14, %s6725_s11  ;;  %4826 = vrot.lane.b32.xlu1 %v4129_v56, %s6725_s11  ;;  %v12833_v14 = vld [vmem:[#allocation40_spill] sm:$0xff] }
 0x622   : > { %v4645_v45 = vsel %vm1596_vm14, %v10786_v40, %v12833_v14 }
 0x623   : > { %5372 = vmatpush1.bf16.msra.mxu1 %v5046_v33  ;;  %v4769_v8 = vpop.permute.xlu0 %4768  ;;  %v4733_v58 = vpop.permute.xlu1 %4732 }
 0x624   : > { %v5038_v55 = vsel %vm1173_vm6, %v11140_v57, %v4769_v8  ;;  %v5039_v35 = vsel %vm1173_vm6, %v4769_v8, %v11516_v13  ;;  %v12834_v8 = vld [vmem:[#allocation59_spill] sm:$0xff] }
 0x625   : > { %4850 = vrot.lane.b32.xlu0 %v12832_v32, %s6725_s11  ;;  %4848 = vrot.lane.b32.xlu1 %v4139_v11, %s6725_s11  ;;  %v5030_v11 = vsel %vm1173_vm6, %v10976_v48, %v11259_v17  ;;  %v4131_v40 = vsel %vm1025_vm8, %v12829_v54, %v12834_v8  ;;  %v5015_v17 = vsel %vm1173_vm6, %v11277_v22, %v11290_v41  ;;  %vm12842_vm8 = vmmov %vm12467_vm4 }
 0x626   : > { %5373 = vmatprep.subr.bf16.mxu1 %v5039_v35 }
 0x627   : > { %5374 = vmatpush1.bf16.msra.mxu1 %v5038_v55  ;;  %v4725_v44 = vpop.permute.xlu0 %4724  ;;  %v4705_v57 = vpop.permute.xlu1 %4704  ;;  %v5022_v55 = vsel %vm1173_vm6, %v11157_v6, %v4733_v58 }
 0x628   : > { %5375 = vmatprep.subr.bf16.mxu1 %v5031_v0  ;;  %v11544_v62 = vsel %vm1173_vm6, %v11511_v47, %v4705_v57  ;;  %v11550_v32 = vsel %vm1173_vm6, %v4723_v10, %v4725_v44  ;;  %v12835_v44 = vld [vmem:[#allocation29_spill] sm:$0xff]  ;;  %v12836_v0 = vld [vmem:[#allocation68_spill] sm:$0xff] }
 0x629   : > { %4994 = vrot.lane.b32.xlu0 %v12833_v14, %s6725_s11  ;;  %4992 = vrot.lane.b32.xlu1 %v4645_v45, %s6725_s11  ;;  %v4637_v14 = vsel %vm1596_vm14, %v12836_v0, %v12835_v44  ;;  %v4647_v45 = vld [vmem:[%s11884_s8] sm:$0x7] }
 0x62b   : > { %5376 = vmatpush1.bf16.msra.mxu1 %v5030_v11  ;;  %v11558_v56 = vpop.permute.xlu0 %4734  ;;  %v4687_v33 = vpop.permute.xlu1 %4686 }
 0x62c   : > { %v5023_v10 = vsel %vm1173_vm6, %v4733_v58, %v11558_v56  ;;  %v5014_v58 = vsel %vm1173_vm6, %v11026_v36, %v11277_v22 }
 0x62d   : > { %4832 = vrot.lane.b32.xlu0 %v12834_v8, %s6725_s11  ;;  %4830 = vrot.lane.b32.xlu1 %v4131_v40, %s6725_s11  ;;  %v12837_v8 = vld [vmem:[#allocation50_spill] sm:$0xff]  ;;  %v12838_v40 = vld [vmem:[#allocation28_spill] sm:$0xff] }
 0x62e   : > { %5377 = vmatprep.subr.bf16.mxu1 %v5023_v10  ;;  %v5007_v10 = vsel %vm1173_vm6, %v12838_v40, %v12837_v8  ;;  %v5006_v36 = vsel %vm1173_vm6, %v12780_v38, %v12838_v40 }
 0x62f   : > { %5378 = vmatpush1.bf16.msra.mxu1 %v5022_v55  ;;  %v4685_v48 = vpop.permute.xlu0 %4684  ;;  %v11573_v35 = vpop.permute.xlu1 %4934 }
 0x630   : > { %v11576_v54 = vsel %vm1173_vm6, %v4685_v48, %v4687_v33  ;;  %5379 = vmatprep.subr.bf16.mxu1 %v5015_v17  ;;  %v11583_v6 = vsel %vm1173_vm6, %v11499_v16, %v4685_v48  ;;  %v12839_v17 = vld [vmem:[#allocation69_spill] sm:$0xff] }
 0x631   : > { %4976 = vrot.lane.b32.xlu0 %v12835_v44, %s6725_s11  ;;  %4974 = vrot.lane.b32.xlu1 %v4637_v14, %s6725_s11  ;;  %v12840_v44 = vld [vmem:[#allocation51_spill] sm:$0xff]  ;;  %s5939_s11 = sld [smem:[#allocation4 + $0x3]] }
 0x632   : > { %v4999_v0 = vsel %vm1173_vm6, %v12840_v44, %v12839_v17 }
 0x633   : > { %5380 = vmatpush1.bf16.msra.mxu1 %v5014_v58  ;;  %v4707_v11 = vpop.permute.xlu0 %4706  ;;  %v4949_v55 = vpop.permute.xlu1 %4948 }
 0x634   : > { %5381 = vmatprep.subr.bf16.mxu1 %v5007_v10  ;;  %v11598_v48 = vsel %vm1173_vm6, %v4705_v57, %v4707_v11  ;;  %v4998_v57 = vsel %vm1173_vm6, %v12784_v25, %v12840_v44  ;;  %v5118_v40 = vsel %vm1173_vm6, %v11175_v23, %v4949_v55  ;;  %v5110_v23 = vsel %vm1173_vm6, %v11036_v60, %v11308_v30 }
 0x635   : > { %4650 = vperm.xlu1 %6465, %v4647_v45  }
 0x637   : > { %5382 = vmatpush1.bf16.msra.mxu1 %v5006_v36  ;;  %v4689_v22 = vpop.permute.xlu0 %4688  ;;  %v4913_v14 = vpop.permute.xlu1 %4912 }
 0x638   : > { %5383 = vmatprep.subr.bf16.mxu1 %v4999_v0  ;;  %v11607_v58 = vsel %vm1173_vm6, %v4687_v33, %v4689_v22  ;;  %v5111_v33 = vsel %vm1173_vm6, %v11308_v30, %v11295_v53  ;;  %v5094_v30 = vsel %vm1173_vm6, %v11044_v39, %v11326_v59  ;;  %v5078_v39 = vsel %vm1173_vm6, %v12794_v26, %v11344_v5 }
 0x63b   : > { %5384 = vmatpush1.bf16.msra.mxu1 %v4998_v57  ;;  %v11612_v45 = vpop.permute.xlu0 %4950  ;;  %v11614_v11 = vpop.permute.xlu1 %4938  ;;  %v5102_v57 = vsel %vm1173_vm6, %v11170_v15, %v4913_v14 }
 0x63c   : > { %v5119_v38 = vsel %vm1173_vm6, %v4949_v55, %v11612_v45 }
 0x63d   : > { %5385 = vmatprep.subr.bf16.mxu1 %v5119_v38 }
 0x63f   : > { %5386 = vmatpush2.bf16.msra.mxu1 %v5118_v40  ;;  %v4937_v10 = vpop.permute.xlu0 %4936  ;;  %v11623_v36 = vpop.permute.xlu1 %4898  ;;  %v5095_v40 = vsel %vm1173_vm6, %v11326_v59, %v11313_v63 }
 0x640   : > { %v11627_v25 = vsel %vm1173_vm6, %v4937_v10, %v11614_v11  ;;  %5387 = vmatprep.subr.bf16.mxu1 %v5111_v33  ;;  %v11631_v22 = vsel %vm1173_vm6, %v11573_v35, %v4937_v10 }
 0x643   : > { %5388 = vmatpush2.bf16.msra.mxu1 %v5110_v23  ;;  %v11636_v55 = vpop.permute.xlu0 %4914  ;;  %v11638_v44 = vpop.permute.xlu1 %4878 }
 0x644   : > { %v5103_v0 = vsel %vm1173_vm6, %v4913_v14, %v11636_v55 }
 0x645   : > { %5389 = vmatprep.subr.bf16.mxu1 %v5103_v0  ;;  %v5079_v0 = vsel %vm1173_vm6, %v11344_v5, %v11331_v31 }
 0x647   : > { %5390 = vmatpush2.bf16.msra.mxu1 %v5102_v57  ;;  %v11644_v38 = vpop.permute.xlu0 %4958  ;;  %v11649_v60 = vpop.permute.xlu1 %4842 }
 0x648   : > { %5391 = vmatprep.subr.bf16.mxu1 %v5095_v40 }
 0x64b   : > { %5392 = vmatpush2.bf16.msra.mxu1 %v5094_v30  ;;  %v4877_v10 = vpop.permute.xlu0 %4876  ;;  %v4985_v33 = vpop.permute.xlu1 %4984 }
 0x64c   : > { %v5086_v15 = vsel %vm1173_vm6, %v11188_v24, %v4877_v10  ;;  %v5087_v14 = vsel %vm1173_vm6, %v4877_v10, %v11638_v44  ;;  %v5134_v26 = vsel %vm1173_vm6, %v11107_v52, %v4985_v33  ;;  %v5126_v52 = vsel %vm1173_vm6, %v10990_v28, %v11376_v50 }
 0x64d   : > { %5393 = vmatprep.subr.bf16.mxu1 %v5087_v14 }
 0x64f   : > { %5394 = vmatpush2.bf16.msra.mxu1 %v5086_v15  ;;  %v11658_v23 = vpop.permute.xlu0 %4940  ;;  %v11663_v57 = vpop.permute.xlu1 %4990  ;;  %v5063_v15 = vsel %vm1173_vm6, %v11349_v1, %v11362_v49 }
 0x650   : > { %5395 = vmatprep.subr.bf16.mxu1 %v5079_v0 }
 0x653   : > { %5396 = vmatpush2.bf16.msra.mxu1 %v5078_v39  ;;  %v4841_v24 = vpop.permute.xlu0 %4840  ;;  %v4809_v59 = vpop.permute.xlu1 %4808 }
 0x654   : > { %v5070_v40 = vsel %vm1173_vm6, %v11204_v42, %v4841_v24  ;;  %v5071_v30 = vsel %vm1173_vm6, %v4841_v24, %v11649_v60  ;;  %v5062_v42 = vsel %vm1173_vm6, %v12802_v7, %v11349_v1  ;;  %v5129_v7 = vsel %vm1173_vm6, %v11381_v19, %v11402_v21 }
 0x655   : > { %5397 = vmatprep.subr.bf16.mxu1 %v5071_v30  ;;  %v5056_v30 = vsel %vm1173_vm6, %v11489_v3, %v4809_v59  ;;  %v5048_v3 = vsel %vm1173_vm6, %v11254_v12, %v11411_v37 }
 0x657   : > { %5398 = vmatpush2.bf16.msra.mxu1 %v5070_v40  ;;  %v4987_v10 = vpop.permute.xlu0 %4986  ;;  %v4813_v14 = vpop.permute.xlu1 %4812 }
 0x658   : > { %5399 = vmatprep.subr.bf16.mxu1 %v5063_v15  ;;  %v5135_v5 = vsel %vm1173_vm6, %v4985_v33, %v4987_v10  ;;  %v5059_v50 = vsel %vm1173_vm6, %v4813_v14, %v11460_v29  ;;  %v12843_v15 = vld [vmem:[#allocation27_spill] sm:$0xff] }
 0x659   : > { %5422 = vmatprep.subr.bf16.mxu0 %v5135_v5 }
 0x65a   : > { %5423 = vmatpush1.bf16.msra.mxu0 %v5134_v26 }
 0x65b   : > { %5400 = vmatpush2.bf16.msra.mxu1 %v5062_v42  ;;  %v4989_v0 = vpop.permute.xlu0 %4988  ;;  %5424 = vmatprep.subr.bf16.mxu0 %v11395_v61  ;;  %v11682_v39 = vpop.permute.xlu1 %4902  ;;  %v12847_v42 = vld [vmem:[#allocation18_spill] sm:$0xff] }
 0x65c   : > { %v5136_v24 = vsel %vm1173_vm6, %v4987_v10, %v4989_v0  ;;  %v5137_v40 = vsel %vm1173_vm6, %v4989_v0, %v11663_v57 }
 0x65d   : > { %5504 = vmatprep.subr.bf16.mxu1 %v5137_v40 }
 0x65e   : > { %5402 = vmatmul.mubr.bf16.vlgmr.msra.gmra.mxu1 %v12808_v34  ;;  %5425 = vmatpush1.bf16.msra.mxu0 %v5126_v52 }
 0x65f   : > { %5505 = vmatpush1.bf16.msra.mxu1 %v5136_v24  ;;  %v4811_v1 = vpop.permute.xlu0 %4810  ;;  %v4775_v61 = vpop.permute.xlu1 %4774  ;;  %5524 = vmatprep.mubr.bf16.mxu1 %v12809_v51 }
 0x660   : > { %5506 = vmatprep.subr.bf16.mxu1 %v5129_v7  ;;  %v5057_v33 = vsel %vm1173_vm6, %v4809_v59, %v4811_v1  ;;  %v5058_v59 = vsel %vm1173_vm6, %v4811_v1, %v4813_v14  ;;  %v12844_v14 = vld [vmem:[#allocation22_spill] sm:$0xff]  ;;  %v12849_v7 = vld [vmem:[#allocation44_spill] sm:$0xff] }
 0x661   : > { %6201 = vmatmul.mubr.msk.bf16.vlgmr.msra.gmra.mxu0 %vm12841_vm7, %v11135_v2  ;;  %5451 = vmatprep.subr.bf16.mxu0 %v5057_v33  ;;  %v12848_v1 = vld [vmem:[#allocation70_spill] sm:$0xff] }
 0x662   : > { %5452 = vmatpush1.bf16.msra.mxu0 %v5056_v30  ;;  %5483 = vmatprep.mubr.bf16.mxu0 %v10971_v18 }
 0x663   : > { %5507 = vmatpush1.bf16.msra.mxu1 %v11385_v9  ;;  %v11702_v28 = vpop.permute.xlu0 %4900  ;;  %5453 = vmatprep.subr.bf16.mxu0 %v11428_v43  ;;  %v4777_v19 = vpop.permute.xlu1 %4776  ;;  %v5051_v43 = vsel %vm1173_vm6, %v11413_v46, %v11220_v27 }
 0x664   : > { %5533 = vmatprep.subr.bf16.mxu1 %v5059_v50  ;;  %v5043_v27 = vsel %vm1173_vm6, %v4777_v19, %v12844_v14  ;;  %v5042_v5 = vsel %vm1173_vm6, %v4775_v61, %v4777_v19  ;;  %v12851_v50 = vld [vmem:[#allocation71_spill] sm:$0xff] }
 0x665   : > { %v5016_v19 = vsel %vm1173_vm6, %v11290_v41, %v12851_v50  ;;  %v12853_v41 = vld [vmem:[#allocation32_spill] sm:$0xff] }
 0x666   : > { %6202 = vmatmul.mubr.msk.bf16.vlgmr.msra.gmra.mxu1 %vm12842_vm8, %v11135_v2  ;;  %5454 = vmatpush1.bf16.msra.mxu0 %v5048_v3  ;;  %vm5786_vm8 = vmand %vm5784_vm12, %vm5785_vm10 }
 0x667   : > { %5534 = vmatpush1.bf16.msra.mxu1 %v5058_v59  ;;  %v4773_v9 = vpop.permute.xlu0 %4772  ;;  %v4737_v10 = vpop.permute.xlu1 %4736  ;;  %5565 = vmatprep.mubr.bf16.mxu1 %v10971_v18  ;;  %v12845_v18 = vld [vmem:[#allocation15_spill] sm:$0xff] }
 0x668   : > { %v5040_v29 = vsel %vm1173_vm6, %v11516_v13, %v4773_v9  ;;  %5535 = vmatprep.subr.bf16.mxu1 %v5051_v43  ;;  %v5041_v12 = vsel %vm1173_vm6, %v4773_v9, %v4775_v61  ;;  %v5032_v13 = vsel %vm1173_vm6, %v11272_v4, %v12845_v18  ;;  %v5024_v52 = vsel %vm1173_vm6, %v11558_v56, %v4737_v10  ;;  %v12850_v61 = vld [vmem:[#allocation72_spill] sm:$0xff]  ;;  %v12852_v56 = vld [vmem:[#allocation61_spill] sm:$0xff] }
 0x669   : > { %5455 = vmatprep.subr.bf16.mxu0 %v5041_v12  ;;  %v5009_v59 = vsel %vm1173_vm6, %v12852_v56, %v11511_v47  ;;  %v5000_v47 = vsel %vm1173_vm6, %v12839_v17, %v11499_v16 }
 0x66a   : > { %5456 = vmatpush1.bf16.msra.mxu0 %v5040_v29 }
 0x66b   : > { %5536 = vmatpush1.bf16.msra.mxu1 %v11418_v20  ;;  %v11721_v37 = vpop.permute.xlu0 %4922  ;;  %5457 = vmatprep.subr.bf16.mxu0 %v12843_v15  ;;  %v11726_v46 = vpop.permute.xlu1 %4862  ;;  %v12846_v20 = vld [vmem:[#allocation60_spill] sm:$0xff] }
 0x66c   : > { %5537 = vmatprep.subr.bf16.mxu1 %v5043_v27  ;;  %v5035_v0 = vsel %vm1173_vm6, %v12847_v42, %v12846_v20 }
 0x66e   : > { %5458 = vmatpush1.bf16.msra.mxu0 %v5032_v13 }
 0x66f   : > { %5538 = vmatpush1.bf16.msra.mxu1 %v5042_v5  ;;  %v4739_v26 = vpop.permute.xlu0 %4738  ;;  %v4741_v24 = vpop.permute.xlu1 %4740 }
 0x670   : > { %5539 = vmatprep.subr.bf16.mxu1 %v5035_v0  ;;  %v5025_v40 = vsel %vm1173_vm6, %v4737_v10, %v4739_v26  ;;  %v5027_v33 = vsel %vm1173_vm6, %v4741_v24, %v12850_v61  ;;  %v5026_v3 = vsel %vm1173_vm6, %v4739_v26, %v4741_v24  ;;  %v5008_v10 = vsel %vm1173_vm6, %v12837_v8, %v12852_v56 }
 0x671   : > { %5459 = vmatprep.subr.bf16.mxu0 %v5025_v40 }
 0x672   : > { %5460 = vmatpush1.bf16.msra.mxu0 %v5024_v52 }
 0x673   : > { %5540 = vmatpush1.bf16.msra.mxu1 %v12848_v1  ;;  %v11739_v4 = vpop.permute.xlu0 %4904  ;;  %5461 = vmatprep.subr.bf16.mxu0 %v12849_v7  ;;  %v4953_v30 = vpop.permute.xlu1 %4952 }
 0x674   : > { %5541 = vmatprep.subr.bf16.mxu1 %v5027_v33 }
 0x676   : > { %5462 = vmatpush1.bf16.msra.mxu0 %v5016_v19 }
 0x677   : > { %5542 = vmatpush1.bf16.msra.mxu1 %v5026_v3  ;;  %v11751_v9 = vpop.permute.xlu0 %4864  ;;  %5463 = vmatprep.subr.bf16.mxu0 %v5009_v59  ;;  %v4957_v43 = vpop.permute.xlu1 %4956 }
 0x678   : > { %5543 = vmatprep.subr.bf16.mxu1 %v11550_v32  ;;  %v5123_v16 = vsel %vm1173_vm6, %v4957_v43, %v11644_v38 }
 0x67a   : > { %5464 = vmatpush1.bf16.msra.mxu0 %v5008_v10 }
 0x67b   : > { %5544 = vmatpush1.bf16.msra.mxu1 %v12853_v41  ;;  %v4955_v29 = vpop.permute.xlu0 %4954  ;;  %5465 = vmatprep.subr.bf16.mxu0 %v11583_v6  ;;  %v4917_v12 = vpop.permute.xlu1 %4916  ;;  %v5120_v6 = vsel %vm1173_vm6, %v11612_v45, %v4953_v30 }
 0x67c   : > { %5545 = vmatprep.subr.bf16.mxu1 %v11598_v48  ;;  %v5121_v32 = vsel %vm1173_vm6, %v4953_v30, %v4955_v29 }
 0x67e   : > { %5466 = vmatpush1.bf16.msra.mxu0 %v5000_v47 }
 0x67f   : > { %5546 = vmatpush1.bf16.msra.mxu1 %v11544_v62  ;;  %v4919_v15 = vpop.permute.xlu0 %4918  ;;  %5467 = vmatprep.subr.bf16.mxu0 %v5121_v32  ;;  %v4921_v8 = vpop.permute.xlu1 %4920  ;;  %v5112_v62 = vsel %vm1173_vm6, %v11295_v53, %v11573_v35  ;;  %v5104_v53 = vsel %vm1173_vm6, %v11636_v55, %v4917_v12  ;;  %v5097_v35 = vsel %vm1173_vm6, %v11623_v36, %v11702_v28 }
 0x680   : > { %5547 = vmatprep.subr.bf16.mxu1 %v11607_v58  ;;  %v5122_v58 = vsel %vm1173_vm6, %v4955_v29, %v4957_v43  ;;  %v5105_v45 = vsel %vm1173_vm6, %v4917_v12, %v4919_v15  ;;  %v5096_v55 = vsel %vm1173_vm6, %v11313_v63, %v11623_v36  ;;  %v5106_v26 = vsel %vm1173_vm6, %v4919_v15, %v4921_v8 }
 0x681   : > { %v5098_v63 = vsel %vm1173_vm6, %v11702_v28, %v11682_v39  ;;  %v5081_v36 = vsel %vm1173_vm6, %v11726_v46, %v11751_v9 }
 0x682   : > { %5468 = vmatpush2.bf16.msra.mxu0 %v5120_v6  ;;  %v5626_v6 = vstv %s5939_s11 }
 0x683   : > { %5548 = vmatpush1.bf16.msra.mxu1 %v11576_v54  ;;  %v4883_v48 = vpop.permute.xlu0 %4882  ;;  %5469 = vmatprep.subr.bf16.mxu0 %v11631_v22  ;;  %v4881_v17 = vpop.permute.xlu1 %4880  ;;  %v5115_v22 = vsel %vm1173_vm6, %v11614_v11, %v11658_v23  ;;  %v5107_v11 = vsel %vm1173_vm6, %v4921_v8, %v11721_v37 }
 0x684   : > { %5549 = vmatprep.subr.bf16.mxu1 %v5123_v16  ;;  %v5089_v20 = vsel %vm1173_vm6, %v4881_v17, %v4883_v48  ;;  %v5088_v0 = vsel %vm1173_vm6, %v11638_v44, %v4881_v17  ;;  %v5080_v44 = vsel %vm1173_vm6, %v11331_v31, %v11726_v46 }
 0x686   : > { %5470 = vmatpush2.bf16.msra.mxu0 %v5112_v62  ;;  %v11777_v14 = vpop.f32.mrf.mxu1 }
 0x687   : > { %5550 = vmatpush2.bf16.msra.mxu1 %v5122_v58  ;;  %v4887_v54 = vpop.permute.xlu0 %4886  ;;  %5471 = vmatprep.subr.bf16.mxu0 %v5105_v45  ;;  %v4885_v38 = vpop.permute.xlu1 %4884 }
 0x688   : > { %5551 = vmatprep.subr.bf16.mxu1 %v5115_v22  ;;  %v11782_v27 = vpop.f32.mrf.mxu1  ;;  %v5091_v40 = vsel %vm1173_vm6, %v4885_v38, %v4887_v54  ;;  %v5090_v1 = vsel %vm1173_vm6, %v4883_v48, %v4885_v38 }
 0x68a   : > { %5472 = vmatpush2.bf16.msra.mxu0 %v5104_v53  ;;  %v5366_v18 = vpop.f32.mrf.mxu1 }
 0x68b   : > { %5552 = vmatpush2.bf16.msra.mxu1 %v11627_v25  ;;  %v4847_v13 = vpop.permute.xlu0 %4846  ;;  %5473 = vmatprep.subr.bf16.mxu0 %v5097_v35  ;;  %v4845_v23 = vpop.permute.xlu1 %4844  ;;  %v5099_v25 = vsel %vm1173_vm6, %v11682_v39, %v11739_v4 }
 0x68c   : > { %5553 = vmatprep.subr.bf16.mxu1 %v5107_v11  ;;  %v5367_v5 = vpop.f32.mrf.mxu1  ;;  %v5073_v39 = vsel %vm1173_vm6, %v4845_v23, %v4847_v13  ;;  %v5072_v61 = vsel %vm1173_vm6, %v11649_v60, %v4845_v23 }
 0x68e   : > { %5474 = vmatpush2.bf16.msra.mxu0 %v5096_v55 }
 0x68f   : > { %5554 = vmatpush2.bf16.msra.mxu1 %v5106_v26  ;;  %v4869_v42 = vpop.permute.xlu0 %4868  ;;  %5475 = vmatprep.subr.bf16.mxu0 %v5089_v20  ;;  %v4867_v37 = vpop.permute.xlu1 %4866 }
 0x690   : > { %5555 = vmatprep.subr.bf16.mxu1 %v5099_v25  ;;  %v5083_v4 = vsel %vm1173_vm6, %v4867_v37, %v4869_v42  ;;  %v5082_v33 = vsel %vm1173_vm6, %v11751_v9, %v4867_v37 }
 0x692   : > { %5476 = vmatpush2.bf16.msra.mxu0 %v5088_v0 }
 0x693   : > { %5556 = vmatpush2.bf16.msra.mxu1 %v5098_v63  ;;  %v4829_v24 = vpop.permute.xlu0 %4828  ;;  %5477 = vmatprep.subr.bf16.mxu0 %v5081_v36  ;;  %v4827_v52 = vpop.permute.xlu1 %4826 }
 0x694   : > { %5557 = vmatprep.subr.bf16.mxu1 %v5091_v40  ;;  %v5065_v31 = vsel %vm1173_vm6, %v4827_v52, %v4829_v24  ;;  %v5064_v19 = vsel %vm1173_vm6, %v11362_v49, %v4827_v52 }
 0x696   : > { %5478 = vmatpush2.bf16.msra.mxu0 %v5080_v44 }
 0x697   : > { %5558 = vmatpush2.bf16.msra.mxu1 %v5090_v1  ;;  %v4851_v28 = vpop.permute.xlu0 %4850  ;;  %5479 = vmatprep.subr.bf16.mxu0 %v5073_v39  ;;  %v4849_v7 = vpop.permute.xlu1 %4848 }
 0x698   : > { %5559 = vmatprep.subr.bf16.mxu1 %v5083_v4  ;;  %v5075_v30 = vsel %vm1173_vm6, %v4849_v7, %v4851_v28  ;;  %v5074_v3 = vsel %vm1173_vm6, %v4847_v13, %v4849_v7 }
 0x69a   : > { %5480 = vmatpush2.bf16.msra.mxu0 %v5072_v61 }
 0x69b   : > { %5560 = vmatpush2.bf16.msra.mxu1 %v5082_v33  ;;  %v4995_v46 = vpop.permute.xlu0 %4994  ;;  %5481 = vmatprep.subr.bf16.mxu0 %v5065_v31  ;;  %v4993_v50 = vpop.permute.xlu1 %4992 }
 0x69c   : > { %5561 = vmatprep.subr.bf16.mxu1 %v5075_v30  ;;  %v5139_v60 = vsel %vm1173_vm6, %v4993_v50, %v4995_v46  ;;  %v5138_v10 = vsel %vm1173_vm6, %v11663_v57, %v4993_v50 }
 0x69e   : > { %5482 = vmatpush2.bf16.msra.mxu0 %v5064_v19 }
 0x69f   : > { %5562 = vmatpush2.bf16.msra.mxu1 %v5074_v3  ;;  %v4833_v56 = vpop.permute.xlu0 %4832  ;;  %5586 = vmatprep.subr.bf16.mxu0 %v5139_v60  ;;  %v4831_v59 = vpop.permute.xlu1 %4830 }
 0x6a0   : > { %v5066_v9 = vsel %vm1173_vm6, %v4829_v24, %v4831_v59  ;;  %v5067_v43 = vsel %vm1173_vm6, %v4831_v59, %v4833_v56 }
 0x6a1   : > { %5484 = vmatmul.mubr.bf16.vlgmr.msra.gmra.mxu0 %v12808_v34  ;;  %5563 = vmatprep.subr.bf16.mxu1 %v5067_v43 }
 0x6a2   : > { %5587 = vmatpush1.bf16.msra.mxu0 %v5138_v10  ;;  %5606 = vmatprep.mubr.bf16.mxu0 %v12809_v51 }
 0x6a3   : > { %5564 = vmatpush2.bf16.msra.mxu1 %v5066_v9  ;;  %v4977_v49 = vpop.permute.xlu0 %4976  ;;  %v4975_v41 = vpop.permute.xlu1 %4974 }
 0x6a4   : > { %v5130_v29 = vsel %vm1173_vm6, %v11402_v21, %v4975_v41  ;;  %v5131_v12 = vsel %vm1173_vm6, %v4975_v41, %v4977_v49  ;;  %v5615_v49 = vld [vmem:[#allocation2] sm:$0x77]  ;;  %v5620_v41 = vstv %s5938_s14  ;;  %vm5776_vm6 = vcmask 1043458  }
 0x6a5   : > { %5588 = vmatprep.subr.bf16.mxu0 %v5131_v12  ;;  %v5621_v12 = vmul.f32 %v5620_v41, %v5615_v49  ;;  %vm5778_vm14 = vmand %vm5776_vm6, %vm5777_vm11 }
 0x6a6   : > { %5566 = vmatmul.mubr.bf16.vlgmr.msra.gmra.mxu1 %v12808_v34  ;;  %5589 = vmatpush1.bf16.msra.mxu0 %v5130_v29 }
 0x6a9   : > { %6203 = vmatmul.mubr.msk.bf16.vlgmr.msra.gmra.mxu0 %vm12854_vm9, %v11135_v2  ;;  %vm12858_vm9 = vcmask 1045504  }
 0x6b0   : > { %v4651_v57 = vpop.permute.xlu1 %4650 }
 0x6c2   : > { %v5321_v47 = vpop.f32.mrf.mxu0 }
 0x6c3   : > { %v5322_v32 = vadd.f32 %v5321_v47, %v4651_v57  ;;  %v5616_v47 = vld [vmem:[#allocation2 + $0x8] sm:$0x77] }
 0x6c4   : > { %v5323_v51 = vpop.f32.mrf.mxu0 }
 0x6c5   : > { %v5324_v15 = vadd.f32 %v5323_v51, %v4651_v57  ;;  %v5363_v8 = vadd.f32 %v11777_v14, %v5322_v32 }
 0x6c6   : > { %v5325_v48 = vpop.f32.mrf.mxu0 }
 0x6c7   : > { %v5365_v21 = vadd.f32 %v11782_v27, %v5324_v15  ;;  %v5627_v17 = vmul.f32 %v5626_v6, %v5363_v8  ;;  %v5622_v8 = vmul.f32 %v5620_v41, %v5616_v47 }
 0x6c8   : > { %v5326_v16 = vpop.f32.mrf.mxu0 }
 0x6c9   : > { %v5628_v62 = vmul.f32 %v5626_v6, %v5365_v21 }
 0x6cb   : > { %v5643_v34 = vcombine.low %v5627_v17, %v5628_v62 }
 0x6cd   : > { %5647 = vrot.lane.b32.xlu0 %v5643_v34, %s6724_s29 }
 0x71e   : > { %v5403_v58 = vpop.f32.mrf.mxu1 }
 0x71f   : > { %v5404_v2 = vadd.f32 %v5403_v58, %v4651_v57 }
 0x720   : > { %v5405_v45 = vpop.f32.mrf.mxu1 }
 0x721   : > { %v5444_v54 = vpop.f32.mrf.mxu0  ;;  %v5406_v22 = vadd.f32 %v5405_v45, %v4651_v57 }
 0x722   : > { %v5407_v38 = vpop.f32.mrf.mxu1  ;;  %v5445_v53 = vadd.f32 %v5444_v54, %v5404_v2  ;;  %v12855_v2 = vld [vmem:[#allocation14_spill] sm:$0xff] }
 0x723   : > { %v5446_v35 = vpop.f32.mrf.mxu0  ;;  %v5617_v38 = vld [vmem:[#allocation2 + $0x10] sm:$0x77] }
 0x724   : > { %v5408_v18 = vpop.f32.mrf.mxu1  ;;  %v5447_v14 = vadd.f32 %v5446_v35, %v5406_v22  ;;  %v5629_v11 = vmul.f32 %v5626_v6, %v5445_v53 }
 0x725   : > { %v5448_v13 = vpop.f32.mrf.mxu0  ;;  %v5623_v18 = vmul.f32 %v5620_v41, %v5617_v38 }
 0x726   : > { %v5630_v23 = vmul.f32 %v5626_v6, %v5447_v14  ;;  %v5526_v27 = vpop.f32.mrf.mxu1 }
 0x727   : > { %v5449_v5 = vpop.f32.mrf.mxu0 }
 0x728   : > { %v5644_v55 = vcombine.low %v5629_v11, %v5630_v23  ;;  %v5528_v26 = vpop.f32.mrf.mxu1  ;;  %v5619_v11 = vld [vmem:[#allocation2 + $0x20] sm:$0x7] }
 0x72a   : > { %v5530_v20 = vpop.f32.mrf.mxu1  ;;  %5649 = vrot.lane.b32.xlu1 %v5644_v55, %s6724_s29 }
 0x72c   : > { %v5531_v42 = vpop.f32.mrf.mxu1 }
 0x73f   : > { %v5648_v43 = vpop.permute.xlu0 %5647 }
 0x740   : > { %v5655_v10 = vrot.slane %v5648_v43, 4 }
 0x742   : > { %v5659_v29 = vsel %vm484_vm3, %v5655_v10, %v5648_v43 }
 0x761   : > { %v5485_v25 = vpop.f32.mrf.mxu0 }
 0x762   : > { %v5486_v37 = vadd.f32 %v5485_v25, %v4651_v57 }
 0x763   : > { %v5487_v0 = vpop.f32.mrf.mxu0 }
 0x764   : > { %v5527_v63 = vadd.f32 %v5526_v27, %v5486_v37  ;;  %v5488_v36 = vadd.f32 %v5487_v0, %v4651_v57  ;;  %v5618_v27 = vld [vmem:[#allocation2 + $0x18] sm:$0x77] }
 0x765   : > { %v5489_v24 = vpop.f32.mrf.mxu0  ;;  %v5624_v42 = vmul.f32 %v5620_v41, %v5618_v27 }
 0x766   : > { %v5529_v40 = vadd.f32 %v5528_v26, %v5488_v36  ;;  %v5567_v52 = vpop.f32.mrf.mxu1  ;;  %v5631_v1 = vmul.f32 %v5626_v6, %v5527_v63  ;;  %v5625_v26 = vmul.f32 %v5620_v41, %v5619_v11 }
 0x767   : > { %v5490_v44 = vpop.f32.mrf.mxu0  ;;  %v5568_v28 = vadd.f32 %v5567_v52, %v4651_v57 }
 0x768   : > { %v5632_v39 = vmul.f32 %v5626_v6, %v5529_v40  ;;  %v5569_v4 = vpop.f32.mrf.mxu1 }
 0x769   : > { %v5608_v7 = vpop.f32.mrf.mxu0  ;;  %v5570_v33 = vadd.f32 %v5569_v4, %v4651_v57  ;;  %v5671_v57 = vsub.f32 %v5621_v12, %v5659_v29 }
 0x76a   : > { %v5645_v61 = vcombine.low %v5631_v1, %v5632_v39  ;;  %v5571_v31 = vpop.f32.mrf.mxu1  ;;  %v5609_v46 = vadd.f32 %v5608_v7, %v5568_v28 }
 0x76b   : > { %v5610_v30 = vpop.f32.mrf.mxu0  ;;  %v6204_v51 = vclamps-f32 %v5671_v57, 1.0 }
 0x76c   : > { %v5572_v50 = vpop.f32.mrf.mxu1  ;;  %v5611_v19 = vadd.f32 %v5610_v30, %v5570_v33  ;;  %5651 = vrot.lane.b32.xlu0 %v5645_v61, %s6724_s29  ;;  %v5633_v60 = vmul.f32 %v5626_v6, %v5609_v46 }
 0x76d   : > { %v5612_v3 = vpop.f32.mrf.mxu0  ;;  %v5690_v21 = vcombine.high %v6204_v51, %v6204_v51 }
 0x76e   : > { %v5634_v56 = vmul.f32 %v5626_v6, %v5611_v19 }
 0x76f   : > { %v5613_v59 = vpop.f32.mrf.mxu0  ;;  %v6209_v62 = vpack.c.bf16 %v5690_v21, %v6204_v51 }
 0x770   : > { %v5646_v9 = vcombine.low %v5633_v60, %v5634_v56  ;;  %v5788_v60 = vld [vmem:[%s428_s18] sm:$0xff]  ;;  %v5791_v56 = vld [vmem:[%s428_s18 + $0x8] sm:$0xff] }
 0x771   : > { %v5724_v45 = vrot.slane %v6209_v62, %v12855_v2 }
 0x772   : > { %5653 = vrot.lane.b32.xlu1 %v5646_v9, %s6724_s29 }
 0x79c   : > { %v5650_v32 = vpop.permute.xlu1 %5649 }
 0x79d   : > { %v5656_v15 = vrot.slane %v5650_v32, 4 }
 0x79f   : > { %v5660_v6 = vsel %vm486_vm5, %v5655_v10, %v5656_v15 }
 0x7a0   : > { %v5661_v48 = vsel %vm484_vm3, %v5660_v6, %v5650_v32 }
 0x7a1   : > { %v5672_v16 = vsub.f32 %v5622_v8, %v5661_v48 }
 0x7a3   : > { %v6205_v17 = vclamps-f32 %v5672_v16, 1.0 }
 0x7a5   : > { %v5691_v34 = vcombine.high %v6205_v17, %v6205_v17 }
 0x7a7   : > { %v6210_v58 = vpack.c.bf16 %v5691_v34, %v6205_v17 }
 0x7a9   : > { %v5731_v54 = vrot.slane %v6210_v58, %v12855_v2 }
 0x7ab   : > { %v5732_v22 = vcombine.low %v5724_v45, %v5731_v54 }
 0x7ad   : > { %5757 = vrot.lane.b32.xlu0 %v5732_v22, %s6724_s29 }
 0x7de   : > { %v5652_v53 = vpop.permute.xlu0 %5651 }
 0x7df   : > { %v5657_v35 = vrot.slane %v5652_v53, 4 }
 0x7e1   : > { %v5662_v14 = vsel %vm486_vm5, %v5656_v15, %v5657_v35 }
 0x7e2   : > { %v5663_v13 = vsel %vm484_vm3, %v5662_v14, %v5652_v53 }
 0x7e3   : > { %v5673_v23 = vsub.f32 %v5623_v18, %v5663_v13 }
 0x7e4   : > { %v5654_v5 = vpop.permute.xlu1 %5653 }
 0x7e5   : > { %v6206_v55 = vclamps-f32 %v5673_v23, 1.0  ;;  %v5658_v20 = vrot.slane %v5654_v5, 4 }
 0x7e7   : > { %v5664_v25 = vsel %vm486_vm5, %v5657_v35, %v5658_v20  ;;  %v5675_v37 = vsub.f32 %v5625_v26, %v5658_v20  ;;  %v5692_v63 = vcombine.high %v6206_v55, %v6206_v55  ;;  %vm5774_vm5 = vsmask.f32 1280 }
 0x7e8   : > { %v5665_v0 = vsel %vm484_vm3, %v5664_v25, %v5654_v5  ;;  %vm5775_vm13 = vmand %vm1663_vm15, %vm5774_vm5 }
 0x7e9   : > { %v5674_v36 = vsub.f32 %v5624_v42, %v5665_v0  ;;  %v6208_v24 = vclamps-f32 %v5675_v37, 1.0  ;;  %v6211_v44 = vpack.c.bf16 %v5692_v63, %v6206_v55  ;;  %vm5779_vm4 = vmor %vm5778_vm14, %vm5775_vm13 }
 0x7ea   : > { %vm11860_vm7 = vmor %vm5782_vm0, %vm5779_vm4 }
 0x7eb   : > { %v6207_v40 = vclamps-f32 %v5674_v36, 1.0  ;;  %v5706_v52 = vpack.c.bf16 %v6208_v24, %v6208_v24  ;;  %v5741_v4 = vrot.slane %v6211_v44, %v12855_v2  ;;  %vm5787_vm15 = vmor %vm5786_vm8, %vm11860_vm7 }
 0x7ec   : > { %vm12859_vm5 = vmmov %vm12858_vm9 }
 0x7ed   : > { %v5693_v1 = vcombine.high %v6207_v40, %v6207_v40  ;;  %v5756_v39 = vrot.slane %v5706_v52, %v12855_v2 }
 0x7ef   : > { %v6212_v28 = vpack.c.bf16 %v5693_v1, %v6207_v40  ;;  %5761 = vrot.lane.b32.xlu0 %v5756_v39, %s6724_s29 }
 0x7f1   : > { %v5748_v7 = vrot.slane %v6212_v28, %v12855_v2 }
 0x7f3   : > { %v5749_v61 = vcombine.low %v5741_v4, %v5748_v7 }
 0x7f5   : > { %5759 = vrot.lane.b32.xlu1 %v5749_v61, %s6724_s29 }
 0x81f   : > { %v5758_v33 = vpop.permute.xlu0 %5757 }
 0x820   : > { %v5763_v50 = vrot.slane %v5758_v33, 2 }
 0x861   : > { %v5762_v31 = vpop.permute.xlu0 %5761 }
 0x862   : > { %v5765_v19 = vrot.slane %v5762_v31, 2 }
 0x867   : > { %v5760_v30 = vpop.permute.xlu1 %5759 }
 0x868   : > { %v5764_v3 = vrot.slane %v5760_v30, 2 }
 0x86a   : > { %v5767_v59 = vsel %vm12858_vm9, %v5763_v50, %v5764_v3  ;;  %v5769_v9 = vsel %vm12859_vm5, %v5764_v3, %v5765_v19 }
 0x86b   : > { %v5768_v43 = vsel %vm484_vm3, %v5758_v33, %v5767_v59  ;;  %v5770_v10 = vsel %vm484_vm3, %v5760_v30, %v5769_v9 }
 0x86c   : > { %v5789_v49 = vsel %vm5787_vm15, %v5768_v43, %v5788_v60  ;;  %v5792_v41 = vsel %vm5787_vm15, %v5770_v10, %v5791_v56 }
 0x86d   : > { %5790 = vst [vmem:[%s428_s18] sm:$0xff] %v5789_v49  ;;  %5793 = vst [vmem:[%s428_s18 + $0x8] sm:$0xff] %v5792_v41 }
 0x86e PF: > { %s22_s30 = sadd.s32 1, %s6712_s30  }
 0x86f   : > { %p19_p2 = scmp.ge.s32.totalorder %s22_s30, 4  }
 0x871   :  { %21 = sbr.rel (!%p19_p2) target bundleno = 3 (0x3), region = 110 }
 0x876   :  { %5815 = vsyncpa [#allocation5], 1 }
 0x877   :  { %5817 = vsyncpa [#allocation5 + $0x1], 1 }
 0x878   :  { %5818 = vsyncpa [#allocation9], 1 }
 0x879   :  { %5819 = vsyncpa [#allocation6], 1 }
 0x87a   :  { %5821 = vsyncpa [#allocation6 + $0x1], 1 }

// kernel: diffusion_model_forward.5
= control target key start
LH: loop header
LB: loop body
LE: loop exit
PB: predicated region body
PF: predicated region fallthrough
CT: control target
= control target key end

     0   :  { %s1999_s18 = smov 0   ;;  %s2366_s0 = inlined_call_operand.vmem [shape: bf16[2,768,196], index: 0, kind: input, shape index: {}]   ;;  %s2367_s1 = inlined_call_operand.vmem [shape: bf16[64,768], index: 1, kind: input, shape index: {}]   ;;  %s2368_s2 = inlined_call_operand.vmem [shape: f32[64,1], index: 2, kind: input, shape index: {}]   ;;  %s2369_s3 = inlined_call_operand.vmem [shape: f32[10,64], index: 3, kind: input, shape index: {}]   ;;  %s2370_s4 = inlined_call_operand.vmem [shape: f32[10,1], index: 4, kind: input, shape index: {}]   ;;  %s2371_s5 = inlined_call_operand.vmem [shape: f32[2,10,1], index: 5, kind: output, shape index: {}]  }
   0x1 LB: > { %s1542_s19 = sadd.s32 4294967295, %s1966_s18   ;;  %p1546_p0 = scmp.ge.s32.totalorder %s1966_s18, 1  ;;  %s1966_s18 = sphi %s1999_s18, %s15_s18  }
   0x2   : > { %p187_p1 = scmp.lt.s32.totalorder %s1966_s18, 3 }
   0x4   : > { %p188_p2 = pnand %p1546_p0, %p187_p1 }
   0x5   : > { %p215_p3 = scmp.lt.s32.totalorder (!%p188_p2), %s1542_s19, 1 }
   0x6   : > { %191 = sbr.rel (%p188_p2) target bundleno = 741 (0x2e5), region = 40 }
   0xb   : > { %v1846_v0 = vld [vmem:[%s2367_s1 + $0x4] ss:$24 sps:$4 sm:$0xff]   ;;  %v1968_v1 = vmov 0   ;;  %s2373_s19 = smov (!%p215_p3, %s1542_s19), 1  ;;  %vm1356_vm0 = vcmask 556032   ;;  %vm1401_vm1 = vcmask 523264  }
   0xc   : > { %1747 = vset.pattern.permute.xlu1 %v1968_v1  ;;  %1746 = vset.pattern.permute.xlu0 %v1968_v1  ;;  %v1849_v2 = vld [vmem:[%s2367_s1 + $0xc] ss:$24 sps:$4 sm:$0xff]   ;;  %s1736_s24 = smul.u32 768, %s2373_s19  ;;  %vm1485_vm2 = vcmask 1024   ;;  %vm1483_vm3 = vcmask 7168  }
   0xd   : > { %1025 = vmatprep.mubr.bf16.mxu0 %v1846_v0  ;;  %1098 = vmatprep.mubr.bf16.mxu1 %v1849_v2 }
   0xe   : > { %s2019_s27 = scalar_lea.vmem %s2366_s0, %s1736_s24  ;;  %s1674_s24 = sshll.u32 %s2373_s19, 4 }
   0xf   : > { %v1748_v3 = vld [vmem:[%s2019_s27 + $0x74] ss:$8 sps:$4 sm:$0xff]   ;;  %v1752_v5 = vld [vmem:[%s2019_s27 + $0x70] ss:$8 sps:$4 sm:$0xff]   ;;  %v1754_v7 = vld [vmem:[%s2019_s27 + $0x64] ss:$8 sps:$4 sm:$0xff]   ;;  %s224_s30 = scalar_lea.vmem %s2371_s5, %s1674_s24 }
  0x10   : > { %v1750_v4 = vld [vmem:[%s2019_s27 + $0x174] ss:$8 sps:$4 sm:$0xff]   ;;  %993 = vmatprep.subr.bf16.mxu0 %v1748_v3  ;;  %v1753_v6 = vld [vmem:[%s2019_s27 + $0x170] ss:$8 sps:$4 sm:$0xff]   ;;  %v1756_v8 = vld [vmem:[%s2019_s27 + $0x164] ss:$8 sps:$4 sm:$0xff]  }
  0x11   : > { %1066 = vmatprep.subr.bf16.mxu1 %v1750_v4  ;;  %994 = vmatpush1.bf16.msra.mxu0 %v1752_v5  ;;  %v1758_v9 = vld [vmem:[%s2019_s27 + $0x60] ss:$8 sps:$4 sm:$0xff]   ;;  %v1760_v11 = vld [vmem:[%s2019_s27 + $0x54] ss:$8 sps:$4 sm:$0xff]   ;;  %v1764_v13 = vld [vmem:[%s2019_s27 + $0x50] ss:$8 sps:$4 sm:$0xff]  }
  0x12   : > { %1067 = vmatpush1.bf16.msra.mxu1 %v1753_v6  ;;  %995 = vmatprep.subr.bf16.mxu0 %v1754_v7  ;;  %v1759_v10 = vld [vmem:[%s2019_s27 + $0x160] ss:$8 sps:$4 sm:$0xff]   ;;  %v1762_v12 = vld [vmem:[%s2019_s27 + $0x154] ss:$8 sps:$4 sm:$0xff]   ;;  %v1765_v14 = vld [vmem:[%s2019_s27 + $0x150] ss:$8 sps:$4 sm:$0xff]  }
  0x13   : > { %1068 = vmatprep.subr.bf16.mxu1 %v1756_v8  ;;  %v1766_v15 = vld [vmem:[%s2019_s27 + $0x44] ss:$8 sps:$4 sm:$0xff]   ;;  %v1770_v17 = vld [vmem:[%s2019_s27 + $0x40] ss:$8 sps:$4 sm:$0xff]   ;;  %v1772_v19 = vld [vmem:[%s2019_s27 + $0x34] ss:$8 sps:$4 sm:$0xff]  }
  0x14   : > { %v1768_v16 = vld [vmem:[%s2019_s27 + $0x144] ss:$8 sps:$4 sm:$0xff]   ;;  %v1771_v18 = vld [vmem:[%s2019_s27 + $0x140] ss:$8 sps:$4 sm:$0xff]   ;;  %v1774_v20 = vld [vmem:[%s2019_s27 + $0x134] ss:$8 sps:$4 sm:$0xff]  }
  0x15   : > { %996 = vmatpush1.bf16.msra.mxu0 %v1758_v9  ;;  %v1776_v21 = vld [vmem:[%s2019_s27 + $0x30] ss:$8 sps:$4 sm:$0xff]   ;;  %v1778_v23 = vld [vmem:[%s2019_s27 + $0x24] ss:$8 sps:$4 sm:$0xff]   ;;  %v1782_v25 = vld [vmem:[%s2019_s27 + $0x20] ss:$8 sps:$4 sm:$0xff]  }
  0x16   : > { %1069 = vmatpush1.bf16.msra.mxu1 %v1759_v10  ;;  %997 = vmatprep.subr.bf16.mxu0 %v1760_v11  ;;  %v1777_v22 = vld [vmem:[%s2019_s27 + $0x130] ss:$8 sps:$4 sm:$0xff]   ;;  %v1780_v24 = vld [vmem:[%s2019_s27 + $0x124] ss:$8 sps:$4 sm:$0xff]   ;;  %v1783_v26 = vld [vmem:[%s2019_s27 + $0x120] ss:$8 sps:$4 sm:$0xff]  }
  0x17   : > { %1070 = vmatprep.subr.bf16.mxu1 %v1762_v12  ;;  %v1784_v27 = vld [vmem:[%s2019_s27 + $0x14] ss:$8 sps:$4 sm:$0xff]   ;;  %v1788_v29 = vld [vmem:[%s2019_s27 + $0x10] ss:$8 sps:$4 sm:$0xff]   ;;  %v1790_v31 = vld [vmem:[%s2019_s27 + $0x4] ss:$8 sps:$4 sm:$0xff]  }
  0x18   : > { %v1786_v28 = vld [vmem:[%s2019_s27 + $0x114] ss:$8 sps:$4 sm:$0xff]   ;;  %v1789_v30 = vld [vmem:[%s2019_s27 + $0x110] ss:$8 sps:$4 sm:$0xff]   ;;  %v1792_v32 = vld [vmem:[%s2019_s27 + $0x104] ss:$8 sps:$4 sm:$0xff]  }
  0x19   : > { %998 = vmatpush1.bf16.msra.mxu0 %v1764_v13  ;;  %v1794_v33 = vld [vmem:[%s2019_s27] ss:$8 sps:$4 sm:$0xff]   ;;  %v1796_v35 = vld [vmem:[%s2019_s27 + $0xf4] ss:$8 sps:$4 sm:$0xff]   ;;  %v1800_v37 = vld [vmem:[%s2019_s27 + $0xf0] ss:$8 sps:$4 sm:$0xff]  }
  0x1a   : > { %1071 = vmatpush1.bf16.msra.mxu1 %v1765_v14  ;;  %999 = vmatprep.subr.bf16.mxu0 %v1766_v15  ;;  %v1795_v34 = vld [vmem:[%s2019_s27 + $0x100] ss:$8 sps:$4 sm:$0xff]   ;;  %v1798_v36 = vld [vmem:[%s2019_s27 + $0x1f4] ss:$8 sps:$4 sm:$0xff]   ;;  %v1801_v38 = vld [vmem:[%s2019_s27 + $0x1f0] ss:$8 sps:$4 sm:$0xff]  }
  0x1b   : > { %1072 = vmatprep.subr.bf16.mxu1 %v1768_v16  ;;  %v1802_v39 = vld [vmem:[%s2019_s27 + $0xe4] ss:$8 sps:$4 sm:$0xff]   ;;  %v1806_v41 = vld [vmem:[%s2019_s27 + $0xe0] ss:$8 sps:$4 sm:$0xff]   ;;  %v1808_v43 = vld [vmem:[%s2019_s27 + $0xd4] ss:$8 sps:$4 sm:$0xff]  }
  0x1c   : > { %v1804_v40 = vld [vmem:[%s2019_s27 + $0x1e4] ss:$8 sps:$4 sm:$0xff]   ;;  %v1807_v42 = vld [vmem:[%s2019_s27 + $0x1e0] ss:$8 sps:$4 sm:$0xff]   ;;  %v1810_v44 = vld [vmem:[%s2019_s27 + $0x1d4] ss:$8 sps:$4 sm:$0xff]  }
  0x1d   : > { %1000 = vmatpush1.bf16.msra.mxu0 %v1770_v17  ;;  %v1812_v45 = vld [vmem:[%s2019_s27 + $0xd0] ss:$8 sps:$4 sm:$0xff]   ;;  %v1814_v47 = vld [vmem:[%s2019_s27 + $0xc4] ss:$8 sps:$4 sm:$0xff]   ;;  %v1818_v49 = vld [vmem:[%s2019_s27 + $0xc0] ss:$8 sps:$4 sm:$0xff]  }
  0x1e   : > { %1073 = vmatpush1.bf16.msra.mxu1 %v1771_v18  ;;  %1001 = vmatprep.subr.bf16.mxu0 %v1772_v19  ;;  %v1813_v46 = vld [vmem:[%s2019_s27 + $0x1d0] ss:$8 sps:$4 sm:$0xff]   ;;  %v1816_v48 = vld [vmem:[%s2019_s27 + $0x1c4] ss:$8 sps:$4 sm:$0xff]   ;;  %v1819_v50 = vld [vmem:[%s2019_s27 + $0x1c0] ss:$8 sps:$4 sm:$0xff]  }
  0x1f   : > { %1074 = vmatprep.subr.bf16.mxu1 %v1774_v20  ;;  %v1820_v51 = vld [vmem:[%s2019_s27 + $0xb4] ss:$8 sps:$4 sm:$0xff]   ;;  %v1824_v53 = vld [vmem:[%s2019_s27 + $0xb0] ss:$8 sps:$4 sm:$0xff]   ;;  %v1826_v55 = vld [vmem:[%s2019_s27 + $0xa4] ss:$8 sps:$4 sm:$0xff]  }
  0x20   : > { %v1822_v52 = vld [vmem:[%s2019_s27 + $0x1b4] ss:$8 sps:$4 sm:$0xff]   ;;  %v1825_v54 = vld [vmem:[%s2019_s27 + $0x1b0] ss:$8 sps:$4 sm:$0xff]   ;;  %v1828_v56 = vld [vmem:[%s2019_s27 + $0x1a4] ss:$8 sps:$4 sm:$0xff]  }
  0x21   : > { %1002 = vmatpush1.bf16.msra.mxu0 %v1776_v21  ;;  %v1830_v57 = vld [vmem:[%s2019_s27 + $0xa0] ss:$8 sps:$4 sm:$0xff]   ;;  %v1832_v59 = vld [vmem:[%s2019_s27 + $0x94] ss:$8 sps:$4 sm:$0xff]   ;;  %v1836_v61 = vld [vmem:[%s2019_s27 + $0x90] ss:$8 sps:$4 sm:$0xff]  }
  0x22   : > { %1075 = vmatpush1.bf16.msra.mxu1 %v1777_v22  ;;  %1003 = vmatprep.subr.bf16.mxu0 %v1778_v23  ;;  %v1831_v58 = vld [vmem:[%s2019_s27 + $0x1a0] ss:$8 sps:$4 sm:$0xff]   ;;  %v1834_v60 = vld [vmem:[%s2019_s27 + $0x194] ss:$8 sps:$4 sm:$0xff]   ;;  %v1837_v62 = vld [vmem:[%s2019_s27 + $0x190] ss:$8 sps:$4 sm:$0xff]  }
  0x23   : > { %1076 = vmatprep.subr.bf16.mxu1 %v1780_v24  ;;  %v1838_v63 = vld [vmem:[%s2019_s27 + $0x84] ss:$8 sps:$4 sm:$0xff]   ;;  %v1842_v1 = vld [vmem:[%s2019_s27 + $0x80] ss:$8 sps:$4 sm:$0xff]   ;;  %v1852_v3 = vld [vmem:[%s2019_s27 + $0x274] ss:$8 sps:$4 sm:$0xff]  }
  0x24   : > { %v1840_v0 = vld [vmem:[%s2019_s27 + $0x184] ss:$8 sps:$4 sm:$0xff]   ;;  %v1843_v2 = vld [vmem:[%s2019_s27 + $0x180] ss:$8 sps:$4 sm:$0xff]   ;;  %v1850_v6 = vld [vmem:[%s2019_s27 + $0x270] ss:$8 sps:$4 sm:$0xff]  }
  0x25   : > { %1004 = vmatpush1.bf16.msra.mxu0 %v1782_v25  ;;  %v1844_v4 = vld [vmem:[%s2367_s1] ss:$24 sps:$4 sm:$0xff]   ;;  %v1855_v7 = vld [vmem:[%s2019_s27 + $0x264] ss:$8 sps:$4 sm:$0xff]   ;;  %v1880_v9 = vld [vmem:[%s2367_s1 + $0x3c] ss:$24 sps:$4 sm:$0xff]  }
  0x26   : > { %1077 = vmatpush1.bf16.msra.mxu1 %v1783_v26  ;;  %1005 = vmatprep.subr.bf16.mxu0 %v1784_v27  ;;  %v1847_v5 = vld [vmem:[%s2367_s1 + $0x8] ss:$24 sps:$4 sm:$0xff]   ;;  %v1874_v8 = vld [vmem:[%s2367_s1 + $0x34] ss:$24 sps:$4 sm:$0xff]   ;;  %v352_v12 = vld [vmem:[%s2368_s2 + $0x38] sm:$0xff] }
  0x27   : > { %1078 = vmatprep.subr.bf16.mxu1 %v1786_v28  ;;  %v1853_v10 = vld [vmem:[%s2019_s27 + $0x260] ss:$8 sps:$4 sm:$0xff]   ;;  %v1858_v13 = vld [vmem:[%s2019_s27 + $0x254] ss:$8 sps:$4 sm:$0xff]   ;;  %v1882_v15 = vld [vmem:[%s2367_s1 + $0x38] ss:$24 sps:$4 sm:$0xff]   ;;  %390 = vperm.xlu0 %1746, %v352_v12  }
  0x28   : > { %v350_v11 = vld [vmem:[%s2368_s2 + $0x28] sm:$0xff]  ;;  %v1856_v16 = vld [vmem:[%s2019_s27 + $0x250] ss:$8 sps:$4 sm:$0xff]   ;;  %v1886_v18 = vld [vmem:[%s2367_s1 + $0x64] ss:$24 sps:$4 sm:$0xff]  }
  0x29   : > { %1006 = vmatpush1.bf16.msra.mxu0 %v1788_v29  ;;  %v1876_v14 = vld [vmem:[%s2367_s1 + $0x30] ss:$24 sps:$4 sm:$0xff]   ;;  %380 = vperm.xlu1 %1747, %v350_v11   ;;  %v1861_v17 = vld [vmem:[%s2019_s27 + $0x244] ss:$8 sps:$4 sm:$0xff]   ;;  %v1864_v23 = vld [vmem:[%s2019_s27 + $0x234] ss:$8 sps:$4 sm:$0xff]  }
  0x2a   : > { %1079 = vmatpush1.bf16.msra.mxu1 %v1789_v30  ;;  %1007 = vmatprep.subr.bf16.mxu0 %v1790_v31  ;;  %v1892_v19 = vld [vmem:[%s2367_s1 + $0x6c] ss:$24 sps:$4 sm:$0xff]   ;;  %v1859_v20 = vld [vmem:[%s2019_s27 + $0x240] ss:$8 sps:$4 sm:$0xff]   ;;  %v351_v22 = vld [vmem:[%s2368_s2 + $0x30] sm:$0xff] }
  0x2b   : > { %1080 = vmatprep.subr.bf16.mxu1 %v1792_v32  ;;  %v349_v21 = vld [vmem:[%s2368_s2 + $0x20] sm:$0xff]  ;;  %385 = vperm.xlu0 %1746, %v351_v22   ;;  %v1862_v26 = vld [vmem:[%s2019_s27 + $0x230] ss:$8 sps:$4 sm:$0xff]   ;;  %v1898_v28 = vld [vmem:[%s2367_s1 + $0x94] ss:$24 sps:$4 sm:$0xff]  }
  0x2c   : > { %v1888_v24 = vld [vmem:[%s2367_s1 + $0x60] ss:$24 sps:$4 sm:$0xff]   ;;  %v1867_v27 = vld [vmem:[%s2019_s27 + $0x224] ss:$8 sps:$4 sm:$0xff]   ;;  %v1904_v29 = vld [vmem:[%s2367_s1 + $0x9c] ss:$24 sps:$4 sm:$0xff]  }
  0x2d   : > { %1008 = vmatpush1.bf16.msra.mxu0 %v1794_v33  ;;  %v1894_v25 = vld [vmem:[%s2367_s1 + $0x68] ss:$24 sps:$4 sm:$0xff]   ;;  %375 = vperm.xlu1 %1747, %v349_v21   ;;  %v347_v31 = vld [vmem:[%s2368_s2 + $0x10] sm:$0xff]  ;;  %v348_v32 = vld [vmem:[%s2368_s2 + $0x18] sm:$0xff] }
  0x2e   : > { %1081 = vmatpush1.bf16.msra.mxu1 %v1795_v34  ;;  %1009 = vmatprep.subr.bf16.mxu0 %v1796_v35  ;;  %v1865_v30 = vld [vmem:[%s2019_s27 + $0x220] ss:$8 sps:$4 sm:$0xff]   ;;  %v1870_v33 = vld [vmem:[%s2019_s27 + $0x214] ss:$8 sps:$4 sm:$0xff]   ;;  %v1906_v35 = vld [vmem:[%s2367_s1 + $0x98] ss:$24 sps:$4 sm:$0xff]  }
  0x2f   : > { %1082 = vmatprep.subr.bf16.mxu1 %v1798_v36  ;;  %v1900_v34 = vld [vmem:[%s2367_s1 + $0x90] ss:$24 sps:$4 sm:$0xff]   ;;  %370 = vperm.xlu0 %1746, %v348_v32  }
  0x30   : > { %v1868_v36 = vld [vmem:[%s2019_s27 + $0x210] ss:$8 sps:$4 sm:$0xff]  }
  0x31   : > { %1010 = vmatpush2.bf16.msra.mxu0 %v1800_v37  ;;  %365 = vperm.xlu1 %1747, %v347_v31   ;;  %v1873_v37 = vld [vmem:[%s2019_s27 + $0x204] ss:$8 sps:$4 sm:$0xff]  }
  0x32   : > { %1083 = vmatpush2.bf16.msra.mxu1 %v1801_v38  ;;  %1011 = vmatprep.subr.bf16.mxu0 %v1802_v39  ;;  %v1918_v38 = vld [vmem:[%s2367_s1 + $0x14] ss:$24 sps:$4 sm:$0xff]  }
  0x33   : > { %1084 = vmatprep.subr.bf16.mxu1 %v1804_v40  ;;  %v1921_v39 = vld [vmem:[%s2367_s1 + $0x74] ss:$24 sps:$4 sm:$0xff]   ;;  %v1871_v40 = vld [vmem:[%s2019_s27 + $0x200] ss:$8 sps:$4 sm:$0xff]  }
  0x35   : > { %1012 = vmatpush2.bf16.msra.mxu0 %v1806_v41  ;;  %v345_v41 = vld [vmem:[%s2368_s2] sm:$0xff] }
  0x36   : > { %1085 = vmatpush2.bf16.msra.mxu1 %v1807_v42  ;;  %1013 = vmatprep.subr.bf16.mxu0 %v1808_v43  ;;  %v346_v42 = vld [vmem:[%s2368_s2 + $0x8] sm:$0xff]  ;;  %v1879_v43 = vld [vmem:[%s2019_s27 + $0x2f4] ss:$8 sps:$4 sm:$0xff]  }
  0x37   : > { %1086 = vmatprep.subr.bf16.mxu1 %v1810_v44  ;;  %355 = vperm.xlu1 %1747, %v345_v41   ;;  %v1877_v44 = vld [vmem:[%s2019_s27 + $0x2f0] ss:$8 sps:$4 sm:$0xff]  }
  0x38   : > { %360 = vperm.xlu0 %1746, %v346_v42  }
  0x39   : > { %1014 = vmatpush2.bf16.msra.mxu0 %v1812_v45  ;;  %v1885_v45 = vld [vmem:[%s2019_s27 + $0x2e4] ss:$8 sps:$4 sm:$0xff]  }
  0x3a   : > { %1087 = vmatpush2.bf16.msra.mxu1 %v1813_v46  ;;  %1015 = vmatprep.subr.bf16.mxu0 %v1814_v47  ;;  %v1883_v46 = vld [vmem:[%s2019_s27 + $0x2e0] ss:$8 sps:$4 sm:$0xff]   ;;  %v1891_v47 = vld [vmem:[%s2019_s27 + $0x2d4] ss:$8 sps:$4 sm:$0xff]  }
  0x3b   : > { %1088 = vmatprep.subr.bf16.mxu1 %v1816_v48  ;;  %v1889_v48 = vld [vmem:[%s2019_s27 + $0x2d0] ss:$8 sps:$4 sm:$0xff]  }
  0x3d   : > { %1016 = vmatpush2.bf16.msra.mxu0 %v1818_v49  ;;  %v1897_v49 = vld [vmem:[%s2019_s27 + $0x2c4] ss:$8 sps:$4 sm:$0xff]  }
  0x3e   : > { %1089 = vmatpush2.bf16.msra.mxu1 %v1819_v50  ;;  %1017 = vmatprep.subr.bf16.mxu0 %v1820_v51  ;;  %v1895_v50 = vld [vmem:[%s2019_s27 + $0x2c0] ss:$8 sps:$4 sm:$0xff]   ;;  %v1903_v51 = vld [vmem:[%s2019_s27 + $0x2b4] ss:$8 sps:$4 sm:$0xff]  }
  0x3f   : > { %1090 = vmatprep.subr.bf16.mxu1 %v1822_v52  ;;  %v1901_v52 = vld [vmem:[%s2019_s27 + $0x2b0] ss:$8 sps:$4 sm:$0xff]  }
  0x41   : > { %1018 = vmatpush2.bf16.msra.mxu0 %v1824_v53  ;;  %v1909_v53 = vld [vmem:[%s2019_s27 + $0x2a4] ss:$8 sps:$4 sm:$0xff]  }
  0x42   : > { %1091 = vmatpush2.bf16.msra.mxu1 %v1825_v54  ;;  %1019 = vmatprep.subr.bf16.mxu0 %v1826_v55  ;;  %v1907_v54 = vld [vmem:[%s2019_s27 + $0x2a0] ss:$8 sps:$4 sm:$0xff]   ;;  %v1912_v55 = vld [vmem:[%s2019_s27 + $0x294] ss:$8 sps:$4 sm:$0xff]  }
  0x43   : > { %1092 = vmatprep.subr.bf16.mxu1 %v1828_v56  ;;  %v1910_v56 = vld [vmem:[%s2019_s27 + $0x290] ss:$8 sps:$4 sm:$0xff]  }
  0x45   : > { %1020 = vmatpush2.bf16.msra.mxu0 %v1830_v57  ;;  %v1915_v57 = vld [vmem:[%s2019_s27 + $0x284] ss:$8 sps:$4 sm:$0xff]  }
  0x46   : > { %1093 = vmatpush2.bf16.msra.mxu1 %v1831_v58  ;;  %1021 = vmatprep.subr.bf16.mxu0 %v1832_v59  ;;  %v1913_v58 = vld [vmem:[%s2019_s27 + $0x280] ss:$8 sps:$4 sm:$0xff]  }
  0x47   : > { %1094 = vmatprep.subr.bf16.mxu1 %v1834_v60  ;;  %v1916_v59 = vld [vmem:[%s2367_s1 + $0x10] ss:$24 sps:$4 sm:$0xff]  }
  0x48   : > { %v1919_v60 = vld [vmem:[%s2367_s1 + $0x70] ss:$24 sps:$4 sm:$0xff]  }
  0x49   : > { %1022 = vmatpush2.bf16.msra.mxu0 %v1836_v61  ;;  %v1922_v61 = vld [vmem:[%s2367_s1 + $0x44] ss:$24 sps:$4 sm:$0xff]  }
  0x4a   : > { %1095 = vmatpush2.bf16.msra.mxu1 %v1837_v62  ;;  %1023 = vmatprep.subr.bf16.mxu0 %v1838_v63  ;;  %v1924_v62 = vld [vmem:[%s2367_s1 + $0xa4] ss:$24 sps:$4 sm:$0xff]   ;;  %v1926_v63 = vld [vmem:[%s2367_s1 + $0x40] ss:$24 sps:$4 sm:$0xff]  }
  0x4b   : > { %1096 = vmatprep.subr.bf16.mxu1 %v1840_v0  ;;  %v1927_v0 = vld [vmem:[%s2367_s1 + $0xa0] ss:$24 sps:$4 sm:$0xff]  }
  0x4d   : > { %1024 = vmatpush2.bf16.msra.mxu0 %v1842_v1 }
  0x4e   : > { %1097 = vmatpush2.bf16.msra.mxu1 %v1843_v2  ;;  %1139 = vmatprep.subr.bf16.mxu0 %v1852_v3 }
  0x4f   : > { %1704 = vmatprep.subr.bf16.mxu1 %v1852_v3 }
  0x50   : > { %1026 = vmatmul.mubr.bf16.vlgmr.msra.gmra.mxu0 %v1844_v4 }
  0x51   : > { %1099 = vmatmul.mubr.bf16.vlgmr.msra.gmra.mxu1 %v1847_v5  ;;  %1140 = vmatpush1.bf16.msra.mxu0 %v1850_v6 }
  0x52   : > { %1720 = vmatpush1.bf16.msra.mxu1 %v1850_v6  ;;  %1141 = vmatprep.subr.bf16.mxu0 %v1855_v7 }
  0x53   : > { %1705 = vmatprep.subr.bf16.mxu1 %v1855_v7  ;;  %1035 = vmatprep.mubr.bf16.mxu0 %v1874_v8 }
  0x54   : > { %1108 = vmatprep.mubr.bf16.mxu1 %v1880_v9 }
  0x55   : > { %1142 = vmatpush1.bf16.msra.mxu0 %v1853_v10 }
  0x56   : > { %1721 = vmatpush1.bf16.msra.mxu1 %v1853_v10  ;;  %1143 = vmatprep.subr.bf16.mxu0 %v1858_v13 }
  0x57   : > { %1706 = vmatprep.subr.bf16.mxu1 %v1858_v13 }
  0x58   : > { %1036 = vmatmul.mubr.bf16.gmra.mxu0 %v1876_v14 }
  0x59   : > { %1109 = vmatmul.mubr.bf16.gmra.mxu1 %v1882_v15  ;;  %1144 = vmatpush1.bf16.msra.mxu0 %v1856_v16 }
  0x5a   : > { %1722 = vmatpush1.bf16.msra.mxu1 %v1856_v16  ;;  %1145 = vmatprep.subr.bf16.mxu0 %v1861_v17 }
  0x5b   : > { %1707 = vmatprep.subr.bf16.mxu1 %v1861_v17  ;;  %1045 = vmatprep.mubr.bf16.mxu0 %v1886_v18 }
  0x5c   : > { %1118 = vmatprep.mubr.bf16.mxu1 %v1892_v19 }
  0x5d   : > { %1146 = vmatpush1.bf16.msra.mxu0 %v1859_v20 }
  0x5e   : > { %1723 = vmatpush1.bf16.msra.mxu1 %v1859_v20  ;;  %1147 = vmatprep.subr.bf16.mxu0 %v1864_v23 }
  0x5f   : > { %1708 = vmatprep.subr.bf16.mxu1 %v1864_v23 }
  0x60   : > { %1046 = vmatmul.mubr.bf16.gmra.mxu0 %v1888_v24 }
  0x61   : > { %1119 = vmatmul.mubr.bf16.gmra.mxu1 %v1894_v25  ;;  %1148 = vmatpush1.bf16.msra.mxu0 %v1862_v26 }
  0x62   : > { %1724 = vmatpush1.bf16.msra.mxu1 %v1862_v26  ;;  %1149 = vmatprep.subr.bf16.mxu0 %v1867_v27 }
  0x63   : > { %1709 = vmatprep.subr.bf16.mxu1 %v1867_v27  ;;  %1055 = vmatprep.mubr.bf16.mxu0 %v1898_v28 }
  0x64   : > { %1128 = vmatprep.mubr.bf16.mxu1 %v1904_v29 }
  0x65   : > { %1150 = vmatpush1.bf16.msra.mxu0 %v1865_v30 }
  0x66   : > { %1725 = vmatpush1.bf16.msra.mxu1 %v1865_v30  ;;  %1151 = vmatprep.subr.bf16.mxu0 %v1870_v33 }
  0x67   : > { %1710 = vmatprep.subr.bf16.mxu1 %v1870_v33 }
  0x68   : > { %1056 = vmatmul.mubr.bf16.gmra.mxu0 %v1900_v34 }
  0x69   : > { %1129 = vmatmul.mubr.bf16.gmra.mxu1 %v1906_v35  ;;  %1152 = vmatpush1.bf16.msra.mxu0 %v1868_v36 }
  0x6a   : > { %1726 = vmatpush1.bf16.msra.mxu1 %v1868_v36  ;;  %1153 = vmatprep.subr.bf16.mxu0 %v1873_v37 }
  0x6b   : > { %1711 = vmatprep.subr.bf16.mxu1 %v1873_v37  ;;  %1171 = vmatprep.mubr.bf16.mxu0 %v1918_v38 }
  0x6c   : > { %1191 = vmatprep.mubr.bf16.mxu1 %v1921_v39 }
  0x6d   : > { %1154 = vmatpush1.bf16.msra.mxu0 %v1871_v40 }
  0x6e   : > { %1727 = vmatpush1.bf16.msra.mxu1 %v1871_v40  ;;  %1155 = vmatprep.subr.bf16.mxu0 %v1879_v43 }
  0x6f   : > { %1712 = vmatprep.subr.bf16.mxu1 %v1879_v43 }
  0x71   : > { %1156 = vmatpush2.bf16.msra.mxu0 %v1877_v44 }
  0x72   : > { %1728 = vmatpush2.bf16.msra.mxu1 %v1877_v44  ;;  %1157 = vmatprep.subr.bf16.mxu0 %v1885_v45 }
  0x73   : > { %1713 = vmatprep.subr.bf16.mxu1 %v1885_v45 }
  0x75   : > { %1158 = vmatpush2.bf16.msra.mxu0 %v1883_v46 }
  0x76   : > { %1729 = vmatpush2.bf16.msra.mxu1 %v1883_v46  ;;  %1159 = vmatprep.subr.bf16.mxu0 %v1891_v47 }
  0x77   : > { %1714 = vmatprep.subr.bf16.mxu1 %v1891_v47 }
  0x79   : > { %1160 = vmatpush2.bf16.msra.mxu0 %v1889_v48 }
  0x7a   : > { %1730 = vmatpush2.bf16.msra.mxu1 %v1889_v48  ;;  %1161 = vmatprep.subr.bf16.mxu0 %v1897_v49 }
  0x7b   : > { %1715 = vmatprep.subr.bf16.mxu1 %v1897_v49 }
  0x7d   : > { %1162 = vmatpush2.bf16.msra.mxu0 %v1895_v50 }
  0x7e   : > { %1731 = vmatpush2.bf16.msra.mxu1 %v1895_v50  ;;  %1163 = vmatprep.subr.bf16.mxu0 %v1903_v51 }
  0x7f   : > { %1716 = vmatprep.subr.bf16.mxu1 %v1903_v51 }
  0x81   : > { %1164 = vmatpush2.bf16.msra.mxu0 %v1901_v52 }
  0x82   : > { %1732 = vmatpush2.bf16.msra.mxu1 %v1901_v52  ;;  %1165 = vmatprep.subr.bf16.mxu0 %v1909_v53 }
  0x83   : > { %1717 = vmatprep.subr.bf16.mxu1 %v1909_v53 }
  0x85   : > { %1166 = vmatpush2.bf16.msra.mxu0 %v1907_v54 }
  0x86   : > { %1733 = vmatpush2.bf16.msra.mxu1 %v1907_v54  ;;  %1167 = vmatprep.subr.bf16.mxu0 %v1912_v55 }
  0x87   : > { %1718 = vmatprep.subr.bf16.mxu1 %v1912_v55 }
  0x89   : > { %1168 = vmatpush2.bf16.msra.mxu0 %v1910_v56 }
  0x8a   : > { %1734 = vmatpush2.bf16.msra.mxu1 %v1910_v56  ;;  %1169 = vmatprep.subr.bf16.mxu0 %v1915_v57 }
  0x8b   : > { %1719 = vmatprep.subr.bf16.mxu1 %v1915_v57 }
  0x8d   : > { %1170 = vmatpush2.bf16.msra.mxu0 %v1913_v58 }
  0x8e   : > { %1735 = vmatpush2.bf16.msra.mxu1 %v1913_v58 }
  0x90   : > { %1172 = vmatmul.mubr.bf16.vlgmr.msra.gmra.mxu0 %v1916_v59 }
  0x91   : > { %1192 = vmatmul.mubr.bf16.vlgmr.msra.gmra.mxu1 %v1919_v60  ;;  %1181 = vmatprep.mubr.bf16.mxu0 %v1922_v61 }
  0x92   : > { %1201 = vmatprep.mubr.bf16.mxu1 %v1924_v62 }
  0x98   : > { %1182 = vmatmul.mubr.bf16.gmra.mxu0 %v1926_v63 }
  0x99   : > { %1202 = vmatmul.mubr.bf16.gmra.mxu1 %v1927_v0 }
  0xa2   : > { %v391_v22 = vpop.permute.xlu0 %390 }
  0xa4   : > { %v381_v21 = vpop.permute.xlu1 %380 }
  0xa6   : > { %v386_v28 = vpop.permute.xlu0 %385 }
  0xa8   : > { %v376_v25 = vpop.permute.xlu1 %375 }
  0xaa   : > { %v371_v32 = vpop.permute.xlu0 %370 }
  0xac   : > { %v366_v31 = vpop.permute.xlu1 %365 }
  0xb2   : > { %v356_v35 = vpop.permute.xlu1 %355 }
  0xb3   : > { %v361_v38 = vpop.permute.xlu0 %360 }
 0x110   : > { %v1027_v1 = vpop.f32.mrf.mxu0 }
 0x111   : > { %v1100_v2 = vpop.f32.mrf.mxu1  ;;  %v1028_v39 = vadd.f32 %v1027_v1, %v356_v35 }
 0x112   : > { %v1029_v3 = vpop.f32.mrf.mxu0 }
 0x113   : > { %v1102_v4 = vpop.f32.mrf.mxu1  ;;  %v1030_v40 = vadd.f32 %v1029_v3, %v356_v35  ;;  %v1101_v48 = vadd.f32 %v1100_v2, %v1028_v39 }
 0x114   : > { %v1031_v5 = vpop.f32.mrf.mxu0 }
 0x115   : > { %v1104_v6 = vpop.f32.mrf.mxu1  ;;  %v1032_v43 = vadd.f32 %v1031_v5, %v361_v38  ;;  %v1103_v49 = vadd.f32 %v1102_v4, %v1030_v40 }
 0x116   : > { %v1033_v7 = vpop.f32.mrf.mxu0 }
 0x117   : > { %v1106_v8 = vpop.f32.mrf.mxu1  ;;  %v1034_v44 = vadd.f32 %v1033_v7, %v361_v38  ;;  %v1105_v58 = vadd.f32 %v1104_v6, %v1032_v43 }
 0x118   : > { %v1037_v9 = vpop.f32.mrf.mxu0 }
 0x119   : > { %v1110_v10 = vpop.f32.mrf.mxu1  ;;  %v1038_v47 = vadd.f32 %v1037_v9, %v366_v31  ;;  %v1107_v59 = vadd.f32 %v1106_v8, %v1034_v44 }
 0x11a   : > { %v1039_v11 = vpop.f32.mrf.mxu0 }
 0x11b   : > { %v1112_v12 = vpop.f32.mrf.mxu1  ;;  %v1040_v50 = vadd.f32 %v1039_v11, %v366_v31  ;;  %v1111_v63 = vadd.f32 %v1110_v10, %v1038_v47 }
 0x11c   : > { %v1041_v13 = vpop.f32.mrf.mxu0 }
 0x11d   : > { %v2207_v14 = vpop.f32.mrf.mxu1  ;;  %v1042_v3 = vadd.f32 %v1041_v13, %v371_v32 }
 0x11e   : > { %v1043_v15 = vpop.f32.mrf.mxu0 }
 0x11f   : > { %v2209_v16 = vpop.f32.mrf.mxu1  ;;  %v1044_v4 = vadd.f32 %v1043_v15, %v371_v32 }
 0x120   : > { %v1047_v17 = vpop.f32.mrf.mxu0 }
 0x121   : > { %v1120_v18 = vpop.f32.mrf.mxu1  ;;  %v1048_v41 = vadd.f32 %v1047_v17, %v376_v25  ;;  %v1113_v17 = vadd.f32 %v1112_v12, %v1040_v50  ;;  %v1115_v12 = vadd.f32 %v2207_v14, %v1042_v3 }
 0x122   : > { %v1049_v19 = vpop.f32.mrf.mxu0 }
 0x123   : > { %v1122_v20 = vpop.f32.mrf.mxu1  ;;  %v1050_v42 = vadd.f32 %v1049_v19, %v376_v25  ;;  %v1121_v54 = vadd.f32 %v1120_v18, %v1048_v41 }
 0x124   : > { %v1051_v23 = vpop.f32.mrf.mxu0 }
 0x125   : > { %v1124_v24 = vpop.f32.mrf.mxu1  ;;  %v1052_v51 = vadd.f32 %v1051_v23, %v381_v21  ;;  %v1123_v55 = vadd.f32 %v1122_v20, %v1050_v42 }
 0x126   : > { %v1053_v26 = vpop.f32.mrf.mxu0 }
 0x127   : > { %v1126_v27 = vpop.f32.mrf.mxu1  ;;  %v1054_v56 = vadd.f32 %v1053_v26, %v381_v21  ;;  %v1125_v5 = vadd.f32 %v1124_v24, %v1052_v51 }
 0x128   : > { %v1057_v29 = vpop.f32.mrf.mxu0 }
 0x129   : > { %v1130_v30 = vpop.f32.mrf.mxu1  ;;  %v1058_v57 = vadd.f32 %v1057_v29, %v386_v28  ;;  %v1127_v6 = vadd.f32 %v1126_v27, %v1054_v56 }
 0x12a   : > { %v1059_v33 = vpop.f32.mrf.mxu0 }
 0x12b   : > { %v1132_v34 = vpop.f32.mrf.mxu1  ;;  %v1060_v7 = vadd.f32 %v1059_v33, %v386_v28  ;;  %v1131_v8 = vadd.f32 %v1130_v30, %v1058_v57 }
 0x12c   : > { %v1061_v36 = vpop.f32.mrf.mxu0 }
 0x12d   : > { %v1134_v37 = vpop.f32.mrf.mxu1  ;;  %v1062_v18 = vadd.f32 %v1061_v36, %v391_v22  ;;  %v1133_v27 = vadd.f32 %v1132_v34, %v1060_v7 }
 0x12e   : > { %v1063_v45 = vpop.f32.mrf.mxu0 }
 0x12f   : > { %v1136_v46 = vpop.f32.mrf.mxu1  ;;  %v1064_v19 = vadd.f32 %v1063_v45, %v391_v22  ;;  %v1117_v22 = vadd.f32 %v2209_v16, %v1044_v4  ;;  %v1135_v31 = vadd.f32 %v1134_v37, %v1062_v18 }
 0x131   : > { %v1137_v36 = vadd.f32 %v1136_v46, %v1064_v19 }
 0x150   : > { %v1173_v52 = vpop.f32.mrf.mxu0 }
 0x151   : > { %v1193_v53 = vpop.f32.mrf.mxu1  ;;  %v2211_v60 = vadd.f32 %v1173_v52, %v1101_v48 }
 0x152   : > { %v1175_v61 = vpop.f32.mrf.mxu0  ;;  %v2213_v0 = vadd.f32 %v1193_v53, %v1121_v54 }
 0x153   : > { %v1195_v62 = vpop.f32.mrf.mxu1  ;;  %v2215_v1 = vadd.f32 %v1175_v61, %v1103_v49  ;;  %v1228_v20 = vmul.f32 0.044715, %v2211_v60 }
 0x154   : > { %v2217_v2 = vadd.f32 %v1195_v62, %v1123_v55  ;;  %v1177_v9 = vpop.f32.mrf.mxu0  ;;  %v1236_v13 = vmul.f32 0.044715, %v2213_v0 }
 0x155   : > { %v1197_v11 = vpop.f32.mrf.mxu1  ;;  %v2220_v10 = vadd.f32 %v1177_v9, %v1105_v58  ;;  %v1229_v15 = vmul.f32 0.044715, %v2215_v1  ;;  %v2238_v38 = vmul.f32 %v1228_v20, %v2211_v60 }
 0x156   : > { %v2222_v21 = vadd.f32 %v1197_v11, %v1125_v5  ;;  %v1179_v23 = vpop.f32.mrf.mxu0  ;;  %v1237_v24 = vmul.f32 0.044715, %v2217_v2  ;;  %v2244_v40 = vmul.f32 %v1236_v13, %v2213_v0 }
 0x157   : > { %v1199_v25 = vpop.f32.mrf.mxu1  ;;  %v2232_v32 = vadd.f32 %v1179_v23, %v1107_v59  ;;  %v1230_v14 = vmul.f32 0.044715, %v2220_v10  ;;  %v2247_v37 = vmul.f32 %v1229_v15, %v2215_v1 }
 0x158   : > { %v2227_v26 = vadd.f32 %v1199_v25, %v1127_v6  ;;  %v1238_v28 = vmul.f32 0.044715, %v2222_v21  ;;  %v1183_v29 = vpop.f32.mrf.mxu0  ;;  %v2250_v41 = vmul.f32 %v1237_v24, %v2217_v2 }
 0x159   : > { %v1203_v30 = vpop.f32.mrf.mxu1  ;;  %v2241_v39 = vadd.f32 %v1183_v29, %v1111_v63  ;;  %v1231_v49 = vmul.f32 0.044715, %v2232_v32  ;;  %v1246_v53 = vmul.f32 %v1230_v14, %v2220_v10 }
 0x15a   : > { %v1239_v33 = vmul.f32 0.044715, %v2227_v26  ;;  %v2235_v35 = vadd.f32 %v1203_v30, %v1131_v8  ;;  %v1185_v16 = vpop.f32.mrf.mxu0  ;;  %v1254_v43 = vmul.f32 %v1238_v28, %v2222_v21 }
 0x15b   : > { %v1205_v34 = vpop.f32.mrf.mxu1  ;;  %v2255_v45 = vadd.f32 %v1185_v16, %v1113_v17  ;;  %v1232_v54 = vmul.f32 0.044715, %v2241_v39  ;;  %v1247_v8 = vmul.f32 %v1231_v49, %v2232_v32 }
 0x15c   : > { %v1240_v42 = vmul.f32 0.044715, %v2235_v35  ;;  %v1255_v44 = vmul.f32 %v1239_v33, %v2227_v26  ;;  %v2257_v46 = vadd.f32 %v1205_v34, %v1133_v27  ;;  %v1187_v47 = vpop.f32.mrf.mxu0  ;;  %v1270_v5 = vmul.f32 %v1254_v43, %v2222_v21 }
 0x15d   : > { %v1207_v48 = vpop.f32.mrf.mxu1  ;;  %v2261_v51 = vadd.f32 %v1187_v47, %v1115_v12  ;;  %v1233_v55 = vmul.f32 0.044715, %v2255_v45  ;;  %v1248_v18 = vmul.f32 %v1232_v54, %v2241_v39  ;;  %v1262_v47 = vmul.f32 %v1246_v53, %v2220_v10 }
 0x15e   : > { %v1256_v50 = vmul.f32 %v1240_v42, %v2235_v35  ;;  %v2263_v52 = vadd.f32 %v1207_v48, %v1135_v31  ;;  %v1241_v56 = vmul.f32 0.044715, %v2257_v46  ;;  %v1189_v57 = vpop.f32.mrf.mxu0  ;;  %v1271_v7 = vmul.f32 %v1255_v44, %v2227_v26 }
 0x15f   : > { %v1209_v58 = vpop.f32.mrf.mxu1  ;;  %v1234_v59 = vmul.f32 0.044715, %v2261_v51  ;;  %v2271_v62 = vadd.f32 %v1189_v57, %v1117_v22  ;;  %v1249_v23 = vmul.f32 %v1233_v55, %v2255_v45  ;;  %v1286_v27 = vadd.f32 %v1270_v5, %v2222_v21 }
 0x160   : > { %v1242_v61 = vmul.f32 0.044715, %v2263_v52  ;;  %v2273_v63 = vadd.f32 %v1209_v58, %v1137_v36  ;;  %v1257_v3 = vmul.f32 %v1241_v56, %v2257_v46  ;;  %v1272_v4 = vmul.f32 %v1256_v50, %v2235_v35 }
 0x161   : > { %v1250_v9 = vmul.f32 %v1234_v59, %v2261_v51  ;;  %v1235_v17 = vmul.f32 0.044715, %v2271_v62  ;;  %v1287_v31 = vadd.f32 %v1271_v7, %v2227_v26  ;;  %v1302_v14 = vmul.f32 0.7978846, %v1286_v27 }
 0x162   : > { %v1258_v11 = vmul.f32 %v1242_v61, %v2263_v52  ;;  %v1243_v6 = vmul.f32 0.044715, %v2273_v63  ;;  %v1273_v19 = vmul.f32 %v1257_v3, %v2257_v46  ;;  %v1288_v20 = vadd.f32 %v1272_v4, %v2235_v35 }
 0x163   : > { %v1251_v25 = vmul.f32 %v1235_v17, %v2271_v62  ;;  %v1266_v22 = vmul.f32 %v1250_v9, %v2261_v51  ;;  %v1303_v43 = vmul.f32 0.7978846, %v1287_v31  ;;  %v1263_v48 = vmul.f32 %v1247_v8, %v2232_v32 }
 0x164   : > { %v1259_v13 = vmul.f32 %v1243_v6, %v2273_v63  ;;  %v1274_v15 = vmul.f32 %v1258_v11, %v2263_v52  ;;  %v1289_v24 = vadd.f32 %v1273_v19, %v2257_v46  ;;  %v1304_v12 = vmul.f32 0.7978846, %v1288_v20 }
 0x165   : > { %v1267_v30 = vmul.f32 %v1251_v25, %v2271_v62  ;;  %v1282_v36 = vadd.f32 %v1266_v22, %v2261_v51  ;;  %v1268_v54 = vmul.f32 %v2244_v40, %v2213_v0  ;;  %v1278_v55 = vadd.f32 %v1262_v47, %v2220_v10 }
 0x166   : > { %v1275_v28 = vmul.f32 %v1259_v13, %v2273_v63  ;;  %v1290_v29 = vadd.f32 %v1274_v15, %v2263_v52  ;;  %v1305_v33 = vmul.f32 0.7978846, %v1289_v24  ;;  %1928 = vtanh.f32 %v1304_v12 }
 0x167   : > { %v1283_v42 = vadd.f32 %v1267_v30, %v2271_v62  ;;  %v1298_v44 = vmul.f32 0.7978846, %v1282_v36  ;;  %v1279_v56 = vadd.f32 %v1263_v48, %v2232_v32  ;;  %v1269_v57 = vmul.f32 %v2250_v41, %v2217_v2 }
 0x168   : > { %v1291_v16 = vadd.f32 %v1275_v28, %v2273_v63  ;;  %v1306_v34 = vmul.f32 0.7978846, %v1290_v29  ;;  %1930 = vtanh.f32 %v1305_v33  ;;  %v1284_v58 = vadd.f32 %v1268_v54, %v2213_v0 }
 0x169   : > { %v1299_v50 = vmul.f32 0.7978846, %v1283_v42  ;;  %v1294_v53 = vmul.f32 0.7978846, %v1278_v55  ;;  %v1295_v59 = vmul.f32 0.7978846, %v1279_v56  ;;  %v1285_v61 = vadd.f32 %v1269_v57, %v2217_v2 }
 0x16a   : > { %v1307_v49 = vmul.f32 0.7978846, %v1291_v16  ;;  %1932 = vtanh.f32 %v1306_v34  ;;  %v1300_v3 = vmul.f32 0.7978846, %v1284_v58  ;;  %v1264_v40 = vmul.f32 %v1248_v18, %v2241_v39 }
 0x16b   : > { %1934 = vtanh.f32 %v1298_v44  ;;  %v1265_v4 = vmul.f32 %v1249_v23, %v2255_v45  ;;  %v1301_v5 = vmul.f32 0.7978846, %v1285_v61  ;;  %v1260_v7 = vmul.f32 %v2238_v38, %v2211_v60 }
 0x16c   : > { %1936 = vtanh.f32 %v1307_v49  ;;  %v1261_v41 = vmul.f32 %v2247_v37, %v2215_v1  ;;  %v1280_v9 = vadd.f32 %v1264_v40, %v2241_v39  ;;  %v1225_v13 = vmul.f32 0.5, %v2257_v46 }
 0x16d   : > { %1938 = vtanh.f32 %v1299_v50  ;;  %v1281_v11 = vadd.f32 %v1265_v4, %v2255_v45  ;;  %v1276_v17 = vadd.f32 %v1260_v7, %v2211_v60  ;;  %v1224_v12 = vmul.f32 0.5, %v2235_v35 }
 0x16e   : > { %1940 = vtanh.f32 %v1302_v14  ;;  %v1277_v6 = vadd.f32 %v1261_v41, %v2215_v1  ;;  %v1296_v8 = vmul.f32 0.7978846, %v1280_v9  ;;  %v1222_v29 = vmul.f32 0.5, %v2222_v21 }
 0x16f   : > { %1942 = vtanh.f32 %v1303_v43  ;;  %v1297_v18 = vmul.f32 0.7978846, %v1281_v11  ;;  %v1292_v38 = vmul.f32 0.7978846, %v1276_v17  ;;  %v1227_v33 = vmul.f32 0.5, %v2273_v63 }
 0x170   : > { %1944 = vtanh.f32 %v1294_v53  ;;  %v1293_v19 = vmul.f32 0.7978846, %v1277_v6  ;;  %v1226_v34 = vmul.f32 0.5, %v2263_v52  ;;  %v1219_v35 = vmul.f32 0.5, %v2271_v62 }
 0x171   : > { %1946 = vtanh.f32 %v1295_v59  ;;  %v1218_v21 = vmul.f32 0.5, %v2261_v51  ;;  %v1223_v48 = vmul.f32 0.5, %v2227_v26  ;;  %v1215_v62 = vmul.f32 0.5, %v2232_v32 }
 0x172   : > { %1948 = vtanh.f32 %v1300_v3  ;;  %v1214_v4 = vmul.f32 0.5, %v2220_v10 }
 0x173   : > { %1950 = vtanh.f32 %v1301_v5  ;;  %v1929_v20 = vpop.eup %1928  ;;  %v1221_v5 = vmul.f32 0.5, %v2217_v2 }
 0x174   : > { %1952 = vtanh.f32 %v1296_v8  ;;  %v1336_v23 = vadd.f32 1.0, %v1929_v20 }
 0x175   : > { %1954 = vtanh.f32 %v1297_v18  ;;  %v1931_v37 = vpop.eup %1930  ;;  %v1220_v18 = vmul.f32 0.5, %v2213_v0  ;;  %v1213_v0 = vmul.f32 0.5, %v2215_v1  ;;  %v1397_v1 = vld [vmem:[%s2369_s3] sm:$0xff] }
 0x176   : > { %v1337_v15 = vadd.f32 1.0, %v1931_v37  ;;  %1956 = vtanh.f32 %v1293_v19  ;;  %v1352_v31 = vmul.f32 %v1336_v23, %v1224_v12  ;;  %v1217_v19 = vmul.f32 0.5, %v2255_v45  ;;  %1701 = vmatprep.mubr.msk.f32.mxu1 %vm1401_vm1, %v1397_v1 }
 0x177   : > { %v1933_v25 = vpop.eup %1932  ;;  %1958 = vtanh.f32 %v1292_v38  ;;  %v1216_v45 = vmul.f32 0.5, %v2241_v39 }
 0x178   : > { %v1935_v24 = vpop.eup %1934  ;;  %v1353_v27 = vmul.f32 %v1337_v15, %v1225_v13  ;;  %v1338_v28 = vadd.f32 1.0, %v1933_v25 }
 0x179   : > { %v1937_v22 = vpop.eup %1936  ;;  %v1330_v14 = vadd.f32 1.0, %v1935_v24 }
 0x17a   : > { %v1939_v30 = vpop.eup %1938  ;;  %v1339_v36 = vadd.f32 1.0, %v1937_v22  ;;  %v1381_v46 = vsel %vm1356_vm0, %v1353_v27, 0.0  ;;  %v1354_v50 = vmul.f32 %v1338_v28, %v1226_v34 }
 0x17b   : > { %v1941_v16 = vpop.eup %1940  ;;  %v1331_v42 = vadd.f32 1.0, %v1939_v30  ;;  %v1382_v44 = vadd.f32 %v1381_v46, %v1352_v31  ;;  %v1346_v52 = vmul.f32 %v1330_v14, %v1218_v21 }
 0x17c   : > { %v1943_v43 = vpop.eup %1942  ;;  %v1355_v47 = vmul.f32 %v1339_v36, %v1227_v33  ;;  %v1334_v54 = vadd.f32 1.0, %v1941_v16  ;;  %v1212_v36 = vmul.f32 0.5, %v2211_v60 }
 0x17d   : > { %v1945_v49 = vpop.eup %1944  ;;  %v1347_v63 = vmul.f32 %v1331_v42, %v1219_v35  ;;  %v1335_v55 = vadd.f32 1.0, %v1943_v43  ;;  %1383 = vadd.xlane.f32.xlu1 %v1382_v44 }
 0x17e   : > { %v1947_v56 = vpop.eup %1946  ;;  %v1385_v57 = vsel %vm1356_vm0, %v1355_v47, 0.0  ;;  %v1326_v58 = vadd.f32 1.0, %v1945_v49  ;;  %v1350_v9 = vmul.f32 %v1334_v54, %v1222_v29 }
 0x17f   : > { %v1949_v53 = vpop.eup %1948  ;;  %v1386_v59 = vadd.f32 %v1385_v57, %v1354_v50  ;;  %v1369_v61 = vsel %vm1356_vm0, %v1347_v63, 0.0  ;;  %v1351_v51 = vmul.f32 %v1335_v55, %v1223_v48  ;;  %v1327_v3 = vadd.f32 1.0, %v1947_v56  ;;  %v1398_v57 = vld [vmem:[%s2369_s3 + $0x8] sm:$0x3] }
 0x180   : > { %v1951_v26 = vpop.eup %1950  ;;  %v1370_v40 = vadd.f32 %v1369_v61, %v1346_v52  ;;  %v1332_v7 = vadd.f32 1.0, %v1949_v53  ;;  %v1342_v8 = vmul.f32 %v1326_v58, %v1214_v4  ;;  %v1400_v52 = vld [vmem:[%s2370_s4 + $0x8] sm:$0x3]  ;;  %v1399_v58 = vld [vmem:[%s2370_s4] sm:$0xff] }
 0x181   : > { %v1953_v41 = vpop.eup %1952  ;;  %1387 = vadd.xlane.f32.xlu0 %v1386_v59  ;;  %v1377_v11 = vsel %vm1356_vm0, %v1351_v51, 0.0  ;;  %v1343_v32 = vmul.f32 %v1327_v3, %v1215_v62  ;;  %v1333_v17 = vadd.f32 1.0, %v1951_v26 }
 0x182   : > { %v1955_v6 = vpop.eup %1954  ;;  %1371 = vadd.xlane.f32.xlu1 %v1370_v40  ;;  %v1378_v20 = vadd.f32 %v1377_v11, %v1350_v9  ;;  %v1348_v25 = vmul.f32 %v1332_v7, %v1220_v18  ;;  %v1328_v15 = vadd.f32 1.0, %v1953_v41 }
 0x183   : > { %v1361_v10 = vsel %vm1356_vm0, %v1343_v32, 0.0  ;;  %v1349_v38 = vmul.f32 %v1333_v17, %v1221_v5  ;;  %v1329_v2 = vadd.f32 1.0, %v1955_v6  ;;  %v1957_v37 = vpop.eup %1956 }
 0x184   : > { %v1362_v23 = vadd.f32 %v1361_v10, %v1342_v8  ;;  %v1325_v12 = vadd.f32 1.0, %v1957_v37  ;;  %v1959_v22 = vpop.eup %1958  ;;  %v1344_v30 = vmul.f32 %v1328_v15, %v1216_v45 }
 0x185   : > { %1379 = vadd.xlane.f32.xlu0 %v1378_v20  ;;  %v1373_v13 = vsel %vm1356_vm0, %v1349_v38, 0.0  ;;  %v1345_v24 = vmul.f32 %v1329_v2, %v1217_v19  ;;  %v1324_v31 = vadd.f32 1.0, %v1959_v22 }
 0x186   : > { %1363 = vadd.xlane.f32.xlu1 %v1362_v23  ;;  %v1374_v27 = vadd.f32 %v1373_v13, %v1348_v25  ;;  %v1341_v29 = vmul.f32 %v1325_v12, %v1213_v0 }
 0x187   : > { %v1365_v28 = vsel %vm1356_vm0, %v1345_v24, 0.0  ;;  %v1340_v16 = vmul.f32 %v1324_v31, %v1212_v36 }
 0x188   : > { %v1366_v33 = vadd.f32 %v1365_v28, %v1344_v30  ;;  %v1357_v14 = vsel %vm1356_vm0, %v1341_v29, 0.0 }
 0x189   : > { %1375 = vadd.xlane.f32.xlu0 %v1374_v27  ;;  %v1358_v46 = vadd.f32 %v1357_v14, %v1340_v16 }
 0x18d   : > { %1367 = vadd.xlane.f32.xlu0 %v1366_v33 }
 0x191   : > { %1359 = vadd.xlane.f32.xlu0 %v1358_v46 }
 0x206   : > { %v1384_v39 = vpop.xlane.xlu1 %1383 }
 0x207   : > { %v1395_v42 = vmul.f32 0.0051020407, %v1384_v39 }
 0x20a   : > { %v1388_v34 = vpop.xlane.xlu0 %1387 }
 0x20b   : > { %v1396_v35 = vmul.f32 0.0051020407, %v1388_v34  ;;  %v1372_v44 = vpop.xlane.xlu1 %1371 }
 0x20c   : > { %v1392_v48 = vmul.f32 0.0051020407, %v1372_v44 }
 0x20d   : > { %1685 = vmatprep.subr.mxu1 %v1396_v35 }
 0x20e   : > { %1686 = vmatpush3.msra.mxu1 %v1396_v35  ;;  %v1380_v60 = vpop.xlane.xlu0 %1379 }
 0x20f   : > { %v1394_v43 = vmul.f32 0.0051020407, %v1380_v60  ;;  %1687 = vmatprep.subr.mxu1 %v1395_v42  ;;  %v1364_v49 = vpop.xlane.xlu1 %1363 }
 0x210   : > { %1688 = vmatpush3.msra.mxu1 %v1395_v42  ;;  %v1390_v54 = vmul.f32 0.0051020407, %v1364_v49 }
 0x211   : > { %1689 = vmatprep.subr.mxu1 %v1394_v43 }
 0x212   : > { %1690 = vmatpush3.msra.mxu1 %v1394_v43  ;;  %v1376_v47 = vpop.xlane.xlu0 %1375 }
 0x213   : > { %v1393_v21 = vmul.f32 0.0051020407, %v1376_v47 }
 0x215   : > { %1691 = vmatprep.subr.mxu1 %v1393_v21 }
 0x216   : > { %1692 = vmatpush3.msra.mxu1 %v1393_v21  ;;  %v1368_v50 = vpop.xlane.xlu0 %1367 }
 0x217   : > { %v1391_v63 = vmul.f32 0.0051020407, %v1368_v50  ;;  %1693 = vmatprep.subr.mxu1 %v1392_v48 }
 0x218   : > { %1694 = vmatpush3.msra.mxu1 %v1392_v48 }
 0x219   : > { %1695 = vmatprep.subr.mxu1 %v1391_v63 }
 0x21a   : > { %1696 = vmatpush3.msra.mxu1 %v1391_v63  ;;  %v1360_v55 = vpop.xlane.xlu0 %1359 }
 0x21b   : > { %v1389_v56 = vmul.f32 0.0051020407, %v1360_v55  ;;  %1697 = vmatprep.subr.mxu1 %v1390_v54 }
 0x21c   : > { %1698 = vmatpush3.msra.mxu1 %v1390_v54 }
 0x21d   : > { %1699 = vmatprep.subr.mxu1 %v1389_v56 }
 0x21e   : > { %1700 = vmatpush3.msra.mxu1 %v1389_v56 }
 0x21f   : > { %1702 = vmatmul.mubr.msk.f32.vlgmr.msra.gmra.mxu1 %vm1401_vm1, %v1398_v57 }
 0x2df   : > { %v1703_v62 = vpop.f32.mrf.mxu1 }
 0x2e0   : > { %v1480_v53 = vadd.f32 %v1703_v62, %v1400_v52 }
 0x2e1   : > { %v1474_v59 = vpop.f32.mrf.mxu1 }
 0x2e2   : > { %1486 = vst.msk [vmem:[%s224_s30 + $0x8] sm:$0x3] %vm1485_vm2, %v1480_v53  ;;  %v1475_v61 = vadd.f32 %v1474_v59, %v1399_v58 }
 0x2e4   : > { %1484 = vst.msk [vmem:[%s224_s30] sm:$0xff] %vm1483_vm3, %v1475_v61 }
 0x2e5 PF: > { %s15_s18 = sadd.s32 1, %s1966_s18  }
 0x2e6   : > { %p12_p4 = scmp.ge.s32.totalorder %s15_s18, 4  }
 0x2e8   :  { %14 = sbr.rel (!%p12_p4) target bundleno = 1 (0x1), region = 70 }

</bundles_post_ra>
